<compile_context>
chip_gen: v5e
topology: v5e:2x2
jax: 0.10.0
libtpu: 0.0.40
codegen_flags: <defaults>
</compile_context>

<pallas_src>
import functools
import numpy as np
import jax
import jax.numpy as jnp
from jax.experimental import pallas as pl
from jax.experimental.pallas import tpu as pltpu


def _round_up(x, m):
    return ((x + m - 1) // m) * m


# --------------------------------------------------------------------------
# Fused matmul kernel (the single hot-path Pallas kernel)
#   out = act_out( acc * scale + bias + residual ),  acc = act_in(A) @ B  (bf16
#   operands on the MXU, f32 accumulation in VMEM scratch).
# --------------------------------------------------------------------------

def _fused_mm_kernel(*refs, in_act, out_act, has_scale, has_bias, has_res):
    it = iter(refs)
    a_ref = next(it)
    b_ref = next(it)
    s_ref = next(it) if has_scale else None
    c_ref = next(it) if has_bias else None
    r_ref = next(it) if has_res else None
    o_ref = next(it)
    acc_ref = next(it)

    @pl.when(pl.program_id(2) == 0)
    def _init():
        acc_ref[...] = jnp.zeros_like(acc_ref)

    a = a_ref[...]
    if in_act == "relu":
        a = jnp.maximum(a, 0)
    acc_ref[...] += jnp.dot(a, b_ref[...], preferred_element_type=jnp.float32)

    @pl.when(pl.program_id(2) == pl.num_programs(2) - 1)
    def _fin():
        y = acc_ref[...]
        if has_scale:
            y = y * s_ref[...].astype(jnp.float32)
        if has_bias:
            y = y + c_ref[...].astype(jnp.float32)
        if has_res:
            y = y + r_ref[...].astype(jnp.float32)
        if out_act == "relu":
            y = jnp.maximum(y, 0.0)
        o_ref[...] = y.astype(o_ref.dtype)


def _pick_tk(Kp):
    # Largest multiple of 128 (<=512) that divides the padded K: minimal padding.
    for t in (512, 384, 256, 128):
        if Kp % t == 0:
            return t
    return 128


def _pick_tm(Mp):
    if Mp <= 256:
        return Mp
    for t in (256, 128, 64):
        if Mp % t == 0:
            return t
    return 256  # fallback: pad M up to a multiple of 256


def matmul_fused(a, b, scale=None, bias=None, residual=None,
                 in_act="none", out_act="none", out_dtype=jnp.bfloat16):
    """(M, K) @ (K, N) with fused per-channel affine / residual / ReLU epilogue."""
    M, K = a.shape
    K2, N = b.shape
    assert K == K2
    Kp = _round_up(K, 128)
    Np = _round_up(N, 128)
    Mp = _round_up(M, 8)
    tk = _pick_tk(Kp)
    tn = 256 if (Np % 256 == 0 and Np >= 512) else 128
    tm = _pick_tm(Mp)
    Mp = _round_up(Mp, tm)

    a_p = jnp.pad(a.astype(jnp.bfloat16), ((0, Mp - M), (0, Kp - K)))
    b_p = jnp.pad(b.astype(jnp.bfloat16), ((0, Kp - K), (0, Np - N)))

    operands = [a_p, b_p]
    in_specs = [pl.BlockSpec((tm, tk), lambda i, j, k: (i, k)),
                pl.BlockSpec((tk, tn), lambda i, j, k: (k, j))]
    if scale is not None:
        operands.append(jnp.pad(scale.reshape(1, N).astype(jnp.float32),
                                ((0, 0), (0, Np - N))))
        in_specs.append(pl.BlockSpec((1, tn), lambda i, j, k: (0, j)))
    if bias is not None:
        operands.append(jnp.pad(bias.reshape(1, N).astype(jnp.float32),
                                ((0, 0), (0, Np - N))))
        in_specs.append(pl.BlockSpec((1, tn), lambda i, j, k: (0, j)))
    if residual is not None:
        operands.append(jnp.pad(residual, ((0, Mp - M), (0, Np - N))))
        in_specs.append(pl.BlockSpec((tm, tn), lambda i, j, k: (i, j)))

    kernel = functools.partial(
        _fused_mm_kernel, in_act=in_act, out_act=out_act,
        has_scale=scale is not None, has_bias=bias is not None,
        has_res=residual is not None)

    out = pl.pallas_call(
        kernel,
        out_shape=jax.ShapeDtypeStruct((Mp, Np), out_dtype),
        grid_spec=pltpu.PrefetchScalarGridSpec(
            num_scalar_prefetch=0,
            grid=(Mp // tm, Np // tn, Kp // tk),
            in_specs=in_specs,
            out_specs=pl.BlockSpec((tm, tn), lambda i, j, k: (i, j)),
            scratch_shapes=[pltpu.VMEM((tm, tn), jnp.float32)]),
        compiler_params=pltpu.CompilerParams(
            dimension_semantics=("parallel", "parallel", "arbitrary")),
    )(*operands)
    return out[:M, :N]


# --------------------------------------------------------------------------
# GRU (HiddenReinforcer) elementwise update — row-tiled Pallas kernel
# --------------------------------------------------------------------------

def _gru_kernel(f_ref, u_ref, n_ref, h_ref, o_ref):
    f = jax.nn.sigmoid(f_ref[...])
    u = jax.nn.sigmoid(u_ref[...])
    n = jnp.tanh(n_ref[...])
    o_ref[...] = f * h_ref[...] * (1.0 - u) + u * n


def gru_update(f_raw, u_raw, n_raw, h2):
    R, C = h2.shape
    tr = min(_round_up(R, 8), 1024)
    Rp = _round_up(R, tr)

    def pad(x):
        return jnp.pad(x.astype(jnp.float32), ((0, Rp - R), (0, 0)))

    out = pl.pallas_call(
        _gru_kernel,
        out_shape=jax.ShapeDtypeStruct((Rp, C), jnp.float32),
        grid_spec=pltpu.PrefetchScalarGridSpec(
            num_scalar_prefetch=0,
            grid=(Rp // tr,),
            in_specs=[pl.BlockSpec((tr, C), lambda i: (i, 0))] * 4,
            out_specs=pl.BlockSpec((tr, C), lambda i: (i, 0))),
        compiler_params=pltpu.CompilerParams(
            dimension_semantics=("parallel",)),
    )(pad(f_raw), pad(u_raw), pad(n_raw), pad(h2))
    return out[:R]


# --------------------------------------------------------------------------
# Conv / pooling helpers (patch extraction is XLA glue; compute is Pallas)
# --------------------------------------------------------------------------

def conv2d_fused(x, w, *, stride=1, padding=0, scale=None, bias=None,
                 residual=None, in_act="none", out_act="none",
                 out_dtype=jnp.bfloat16):
    """x: (B, H, W, Cin), w: (KH, KW, Cin, Cout).  bf16 im2col + fused MXU matmul."""
    B, H, W, Cin = x.shape
    KH, KW, _, Cout = w.shape
    Ho = (H + 2 * padding - KH) // stride + 1
    Wo = (W + 2 * padding - KW) // stride + 1
    xb = x.astype(jnp.bfloat16)
    if padding > 0:
        xb = jnp.pad(xb, ((0, 0), (padding, padding), (padding, padding), (0, 0)))
    cols = []
    for kh in range(KH):
        for kw in range(KW):
            cols.append(xb[:, kh:kh + stride * (Ho - 1) + 1:stride,
                              kw:kw + stride * (Wo - 1) + 1:stride, :])
    patches = jnp.concatenate(cols, axis=-1).reshape(B * Ho * Wo, KH * KW * Cin)
    res2d = residual.reshape(B * Ho * Wo, Cout) if residual is not None else None
    out = matmul_fused(patches,
                       w.astype(jnp.bfloat16).reshape(KH * KW * Cin, Cout),
                       scale=scale, bias=bias, residual=res2d,
                       in_act=in_act, out_act=out_act, out_dtype=out_dtype)
    return out.reshape(B, Ho, Wo, Cout)


def maxpool_3x3_s2_p1_relu(x):
    # TODO(synk): runs as a single-pass XLA-fused max tree (no 9x HBM copy),
    #             not a dedicated Pallas kernel.  ReLU fused in (module order:
    #             maxpool then relu).
    B, H, W, C = x.shape
    xp = jnp.pad(x, ((0, 0), (1, 1), (1, 1), (0, 0)), constant_values=-jnp.inf)
    Ho = (H + 2 - 3) // 2 + 1
    Wo = (W + 2 - 3) // 2 + 1
    out = None
    for kh in range(3):
        for kw in range(3):
            s = xp[:, kh:kh + 2 * (Ho - 1) + 1:2, kw:kw + 2 * (Wo - 1) + 1:2, :]
            out = s if out is None else jnp.maximum(out, s)
    return jnp.maximum(out, 0)


# --------------------------------------------------------------------------
# Network blocks
# --------------------------------------------------------------------------

def basic_block(x, p, stride):
    # relu(bn2(conv2(relu(bn1(conv1(x))))) + shortcut(x)), all fused into 2-3 matmuls
    out1 = conv2d_fused(x, p["conv1_w"], stride=stride, padding=1,
                        scale=p["bn1"][0], bias=p["bn1"][1], out_act="relu")
    if "down_w" in p:
        res = conv2d_fused(x, p["down_w"], stride=stride, padding=0,
                           scale=p["down_bn"][0], bias=p["down_bn"][1])
    else:
        res = x
    return conv2d_fused(out1, p["conv2_w"], stride=1, padding=1,
                        scale=p["bn2"][0], bias=p["bn2"][1],
                        residual=res, out_act="relu")


def resnet_layer(x, blocks, stride):
    x = basic_block(x, blocks[0], stride)
    for p in blocks[1:]:
        x = basic_block(x, p, 1)
    return x


def group_res_block(g, p, out_dtype=jnp.bfloat16):
    # conv2(relu(conv1(relu(g)))) + shortcut(g); ReLUs fused as in_act, bias +
    # residual fused into the epilogue.
    h1 = conv2d_fused(g, p["conv1_w"], stride=1, padding=1,
                      bias=p["conv1_b"], in_act="relu")
    if "down_w" in p:
        res = conv2d_fused(g, p["down_w"], stride=1, padding=1, bias=p["down_b"])
    else:
        res = g
    return conv2d_fused(h1, p["conv2_w"], stride=1, padding=1,
                        bias=p["conv2_b"], in_act="relu",
                        residual=res, out_dtype=out_dtype)


def cbam(x, p):  # x: (G, H, W, C)
    # TODO(synk): the tiny (G, C) channel-gate MLPs / poolings / sigmoid scalings
    #             run in plain jnp (a Pallas launch per op would cost more than
    #             the work); the 7x7 spatial conv + BN stays in the Pallas path.
    G, H, W, C = x.shape
    x3 = x.astype(jnp.float32).reshape(G, H * W, C)

    avg = jnp.mean(x3, axis=1)
    mx = jnp.max(x3, axis=1)

    def mlp(v):
        h1 = jnp.maximum(v @ p["fc1_w"] + p["fc1_b"], 0.0)
        return h1 @ p["fc2_w"] + p["fc2_b"]

    att = jax.nn.sigmoid(mlp(avg) + mlp(mx))          # (G, C)
    xc = x3 * att[:, None, :]                         # channel gate

    mxc = jnp.max(xc, axis=-1)                        # (G, HW)
    mnc = jnp.mean(xc, axis=-1)                       # (G, HW)
    sp = jnp.stack([mxc, mnc], axis=-1).reshape(G, H, W, 2)
    sp = conv2d_fused(sp, p["sp_w"], stride=1, padding=3,
                      scale=p["sp_bn"][0], bias=p["sp_bn"][1],
                      out_dtype=jnp.float32)          # (G, H, W, 1)
    gate = jax.nn.sigmoid(sp.reshape(G, H * W, 1))
    return (xc * gate).reshape(G, H, W, C)


def feature_fusion(x_feat, g, p):
    # x_feat: (B, Hf, Wf, 1024); g: (B, N, Hf, Wf, 256)
    B, N, Hf, Wf, Cg = g.shape
    Cx = x_feat.shape[-1]
    xb = jnp.broadcast_to(x_feat[:, None].astype(jnp.bfloat16), (B, N, Hf, Wf, Cx))
    xg = jnp.concatenate([xb, g.astype(jnp.bfloat16)], axis=-1)
    gg = xg.reshape(B * N, Hf, Wf, Cx + Cg)
    g1 = group_res_block(gg, p["block1"])                       # (B*N,Hf,Wf,vd) bf16
    r = cbam(g1, p["cbam"])                                     # f32
    g2_in = (g1.astype(jnp.float32) + r).astype(jnp.bfloat16)
    g2 = group_res_block(g2_in, p["block2"], out_dtype=jnp.float32)
    return g2.reshape(B, N, Hf, Wf, g2.shape[-1])


def hidden_reinforce(g, h, p, hidden_dim):
    B, N, Hf, Wf, _ = g.shape
    cat = jnp.concatenate([g, h], axis=-1).reshape(B * N, Hf, Wf, -1)
    vals = conv2d_fused(cat, p["w"], stride=1, padding=1, bias=p["b"],
                        out_dtype=jnp.float32)
    R = B * N * Hf * Wf
    v2 = vals.reshape(R, 3 * hidden_dim)
    h2 = h.reshape(R, hidden_dim).astype(jnp.float32)
    new_h = gru_update(v2[:, :hidden_dim],
                       v2[:, hidden_dim:2 * hidden_dim],
                       v2[:, 2 * hidden_dim:],
                       h2)
    return new_h.reshape(B, N, Hf, Wf, hidden_dim)


def value_encoder_forward(params, image, image_feat_f16, h, masks, others,
                          hidden_dim, is_deep_update=True):
    B, H, W, _ = image.shape
    N = masks.shape[1]
    # g = stack([masks, others], ch); distributor: cat([image, g], ch)
    g = jnp.stack([masks, others], axis=-1)                       # (B,N,H,W,2)
    img = jnp.broadcast_to(image[:, None], (B, N, H, W, 3))
    g = jnp.concatenate([img, g], axis=-1).reshape(B * N, H, W, 5)
    # ResNet18 stem + layers 1..3 (maxpool BEFORE relu, as in the module)
    g = conv2d_fused(g, params["conv1_w"], stride=2, padding=3,
                     scale=params["bn1"][0], bias=params["bn1"][1])
    g = maxpool_3x3_s2_p1_relu(g)
    g = resnet_layer(g, params["layer1"], stride=1)
    g = resnet_layer(g, params["layer2"], stride=2)
    g = resnet_layer(g, params["layer3"], stride=2)
    Hf, Wf, Cf = g.shape[1:]
    g = g.reshape(B, N, Hf, Wf, Cf)
    g = feature_fusion(image_feat_f16, g, params["fuser"])
    if is_deep_update and params.get("hidden") is not None:
        h = hidden_reinforce(g, h, params["hidden"], hidden_dim)
    return g, h


# --------------------------------------------------------------------------
# Deterministic parameter construction (synthetic, no checkpoint load)
# --------------------------------------------------------------------------

def init_params(key, value_dim=32, hidden_dim=16):
    keys = iter(jax.random.split(key, 256))

    def nk():
        return next(keys)

    def conv_w(cin, cout, k):
        return (jax.random.normal(nk(), (k, k, cin, cout), jnp.float32)
                / np.sqrt(k * k * cin))

    def bias(c):
        return 0.05 * jax.random.normal(nk(), (c,), jnp.float32)

    def bn(c, eps=1e-5):
        gamma = 1.0 + 0.05 * jax.random.normal(nk(), (c,), jnp.float32)
        beta = 0.05 * jax.random.normal(nk(), (c,), jnp.float32)
        mean = 0.05 * jax.random.normal(nk(), (c,), jnp.float32)
        var = jnp.ones((c,), jnp.float32)
        scale = gamma / jnp.sqrt(var + eps)
        return scale, beta - mean * scale

    def basic(cin, cout, downsample):
        p = {"conv1_w": conv_w(cin, cout, 3), "bn1": bn(cout),
             "conv2_w": conv_w(cout, cout, 3), "bn2": bn(cout)}
        if downsample:
            p["down_w"] = conv_w(cin, cout, 1)
            p["down_bn"] = bn(cout)
        return p

    def gres(cin, cout):
        p = {"conv1_w": conv_w(cin, cout, 3), "conv1_b": bias(cout),
             "conv2_w": conv_w(cout, cout, 3), "conv2_b": bias(cout)}
        if cin != cout:
            p["down_w"] = conv_w(cin, cout, 3)
            p["down_b"] = bias(cout)
        return p

    red = max(value_dim // 16, 1)
    fan_in = (value_dim + hidden_dim) * 9
    fan_out = 3 * hidden_dim * 9
    xav = np.sqrt(2.0 / (fan_in + fan_out))
    return {
        "conv1_w": conv_w(5, 64, 7),
        "bn1": bn(64),
        "layer1": [basic(64, 64, False), basic(64, 64, False)],
        "layer2": [basic(64, 128, True), basic(128, 128, False)],
        "layer3": [basic(128, 256, True), basic(256, 256, False)],
        "fuser": {
            "block1": gres(1024 + 256, value_dim),
            "cbam": {
                "fc1_w": jax.random.normal(nk(), (value_dim, red), jnp.float32)
                         / np.sqrt(value_dim),
                "fc1_b": bias(red),
                "fc2_w": jax.random.normal(nk(), (red, value_dim), jnp.float32)
                         / np.sqrt(red),
                "fc2_b": bias(value_dim),
                "sp_w": conv_w(2, 1, 7),
                "sp_bn": bn(1),
            },
            "block2": gres(value_dim, value_dim),
        },
        "hidden": {
            "w": xav * jax.random.normal(
                nk(), (3, 3, value_dim + hidden_dim, 3 * hidden_dim),
                jnp.float32),
            "b": bias(3 * hidden_dim),
        },
    }


# --------------------------------------------------------------------------
# Main
# --------------------------------------------------------------------------

if __name__ == "__main__":
    B, N, H, W = 1, 2, 32, 32
    value_dim, hidden_dim = 32, 16
    Hf, Wf = H // 16, W // 16

    key = jax.random.PRNGKey(0)
    k_img, k_feat, k_h, k_m, k_o, k_p = jax.random.split(key, 6)
    image = jax.random.normal(k_img, (B, H, W, 3), jnp.float32)
    image_feat_f16 = jax.random.normal(k_feat, (B, Hf, Wf, 1024), jnp.float32)
    h = jax.random.normal(k_h, (B, N, Hf, Wf, hidden_dim), jnp.float32)
    masks = jax.nn.sigmoid(jax.random.normal(k_m, (B, N, H, W), jnp.float32))
    others = jax.nn.sigmoid(jax.random.normal(k_o, (B, N, H, W), jnp.float32))

    params = init_params(k_p, value_dim=value_dim, hidden_dim=hidden_dim)

    fwd = jax.jit(functools.partial(value_encoder_forward,
                                    hidden_dim=hidden_dim,
                                    is_deep_update=True))
    g_out, h_out = fwd(params, image, image_feat_f16, h, masks, others)
    jax.block_until_ready((g_out, h_out))

    assert g_out.shape == (B, N, Hf, Wf, value_dim)
    assert h_out.shape == (B, N, Hf, Wf, hidden_dim)
    assert bool(jnp.all(jnp.isfinite(g_out))) and bool(jnp.all(jnp.isfinite(h_out)))
    print("KERNEL_OK")
</pallas_src>

<mosaic_0001>
module attributes {stable_mosaic.version = 11 : i64} {
  func.func @_fused_mm_kernel(%arg0: i32, %arg1: i32, %arg2: i32, %arg3: memref<256x256xbf16, #tpu.memory_space<vmem>>, %arg4: memref<256x128xbf16, #tpu.memory_space<vmem>>, %arg5: memref<1x128xf32, #tpu.memory_space<vmem>>, %arg6: memref<1x128xf32, #tpu.memory_space<vmem>>, %arg7: memref<256x128xbf16, #tpu.memory_space<vmem>>, %arg8: memref<256x128xf32, #tpu.memory_space<vmem>>) attributes {dimension_semantics = [#tpu.dimension_semantics<parallel>, #tpu.dimension_semantics<parallel>, #tpu.dimension_semantics<arbitrary>], iteration_bounds = array<i64: 2, 1, 1>, scalar_prefetch = 0 : i64, scratch_operands = 1 : i64, tpu.core_type = #tpu.core_type<tc>, window_params = [{transform_indices = @transform_0, window_bounds = array<i64: 256, 256>}, {transform_indices = @transform_1, window_bounds = array<i64: 256, 128>}, {transform_indices = @transform_2, window_bounds = array<i64: 1, 128>}, {transform_indices = @transform_3, window_bounds = array<i64: 1, 128>}, {transform_indices = @transform_4, window_bounds = array<i64: 256, 128>}]} {
    %c0_i32 = arith.constant 0 : i32
    %0 = arith.cmpi eq, %arg2, %c0_i32 : i32
    %1 = arith.extui %0 : i1 to i32
    %c0_i32_0 = arith.constant 0 : i32
    %2 = arith.cmpi ne, %1, %c0_i32_0 : i32
    scf.if %2 {
      %cst_10 = arith.constant 0.000000e+00 : f32
      %12 = vector.broadcast %cst_10 : f32 to vector<256x128xf32>
      %c0_11 = arith.constant 0 : index
      %c0_12 = arith.constant 0 : index
      %13 = vector.load %arg8[%c0_11, %c0_12] : memref<256x128xf32, #tpu.memory_space<vmem>>, vector<256x128xf32>
      tpu.vector_store %arg8[%c0_11, %c0_12], %12 {strides = array<i32>} : memref<256x128xf32, #tpu.memory_space<vmem>>, vector<256x128xf32>,
    } else {
    }
    %c0 = arith.constant 0 : index
    %c0_1 = arith.constant 0 : index
    %3 = vector.load %arg3[%c0, %c0_1] : memref<256x256xbf16, #tpu.memory_space<vmem>>, vector<256x256xbf16>
    %c0_2 = arith.constant 0 : index
    %c0_3 = arith.constant 0 : index
    %4 = vector.load %arg8[%c0_2, %c0_3] : memref<256x128xf32, #tpu.memory_space<vmem>>, vector<256x128xf32>
    %c0_4 = arith.constant 0 : index
    %c0_5 = arith.constant 0 : index
    %5 = vector.load %arg4[%c0_4, %c0_5] : memref<256x128xbf16, #tpu.memory_space<vmem>>, vector<256x128xbf16>
    %cst = arith.constant dense<0.000000e+00> : vector<256x128xf32>
    %6 = tpu.matmul %3, %5, %cst {dimension_numbers = #tpu.dot_dimension_numbers<[1], [0], [0], [1], [0, 0, 1, 1], [], []>} : vector<256x256xbf16>, vector<256x128xbf16>, vector<256x128xf32> -> vector<256x128xf32>
    %7 = arith.addf %4, %6 : vector<256x128xf32>
    %c0_6 = arith.constant 0 : index
    %c0_7 = arith.constant 0 : index
    %8 = vector.load %arg8[%c0_6, %c0_7] : memref<256x128xf32, #tpu.memory_space<vmem>>, vector<256x128xf32>
    tpu.vector_store %arg8[%c0_6, %c0_7], %7 {strides = array<i32>} : memref<256x128xf32, #tpu.memory_space<vmem>>, vector<256x128xf32>,
    %c0_i32_8 = arith.constant 0 : i32
    %9 = arith.cmpi eq, %arg2, %c0_i32_8 : i32
    %10 = arith.extui %9 : i1 to i32
    %c0_i32_9 = arith.constant 0 : i32
    %11 = arith.cmpi ne, %10, %c0_i32_9 : i32
    scf.if %11 {
      %c0_10 = arith.constant 0 : index
      %c0_11 = arith.constant 0 : index
      %12 = vector.load %arg8[%c0_10, %c0_11] : memref<256x128xf32, #tpu.memory_space<vmem>>, vector<256x128xf32>
      %c0_12 = arith.constant 0 : index
      %c0_13 = arith.constant 0 : index
      %13 = vector.load %arg5[%c0_12, %c0_13] : memref<1x128xf32, #tpu.memory_space<vmem>>, vector<1x128xf32>
      %14 = vector.broadcast %13 : vector<1x128xf32> to vector<256x128xf32>
      %15 = arith.mulf %12, %14 : vector<256x128xf32>
      %c0_14 = arith.constant 0 : index
      %c0_15 = arith.constant 0 : index
      %16 = vector.load %arg6[%c0_14, %c0_15] : memref<1x128xf32, #tpu.memory_space<vmem>>, vector<1x128xf32>
      %17 = vector.broadcast %16 : vector<1x128xf32> to vector<256x128xf32>
      %18 = arith.addf %15, %17 : vector<256x128xf32>
      %19 = arith.truncf %18 : vector<256x128xf32> to vector<256x128xbf16>
      %c0_16 = arith.constant 0 : index
      %c0_17 = arith.constant 0 : index
      %20 = vector.load %arg7[%c0_16, %c0_17] : memref<256x128xbf16, #tpu.memory_space<vmem>>, vector<256x128xbf16>
      tpu.vector_store %arg7[%c0_16, %c0_17], %19 {strides = array<i32>} : memref<256x128xbf16, #tpu.memory_space<vmem>>, vector<256x128xbf16>,
    } else {
    }
    return
  }
  func.func @transform_0(%arg0: i32, %arg1: i32, %arg2: i32) -> (i32, i32) {
    %c0_i32 = arith.constant 0 : i32
    return %arg0, %arg2 : i32, i32
  }
  func.func @transform_1(%arg0: i32, %arg1: i32, %arg2: i32) -> (i32, i32) {
    %c0_i32 = arith.constant 0 : i32
    return %arg2, %arg1 : i32, i32
  }
  func.func @transform_2(%arg0: i32, %arg1: i32, %arg2: i32) -> (i32, i32) {
    %c0_i32 = arith.constant 0 : i32
    %c0_i32_0 = arith.constant 0 : i32
    return %c0_i32, %arg1 : i32, i32
  }
  func.func @transform_3(%arg0: i32, %arg1: i32, %arg2: i32) -> (i32, i32) {
    %c0_i32 = arith.constant 0 : i32
    %c0_i32_0 = arith.constant 0 : i32
    return %c0_i32, %arg1 : i32, i32
  }
  func.func @transform_4(%arg0: i32, %arg1: i32, %arg2: i32) -> (i32, i32) {
    %c0_i32 = arith.constant 0 : i32
    return %arg0, %arg1 : i32, i32
  }
}

module attributes {stable_mosaic.version = 11 : i64} {
  func.func @_fused_mm_kernel(%arg0: i32, %arg1: i32, %arg2: i32, %arg3: memref<128x128xbf16, #tpu.memory_space<vmem>>, %arg4: memref<128x128xbf16, #tpu.memory_space<vmem>>, %arg5: memref<1x128xf32, #tpu.memory_space<vmem>>, %arg6: memref<1x128xf32, #tpu.memory_space<vmem>>, %arg7: memref<128x128xbf16, #tpu.memory_space<vmem>>, %arg8: memref<128x128xf32, #tpu.memory_space<vmem>>) attributes {dimension_semantics = [#tpu.dimension_semantics<parallel>, #tpu.dimension_semantics<parallel>, #tpu.dimension_semantics<arbitrary>], iteration_bounds = array<i64: 1, 1, 5>, scalar_prefetch = 0 : i64, scratch_operands = 1 : i64, tpu.core_type = #tpu.core_type<tc>, window_params = [{transform_indices = @transform_0, window_bounds = array<i64: 128, 128>}, {transform_indices = @transform_1, window_bounds = array<i64: 128, 128>}, {transform_indices = @transform_2, window_bounds = array<i64: 1, 128>}, {transform_indices = @transform_3, window_bounds = array<i64: 1, 128>}, {transform_indices = @transform_4, window_bounds = array<i64: 128, 128>}]} {
    %c0_i32 = arith.constant 0 : i32
    %0 = arith.cmpi eq, %arg2, %c0_i32 : i32
    %1 = arith.extui %0 : i1 to i32
    %c0_i32_0 = arith.constant 0 : i32
    %2 = arith.cmpi ne, %1, %c0_i32_0 : i32
    scf.if %2 {
      %cst_9 = arith.constant 0.000000e+00 : f32
      %12 = vector.broadcast %cst_9 : f32 to vector<128x128xf32>
      %c0_10 = arith.constant 0 : index
      %c0_11 = arith.constant 0 : index
      %13 = vector.load %arg8[%c0_10, %c0_11] : memref<128x128xf32, #tpu.memory_space<vmem>>, vector<128x128xf32>
      tpu.vector_store %arg8[%c0_10, %c0_11], %12 {strides = array<i32>} : memref<128x128xf32, #tpu.memory_space<vmem>>, vector<128x128xf32>,
    } else {
    }
    %c0 = arith.constant 0 : index
    %c0_1 = arith.constant 0 : index
    %3 = vector.load %arg3[%c0, %c0_1] : memref<128x128xbf16, #tpu.memory_space<vmem>>, vector<128x128xbf16>
    %c0_2 = arith.constant 0 : index
    %c0_3 = arith.constant 0 : index
    %4 = vector.load %arg8[%c0_2, %c0_3] : memref<128x128xf32, #tpu.memory_space<vmem>>, vector<128x128xf32>
    %c0_4 = arith.constant 0 : index
    %c0_5 = arith.constant 0 : index
    %5 = vector.load %arg4[%c0_4, %c0_5] : memref<128x128xbf16, #tpu.memory_space<vmem>>, vector<128x128xbf16>
    %cst = arith.constant dense<0.000000e+00> : vector<128x128xf32>
    %6 = tpu.matmul %3, %5, %cst {dimension_numbers = #tpu.dot_dimension_numbers<[1], [0], [0], [1], [0, 0, 1, 1], [], []>} : vector<128x128xbf16>, vector<128x128xbf16>, vector<128x128xf32> -> vector<128x128xf32>
    %7 = arith.addf %4, %6 : vector<128x128xf32>
    %c0_6 = arith.constant 0 : index
    %c0_7 = arith.constant 0 : index
    %8 = vector.load %arg8[%c0_6, %c0_7] : memref<128x128xf32, #tpu.memory_space<vmem>>, vector<128x128xf32>
    tpu.vector_store %arg8[%c0_6, %c0_7], %7 {strides = array<i32>} : memref<128x128xf32, #tpu.memory_space<vmem>>, vector<128x128xf32>,
    %c4_i32 = arith.constant 4 : i32
    %9 = arith.cmpi eq, %arg2, %c4_i32 : i32
    %10 = arith.extui %9 : i1 to i32
    %c0_i32_8 = arith.constant 0 : i32
    %11 = arith.cmpi ne, %10, %c0_i32_8 : i32
    scf.if %11 {
      %c0_9 = arith.constant 0 : index
      %c0_10 = arith.constant 0 : index
      %12 = vector.load %arg8[%c0_9, %c0_10] : memref<128x128xf32, #tpu.memory_space<vmem>>, vector<128x128xf32>
      %c0_11 = arith.constant 0 : index
      %c0_12 = arith.constant 0 : index
      %13 = vector.load %arg5[%c0_11, %c0_12] : memref<1x128xf32, #tpu.memory_space<vmem>>, vector<1x128xf32>
      %14 = vector.broadcast %13 : vector<1x128xf32> to vector<128x128xf32>
      %15 = arith.mulf %12, %14 : vector<128x128xf32>
      %c0_13 = arith.constant 0 : index
      %c0_14 = arith.constant 0 : index
      %16 = vector.load %arg6[%c0_13, %c0_14] : memref<1x128xf32, #tpu.memory_space<vmem>>, vector<1x128xf32>
      %17 = vector.broadcast %16 : vector<1x128xf32> to vector<128x128xf32>
      %18 = arith.addf %15, %17 : vector<128x128xf32>
      %cst_15 = arith.constant 0.000000e+00 : f32
      %19 = vector.broadcast %cst_15 : f32 to vector<128x128xf32>
      %20 = arith.maximumf %18, %19 : vector<128x128xf32>
      %21 = arith.truncf %20 : vector<128x128xf32> to vector<128x128xbf16>
      %c0_16 = arith.constant 0 : index
      %c0_17 = arith.constant 0 : index
      %22 = vector.load %arg7[%c0_16, %c0_17] : memref<128x128xbf16, #tpu.memory_space<vmem>>, vector<128x128xbf16>
      tpu.vector_store %arg7[%c0_16, %c0_17], %21 {strides = array<i32>} : memref<128x128xbf16, #tpu.memory_space<vmem>>, vector<128x128xbf16>,
    } else {
    }
    return
  }
  func.func @transform_0(%arg0: i32, %arg1: i32, %arg2: i32) -> (i32, i32) {
    %c0_i32 = arith.constant 0 : i32
    return %arg0, %arg2 : i32, i32
  }
  func.func @transform_1(%arg0: i32, %arg1: i32, %arg2: i32) -> (i32, i32) {
    %c0_i32 = arith.constant 0 : i32
    return %arg2, %arg1 : i32, i32
  }
  func.func @transform_2(%arg0: i32, %arg1: i32, %arg2: i32) -> (i32, i32) {
    %c0_i32 = arith.constant 0 : i32
    %c0_i32_0 = arith.constant 0 : i32
    return %c0_i32, %arg1 : i32, i32
  }
  func.func @transform_3(%arg0: i32, %arg1: i32, %arg2: i32) -> (i32, i32) {
    %c0_i32 = arith.constant 0 : i32
    %c0_i32_0 = arith.constant 0 : i32
    return %c0_i32, %arg1 : i32, i32
  }
  func.func @transform_4(%arg0: i32, %arg1: i32, %arg2: i32) -> (i32, i32) {
    %c0_i32 = arith.constant 0 : i32
    return %arg0, %arg1 : i32, i32
  }
}

module attributes {stable_mosaic.version = 11 : i64} {
  func.func @_fused_mm_kernel(%arg0: i32, %arg1: i32, %arg2: i32, %arg3: memref<128x128xbf16, #tpu.memory_space<vmem>>, %arg4: memref<128x128xbf16, #tpu.memory_space<vmem>>, %arg5: memref<1x128xf32, #tpu.memory_space<vmem>>, %arg6: memref<1x128xf32, #tpu.memory_space<vmem>>, %arg7: memref<128x128xbf16, #tpu.memory_space<vmem>>, %arg8: memref<128x128xbf16, #tpu.memory_space<vmem>>, %arg9: memref<128x128xf32, #tpu.memory_space<vmem>>) attributes {dimension_semantics = [#tpu.dimension_semantics<parallel>, #tpu.dimension_semantics<parallel>, #tpu.dimension_semantics<arbitrary>], iteration_bounds = array<i64: 1, 1, 5>, scalar_prefetch = 0 : i64, scratch_operands = 1 : i64, tpu.core_type = #tpu.core_type<tc>, window_params = [{transform_indices = @transform_0, window_bounds = array<i64: 128, 128>}, {transform_indices = @transform_1, window_bounds = array<i64: 128, 128>}, {transform_indices = @transform_2, window_bounds = array<i64: 1, 128>}, {transform_indices = @transform_3, window_bounds = array<i64: 1, 128>}, {transform_indices = @transform_4, window_bounds = array<i64: 128, 128>}, {transform_indices = @transform_5, window_bounds = array<i64: 128, 128>}]} {
    %c0_i32 = arith.constant 0 : i32
    %0 = arith.cmpi eq, %arg2, %c0_i32 : i32
    %1 = arith.extui %0 : i1 to i32
    %c0_i32_0 = arith.constant 0 : i32
    %2 = arith.cmpi ne, %1, %c0_i32_0 : i32
    scf.if %2 {
      %cst_9 = arith.constant 0.000000e+00 : f32
      %12 = vector.broadcast %cst_9 : f32 to vector<128x128xf32>
      %c0_10 = arith.constant 0 : index
      %c0_11 = arith.constant 0 : index
      %13 = vector.load %arg9[%c0_10, %c0_11] : memref<128x128xf32, #tpu.memory_space<vmem>>, vector<128x128xf32>
      tpu.vector_store %arg9[%c0_10, %c0_11], %12 {strides = array<i32>} : memref<128x128xf32, #tpu.memory_space<vmem>>, vector<128x128xf32>,
    } else {
    }
    %c0 = arith.constant 0 : index
    %c0_1 = arith.constant 0 : index
    %3 = vector.load %arg3[%c0, %c0_1] : memref<128x128xbf16, #tpu.memory_space<vmem>>, vector<128x128xbf16>
    %c0_2 = arith.constant 0 : index
    %c0_3 = arith.constant 0 : index
    %4 = vector.load %arg9[%c0_2, %c0_3] : memref<128x128xf32, #tpu.memory_space<vmem>>, vector<128x128xf32>
    %c0_4 = arith.constant 0 : index
    %c0_5 = arith.constant 0 : index
    %5 = vector.load %arg4[%c0_4, %c0_5] : memref<128x128xbf16, #tpu.memory_space<vmem>>, vector<128x128xbf16>
    %cst = arith.constant dense<0.000000e+00> : vector<128x128xf32>
    %6 = tpu.matmul %3, %5, %cst {dimension_numbers = #tpu.dot_dimension_numbers<[1], [0], [0], [1], [0, 0, 1, 1], [], []>} : vector<128x128xbf16>, vector<128x128xbf16>, vector<128x128xf32> -> vector<128x128xf32>
    %7 = arith.addf %4, %6 : vector<128x128xf32>
    %c0_6 = arith.constant 0 : index
    %c0_7 = arith.constant 0 : index
    %8 = vector.load %arg9[%c0_6, %c0_7] : memref<128x128xf32, #tpu.memory_space<vmem>>, vector<128x128xf32>
    tpu.vector_store %arg9[%c0_6, %c0_7], %7 {strides = array<i32>} : memref<128x128xf32, #tpu.memory_space<vmem>>, vector<128x128xf32>,
    %c4_i32 = arith.constant 4 : i32
    %9 = arith.cmpi eq, %arg2, %c4_i32 : i32
    %10 = arith.extui %9 : i1 to i32
    %c0_i32_8 = arith.constant 0 : i32
    %11 = arith.cmpi ne, %10, %c0_i32_8 : i32
    scf.if %11 {
      %c0_9 = arith.constant 0 : index
      %c0_10 = arith.constant 0 : index
      %12 = vector.load %arg9[%c0_9, %c0_10] : memref<128x128xf32, #tpu.memory_space<vmem>>, vector<128x128xf32>
      %c0_11 = arith.constant 0 : index
      %c0_12 = arith.constant 0 : index
      %13 = vector.load %arg5[%c0_11, %c0_12] : memref<1x128xf32, #tpu.memory_space<vmem>>, vector<1x128xf32>
      %14 = vector.broadcast %13 : vector<1x128xf32> to vector<128x128xf32>
      %15 = arith.mulf %12, %14 : vector<128x128xf32>
      %c0_13 = arith.constant 0 : index
      %c0_14 = arith.constant 0 : index
      %16 = vector.load %arg6[%c0_13, %c0_14] : memref<1x128xf32, #tpu.memory_space<vmem>>, vector<1x128xf32>
      %17 = vector.broadcast %16 : vector<1x128xf32> to vector<128x128xf32>
      %18 = arith.addf %15, %17 : vector<128x128xf32>
      %c0_15 = arith.constant 0 : index
      %c0_16 = arith.constant 0 : index
      %19 = vector.load %arg7[%c0_15, %c0_16] : memref<128x128xbf16, #tpu.memory_space<vmem>>, vector<128x128xbf16>
      %20 = arith.extf %19 : vector<128x128xbf16> to vector<128x128xf32>
      %21 = arith.addf %18, %20 : vector<128x128xf32>
      %cst_17 = arith.constant 0.000000e+00 : f32
      %22 = vector.broadcast %cst_17 : f32 to vector<128x128xf32>
      %23 = arith.maximumf %21, %22 : vector<128x128xf32>
      %24 = arith.truncf %23 : vector<128x128xf32> to vector<128x128xbf16>
      %c0_18 = arith.constant 0 : index
      %c0_19 = arith.constant 0 : index
      %25 = vector.load %arg8[%c0_18, %c0_19] : memref<128x128xbf16, #tpu.memory_space<vmem>>, vector<128x128xbf16>
      tpu.vector_store %arg8[%c0_18, %c0_19], %24 {strides = array<i32>} : memref<128x128xbf16, #tpu.memory_space<vmem>>, vector<128x128xbf16>,
    } else {
    }
    return
  }
  func.func @transform_0(%arg0: i32, %arg1: i32, %arg2: i32) -> (i32, i32) {
    %c0_i32 = arith.constant 0 : i32
    return %arg0, %arg2 : i32, i32
  }
  func.func @transform_1(%arg0: i32, %arg1: i32, %arg2: i32) -> (i32, i32) {
    %c0_i32 = arith.constant 0 : i32
    return %arg2, %arg1 : i32, i32
  }
  func.func @transform_2(%arg0: i32, %arg1: i32, %arg2: i32) -> (i32, i32) {
    %c0_i32 = arith.constant 0 : i32
    %c0_i32_0 = arith.constant 0 : i32
    return %c0_i32, %arg1 : i32, i32
  }
  func.func @transform_3(%arg0: i32, %arg1: i32, %arg2: i32) -> (i32, i32) {
    %c0_i32 = arith.constant 0 : i32
    %c0_i32_0 = arith.constant 0 : i32
    return %c0_i32, %arg1 : i32, i32
  }
  func.func @transform_4(%arg0: i32, %arg1: i32, %arg2: i32) -> (i32, i32) {
    %c0_i32 = arith.constant 0 : i32
    return %arg0, %arg1 : i32, i32
  }
  func.func @transform_5(%arg0: i32, %arg1: i32, %arg2: i32) -> (i32, i32) {
    %c0_i32 = arith.constant 0 : i32
    return %arg0, %arg1 : i32, i32
  }
}

module attributes {stable_mosaic.version = 11 : i64} {
  func.func @_fused_mm_kernel(%arg0: i32, %arg1: i32, %arg2: i32, %arg3: memref<32x128xbf16, #tpu.memory_space<vmem>>, %arg4: memref<128x128xbf16, #tpu.memory_space<vmem>>, %arg5: memref<1x128xf32, #tpu.memory_space<vmem>>, %arg6: memref<1x128xf32, #tpu.memory_space<vmem>>, %arg7: memref<32x128xbf16, #tpu.memory_space<vmem>>, %arg8: memref<32x128xf32, #tpu.memory_space<vmem>>) attributes {dimension_semantics = [#tpu.dimension_semantics<parallel>, #tpu.dimension_semantics<parallel>, #tpu.dimension_semantics<arbitrary>], iteration_bounds = array<i64: 1, 1, 5>, scalar_prefetch = 0 : i64, scratch_operands = 1 : i64, tpu.core_type = #tpu.core_type<tc>, window_params = [{transform_indices = @transform_0, window_bounds = array<i64: 32, 128>}, {transform_indices = @transform_1, window_bounds = array<i64: 128, 128>}, {transform_indices = @transform_2, window_bounds = array<i64: 1, 128>}, {transform_indices = @transform_3, window_bounds = array<i64: 1, 128>}, {transform_indices = @transform_4, window_bounds = array<i64: 32, 128>}]} {
    %c0_i32 = arith.constant 0 : i32
    %0 = arith.cmpi eq, %arg2, %c0_i32 : i32
    %1 = arith.extui %0 : i1 to i32
    %c0_i32_0 = arith.constant 0 : i32
    %2 = arith.cmpi ne, %1, %c0_i32_0 : i32
    scf.if %2 {
      %cst_9 = arith.constant 0.000000e+00 : f32
      %12 = vector.broadcast %cst_9 : f32 to vector<32x128xf32>
      %c0_10 = arith.constant 0 : index
      %c0_11 = arith.constant 0 : index
      %13 = vector.load %arg8[%c0_10, %c0_11] : memref<32x128xf32, #tpu.memory_space<vmem>>, vector<32x128xf32>
      tpu.vector_store %arg8[%c0_10, %c0_11], %12 {strides = array<i32>} : memref<32x128xf32, #tpu.memory_space<vmem>>, vector<32x128xf32>,
    } else {
    }
    %c0 = arith.constant 0 : index
    %c0_1 = arith.constant 0 : index
    %3 = vector.load %arg3[%c0, %c0_1] : memref<32x128xbf16, #tpu.memory_space<vmem>>, vector<32x128xbf16>
    %c0_2 = arith.constant 0 : index
    %c0_3 = arith.constant 0 : index
    %4 = vector.load %arg8[%c0_2, %c0_3] : memref<32x128xf32, #tpu.memory_space<vmem>>, vector<32x128xf32>
    %c0_4 = arith.constant 0 : index
    %c0_5 = arith.constant 0 : index
    %5 = vector.load %arg4[%c0_4, %c0_5] : memref<128x128xbf16, #tpu.memory_space<vmem>>, vector<128x128xbf16>
    %cst = arith.constant dense<0.000000e+00> : vector<32x128xf32>
    %6 = tpu.matmul %3, %5, %cst {dimension_numbers = #tpu.dot_dimension_numbers<[1], [0], [0], [1], [0, 0, 1, 1], [], []>} : vector<32x128xbf16>, vector<128x128xbf16>, vector<32x128xf32> -> vector<32x128xf32>
    %7 = arith.addf %4, %6 : vector<32x128xf32>
    %c0_6 = arith.constant 0 : index
    %c0_7 = arith.constant 0 : index
    %8 = vector.load %arg8[%c0_6, %c0_7] : memref<32x128xf32, #tpu.memory_space<vmem>>, vector<32x128xf32>
    tpu.vector_store %arg8[%c0_6, %c0_7], %7 {strides = array<i32>} : memref<32x128xf32, #tpu.memory_space<vmem>>, vector<32x128xf32>,
    %c4_i32 = arith.constant 4 : i32
    %9 = arith.cmpi eq, %arg2, %c4_i32 : i32
    %10 = arith.extui %9 : i1 to i32
    %c0_i32_8 = arith.constant 0 : i32
    %11 = arith.cmpi ne, %10, %c0_i32_8 : i32
    scf.if %11 {
      %c0_9 = arith.constant 0 : index
      %c0_10 = arith.constant 0 : index
      %12 = vector.load %arg8[%c0_9, %c0_10] : memref<32x128xf32, #tpu.memory_space<vmem>>, vector<32x128xf32>
      %c0_11 = arith.constant 0 : index
      %c0_12 = arith.constant 0 : index
      %13 = vector.load %arg5[%c0_11, %c0_12] : memref<1x128xf32, #tpu.memory_space<vmem>>, vector<1x128xf32>
      %14 = vector.broadcast %13 : vector<1x128xf32> to vector<32x128xf32>
      %15 = arith.mulf %12, %14 : vector<32x128xf32>
      %c0_13 = arith.constant 0 : index
      %c0_14 = arith.constant 0 : index
      %16 = vector.load %arg6[%c0_13, %c0_14] : memref<1x128xf32, #tpu.memory_space<vmem>>, vector<1x128xf32>
      %17 = vector.broadcast %16 : vector<1x128xf32> to vector<32x128xf32>
      %18 = arith.addf %15, %17 : vector<32x128xf32>
      %cst_15 = arith.constant 0.000000e+00 : f32
      %19 = vector.broadcast %cst_15 : f32 to vector<32x128xf32>
      %20 = arith.maximumf %18, %19 : vector<32x128xf32>
      %21 = arith.truncf %20 : vector<32x128xf32> to vector<32x128xbf16>
      %c0_16 = arith.constant 0 : index
      %c0_17 = arith.constant 0 : index
      %22 = vector.load %arg7[%c0_16, %c0_17] : memref<32x128xbf16, #tpu.memory_space<vmem>>, vector<32x128xbf16>
      tpu.vector_store %arg7[%c0_16, %c0_17], %21 {strides = array<i32>} : memref<32x128xbf16, #tpu.memory_space<vmem>>, vector<32x128xbf16>,
    } else {
    }
    return
  }
  func.func @transform_0(%arg0: i32, %arg1: i32, %arg2: i32) -> (i32, i32) {
    %c0_i32 = arith.constant 0 : i32
    return %arg0, %arg2 : i32, i32
  }
  func.func @transform_1(%arg0: i32, %arg1: i32, %arg2: i32) -> (i32, i32) {
    %c0_i32 = arith.constant 0 : i32
    return %arg2, %arg1 : i32, i32
  }
  func.func @transform_2(%arg0: i32, %arg1: i32, %arg2: i32) -> (i32, i32) {
    %c0_i32 = arith.constant 0 : i32
    %c0_i32_0 = arith.constant 0 : i32
    return %c0_i32, %arg1 : i32, i32
  }
  func.func @transform_3(%arg0: i32, %arg1: i32, %arg2: i32) -> (i32, i32) {
    %c0_i32 = arith.constant 0 : i32
    %c0_i32_0 = arith.constant 0 : i32
    return %c0_i32, %arg1 : i32, i32
  }
  func.func @transform_4(%arg0: i32, %arg1: i32, %arg2: i32) -> (i32, i32) {
    %c0_i32 = arith.constant 0 : i32
    return %arg0, %arg1 : i32, i32
  }
}

module attributes {stable_mosaic.version = 11 : i64} {
  func.func @_fused_mm_kernel(%arg0: i32, %arg1: i32, %arg2: i32, %arg3: memref<32x128xbf16, #tpu.memory_space<vmem>>, %arg4: memref<128x128xbf16, #tpu.memory_space<vmem>>, %arg5: memref<1x128xf32, #tpu.memory_space<vmem>>, %arg6: memref<1x128xf32, #tpu.memory_space<vmem>>, %arg7: memref<32x128xbf16, #tpu.memory_space<vmem>>, %arg8: memref<32x128xf32, #tpu.memory_space<vmem>>) attributes {dimension_semantics = [#tpu.dimension_semantics<parallel>, #tpu.dimension_semantics<parallel>, #tpu.dimension_semantics<arbitrary>], iteration_bounds = array<i64: 1, 1, 1>, scalar_prefetch = 0 : i64, scratch_operands = 1 : i64, tpu.core_type = #tpu.core_type<tc>, window_params = [{transform_indices = @transform_0, window_bounds = array<i64: 32, 128>}, {transform_indices = @transform_1, window_bounds = array<i64: 128, 128>}, {transform_indices = @transform_2, window_bounds = array<i64: 1, 128>}, {transform_indices = @transform_3, window_bounds = array<i64: 1, 128>}, {transform_indices = @transform_4, window_bounds = array<i64: 32, 128>}]} {
    %c0_i32 = arith.constant 0 : i32
    %0 = arith.cmpi eq, %arg2, %c0_i32 : i32
    %1 = arith.extui %0 : i1 to i32
    %c0_i32_0 = arith.constant 0 : i32
    %2 = arith.cmpi ne, %1, %c0_i32_0 : i32
    scf.if %2 {
      %cst_10 = arith.constant 0.000000e+00 : f32
      %12 = vector.broadcast %cst_10 : f32 to vector<32x128xf32>
      %c0_11 = arith.constant 0 : index
      %c0_12 = arith.constant 0 : index
      %13 = vector.load %arg8[%c0_11, %c0_12] : memref<32x128xf32, #tpu.memory_space<vmem>>, vector<32x128xf32>
      tpu.vector_store %arg8[%c0_11, %c0_12], %12 {strides = array<i32>} : memref<32x128xf32, #tpu.memory_space<vmem>>, vector<32x128xf32>,
    } else {
    }
    %c0 = arith.constant 0 : index
    %c0_1 = arith.constant 0 : index
    %3 = vector.load %arg3[%c0, %c0_1] : memref<32x128xbf16, #tpu.memory_space<vmem>>, vector<32x128xbf16>
    %c0_2 = arith.constant 0 : index
    %c0_3 = arith.constant 0 : index
    %4 = vector.load %arg8[%c0_2, %c0_3] : memref<32x128xf32, #tpu.memory_space<vmem>>, vector<32x128xf32>
    %c0_4 = arith.constant 0 : index
    %c0_5 = arith.constant 0 : index
    %5 = vector.load %arg4[%c0_4, %c0_5] : memref<128x128xbf16, #tpu.memory_space<vmem>>, vector<128x128xbf16>
    %cst = arith.constant dense<0.000000e+00> : vector<32x128xf32>
    %6 = tpu.matmul %3, %5, %cst {dimension_numbers = #tpu.dot_dimension_numbers<[1], [0], [0], [1], [0, 0, 1, 1], [], []>} : vector<32x128xbf16>, vector<128x128xbf16>, vector<32x128xf32> -> vector<32x128xf32>
    %7 = arith.addf %4, %6 : vector<32x128xf32>
    %c0_6 = arith.constant 0 : index
    %c0_7 = arith.constant 0 : index
    %8 = vector.load %arg8[%c0_6, %c0_7] : memref<32x128xf32, #tpu.memory_space<vmem>>, vector<32x128xf32>
    tpu.vector_store %arg8[%c0_6, %c0_7], %7 {strides = array<i32>} : memref<32x128xf32, #tpu.memory_space<vmem>>, vector<32x128xf32>,
    %c0_i32_8 = arith.constant 0 : i32
    %9 = arith.cmpi eq, %arg2, %c0_i32_8 : i32
    %10 = arith.extui %9 : i1 to i32
    %c0_i32_9 = arith.constant 0 : i32
    %11 = arith.cmpi ne, %10, %c0_i32_9 : i32
    scf.if %11 {
      %c0_10 = arith.constant 0 : index
      %c0_11 = arith.constant 0 : index
      %12 = vector.load %arg8[%c0_10, %c0_11] : memref<32x128xf32, #tpu.memory_space<vmem>>, vector<32x128xf32>
      %c0_12 = arith.constant 0 : index
      %c0_13 = arith.constant 0 : index
      %13 = vector.load %arg5[%c0_12, %c0_13] : memref<1x128xf32, #tpu.memory_space<vmem>>, vector<1x128xf32>
      %14 = vector.broadcast %13 : vector<1x128xf32> to vector<32x128xf32>
      %15 = arith.mulf %12, %14 : vector<32x128xf32>
      %c0_14 = arith.constant 0 : index
      %c0_15 = arith.constant 0 : index
      %16 = vector.load %arg6[%c0_14, %c0_15] : memref<1x128xf32, #tpu.memory_space<vmem>>, vector<1x128xf32>
      %17 = vector.broadcast %16 : vector<1x128xf32> to vector<32x128xf32>
      %18 = arith.addf %15, %17 : vector<32x128xf32>
      %19 = arith.truncf %18 : vector<32x128xf32> to vector<32x128xbf16>
      %c0_16 = arith.constant 0 : index
      %c0_17 = arith.constant 0 : index
      %20 = vector.load %arg7[%c0_16, %c0_17] : memref<32x128xbf16, #tpu.memory_space<vmem>>, vector<32x128xbf16>
      tpu.vector_store %arg7[%c0_16, %c0_17], %19 {strides = array<i32>} : memref<32x128xbf16, #tpu.memory_space<vmem>>, vector<32x128xbf16>,
    } else {
    }
    return
  }
  func.func @transform_0(%arg0: i32, %arg1: i32, %arg2: i32) -> (i32, i32) {
    %c0_i32 = arith.constant 0 : i32
    return %arg0, %arg2 : i32, i32
  }
  func.func @transform_1(%arg0: i32, %arg1: i32, %arg2: i32) -> (i32, i32) {
    %c0_i32 = arith.constant 0 : i32
    return %arg2, %arg1 : i32, i32
  }
  func.func @transform_2(%arg0: i32, %arg1: i32, %arg2: i32) -> (i32, i32) {
    %c0_i32 = arith.constant 0 : i32
    %c0_i32_0 = arith.constant 0 : i32
    return %c0_i32, %arg1 : i32, i32
  }
  func.func @transform_3(%arg0: i32, %arg1: i32, %arg2: i32) -> (i32, i32) {
    %c0_i32 = arith.constant 0 : i32
    %c0_i32_0 = arith.constant 0 : i32
    return %c0_i32, %arg1 : i32, i32
  }
  func.func @transform_4(%arg0: i32, %arg1: i32, %arg2: i32) -> (i32, i32) {
    %c0_i32 = arith.constant 0 : i32
    return %arg0, %arg1 : i32, i32
  }
}

module attributes {stable_mosaic.version = 11 : i64} {
  func.func @_fused_mm_kernel(%arg0: i32, %arg1: i32, %arg2: i32, %arg3: memref<32x384xbf16, #tpu.memory_space<vmem>>, %arg4: memref<384x128xbf16, #tpu.memory_space<vmem>>, %arg5: memref<1x128xf32, #tpu.memory_space<vmem>>, %arg6: memref<1x128xf32, #tpu.memory_space<vmem>>, %arg7: memref<32x128xbf16, #tpu.memory_space<vmem>>, %arg8: memref<32x128xbf16, #tpu.memory_space<vmem>>, %arg9: memref<32x128xf32, #tpu.memory_space<vmem>>) attributes {dimension_semantics = [#tpu.dimension_semantics<parallel>, #tpu.dimension_semantics<parallel>, #tpu.dimension_semantics<arbitrary>], iteration_bounds = array<i64: 1, 1, 3>, scalar_prefetch = 0 : i64, scratch_operands = 1 : i64, tpu.core_type = #tpu.core_type<tc>, window_params = [{transform_indices = @transform_0, window_bounds = array<i64: 32, 384>}, {transform_indices = @transform_1, window_bounds = array<i64: 384, 128>}, {transform_indices = @transform_2, window_bounds = array<i64: 1, 128>}, {transform_indices = @transform_3, window_bounds = array<i64: 1, 128>}, {transform_indices = @transform_4, window_bounds = array<i64: 32, 128>}, {transform_indices = @transform_5, window_bounds = array<i64: 32, 128>}]} {
    %c0_i32 = arith.constant 0 : i32
    %0 = arith.cmpi eq, %arg2, %c0_i32 : i32
    %1 = arith.extui %0 : i1 to i32
    %c0_i32_0 = arith.constant 0 : i32
    %2 = arith.cmpi ne, %1, %c0_i32_0 : i32
    scf.if %2 {
      %cst_9 = arith.constant 0.000000e+00 : f32
      %12 = vector.broadcast %cst_9 : f32 to vector<32x128xf32>
      %c0_10 = arith.constant 0 : index
      %c0_11 = arith.constant 0 : index
      %13 = vector.load %arg9[%c0_10, %c0_11] : memref<32x128xf32, #tpu.memory_space<vmem>>, vector<32x128xf32>
      tpu.vector_store %arg9[%c0_10, %c0_11], %12 {strides = array<i32>} : memref<32x128xf32, #tpu.memory_space<vmem>>, vector<32x128xf32>,
    } else {
    }
    %c0 = arith.constant 0 : index
    %c0_1 = arith.constant 0 : index
    %3 = vector.load %arg3[%c0, %c0_1] : memref<32x384xbf16, #tpu.memory_space<vmem>>, vector<32x384xbf16>
    %c0_2 = arith.constant 0 : index
    %c0_3 = arith.constant 0 : index
    %4 = vector.load %arg9[%c0_2, %c0_3] : memref<32x128xf32, #tpu.memory_space<vmem>>, vector<32x128xf32>
    %c0_4 = arith.constant 0 : index
    %c0_5 = arith.constant 0 : index
    %5 = vector.load %arg4[%c0_4, %c0_5] : memref<384x128xbf16, #tpu.memory_space<vmem>>, vector<384x128xbf16>
    %cst = arith.constant dense<0.000000e+00> : vector<32x128xf32>
    %6 = tpu.matmul %3, %5, %cst {dimension_numbers = #tpu.dot_dimension_numbers<[1], [0], [0], [1], [0, 0, 1, 1], [], []>} : vector<32x384xbf16>, vector<384x128xbf16>, vector<32x128xf32> -> vector<32x128xf32>
    %7 = arith.addf %4, %6 : vector<32x128xf32>
    %c0_6 = arith.constant 0 : index
    %c0_7 = arith.constant 0 : index
    %8 = vector.load %arg9[%c0_6, %c0_7] : memref<32x128xf32, #tpu.memory_space<vmem>>, vector<32x128xf32>
    tpu.vector_store %arg9[%c0_6, %c0_7], %7 {strides = array<i32>} : memref<32x128xf32, #tpu.memory_space<vmem>>, vector<32x128xf32>,
    %c2_i32 = arith.constant 2 : i32
    %9 = arith.cmpi eq, %arg2, %c2_i32 : i32
    %10 = arith.extui %9 : i1 to i32
    %c0_i32_8 = arith.constant 0 : i32
    %11 = arith.cmpi ne, %10, %c0_i32_8 : i32
    scf.if %11 {
      %c0_9 = arith.constant 0 : index
      %c0_10 = arith.constant 0 : index
      %12 = vector.load %arg9[%c0_9, %c0_10] : memref<32x128xf32, #tpu.memory_space<vmem>>, vector<32x128xf32>
      %c0_11 = arith.constant 0 : index
      %c0_12 = arith.constant 0 : index
      %13 = vector.load %arg5[%c0_11, %c0_12] : memref<1x128xf32, #tpu.memory_space<vmem>>, vector<1x128xf32>
      %14 = vector.broadcast %13 : vector<1x128xf32> to vector<32x128xf32>
      %15 = arith.mulf %12, %14 : vector<32x128xf32>
      %c0_13 = arith.constant 0 : index
      %c0_14 = arith.constant 0 : index
      %16 = vector.load %arg6[%c0_13, %c0_14] : memref<1x128xf32, #tpu.memory_space<vmem>>, vector<1x128xf32>
      %17 = vector.broadcast %16 : vector<1x128xf32> to vector<32x128xf32>
      %18 = arith.addf %15, %17 : vector<32x128xf32>
      %c0_15 = arith.constant 0 : index
      %c0_16 = arith.constant 0 : index
      %19 = vector.load %arg7[%c0_15, %c0_16] : memref<32x128xbf16, #tpu.memory_space<vmem>>, vector<32x128xbf16>
      %20 = arith.extf %19 : vector<32x128xbf16> to vector<32x128xf32>
      %21 = arith.addf %18, %20 : vector<32x128xf32>
      %cst_17 = arith.constant 0.000000e+00 : f32
      %22 = vector.broadcast %cst_17 : f32 to vector<32x128xf32>
      %23 = arith.maximumf %21, %22 : vector<32x128xf32>
      %24 = arith.truncf %23 : vector<32x128xf32> to vector<32x128xbf16>
      %c0_18 = arith.constant 0 : index
      %c0_19 = arith.constant 0 : index
      %25 = vector.load %arg8[%c0_18, %c0_19] : memref<32x128xbf16, #tpu.memory_space<vmem>>, vector<32x128xbf16>
      tpu.vector_store %arg8[%c0_18, %c0_19], %24 {strides = array<i32>} : memref<32x128xbf16, #tpu.memory_space<vmem>>, vector<32x128xbf16>,
    } else {
    }
    return
  }
  func.func @transform_0(%arg0: i32, %arg1: i32, %arg2: i32) -> (i32, i32) {
    %c0_i32 = arith.constant 0 : i32
    return %arg0, %arg2 : i32, i32
  }
  func.func @transform_1(%arg0: i32, %arg1: i32, %arg2: i32) -> (i32, i32) {
    %c0_i32 = arith.constant 0 : i32
    return %arg2, %arg1 : i32, i32
  }
  func.func @transform_2(%arg0: i32, %arg1: i32, %arg2: i32) -> (i32, i32) {
    %c0_i32 = arith.constant 0 : i32
    %c0_i32_0 = arith.constant 0 : i32
    return %c0_i32, %arg1 : i32, i32
  }
  func.func @transform_3(%arg0: i32, %arg1: i32, %arg2: i32) -> (i32, i32) {
    %c0_i32 = arith.constant 0 : i32
    %c0_i32_0 = arith.constant 0 : i32
    return %c0_i32, %arg1 : i32, i32
  }
  func.func @transform_4(%arg0: i32, %arg1: i32, %arg2: i32) -> (i32, i32) {
    %c0_i32 = arith.constant 0 : i32
    return %arg0, %arg1 : i32, i32
  }
  func.func @transform_5(%arg0: i32, %arg1: i32, %arg2: i32) -> (i32, i32) {
    %c0_i32 = arith.constant 0 : i32
    return %arg0, %arg1 : i32, i32
  }
}

module attributes {stable_mosaic.version = 11 : i64} {
  func.func @_fused_mm_kernel(%arg0: i32, %arg1: i32, %arg2: i32, %arg3: memref<32x384xbf16, #tpu.memory_space<vmem>>, %arg4: memref<384x128xbf16, #tpu.memory_space<vmem>>, %arg5: memref<1x128xf32, #tpu.memory_space<vmem>>, %arg6: memref<1x128xf32, #tpu.memory_space<vmem>>, %arg7: memref<32x128xbf16, #tpu.memory_space<vmem>>, %arg8: memref<32x128xf32, #tpu.memory_space<vmem>>) attributes {dimension_semantics = [#tpu.dimension_semantics<parallel>, #tpu.dimension_semantics<parallel>, #tpu.dimension_semantics<arbitrary>], iteration_bounds = array<i64: 1, 1, 3>, scalar_prefetch = 0 : i64, scratch_operands = 1 : i64, tpu.core_type = #tpu.core_type<tc>, window_params = [{transform_indices = @transform_0, window_bounds = array<i64: 32, 384>}, {transform_indices = @transform_1, window_bounds = array<i64: 384, 128>}, {transform_indices = @transform_2, window_bounds = array<i64: 1, 128>}, {transform_indices = @transform_3, window_bounds = array<i64: 1, 128>}, {transform_indices = @transform_4, window_bounds = array<i64: 32, 128>}]} {
    %c0_i32 = arith.constant 0 : i32
    %0 = arith.cmpi eq, %arg2, %c0_i32 : i32
    %1 = arith.extui %0 : i1 to i32
    %c0_i32_0 = arith.constant 0 : i32
    %2 = arith.cmpi ne, %1, %c0_i32_0 : i32
    scf.if %2 {
      %cst_9 = arith.constant 0.000000e+00 : f32
      %12 = vector.broadcast %cst_9 : f32 to vector<32x128xf32>
      %c0_10 = arith.constant 0 : index
      %c0_11 = arith.constant 0 : index
      %13 = vector.load %arg8[%c0_10, %c0_11] : memref<32x128xf32, #tpu.memory_space<vmem>>, vector<32x128xf32>
      tpu.vector_store %arg8[%c0_10, %c0_11], %12 {strides = array<i32>} : memref<32x128xf32, #tpu.memory_space<vmem>>, vector<32x128xf32>,
    } else {
    }
    %c0 = arith.constant 0 : index
    %c0_1 = arith.constant 0 : index
    %3 = vector.load %arg3[%c0, %c0_1] : memref<32x384xbf16, #tpu.memory_space<vmem>>, vector<32x384xbf16>
    %c0_2 = arith.constant 0 : index
    %c0_3 = arith.constant 0 : index
    %4 = vector.load %arg8[%c0_2, %c0_3] : memref<32x128xf32, #tpu.memory_space<vmem>>, vector<32x128xf32>
    %c0_4 = arith.constant 0 : index
    %c0_5 = arith.constant 0 : index
    %5 = vector.load %arg4[%c0_4, %c0_5] : memref<384x128xbf16, #tpu.memory_space<vmem>>, vector<384x128xbf16>
    %cst = arith.constant dense<0.000000e+00> : vector<32x128xf32>
    %6 = tpu.matmul %3, %5, %cst {dimension_numbers = #tpu.dot_dimension_numbers<[1], [0], [0], [1], [0, 0, 1, 1], [], []>} : vector<32x384xbf16>, vector<384x128xbf16>, vector<32x128xf32> -> vector<32x128xf32>
    %7 = arith.addf %4, %6 : vector<32x128xf32>
    %c0_6 = arith.constant 0 : index
    %c0_7 = arith.constant 0 : index
    %8 = vector.load %arg8[%c0_6, %c0_7] : memref<32x128xf32, #tpu.memory_space<vmem>>, vector<32x128xf32>
    tpu.vector_store %arg8[%c0_6, %c0_7], %7 {strides = array<i32>} : memref<32x128xf32, #tpu.memory_space<vmem>>, vector<32x128xf32>,
    %c2_i32 = arith.constant 2 : i32
    %9 = arith.cmpi eq, %arg2, %c2_i32 : i32
    %10 = arith.extui %9 : i1 to i32
    %c0_i32_8 = arith.constant 0 : i32
    %11 = arith.cmpi ne, %10, %c0_i32_8 : i32
    scf.if %11 {
      %c0_9 = arith.constant 0 : index
      %c0_10 = arith.constant 0 : index
      %12 = vector.load %arg8[%c0_9, %c0_10] : memref<32x128xf32, #tpu.memory_space<vmem>>, vector<32x128xf32>
      %c0_11 = arith.constant 0 : index
      %c0_12 = arith.constant 0 : index
      %13 = vector.load %arg5[%c0_11, %c0_12] : memref<1x128xf32, #tpu.memory_space<vmem>>, vector<1x128xf32>
      %14 = vector.broadcast %13 : vector<1x128xf32> to vector<32x128xf32>
      %15 = arith.mulf %12, %14 : vector<32x128xf32>
      %c0_13 = arith.constant 0 : index
      %c0_14 = arith.constant 0 : index
      %16 = vector.load %arg6[%c0_13, %c0_14] : memref<1x128xf32, #tpu.memory_space<vmem>>, vector<1x128xf32>
      %17 = vector.broadcast %16 : vector<1x128xf32> to vector<32x128xf32>
      %18 = arith.addf %15, %17 : vector<32x128xf32>
      %cst_15 = arith.constant 0.000000e+00 : f32
      %19 = vector.broadcast %cst_15 : f32 to vector<32x128xf32>
      %20 = arith.maximumf %18, %19 : vector<32x128xf32>
      %21 = arith.truncf %20 : vector<32x128xf32> to vector<32x128xbf16>
      %c0_16 = arith.constant 0 : index
      %c0_17 = arith.constant 0 : index
      %22 = vector.load %arg7[%c0_16, %c0_17] : memref<32x128xbf16, #tpu.memory_space<vmem>>, vector<32x128xbf16>
      tpu.vector_store %arg7[%c0_16, %c0_17], %21 {strides = array<i32>} : memref<32x128xbf16, #tpu.memory_space<vmem>>, vector<32x128xbf16>,
    } else {
    }
    return
  }
  func.func @transform_0(%arg0: i32, %arg1: i32, %arg2: i32) -> (i32, i32) {
    %c0_i32 = arith.constant 0 : i32
    return %arg0, %arg2 : i32, i32
  }
  func.func @transform_1(%arg0: i32, %arg1: i32, %arg2: i32) -> (i32, i32) {
    %c0_i32 = arith.constant 0 : i32
    return %arg2, %arg1 : i32, i32
  }
  func.func @transform_2(%arg0: i32, %arg1: i32, %arg2: i32) -> (i32, i32) {
    %c0_i32 = arith.constant 0 : i32
    %c0_i32_0 = arith.constant 0 : i32
    return %c0_i32, %arg1 : i32, i32
  }
  func.func @transform_3(%arg0: i32, %arg1: i32, %arg2: i32) -> (i32, i32) {
    %c0_i32 = arith.constant 0 : i32
    %c0_i32_0 = arith.constant 0 : i32
    return %c0_i32, %arg1 : i32, i32
  }
  func.func @transform_4(%arg0: i32, %arg1: i32, %arg2: i32) -> (i32, i32) {
    %c0_i32 = arith.constant 0 : i32
    return %arg0, %arg1 : i32, i32
  }
}

module attributes {stable_mosaic.version = 11 : i64} {
  func.func @_fused_mm_kernel(%arg0: i32, %arg1: i32, %arg2: i32, %arg3: memref<8x384xbf16, #tpu.memory_space<vmem>>, %arg4: memref<384x128xbf16, #tpu.memory_space<vmem>>, %arg5: memref<1x128xf32, #tpu.memory_space<vmem>>, %arg6: memref<1x128xf32, #tpu.memory_space<vmem>>, %arg7: memref<8x128xbf16, #tpu.memory_space<vmem>>, %arg8: memref<8x128xf32, #tpu.memory_space<vmem>>) attributes {dimension_semantics = [#tpu.dimension_semantics<parallel>, #tpu.dimension_semantics<parallel>, #tpu.dimension_semantics<arbitrary>], iteration_bounds = array<i64: 1, 2, 3>, scalar_prefetch = 0 : i64, scratch_operands = 1 : i64, tpu.core_type = #tpu.core_type<tc>, window_params = [{transform_indices = @transform_0, window_bounds = array<i64: 8, 384>}, {transform_indices = @transform_1, window_bounds = array<i64: 384, 128>}, {transform_indices = @transform_2, window_bounds = array<i64: 1, 128>}, {transform_indices = @transform_3, window_bounds = array<i64: 1, 128>}, {transform_indices = @transform_4, window_bounds = array<i64: 8, 128>}]} {
    %c0_i32 = arith.constant 0 : i32
    %0 = arith.cmpi eq, %arg2, %c0_i32 : i32
    %1 = arith.extui %0 : i1 to i32
    %c0_i32_0 = arith.constant 0 : i32
    %2 = arith.cmpi ne, %1, %c0_i32_0 : i32
    scf.if %2 {
      %cst_9 = arith.constant 0.000000e+00 : f32
      %12 = vector.broadcast %cst_9 : f32 to vector<8x128xf32>
      %c0_10 = arith.constant 0 : index
      %c0_11 = arith.constant 0 : index
      %13 = vector.load %arg8[%c0_10, %c0_11] : memref<8x128xf32, #tpu.memory_space<vmem>>, vector<8x128xf32>
      tpu.vector_store %arg8[%c0_10, %c0_11], %12 {strides = array<i32>} : memref<8x128xf32, #tpu.memory_space<vmem>>, vector<8x128xf32>,
    } else {
    }
    %c0 = arith.constant 0 : index
    %c0_1 = arith.constant 0 : index
    %3 = vector.load %arg3[%c0, %c0_1] : memref<8x384xbf16, #tpu.memory_space<vmem>>, vector<8x384xbf16>
    %c0_2 = arith.constant 0 : index
    %c0_3 = arith.constant 0 : index
    %4 = vector.load %arg8[%c0_2, %c0_3] : memref<8x128xf32, #tpu.memory_space<vmem>>, vector<8x128xf32>
    %c0_4 = arith.constant 0 : index
    %c0_5 = arith.constant 0 : index
    %5 = vector.load %arg4[%c0_4, %c0_5] : memref<384x128xbf16, #tpu.memory_space<vmem>>, vector<384x128xbf16>
    %cst = arith.constant dense<0.000000e+00> : vector<8x128xf32>
    %6 = tpu.matmul %3, %5, %cst {dimension_numbers = #tpu.dot_dimension_numbers<[1], [0], [0], [1], [0, 0, 1, 1], [], []>} : vector<8x384xbf16>, vector<384x128xbf16>, vector<8x128xf32> -> vector<8x128xf32>
    %7 = arith.addf %4, %6 : vector<8x128xf32>
    %c0_6 = arith.constant 0 : index
    %c0_7 = arith.constant 0 : index
    %8 = vector.load %arg8[%c0_6, %c0_7] : memref<8x128xf32, #tpu.memory_space<vmem>>, vector<8x128xf32>
    tpu.vector_store %arg8[%c0_6, %c0_7], %7 {strides = array<i32>} : memref<8x128xf32, #tpu.memory_space<vmem>>, vector<8x128xf32>,
    %c2_i32 = arith.constant 2 : i32
    %9 = arith.cmpi eq, %arg2, %c2_i32 : i32
    %10 = arith.extui %9 : i1 to i32
    %c0_i32_8 = arith.constant 0 : i32
    %11 = arith.cmpi ne, %10, %c0_i32_8 : i32
    scf.if %11 {
      %c0_9 = arith.constant 0 : index
      %c0_10 = arith.constant 0 : index
      %12 = vector.load %arg8[%c0_9, %c0_10] : memref<8x128xf32, #tpu.memory_space<vmem>>, vector<8x128xf32>
      %c0_11 = arith.constant 0 : index
      %c0_12 = arith.constant 0 : index
      %13 = vector.load %arg5[%c0_11, %c0_12] : memref<1x128xf32, #tpu.memory_space<vmem>>, vector<1x128xf32>
      %14 = vector.broadcast %13 : vector<1x128xf32> to vector<8x128xf32>
      %15 = arith.mulf %12, %14 : vector<8x128xf32>
      %c0_13 = arith.constant 0 : index
      %c0_14 = arith.constant 0 : index
      %16 = vector.load %arg6[%c0_13, %c0_14] : memref<1x128xf32, #tpu.memory_space<vmem>>, vector<1x128xf32>
      %17 = vector.broadcast %16 : vector<1x128xf32> to vector<8x128xf32>
      %18 = arith.addf %15, %17 : vector<8x128xf32>
      %cst_15 = arith.constant 0.000000e+00 : f32
      %19 = vector.broadcast %cst_15 : f32 to vector<8x128xf32>
      %20 = arith.maximumf %18, %19 : vector<8x128xf32>
      %21 = arith.truncf %20 : vector<8x128xf32> to vector<8x128xbf16>
      %c0_16 = arith.constant 0 : index
      %c0_17 = arith.constant 0 : index
      %22 = vector.load %arg7[%c0_16, %c0_17] : memref<8x128xbf16, #tpu.memory_space<vmem>>, vector<8x128xbf16>
      tpu.vector_store %arg7[%c0_16, %c0_17], %21 {strides = array<i32>} : memref<8x128xbf16, #tpu.memory_space<vmem>>, vector<8x128xbf16>,
    } else {
    }
    return
  }
  func.func @transform_0(%arg0: i32, %arg1: i32, %arg2: i32) -> (i32, i32) {
    %c0_i32 = arith.constant 0 : i32
    return %arg0, %arg2 : i32, i32
  }
  func.func @transform_1(%arg0: i32, %arg1: i32, %arg2: i32) -> (i32, i32) {
    %c0_i32 = arith.constant 0 : i32
    return %arg2, %arg1 : i32, i32
  }
  func.func @transform_2(%arg0: i32, %arg1: i32, %arg2: i32) -> (i32, i32) {
    %c0_i32 = arith.constant 0 : i32
    %c0_i32_0 = arith.constant 0 : i32
    return %c0_i32, %arg1 : i32, i32
  }
  func.func @transform_3(%arg0: i32, %arg1: i32, %arg2: i32) -> (i32, i32) {
    %c0_i32 = arith.constant 0 : i32
    %c0_i32_0 = arith.constant 0 : i32
    return %c0_i32, %arg1 : i32, i32
  }
  func.func @transform_4(%arg0: i32, %arg1: i32, %arg2: i32) -> (i32, i32) {
    %c0_i32 = arith.constant 0 : i32
    return %arg0, %arg1 : i32, i32
  }
}

module attributes {stable_mosaic.version = 11 : i64} {
  func.func @_fused_mm_kernel(%arg0: i32, %arg1: i32, %arg2: i32, %arg3: memref<8x128xbf16, #tpu.memory_space<vmem>>, %arg4: memref<128x128xbf16, #tpu.memory_space<vmem>>, %arg5: memref<1x128xf32, #tpu.memory_space<vmem>>, %arg6: memref<1x128xf32, #tpu.memory_space<vmem>>, %arg7: memref<8x128xbf16, #tpu.memory_space<vmem>>, %arg8: memref<8x128xf32, #tpu.memory_space<vmem>>) attributes {dimension_semantics = [#tpu.dimension_semantics<parallel>, #tpu.dimension_semantics<parallel>, #tpu.dimension_semantics<arbitrary>], iteration_bounds = array<i64: 1, 2, 1>, scalar_prefetch = 0 : i64, scratch_operands = 1 : i64, tpu.core_type = #tpu.core_type<tc>, window_params = [{transform_indices = @transform_0, window_bounds = array<i64: 8, 128>}, {transform_indices = @transform_1, window_bounds = array<i64: 128, 128>}, {transform_indices = @transform_2, window_bounds = array<i64: 1, 128>}, {transform_indices = @transform_3, window_bounds = array<i64: 1, 128>}, {transform_indices = @transform_4, window_bounds = array<i64: 8, 128>}]} {
    %c0_i32 = arith.constant 0 : i32
    %0 = arith.cmpi eq, %arg2, %c0_i32 : i32
    %1 = arith.extui %0 : i1 to i32
    %c0_i32_0 = arith.constant 0 : i32
    %2 = arith.cmpi ne, %1, %c0_i32_0 : i32
    scf.if %2 {
      %cst_10 = arith.constant 0.000000e+00 : f32
      %12 = vector.broadcast %cst_10 : f32 to vector<8x128xf32>
      %c0_11 = arith.constant 0 : index
      %c0_12 = arith.constant 0 : index
      %13 = vector.load %arg8[%c0_11, %c0_12] : memref<8x128xf32, #tpu.memory_space<vmem>>, vector<8x128xf32>
      tpu.vector_store %arg8[%c0_11, %c0_12], %12 {strides = array<i32>} : memref<8x128xf32, #tpu.memory_space<vmem>>, vector<8x128xf32>,
    } else {
    }
    %c0 = arith.constant 0 : index
    %c0_1 = arith.constant 0 : index
    %3 = vector.load %arg3[%c0, %c0_1] : memref<8x128xbf16, #tpu.memory_space<vmem>>, vector<8x128xbf16>
    %c0_2 = arith.constant 0 : index
    %c0_3 = arith.constant 0 : index
    %4 = vector.load %arg8[%c0_2, %c0_3] : memref<8x128xf32, #tpu.memory_space<vmem>>, vector<8x128xf32>
    %c0_4 = arith.constant 0 : index
    %c0_5 = arith.constant 0 : index
    %5 = vector.load %arg4[%c0_4, %c0_5] : memref<128x128xbf16, #tpu.memory_space<vmem>>, vector<128x128xbf16>
    %cst = arith.constant dense<0.000000e+00> : vector<8x128xf32>
    %6 = tpu.matmul %3, %5, %cst {dimension_numbers = #tpu.dot_dimension_numbers<[1], [0], [0], [1], [0, 0, 1, 1], [], []>} : vector<8x128xbf16>, vector<128x128xbf16>, vector<8x128xf32> -> vector<8x128xf32>
    %7 = arith.addf %4, %6 : vector<8x128xf32>
    %c0_6 = arith.constant 0 : index
    %c0_7 = arith.constant 0 : index
    %8 = vector.load %arg8[%c0_6, %c0_7] : memref<8x128xf32, #tpu.memory_space<vmem>>, vector<8x128xf32>
    tpu.vector_store %arg8[%c0_6, %c0_7], %7 {strides = array<i32>} : memref<8x128xf32, #tpu.memory_space<vmem>>, vector<8x128xf32>,
    %c0_i32_8 = arith.constant 0 : i32
    %9 = arith.cmpi eq, %arg2, %c0_i32_8 : i32
    %10 = arith.extui %9 : i1 to i32
    %c0_i32_9 = arith.constant 0 : i32
    %11 = arith.cmpi ne, %10, %c0_i32_9 : i32
    scf.if %11 {
      %c0_10 = arith.constant 0 : index
      %c0_11 = arith.constant 0 : index
      %12 = vector.load %arg8[%c0_10, %c0_11] : memref<8x128xf32, #tpu.memory_space<vmem>>, vector<8x128xf32>
      %c0_12 = arith.constant 0 : index
      %c0_13 = arith.constant 0 : index
      %13 = vector.load %arg5[%c0_12, %c0_13] : memref<1x128xf32, #tpu.memory_space<vmem>>, vector<1x128xf32>
      %14 = vector.broadcast %13 : vector<1x128xf32> to vector<8x128xf32>
      %15 = arith.mulf %12, %14 : vector<8x128xf32>
      %c0_14 = arith.constant 0 : index
      %c0_15 = arith.constant 0 : index
      %16 = vector.load %arg6[%c0_14, %c0_15] : memref<1x128xf32, #tpu.memory_space<vmem>>, vector<1x128xf32>
      %17 = vector.broadcast %16 : vector<1x128xf32> to vector<8x128xf32>
      %18 = arith.addf %15, %17 : vector<8x128xf32>
      %19 = arith.truncf %18 : vector<8x128xf32> to vector<8x128xbf16>
      %c0_16 = arith.constant 0 : index
      %c0_17 = arith.constant 0 : index
      %20 = vector.load %arg7[%c0_16, %c0_17] : memref<8x128xbf16, #tpu.memory_space<vmem>>, vector<8x128xbf16>
      tpu.vector_store %arg7[%c0_16, %c0_17], %19 {strides = array<i32>} : memref<8x128xbf16, #tpu.memory_space<vmem>>, vector<8x128xbf16>,
    } else {
    }
    return
  }
  func.func @transform_0(%arg0: i32, %arg1: i32, %arg2: i32) -> (i32, i32) {
    %c0_i32 = arith.constant 0 : i32
    return %arg0, %arg2 : i32, i32
  }
  func.func @transform_1(%arg0: i32, %arg1: i32, %arg2: i32) -> (i32, i32) {
    %c0_i32 = arith.constant 0 : i32
    return %arg2, %arg1 : i32, i32
  }
  func.func @transform_2(%arg0: i32, %arg1: i32, %arg2: i32) -> (i32, i32) {
    %c0_i32 = arith.constant 0 : i32
    %c0_i32_0 = arith.constant 0 : i32
    return %c0_i32, %arg1 : i32, i32
  }
  func.func @transform_3(%arg0: i32, %arg1: i32, %arg2: i32) -> (i32, i32) {
    %c0_i32 = arith.constant 0 : i32
    %c0_i32_0 = arith.constant 0 : i32
    return %c0_i32, %arg1 : i32, i32
  }
  func.func @transform_4(%arg0: i32, %arg1: i32, %arg2: i32) -> (i32, i32) {
    %c0_i32 = arith.constant 0 : i32
    return %arg0, %arg1 : i32, i32
  }
}

module attributes {stable_mosaic.version = 11 : i64} {
  func.func @_fused_mm_kernel(%arg0: i32, %arg1: i32, %arg2: i32, %arg3: memref<8x384xbf16, #tpu.memory_space<vmem>>, %arg4: memref<384x128xbf16, #tpu.memory_space<vmem>>, %arg5: memref<1x128xf32, #tpu.memory_space<vmem>>, %arg6: memref<1x128xf32, #tpu.memory_space<vmem>>, %arg7: memref<8x128xbf16, #tpu.memory_space<vmem>>, %arg8: memref<8x128xbf16, #tpu.memory_space<vmem>>, %arg9: memref<8x128xf32, #tpu.memory_space<vmem>>) attributes {dimension_semantics = [#tpu.dimension_semantics<parallel>, #tpu.dimension_semantics<parallel>, #tpu.dimension_semantics<arbitrary>], iteration_bounds = array<i64: 1, 2, 6>, scalar_prefetch = 0 : i64, scratch_operands = 1 : i64, tpu.core_type = #tpu.core_type<tc>, window_params = [{transform_indices = @transform_0, window_bounds = array<i64: 8, 384>}, {transform_indices = @transform_1, window_bounds = array<i64: 384, 128>}, {transform_indices = @transform_2, window_bounds = array<i64: 1, 128>}, {transform_indices = @transform_3, window_bounds = array<i64: 1, 128>}, {transform_indices = @transform_4, window_bounds = array<i64: 8, 128>}, {transform_indices = @transform_5, window_bounds = array<i64: 8, 128>}]} {
    %c0_i32 = arith.constant 0 : i32
    %0 = arith.cmpi eq, %arg2, %c0_i32 : i32
    %1 = arith.extui %0 : i1 to i32
    %c0_i32_0 = arith.constant 0 : i32
    %2 = arith.cmpi ne, %1, %c0_i32_0 : i32
    scf.if %2 {
      %cst_9 = arith.constant 0.000000e+00 : f32
      %12 = vector.broadcast %cst_9 : f32 to vector<8x128xf32>
      %c0_10 = arith.constant 0 : index
      %c0_11 = arith.constant 0 : index
      %13 = vector.load %arg9[%c0_10, %c0_11] : memref<8x128xf32, #tpu.memory_space<vmem>>, vector<8x128xf32>
      tpu.vector_store %arg9[%c0_10, %c0_11], %12 {strides = array<i32>} : memref<8x128xf32, #tpu.memory_space<vmem>>, vector<8x128xf32>,
    } else {
    }
    %c0 = arith.constant 0 : index
    %c0_1 = arith.constant 0 : index
    %3 = vector.load %arg3[%c0, %c0_1] : memref<8x384xbf16, #tpu.memory_space<vmem>>, vector<8x384xbf16>
    %c0_2 = arith.constant 0 : index
    %c0_3 = arith.constant 0 : index
    %4 = vector.load %arg9[%c0_2, %c0_3] : memref<8x128xf32, #tpu.memory_space<vmem>>, vector<8x128xf32>
    %c0_4 = arith.constant 0 : index
    %c0_5 = arith.constant 0 : index
    %5 = vector.load %arg4[%c0_4, %c0_5] : memref<384x128xbf16, #tpu.memory_space<vmem>>, vector<384x128xbf16>
    %cst = arith.constant dense<0.000000e+00> : vector<8x128xf32>
    %6 = tpu.matmul %3, %5, %cst {dimension_numbers = #tpu.dot_dimension_numbers<[1], [0], [0], [1], [0, 0, 1, 1], [], []>} : vector<8x384xbf16>, vector<384x128xbf16>, vector<8x128xf32> -> vector<8x128xf32>
    %7 = arith.addf %4, %6 : vector<8x128xf32>
    %c0_6 = arith.constant 0 : index
    %c0_7 = arith.constant 0 : index
    %8 = vector.load %arg9[%c0_6, %c0_7] : memref<8x128xf32, #tpu.memory_space<vmem>>, vector<8x128xf32>
    tpu.vector_store %arg9[%c0_6, %c0_7], %7 {strides = array<i32>} : memref<8x128xf32, #tpu.memory_space<vmem>>, vector<8x128xf32>,
    %c5_i32 = arith.constant 5 : i32
    %9 = arith.cmpi eq, %arg2, %c5_i32 : i32
    %10 = arith.extui %9 : i1 to i32
    %c0_i32_8 = arith.constant 0 : i32
    %11 = arith.cmpi ne, %10, %c0_i32_8 : i32
    scf.if %11 {
      %c0_9 = arith.constant 0 : index
      %c0_10 = arith.constant 0 : index
      %12 = vector.load %arg9[%c0_9, %c0_10] : memref<8x128xf32, #tpu.memory_space<vmem>>, vector<8x128xf32>
      %c0_11 = arith.constant 0 : index
      %c0_12 = arith.constant 0 : index
      %13 = vector.load %arg5[%c0_11, %c0_12] : memref<1x128xf32, #tpu.memory_space<vmem>>, vector<1x128xf32>
      %14 = vector.broadcast %13 : vector<1x128xf32> to vector<8x128xf32>
      %15 = arith.mulf %12, %14 : vector<8x128xf32>
      %c0_13 = arith.constant 0 : index
      %c0_14 = arith.constant 0 : index
      %16 = vector.load %arg6[%c0_13, %c0_14] : memref<1x128xf32, #tpu.memory_space<vmem>>, vector<1x128xf32>
      %17 = vector.broadcast %16 : vector<1x128xf32> to vector<8x128xf32>
      %18 = arith.addf %15, %17 : vector<8x128xf32>
      %c0_15 = arith.constant 0 : index
      %c0_16 = arith.constant 0 : index
      %19 = vector.load %arg7[%c0_15, %c0_16] : memref<8x128xbf16, #tpu.memory_space<vmem>>, vector<8x128xbf16>
      %20 = arith.extf %19 : vector<8x128xbf16> to vector<8x128xf32>
      %21 = arith.addf %18, %20 : vector<8x128xf32>
      %cst_17 = arith.constant 0.000000e+00 : f32
      %22 = vector.broadcast %cst_17 : f32 to vector<8x128xf32>
      %23 = arith.maximumf %21, %22 : vector<8x128xf32>
      %24 = arith.truncf %23 : vector<8x128xf32> to vector<8x128xbf16>
      %c0_18 = arith.constant 0 : index
      %c0_19 = arith.constant 0 : index
      %25 = vector.load %arg8[%c0_18, %c0_19] : memref<8x128xbf16, #tpu.memory_space<vmem>>, vector<8x128xbf16>
      tpu.vector_store %arg8[%c0_18, %c0_19], %24 {strides = array<i32>} : memref<8x128xbf16, #tpu.memory_space<vmem>>, vector<8x128xbf16>,
    } else {
    }
    return
  }
  func.func @transform_0(%arg0: i32, %arg1: i32, %arg2: i32) -> (i32, i32) {
    %c0_i32 = arith.constant 0 : i32
    return %arg0, %arg2 : i32, i32
  }
  func.func @transform_1(%arg0: i32, %arg1: i32, %arg2: i32) -> (i32, i32) {
    %c0_i32 = arith.constant 0 : i32
    return %arg2, %arg1 : i32, i32
  }
  func.func @transform_2(%arg0: i32, %arg1: i32, %arg2: i32) -> (i32, i32) {
    %c0_i32 = arith.constant 0 : i32
    %c0_i32_0 = arith.constant 0 : i32
    return %c0_i32, %arg1 : i32, i32
  }
  func.func @transform_3(%arg0: i32, %arg1: i32, %arg2: i32) -> (i32, i32) {
    %c0_i32 = arith.constant 0 : i32
    %c0_i32_0 = arith.constant 0 : i32
    return %c0_i32, %arg1 : i32, i32
  }
  func.func @transform_4(%arg0: i32, %arg1: i32, %arg2: i32) -> (i32, i32) {
    %c0_i32 = arith.constant 0 : i32
    return %arg0, %arg1 : i32, i32
  }
  func.func @transform_5(%arg0: i32, %arg1: i32, %arg2: i32) -> (i32, i32) {
    %c0_i32 = arith.constant 0 : i32
    return %arg0, %arg1 : i32, i32
  }
}

module attributes {stable_mosaic.version = 11 : i64} {
  func.func @_fused_mm_kernel(%arg0: i32, %arg1: i32, %arg2: i32, %arg3: memref<8x384xbf16, #tpu.memory_space<vmem>>, %arg4: memref<384x128xbf16, #tpu.memory_space<vmem>>, %arg5: memref<1x128xf32, #tpu.memory_space<vmem>>, %arg6: memref<1x128xf32, #tpu.memory_space<vmem>>, %arg7: memref<8x128xbf16, #tpu.memory_space<vmem>>, %arg8: memref<8x128xf32, #tpu.memory_space<vmem>>) attributes {dimension_semantics = [#tpu.dimension_semantics<parallel>, #tpu.dimension_semantics<parallel>, #tpu.dimension_semantics<arbitrary>], iteration_bounds = array<i64: 1, 2, 6>, scalar_prefetch = 0 : i64, scratch_operands = 1 : i64, tpu.core_type = #tpu.core_type<tc>, window_params = [{transform_indices = @transform_0, window_bounds = array<i64: 8, 384>}, {transform_indices = @transform_1, window_bounds = array<i64: 384, 128>}, {transform_indices = @transform_2, window_bounds = array<i64: 1, 128>}, {transform_indices = @transform_3, window_bounds = array<i64: 1, 128>}, {transform_indices = @transform_4, window_bounds = array<i64: 8, 128>}]} {
    %c0_i32 = arith.constant 0 : i32
    %0 = arith.cmpi eq, %arg2, %c0_i32 : i32
    %1 = arith.extui %0 : i1 to i32
    %c0_i32_0 = arith.constant 0 : i32
    %2 = arith.cmpi ne, %1, %c0_i32_0 : i32
    scf.if %2 {
      %cst_9 = arith.constant 0.000000e+00 : f32
      %12 = vector.broadcast %cst_9 : f32 to vector<8x128xf32>
      %c0_10 = arith.constant 0 : index
      %c0_11 = arith.constant 0 : index
      %13 = vector.load %arg8[%c0_10, %c0_11] : memref<8x128xf32, #tpu.memory_space<vmem>>, vector<8x128xf32>
      tpu.vector_store %arg8[%c0_10, %c0_11], %12 {strides = array<i32>} : memref<8x128xf32, #tpu.memory_space<vmem>>, vector<8x128xf32>,
    } else {
    }
    %c0 = arith.constant 0 : index
    %c0_1 = arith.constant 0 : index
    %3 = vector.load %arg3[%c0, %c0_1] : memref<8x384xbf16, #tpu.memory_space<vmem>>, vector<8x384xbf16>
    %c0_2 = arith.constant 0 : index
    %c0_3 = arith.constant 0 : index
    %4 = vector.load %arg8[%c0_2, %c0_3] : memref<8x128xf32, #tpu.memory_space<vmem>>, vector<8x128xf32>
    %c0_4 = arith.constant 0 : index
    %c0_5 = arith.constant 0 : index
    %5 = vector.load %arg4[%c0_4, %c0_5] : memref<384x128xbf16, #tpu.memory_space<vmem>>, vector<384x128xbf16>
    %cst = arith.constant dense<0.000000e+00> : vector<8x128xf32>
    %6 = tpu.matmul %3, %5, %cst {dimension_numbers = #tpu.dot_dimension_numbers<[1], [0], [0], [1], [0, 0, 1, 1], [], []>} : vector<8x384xbf16>, vector<384x128xbf16>, vector<8x128xf32> -> vector<8x128xf32>
    %7 = arith.addf %4, %6 : vector<8x128xf32>
    %c0_6 = arith.constant 0 : index
    %c0_7 = arith.constant 0 : index
    %8 = vector.load %arg8[%c0_6, %c0_7] : memref<8x128xf32, #tpu.memory_space<vmem>>, vector<8x128xf32>
    tpu.vector_store %arg8[%c0_6, %c0_7], %7 {strides = array<i32>} : memref<8x128xf32, #tpu.memory_space<vmem>>, vector<8x128xf32>,
    %c5_i32 = arith.constant 5 : i32
    %9 = arith.cmpi eq, %arg2, %c5_i32 : i32
    %10 = arith.extui %9 : i1 to i32
    %c0_i32_8 = arith.constant 0 : i32
    %11 = arith.cmpi ne, %10, %c0_i32_8 : i32
    scf.if %11 {
      %c0_9 = arith.constant 0 : index
      %c0_10 = arith.constant 0 : index
      %12 = vector.load %arg8[%c0_9, %c0_10] : memref<8x128xf32, #tpu.memory_space<vmem>>, vector<8x128xf32>
      %c0_11 = arith.constant 0 : index
      %c0_12 = arith.constant 0 : index
      %13 = vector.load %arg5[%c0_11, %c0_12] : memref<1x128xf32, #tpu.memory_space<vmem>>, vector<1x128xf32>
      %14 = vector.broadcast %13 : vector<1x128xf32> to vector<8x128xf32>
      %15 = arith.mulf %12, %14 : vector<8x128xf32>
      %c0_13 = arith.constant 0 : index
      %c0_14 = arith.constant 0 : index
      %16 = vector.load %arg6[%c0_13, %c0_14] : memref<1x128xf32, #tpu.memory_space<vmem>>, vector<1x128xf32>
      %17 = vector.broadcast %16 : vector<1x128xf32> to vector<8x128xf32>
      %18 = arith.addf %15, %17 : vector<8x128xf32>
      %cst_15 = arith.constant 0.000000e+00 : f32
      %19 = vector.broadcast %cst_15 : f32 to vector<8x128xf32>
      %20 = arith.maximumf %18, %19 : vector<8x128xf32>
      %21 = arith.truncf %20 : vector<8x128xf32> to vector<8x128xbf16>
      %c0_16 = arith.constant 0 : index
      %c0_17 = arith.constant 0 : index
      %22 = vector.load %arg7[%c0_16, %c0_17] : memref<8x128xbf16, #tpu.memory_space<vmem>>, vector<8x128xbf16>
      tpu.vector_store %arg7[%c0_16, %c0_17], %21 {strides = array<i32>} : memref<8x128xbf16, #tpu.memory_space<vmem>>, vector<8x128xbf16>,
    } else {
    }
    return
  }
  func.func @transform_0(%arg0: i32, %arg1: i32, %arg2: i32) -> (i32, i32) {
    %c0_i32 = arith.constant 0 : i32
    return %arg0, %arg2 : i32, i32
  }
  func.func @transform_1(%arg0: i32, %arg1: i32, %arg2: i32) -> (i32, i32) {
    %c0_i32 = arith.constant 0 : i32
    return %arg2, %arg1 : i32, i32
  }
  func.func @transform_2(%arg0: i32, %arg1: i32, %arg2: i32) -> (i32, i32) {
    %c0_i32 = arith.constant 0 : i32
    %c0_i32_0 = arith.constant 0 : i32
    return %c0_i32, %arg1 : i32, i32
  }
  func.func @transform_3(%arg0: i32, %arg1: i32, %arg2: i32) -> (i32, i32) {
    %c0_i32 = arith.constant 0 : i32
    %c0_i32_0 = arith.constant 0 : i32
    return %c0_i32, %arg1 : i32, i32
  }
  func.func @transform_4(%arg0: i32, %arg1: i32, %arg2: i32) -> (i32, i32) {
    %c0_i32 = arith.constant 0 : i32
    return %arg0, %arg1 : i32, i32
  }
}

module attributes {stable_mosaic.version = 11 : i64} {
  func.func @_fused_mm_kernel(%arg0: i32, %arg1: i32, %arg2: i32, %arg3: memref<8x384xbf16, #tpu.memory_space<vmem>>, %arg4: memref<384x128xbf16, #tpu.memory_space<vmem>>, %arg5: memref<1x128xf32, #tpu.memory_space<vmem>>, %arg6: memref<8x128xbf16, #tpu.memory_space<vmem>>, %arg7: memref<8x128xf32, #tpu.memory_space<vmem>>) attributes {dimension_semantics = [#tpu.dimension_semantics<parallel>, #tpu.dimension_semantics<parallel>, #tpu.dimension_semantics<arbitrary>], iteration_bounds = array<i64: 1, 1, 30>, scalar_prefetch = 0 : i64, scratch_operands = 1 : i64, tpu.core_type = #tpu.core_type<tc>, window_params = [{transform_indices = @transform_0, window_bounds = array<i64: 8, 384>}, {transform_indices = @transform_1, window_bounds = array<i64: 384, 128>}, {transform_indices = @transform_2, window_bounds = array<i64: 1, 128>}, {transform_indices = @transform_3, window_bounds = array<i64: 8, 128>}]} {
    %c0_i32 = arith.constant 0 : i32
    %0 = arith.cmpi eq, %arg2, %c0_i32 : i32
    %1 = arith.extui %0 : i1 to i32
    %c0_i32_0 = arith.constant 0 : i32
    %2 = arith.cmpi ne, %1, %c0_i32_0 : i32
    scf.if %2 {
      %cst_10 = arith.constant 0.000000e+00 : f32
      %14 = vector.broadcast %cst_10 : f32 to vector<8x128xf32>
      %c0_11 = arith.constant 0 : index
      %c0_12 = arith.constant 0 : index
      %15 = vector.load %arg7[%c0_11, %c0_12] : memref<8x128xf32, #tpu.memory_space<vmem>>, vector<8x128xf32>
      tpu.vector_store %arg7[%c0_11, %c0_12], %14 {strides = array<i32>} : memref<8x128xf32, #tpu.memory_space<vmem>>, vector<8x128xf32>,
    } else {
    }
    %c0 = arith.constant 0 : index
    %c0_1 = arith.constant 0 : index
    %3 = vector.load %arg3[%c0, %c0_1] : memref<8x384xbf16, #tpu.memory_space<vmem>>, vector<8x384xbf16>
    %cst = arith.constant 0.000000e+00 : bf16
    %4 = vector.broadcast %cst : bf16 to vector<8x384xbf16>
    %5 = arith.maximumf %3, %4 : vector<8x384xbf16>
    %c0_2 = arith.constant 0 : index
    %c0_3 = arith.constant 0 : index
    %6 = vector.load %arg7[%c0_2, %c0_3] : memref<8x128xf32, #tpu.memory_space<vmem>>, vector<8x128xf32>
    %c0_4 = arith.constant 0 : index
    %c0_5 = arith.constant 0 : index
    %7 = vector.load %arg4[%c0_4, %c0_5] : memref<384x128xbf16, #tpu.memory_space<vmem>>, vector<384x128xbf16>
    %cst_6 = arith.constant dense<0.000000e+00> : vector<8x128xf32>
    %8 = tpu.matmul %5, %7, %cst_6 {dimension_numbers = #tpu.dot_dimension_numbers<[1], [0], [0], [1], [0, 0, 1, 1], [], []>} : vector<8x384xbf16>, vector<384x128xbf16>, vector<8x128xf32> -> vector<8x128xf32>
    %9 = arith.addf %6, %8 : vector<8x128xf32>
    %c0_7 = arith.constant 0 : index
    %c0_8 = arith.constant 0 : index
    %10 = vector.load %arg7[%c0_7, %c0_8] : memref<8x128xf32, #tpu.memory_space<vmem>>, vector<8x128xf32>
    tpu.vector_store %arg7[%c0_7, %c0_8], %9 {strides = array<i32>} : memref<8x128xf32, #tpu.memory_space<vmem>>, vector<8x128xf32>,
    %c29_i32 = arith.constant 29 : i32
    %11 = arith.cmpi eq, %arg2, %c29_i32 : i32
    %12 = arith.extui %11 : i1 to i32
    %c0_i32_9 = arith.constant 0 : i32
    %13 = arith.cmpi ne, %12, %c0_i32_9 : i32
    scf.if %13 {
      %c0_10 = arith.constant 0 : index
      %c0_11 = arith.constant 0 : index
      %14 = vector.load %arg7[%c0_10, %c0_11] : memref<8x128xf32, #tpu.memory_space<vmem>>, vector<8x128xf32>
      %c0_12 = arith.constant 0 : index
      %c0_13 = arith.constant 0 : index
      %15 = vector.load %arg5[%c0_12, %c0_13] : memref<1x128xf32, #tpu.memory_space<vmem>>, vector<1x128xf32>
      %16 = vector.broadcast %15 : vector<1x128xf32> to vector<8x128xf32>
      %17 = arith.addf %14, %16 : vector<8x128xf32>
      %18 = arith.truncf %17 : vector<8x128xf32> to vector<8x128xbf16>
      %c0_14 = arith.constant 0 : index
      %c0_15 = arith.constant 0 : index
      %19 = vector.load %arg6[%c0_14, %c0_15] : memref<8x128xbf16, #tpu.memory_space<vmem>>, vector<8x128xbf16>
      tpu.vector_store %arg6[%c0_14, %c0_15], %18 {strides = array<i32>} : memref<8x128xbf16, #tpu.memory_space<vmem>>, vector<8x128xbf16>,
    } else {
    }
    return
  }
  func.func @transform_0(%arg0: i32, %arg1: i32, %arg2: i32) -> (i32, i32) {
    %c0_i32 = arith.constant 0 : i32
    return %arg0, %arg2 : i32, i32
  }
  func.func @transform_1(%arg0: i32, %arg1: i32, %arg2: i32) -> (i32, i32) {
    %c0_i32 = arith.constant 0 : i32
    return %arg2, %arg1 : i32, i32
  }
  func.func @transform_2(%arg0: i32, %arg1: i32, %arg2: i32) -> (i32, i32) {
    %c0_i32 = arith.constant 0 : i32
    %c0_i32_0 = arith.constant 0 : i32
    return %c0_i32, %arg1 : i32, i32
  }
  func.func @transform_3(%arg0: i32, %arg1: i32, %arg2: i32) -> (i32, i32) {
    %c0_i32 = arith.constant 0 : i32
    return %arg0, %arg1 : i32, i32
  }
}

module attributes {stable_mosaic.version = 11 : i64} {
  func.func @_fused_mm_kernel(%arg0: i32, %arg1: i32, %arg2: i32, %arg3: memref<8x384xbf16, #tpu.memory_space<vmem>>, %arg4: memref<384x128xbf16, #tpu.memory_space<vmem>>, %arg5: memref<1x128xf32, #tpu.memory_space<vmem>>, %arg6: memref<8x128xbf16, #tpu.memory_space<vmem>>, %arg7: memref<8x128xf32, #tpu.memory_space<vmem>>) attributes {dimension_semantics = [#tpu.dimension_semantics<parallel>, #tpu.dimension_semantics<parallel>, #tpu.dimension_semantics<arbitrary>], iteration_bounds = array<i64: 1, 1, 30>, scalar_prefetch = 0 : i64, scratch_operands = 1 : i64, tpu.core_type = #tpu.core_type<tc>, window_params = [{transform_indices = @transform_0, window_bounds = array<i64: 8, 384>}, {transform_indices = @transform_1, window_bounds = array<i64: 384, 128>}, {transform_indices = @transform_2, window_bounds = array<i64: 1, 128>}, {transform_indices = @transform_3, window_bounds = array<i64: 8, 128>}]} {
    %c0_i32 = arith.constant 0 : i32
    %0 = arith.cmpi eq, %arg2, %c0_i32 : i32
    %1 = arith.extui %0 : i1 to i32
    %c0_i32_0 = arith.constant 0 : i32
    %2 = arith.cmpi ne, %1, %c0_i32_0 : i32
    scf.if %2 {
      %cst_9 = arith.constant 0.000000e+00 : f32
      %12 = vector.broadcast %cst_9 : f32 to vector<8x128xf32>
      %c0_10 = arith.constant 0 : index
      %c0_11 = arith.constant 0 : index
      %13 = vector.load %arg7[%c0_10, %c0_11] : memref<8x128xf32, #tpu.memory_space<vmem>>, vector<8x128xf32>
      tpu.vector_store %arg7[%c0_10, %c0_11], %12 {strides = array<i32>} : memref<8x128xf32, #tpu.memory_space<vmem>>, vector<8x128xf32>,
    } else {
    }
    %c0 = arith.constant 0 : index
    %c0_1 = arith.constant 0 : index
    %3 = vector.load %arg3[%c0, %c0_1] : memref<8x384xbf16, #tpu.memory_space<vmem>>, vector<8x384xbf16>
    %c0_2 = arith.constant 0 : index
    %c0_3 = arith.constant 0 : index
    %4 = vector.load %arg7[%c0_2, %c0_3] : memref<8x128xf32, #tpu.memory_space<vmem>>, vector<8x128xf32>
    %c0_4 = arith.constant 0 : index
    %c0_5 = arith.constant 0 : index
    %5 = vector.load %arg4[%c0_4, %c0_5] : memref<384x128xbf16, #tpu.memory_space<vmem>>, vector<384x128xbf16>
    %cst = arith.constant dense<0.000000e+00> : vector<8x128xf32>
    %6 = tpu.matmul %3, %5, %cst {dimension_numbers = #tpu.dot_dimension_numbers<[1], [0], [0], [1], [0, 0, 1, 1], [], []>} : vector<8x384xbf16>, vector<384x128xbf16>, vector<8x128xf32> -> vector<8x128xf32>
    %7 = arith.addf %4, %6 : vector<8x128xf32>
    %c0_6 = arith.constant 0 : index
    %c0_7 = arith.constant 0 : index
    %8 = vector.load %arg7[%c0_6, %c0_7] : memref<8x128xf32, #tpu.memory_space<vmem>>, vector<8x128xf32>
    tpu.vector_store %arg7[%c0_6, %c0_7], %7 {strides = array<i32>} : memref<8x128xf32, #tpu.memory_space<vmem>>, vector<8x128xf32>,
    %c29_i32 = arith.constant 29 : i32
    %9 = arith.cmpi eq, %arg2, %c29_i32 : i32
    %10 = arith.extui %9 : i1 to i32
    %c0_i32_8 = arith.constant 0 : i32
    %11 = arith.cmpi ne, %10, %c0_i32_8 : i32
    scf.if %11 {
      %c0_9 = arith.constant 0 : index
      %c0_10 = arith.constant 0 : index
      %12 = vector.load %arg7[%c0_9, %c0_10] : memref<8x128xf32, #tpu.memory_space<vmem>>, vector<8x128xf32>
      %c0_11 = arith.constant 0 : index
      %c0_12 = arith.constant 0 : index
      %13 = vector.load %arg5[%c0_11, %c0_12] : memref<1x128xf32, #tpu.memory_space<vmem>>, vector<1x128xf32>
      %14 = vector.broadcast %13 : vector<1x128xf32> to vector<8x128xf32>
      %15 = arith.addf %12, %14 : vector<8x128xf32>
      %16 = arith.truncf %15 : vector<8x128xf32> to vector<8x128xbf16>
      %c0_13 = arith.constant 0 : index
      %c0_14 = arith.constant 0 : index
      %17 = vector.load %arg6[%c0_13, %c0_14] : memref<8x128xbf16, #tpu.memory_space<vmem>>, vector<8x128xbf16>
      tpu.vector_store %arg6[%c0_13, %c0_14], %16 {strides = array<i32>} : memref<8x128xbf16, #tpu.memory_space<vmem>>, vector<8x128xbf16>,
    } else {
    }
    return
  }
  func.func @transform_0(%arg0: i32, %arg1: i32, %arg2: i32) -> (i32, i32) {
    %c0_i32 = arith.constant 0 : i32
    return %arg0, %arg2 : i32, i32
  }
  func.func @transform_1(%arg0: i32, %arg1: i32, %arg2: i32) -> (i32, i32) {
    %c0_i32 = arith.constant 0 : i32
    return %arg2, %arg1 : i32, i32
  }
  func.func @transform_2(%arg0: i32, %arg1: i32, %arg2: i32) -> (i32, i32) {
    %c0_i32 = arith.constant 0 : i32
    %c0_i32_0 = arith.constant 0 : i32
    return %c0_i32, %arg1 : i32, i32
  }
  func.func @transform_3(%arg0: i32, %arg1: i32, %arg2: i32) -> (i32, i32) {
    %c0_i32 = arith.constant 0 : i32
    return %arg0, %arg1 : i32, i32
  }
}

module attributes {stable_mosaic.version = 11 : i64} {
  func.func @_fused_mm_kernel(%arg0: i32, %arg1: i32, %arg2: i32, %arg3: memref<8x384xbf16, #tpu.memory_space<vmem>>, %arg4: memref<384x128xbf16, #tpu.memory_space<vmem>>, %arg5: memref<1x128xf32, #tpu.memory_space<vmem>>, %arg6: memref<8x128xbf16, #tpu.memory_space<vmem>>, %arg7: memref<8x128xbf16, #tpu.memory_space<vmem>>, %arg8: memref<8x128xf32, #tpu.memory_space<vmem>>) attributes {dimension_semantics = [#tpu.dimension_semantics<parallel>, #tpu.dimension_semantics<parallel>, #tpu.dimension_semantics<arbitrary>], iteration_bounds = array<i64: 1, 1, 1>, scalar_prefetch = 0 : i64, scratch_operands = 1 : i64, tpu.core_type = #tpu.core_type<tc>, window_params = [{transform_indices = @transform_0, window_bounds = array<i64: 8, 384>}, {transform_indices = @transform_1, window_bounds = array<i64: 384, 128>}, {transform_indices = @transform_2, window_bounds = array<i64: 1, 128>}, {transform_indices = @transform_3, window_bounds = array<i64: 8, 128>}, {transform_indices = @transform_4, window_bounds = array<i64: 8, 128>}]} {
    %c0_i32 = arith.constant 0 : i32
    %0 = arith.cmpi eq, %arg2, %c0_i32 : i32
    %1 = arith.extui %0 : i1 to i32
    %c0_i32_0 = arith.constant 0 : i32
    %2 = arith.cmpi ne, %1, %c0_i32_0 : i32
    scf.if %2 {
      %cst_11 = arith.constant 0.000000e+00 : f32
      %14 = vector.broadcast %cst_11 : f32 to vector<8x128xf32>
      %c0_12 = arith.constant 0 : index
      %c0_13 = arith.constant 0 : index
      %15 = vector.load %arg8[%c0_12, %c0_13] : memref<8x128xf32, #tpu.memory_space<vmem>>, vector<8x128xf32>
      tpu.vector_store %arg8[%c0_12, %c0_13], %14 {strides = array<i32>} : memref<8x128xf32, #tpu.memory_space<vmem>>, vector<8x128xf32>,
    } else {
    }
    %c0 = arith.constant 0 : index
    %c0_1 = arith.constant 0 : index
    %3 = vector.load %arg3[%c0, %c0_1] : memref<8x384xbf16, #tpu.memory_space<vmem>>, vector<8x384xbf16>
    %cst = arith.constant 0.000000e+00 : bf16
    %4 = vector.broadcast %cst : bf16 to vector<8x384xbf16>
    %5 = arith.maximumf %3, %4 : vector<8x384xbf16>
    %c0_2 = arith.constant 0 : index
    %c0_3 = arith.constant 0 : index
    %6 = vector.load %arg8[%c0_2, %c0_3] : memref<8x128xf32, #tpu.memory_space<vmem>>, vector<8x128xf32>
    %c0_4 = arith.constant 0 : index
    %c0_5 = arith.constant 0 : index
    %7 = vector.load %arg4[%c0_4, %c0_5] : memref<384x128xbf16, #tpu.memory_space<vmem>>, vector<384x128xbf16>
    %cst_6 = arith.constant dense<0.000000e+00> : vector<8x128xf32>
    %8 = tpu.matmul %5, %7, %cst_6 {dimension_numbers = #tpu.dot_dimension_numbers<[1], [0], [0], [1], [0, 0, 1, 1], [], []>} : vector<8x384xbf16>, vector<384x128xbf16>, vector<8x128xf32> -> vector<8x128xf32>
    %9 = arith.addf %6, %8 : vector<8x128xf32>
    %c0_7 = arith.constant 0 : index
    %c0_8 = arith.constant 0 : index
    %10 = vector.load %arg8[%c0_7, %c0_8] : memref<8x128xf32, #tpu.memory_space<vmem>>, vector<8x128xf32>
    tpu.vector_store %arg8[%c0_7, %c0_8], %9 {strides = array<i32>} : memref<8x128xf32, #tpu.memory_space<vmem>>, vector<8x128xf32>,
    %c0_i32_9 = arith.constant 0 : i32
    %11 = arith.cmpi eq, %arg2, %c0_i32_9 : i32
    %12 = arith.extui %11 : i1 to i32
    %c0_i32_10 = arith.constant 0 : i32
    %13 = arith.cmpi ne, %12, %c0_i32_10 : i32
    scf.if %13 {
      %c0_11 = arith.constant 0 : index
      %c0_12 = arith.constant 0 : index
      %14 = vector.load %arg8[%c0_11, %c0_12] : memref<8x128xf32, #tpu.memory_space<vmem>>, vector<8x128xf32>
      %c0_13 = arith.constant 0 : index
      %c0_14 = arith.constant 0 : index
      %15 = vector.load %arg5[%c0_13, %c0_14] : memref<1x128xf32, #tpu.memory_space<vmem>>, vector<1x128xf32>
      %16 = vector.broadcast %15 : vector<1x128xf32> to vector<8x128xf32>
      %17 = arith.addf %14, %16 : vector<8x128xf32>
      %c0_15 = arith.constant 0 : index
      %c0_16 = arith.constant 0 : index
      %18 = vector.load %arg6[%c0_15, %c0_16] : memref<8x128xbf16, #tpu.memory_space<vmem>>, vector<8x128xbf16>
      %19 = arith.extf %18 : vector<8x128xbf16> to vector<8x128xf32>
      %20 = arith.addf %17, %19 : vector<8x128xf32>
      %21 = arith.truncf %20 : vector<8x128xf32> to vector<8x128xbf16>
      %c0_17 = arith.constant 0 : index
      %c0_18 = arith.constant 0 : index
      %22 = vector.load %arg7[%c0_17, %c0_18] : memref<8x128xbf16, #tpu.memory_space<vmem>>, vector<8x128xbf16>
      tpu.vector_store %arg7[%c0_17, %c0_18], %21 {strides = array<i32>} : memref<8x128xbf16, #tpu.memory_space<vmem>>, vector<8x128xbf16>,
    } else {
    }
    return
  }
  func.func @transform_0(%arg0: i32, %arg1: i32, %arg2: i32) -> (i32, i32) {
    %c0_i32 = arith.constant 0 : i32
    return %arg0, %arg2 : i32, i32
  }
  func.func @transform_1(%arg0: i32, %arg1: i32, %arg2: i32) -> (i32, i32) {
    %c0_i32 = arith.constant 0 : i32
    return %arg2, %arg1 : i32, i32
  }
  func.func @transform_2(%arg0: i32, %arg1: i32, %arg2: i32) -> (i32, i32) {
    %c0_i32 = arith.constant 0 : i32
    %c0_i32_0 = arith.constant 0 : i32
    return %c0_i32, %arg1 : i32, i32
  }
  func.func @transform_3(%arg0: i32, %arg1: i32, %arg2: i32) -> (i32, i32) {
    %c0_i32 = arith.constant 0 : i32
    return %arg0, %arg1 : i32, i32
  }
  func.func @transform_4(%arg0: i32, %arg1: i32, %arg2: i32) -> (i32, i32) {
    %c0_i32 = arith.constant 0 : i32
    return %arg0, %arg1 : i32, i32
  }
}

module attributes {stable_mosaic.version = 11 : i64} {
  func.func @_fused_mm_kernel(%arg0: i32, %arg1: i32, %arg2: i32, %arg3: memref<8x128xbf16, #tpu.memory_space<vmem>>, %arg4: memref<128x128xbf16, #tpu.memory_space<vmem>>, %arg5: memref<1x128xf32, #tpu.memory_space<vmem>>, %arg6: memref<1x128xf32, #tpu.memory_space<vmem>>, %arg7: memref<8x128xf32, #tpu.memory_space<vmem>>, %arg8: memref<8x128xf32, #tpu.memory_space<vmem>>) attributes {dimension_semantics = [#tpu.dimension_semantics<parallel>, #tpu.dimension_semantics<parallel>, #tpu.dimension_semantics<arbitrary>], iteration_bounds = array<i64: 1, 1, 1>, scalar_prefetch = 0 : i64, scratch_operands = 1 : i64, tpu.core_type = #tpu.core_type<tc>, window_params = [{transform_indices = @transform_0, window_bounds = array<i64: 8, 128>}, {transform_indices = @transform_1, window_bounds = array<i64: 128, 128>}, {transform_indices = @transform_2, window_bounds = array<i64: 1, 128>}, {transform_indices = @transform_3, window_bounds = array<i64: 1, 128>}, {transform_indices = @transform_4, window_bounds = array<i64: 8, 128>}]} {
    %c0_i32 = arith.constant 0 : i32
    %0 = arith.cmpi eq, %arg2, %c0_i32 : i32
    %1 = arith.extui %0 : i1 to i32
    %c0_i32_0 = arith.constant 0 : i32
    %2 = arith.cmpi ne, %1, %c0_i32_0 : i32
    scf.if %2 {
      %cst_10 = arith.constant 0.000000e+00 : f32
      %12 = vector.broadcast %cst_10 : f32 to vector<8x128xf32>
      %c0_11 = arith.constant 0 : index
      %c0_12 = arith.constant 0 : index
      %13 = vector.load %arg8[%c0_11, %c0_12] : memref<8x128xf32, #tpu.memory_space<vmem>>, vector<8x128xf32>
      tpu.vector_store %arg8[%c0_11, %c0_12], %12 {strides = array<i32>} : memref<8x128xf32, #tpu.memory_space<vmem>>, vector<8x128xf32>,
    } else {
    }
    %c0 = arith.constant 0 : index
    %c0_1 = arith.constant 0 : index
    %3 = vector.load %arg3[%c0, %c0_1] : memref<8x128xbf16, #tpu.memory_space<vmem>>, vector<8x128xbf16>
    %c0_2 = arith.constant 0 : index
    %c0_3 = arith.constant 0 : index
    %4 = vector.load %arg8[%c0_2, %c0_3] : memref<8x128xf32, #tpu.memory_space<vmem>>, vector<8x128xf32>
    %c0_4 = arith.constant 0 : index
    %c0_5 = arith.constant 0 : index
    %5 = vector.load %arg4[%c0_4, %c0_5] : memref<128x128xbf16, #tpu.memory_space<vmem>>, vector<128x128xbf16>
    %cst = arith.constant dense<0.000000e+00> : vector<8x128xf32>
    %6 = tpu.matmul %3, %5, %cst {dimension_numbers = #tpu.dot_dimension_numbers<[1], [0], [0], [1], [0, 0, 1, 1], [], []>} : vector<8x128xbf16>, vector<128x128xbf16>, vector<8x128xf32> -> vector<8x128xf32>
    %7 = arith.addf %4, %6 : vector<8x128xf32>
    %c0_6 = arith.constant 0 : index
    %c0_7 = arith.constant 0 : index
    %8 = vector.load %arg8[%c0_6, %c0_7] : memref<8x128xf32, #tpu.memory_space<vmem>>, vector<8x128xf32>
    tpu.vector_store %arg8[%c0_6, %c0_7], %7 {strides = array<i32>} : memref<8x128xf32, #tpu.memory_space<vmem>>, vector<8x128xf32>,
    %c0_i32_8 = arith.constant 0 : i32
    %9 = arith.cmpi eq, %arg2, %c0_i32_8 : i32
    %10 = arith.extui %9 : i1 to i32
    %c0_i32_9 = arith.constant 0 : i32
    %11 = arith.cmpi ne, %10, %c0_i32_9 : i32
    scf.if %11 {
      %c0_10 = arith.constant 0 : index
      %c0_11 = arith.constant 0 : index
      %12 = vector.load %arg8[%c0_10, %c0_11] : memref<8x128xf32, #tpu.memory_space<vmem>>, vector<8x128xf32>
      %c0_12 = arith.constant 0 : index
      %c0_13 = arith.constant 0 : index
      %13 = vector.load %arg5[%c0_12, %c0_13] : memref<1x128xf32, #tpu.memory_space<vmem>>, vector<1x128xf32>
      %14 = vector.broadcast %13 : vector<1x128xf32> to vector<8x128xf32>
      %15 = arith.mulf %12, %14 : vector<8x128xf32>
      %c0_14 = arith.constant 0 : index
      %c0_15 = arith.constant 0 : index
      %16 = vector.load %arg6[%c0_14, %c0_15] : memref<1x128xf32, #tpu.memory_space<vmem>>, vector<1x128xf32>
      %17 = vector.broadcast %16 : vector<1x128xf32> to vector<8x128xf32>
      %18 = arith.addf %15, %17 : vector<8x128xf32>
      %c0_16 = arith.constant 0 : index
      %c0_17 = arith.constant 0 : index
      %19 = vector.load %arg7[%c0_16, %c0_17] : memref<8x128xf32, #tpu.memory_space<vmem>>, vector<8x128xf32>
      tpu.vector_store %arg7[%c0_16, %c0_17], %18 {strides = array<i32>} : memref<8x128xf32, #tpu.memory_space<vmem>>, vector<8x128xf32>,
    } else {
    }
    return
  }
  func.func @transform_0(%arg0: i32, %arg1: i32, %arg2: i32) -> (i32, i32) {
    %c0_i32 = arith.constant 0 : i32
    return %arg0, %arg2 : i32, i32
  }
  func.func @transform_1(%arg0: i32, %arg1: i32, %arg2: i32) -> (i32, i32) {
    %c0_i32 = arith.constant 0 : i32
    return %arg2, %arg1 : i32, i32
  }
  func.func @transform_2(%arg0: i32, %arg1: i32, %arg2: i32) -> (i32, i32) {
    %c0_i32 = arith.constant 0 : i32
    %c0_i32_0 = arith.constant 0 : i32
    return %c0_i32, %arg1 : i32, i32
  }
  func.func @transform_3(%arg0: i32, %arg1: i32, %arg2: i32) -> (i32, i32) {
    %c0_i32 = arith.constant 0 : i32
    %c0_i32_0 = arith.constant 0 : i32
    return %c0_i32, %arg1 : i32, i32
  }
  func.func @transform_4(%arg0: i32, %arg1: i32, %arg2: i32) -> (i32, i32) {
    %c0_i32 = arith.constant 0 : i32
    return %arg0, %arg1 : i32, i32
  }
}

module attributes {stable_mosaic.version = 11 : i64} {
  func.func @_fused_mm_kernel(%arg0: i32, %arg1: i32, %arg2: i32, %arg3: memref<8x384xbf16, #tpu.memory_space<vmem>>, %arg4: memref<384x128xbf16, #tpu.memory_space<vmem>>, %arg5: memref<1x128xf32, #tpu.memory_space<vmem>>, %arg6: memref<8x128xbf16, #tpu.memory_space<vmem>>, %arg7: memref<8x128xf32, #tpu.memory_space<vmem>>) attributes {dimension_semantics = [#tpu.dimension_semantics<parallel>, #tpu.dimension_semantics<parallel>, #tpu.dimension_semantics<arbitrary>], iteration_bounds = array<i64: 1, 1, 1>, scalar_prefetch = 0 : i64, scratch_operands = 1 : i64, tpu.core_type = #tpu.core_type<tc>, window_params = [{transform_indices = @transform_0, window_bounds = array<i64: 8, 384>}, {transform_indices = @transform_1, window_bounds = array<i64: 384, 128>}, {transform_indices = @transform_2, window_bounds = array<i64: 1, 128>}, {transform_indices = @transform_3, window_bounds = array<i64: 8, 128>}]} {
    %c0_i32 = arith.constant 0 : i32
    %0 = arith.cmpi eq, %arg2, %c0_i32 : i32
    %1 = arith.extui %0 : i1 to i32
    %c0_i32_0 = arith.constant 0 : i32
    %2 = arith.cmpi ne, %1, %c0_i32_0 : i32
    scf.if %2 {
      %cst_11 = arith.constant 0.000000e+00 : f32
      %14 = vector.broadcast %cst_11 : f32 to vector<8x128xf32>
      %c0_12 = arith.constant 0 : index
      %c0_13 = arith.constant 0 : index
      %15 = vector.load %arg7[%c0_12, %c0_13] : memref<8x128xf32, #tpu.memory_space<vmem>>, vector<8x128xf32>
      tpu.vector_store %arg7[%c0_12, %c0_13], %14 {strides = array<i32>} : memref<8x128xf32, #tpu.memory_space<vmem>>, vector<8x128xf32>,
    } else {
    }
    %c0 = arith.constant 0 : index
    %c0_1 = arith.constant 0 : index
    %3 = vector.load %arg3[%c0, %c0_1] : memref<8x384xbf16, #tpu.memory_space<vmem>>, vector<8x384xbf16>
    %cst = arith.constant 0.000000e+00 : bf16
    %4 = vector.broadcast %cst : bf16 to vector<8x384xbf16>
    %5 = arith.maximumf %3, %4 : vector<8x384xbf16>
    %c0_2 = arith.constant 0 : index
    %c0_3 = arith.constant 0 : index
    %6 = vector.load %arg7[%c0_2, %c0_3] : memref<8x128xf32, #tpu.memory_space<vmem>>, vector<8x128xf32>
    %c0_4 = arith.constant 0 : index
    %c0_5 = arith.constant 0 : index
    %7 = vector.load %arg4[%c0_4, %c0_5] : memref<384x128xbf16, #tpu.memory_space<vmem>>, vector<384x128xbf16>
    %cst_6 = arith.constant dense<0.000000e+00> : vector<8x128xf32>
    %8 = tpu.matmul %5, %7, %cst_6 {dimension_numbers = #tpu.dot_dimension_numbers<[1], [0], [0], [1], [0, 0, 1, 1], [], []>} : vector<8x384xbf16>, vector<384x128xbf16>, vector<8x128xf32> -> vector<8x128xf32>
    %9 = arith.addf %6, %8 : vector<8x128xf32>
    %c0_7 = arith.constant 0 : index
    %c0_8 = arith.constant 0 : index
    %10 = vector.load %arg7[%c0_7, %c0_8] : memref<8x128xf32, #tpu.memory_space<vmem>>, vector<8x128xf32>
    tpu.vector_store %arg7[%c0_7, %c0_8], %9 {strides = array<i32>} : memref<8x128xf32, #tpu.memory_space<vmem>>, vector<8x128xf32>,
    %c0_i32_9 = arith.constant 0 : i32
    %11 = arith.cmpi eq, %arg2, %c0_i32_9 : i32
    %12 = arith.extui %11 : i1 to i32
    %c0_i32_10 = arith.constant 0 : i32
    %13 = arith.cmpi ne, %12, %c0_i32_10 : i32
    scf.if %13 {
      %c0_11 = arith.constant 0 : index
      %c0_12 = arith.constant 0 : index
      %14 = vector.load %arg7[%c0_11, %c0_12] : memref<8x128xf32, #tpu.memory_space<vmem>>, vector<8x128xf32>
      %c0_13 = arith.constant 0 : index
      %c0_14 = arith.constant 0 : index
      %15 = vector.load %arg5[%c0_13, %c0_14] : memref<1x128xf32, #tpu.memory_space<vmem>>, vector<1x128xf32>
      %16 = vector.broadcast %15 : vector<1x128xf32> to vector<8x128xf32>
      %17 = arith.addf %14, %16 : vector<8x128xf32>
      %18 = arith.truncf %17 : vector<8x128xf32> to vector<8x128xbf16>
      %c0_15 = arith.constant 0 : index
      %c0_16 = arith.constant 0 : index
      %19 = vector.load %arg6[%c0_15, %c0_16] : memref<8x128xbf16, #tpu.memory_space<vmem>>, vector<8x128xbf16>
      tpu.vector_store %arg6[%c0_15, %c0_16], %18 {strides = array<i32>} : memref<8x128xbf16, #tpu.memory_space<vmem>>, vector<8x128xbf16>,
    } else {
    }
    return
  }
  func.func @transform_0(%arg0: i32, %arg1: i32, %arg2: i32) -> (i32, i32) {
    %c0_i32 = arith.constant 0 : i32
    return %arg0, %arg2 : i32, i32
  }
  func.func @transform_1(%arg0: i32, %arg1: i32, %arg2: i32) -> (i32, i32) {
    %c0_i32 = arith.constant 0 : i32
    return %arg2, %arg1 : i32, i32
  }
  func.func @transform_2(%arg0: i32, %arg1: i32, %arg2: i32) -> (i32, i32) {
    %c0_i32 = arith.constant 0 : i32
    %c0_i32_0 = arith.constant 0 : i32
    return %c0_i32, %arg1 : i32, i32
  }
  func.func @transform_3(%arg0: i32, %arg1: i32, %arg2: i32) -> (i32, i32) {
    %c0_i32 = arith.constant 0 : i32
    return %arg0, %arg1 : i32, i32
  }
}

module attributes {stable_mosaic.version = 11 : i64} {
  func.func @_fused_mm_kernel(%arg0: i32, %arg1: i32, %arg2: i32, %arg3: memref<8x384xbf16, #tpu.memory_space<vmem>>, %arg4: memref<384x128xbf16, #tpu.memory_space<vmem>>, %arg5: memref<1x128xf32, #tpu.memory_space<vmem>>, %arg6: memref<8x128xbf16, #tpu.memory_space<vmem>>, %arg7: memref<8x128xf32, #tpu.memory_space<vmem>>, %arg8: memref<8x128xf32, #tpu.memory_space<vmem>>) attributes {dimension_semantics = [#tpu.dimension_semantics<parallel>, #tpu.dimension_semantics<parallel>, #tpu.dimension_semantics<arbitrary>], iteration_bounds = array<i64: 1, 1, 1>, scalar_prefetch = 0 : i64, scratch_operands = 1 : i64, tpu.core_type = #tpu.core_type<tc>, window_params = [{transform_indices = @transform_0, window_bounds = array<i64: 8, 384>}, {transform_indices = @transform_1, window_bounds = array<i64: 384, 128>}, {transform_indices = @transform_2, window_bounds = array<i64: 1, 128>}, {transform_indices = @transform_3, window_bounds = array<i64: 8, 128>}, {transform_indices = @transform_4, window_bounds = array<i64: 8, 128>}]} {
    %c0_i32 = arith.constant 0 : i32
    %0 = arith.cmpi eq, %arg2, %c0_i32 : i32
    %1 = arith.extui %0 : i1 to i32
    %c0_i32_0 = arith.constant 0 : i32
    %2 = arith.cmpi ne, %1, %c0_i32_0 : i32
    scf.if %2 {
      %cst_11 = arith.constant 0.000000e+00 : f32
      %14 = vector.broadcast %cst_11 : f32 to vector<8x128xf32>
      %c0_12 = arith.constant 0 : index
      %c0_13 = arith.constant 0 : index
      %15 = vector.load %arg8[%c0_12, %c0_13] : memref<8x128xf32, #tpu.memory_space<vmem>>, vector<8x128xf32>
      tpu.vector_store %arg8[%c0_12, %c0_13], %14 {strides = array<i32>} : memref<8x128xf32, #tpu.memory_space<vmem>>, vector<8x128xf32>,
    } else {
    }
    %c0 = arith.constant 0 : index
    %c0_1 = arith.constant 0 : index
    %3 = vector.load %arg3[%c0, %c0_1] : memref<8x384xbf16, #tpu.memory_space<vmem>>, vector<8x384xbf16>
    %cst = arith.constant 0.000000e+00 : bf16
    %4 = vector.broadcast %cst : bf16 to vector<8x384xbf16>
    %5 = arith.maximumf %3, %4 : vector<8x384xbf16>
    %c0_2 = arith.constant 0 : index
    %c0_3 = arith.constant 0 : index
    %6 = vector.load %arg8[%c0_2, %c0_3] : memref<8x128xf32, #tpu.memory_space<vmem>>, vector<8x128xf32>
    %c0_4 = arith.constant 0 : index
    %c0_5 = arith.constant 0 : index
    %7 = vector.load %arg4[%c0_4, %c0_5] : memref<384x128xbf16, #tpu.memory_space<vmem>>, vector<384x128xbf16>
    %cst_6 = arith.constant dense<0.000000e+00> : vector<8x128xf32>
    %8 = tpu.matmul %5, %7, %cst_6 {dimension_numbers = #tpu.dot_dimension_numbers<[1], [0], [0], [1], [0, 0, 1, 1], [], []>} : vector<8x384xbf16>, vector<384x128xbf16>, vector<8x128xf32> -> vector<8x128xf32>
    %9 = arith.addf %6, %8 : vector<8x128xf32>
    %c0_7 = arith.constant 0 : index
    %c0_8 = arith.constant 0 : index
    %10 = vector.load %arg8[%c0_7, %c0_8] : memref<8x128xf32, #tpu.memory_space<vmem>>, vector<8x128xf32>
    tpu.vector_store %arg8[%c0_7, %c0_8], %9 {strides = array<i32>} : memref<8x128xf32, #tpu.memory_space<vmem>>, vector<8x128xf32>,
    %c0_i32_9 = arith.constant 0 : i32
    %11 = arith.cmpi eq, %arg2, %c0_i32_9 : i32
    %12 = arith.extui %11 : i1 to i32
    %c0_i32_10 = arith.constant 0 : i32
    %13 = arith.cmpi ne, %12, %c0_i32_10 : i32
    scf.if %13 {
      %c0_11 = arith.constant 0 : index
      %c0_12 = arith.constant 0 : index
      %14 = vector.load %arg8[%c0_11, %c0_12] : memref<8x128xf32, #tpu.memory_space<vmem>>, vector<8x128xf32>
      %c0_13 = arith.constant 0 : index
      %c0_14 = arith.constant 0 : index
      %15 = vector.load %arg5[%c0_13, %c0_14] : memref<1x128xf32, #tpu.memory_space<vmem>>, vector<1x128xf32>
      %16 = vector.broadcast %15 : vector<1x128xf32> to vector<8x128xf32>
      %17 = arith.addf %14, %16 : vector<8x128xf32>
      %c0_15 = arith.constant 0 : index
      %c0_16 = arith.constant 0 : index
      %18 = vector.load %arg6[%c0_15, %c0_16] : memref<8x128xbf16, #tpu.memory_space<vmem>>, vector<8x128xbf16>
      %19 = arith.extf %18 : vector<8x128xbf16> to vector<8x128xf32>
      %20 = arith.addf %17, %19 : vector<8x128xf32>
      %c0_17 = arith.constant 0 : index
      %c0_18 = arith.constant 0 : index
      %21 = vector.load %arg7[%c0_17, %c0_18] : memref<8x128xf32, #tpu.memory_space<vmem>>, vector<8x128xf32>
      tpu.vector_store %arg7[%c0_17, %c0_18], %20 {strides = array<i32>} : memref<8x128xf32, #tpu.memory_space<vmem>>, vector<8x128xf32>,
    } else {
    }
    return
  }
  func.func @transform_0(%arg0: i32, %arg1: i32, %arg2: i32) -> (i32, i32) {
    %c0_i32 = arith.constant 0 : i32
    return %arg0, %arg2 : i32, i32
  }
  func.func @transform_1(%arg0: i32, %arg1: i32, %arg2: i32) -> (i32, i32) {
    %c0_i32 = arith.constant 0 : i32
    return %arg2, %arg1 : i32, i32
  }
  func.func @transform_2(%arg0: i32, %arg1: i32, %arg2: i32) -> (i32, i32) {
    %c0_i32 = arith.constant 0 : i32
    %c0_i32_0 = arith.constant 0 : i32
    return %c0_i32, %arg1 : i32, i32
  }
  func.func @transform_3(%arg0: i32, %arg1: i32, %arg2: i32) -> (i32, i32) {
    %c0_i32 = arith.constant 0 : i32
    return %arg0, %arg1 : i32, i32
  }
  func.func @transform_4(%arg0: i32, %arg1: i32, %arg2: i32) -> (i32, i32) {
    %c0_i32 = arith.constant 0 : i32
    return %arg0, %arg1 : i32, i32
  }
}

module attributes {stable_mosaic.version = 11 : i64} {
  func.func @_gru_kernel(%arg0: i32, %arg1: memref<8x16xf32, #tpu.memory_space<vmem>>, %arg2: memref<8x16xf32, #tpu.memory_space<vmem>>, %arg3: memref<8x16xf32, #tpu.memory_space<vmem>>, %arg4: memref<8x16xf32, #tpu.memory_space<vmem>>, %arg5: memref<8x16xf32, #tpu.memory_space<vmem>>) attributes {dimension_semantics = [#tpu.dimension_semantics<parallel>], iteration_bounds = array<i64: 1>, scalar_prefetch = 0 : i64, scratch_operands = 0 : i64, tpu.core_type = #tpu.core_type<tc>, window_params = [{transform_indices = @transform_0, window_bounds = array<i64: 8, 16>}, {transform_indices = @transform_1, window_bounds = array<i64: 8, 16>}, {transform_indices = @transform_2, window_bounds = array<i64: 8, 16>}, {transform_indices = @transform_3, window_bounds = array<i64: 8, 16>}, {transform_indices = @transform_4, window_bounds = array<i64: 8, 16>}]} {
    %c0 = arith.constant 0 : index
    %c0_0 = arith.constant 0 : index
    %0 = vector.load %arg1[%c0, %c0_0] : memref<8x16xf32, #tpu.memory_space<vmem>>, vector<8x16xf32>
    %1 = arith.negf %0 : vector<8x16xf32>
    %2 = math.exp %1 : vector<8x16xf32>
    %cst = arith.constant 1.000000e+00 : f32
    %3 = vector.broadcast %cst : f32 to vector<8x16xf32>
    %4 = arith.addf %3, %2 : vector<8x16xf32>
    %5 = arith.divf %3, %4 : vector<8x16xf32>
    %c0_1 = arith.constant 0 : index
    %c0_2 = arith.constant 0 : index
    %6 = vector.load %arg2[%c0_1, %c0_2] : memref<8x16xf32, #tpu.memory_space<vmem>>, vector<8x16xf32>
    %7 = arith.negf %6 : vector<8x16xf32>
    %8 = math.exp %7 : vector<8x16xf32>
    %cst_3 = arith.constant 1.000000e+00 : f32
    %9 = vector.broadcast %cst_3 : f32 to vector<8x16xf32>
    %10 = arith.addf %9, %8 : vector<8x16xf32>
    %11 = arith.divf %9, %10 : vector<8x16xf32>
    %c0_4 = arith.constant 0 : index
    %c0_5 = arith.constant 0 : index
    %12 = vector.load %arg3[%c0_4, %c0_5] : memref<8x16xf32, #tpu.memory_space<vmem>>, vector<8x16xf32>
    %13 = math.tanh %12 : vector<8x16xf32>
    %c0_6 = arith.constant 0 : index
    %c0_7 = arith.constant 0 : index
    %14 = vector.load %arg4[%c0_6, %c0_7] : memref<8x16xf32, #tpu.memory_space<vmem>>, vector<8x16xf32>
    %15 = arith.mulf %5, %14 : vector<8x16xf32>
    %cst_8 = arith.constant 1.000000e+00 : f32
    %16 = vector.broadcast %cst_8 : f32 to vector<8x16xf32>
    %17 = arith.subf %16, %11 : vector<8x16xf32>
    %18 = arith.mulf %15, %17 : vector<8x16xf32>
    %19 = arith.mulf %11, %13 : vector<8x16xf32>
    %20 = arith.addf %18, %19 : vector<8x16xf32>
    %c0_9 = arith.constant 0 : index
    %c0_10 = arith.constant 0 : index
    %21 = vector.load %arg5[%c0_9, %c0_10] : memref<8x16xf32, #tpu.memory_space<vmem>>, vector<8x16xf32>
    tpu.vector_store %arg5[%c0_9, %c0_10], %20 {strides = array<i32>} : memref<8x16xf32, #tpu.memory_space<vmem>>, vector<8x16xf32>,
    return
  }
  func.func @transform_0(%arg0: i32) -> (i32, i32) {
    %c0_i32 = arith.constant 0 : i32
    %c0_i32_0 = arith.constant 0 : i32
    return %arg0, %c0_i32 : i32, i32
  }
  func.func @transform_1(%arg0: i32) -> (i32, i32) {
    %c0_i32 = arith.constant 0 : i32
    %c0_i32_0 = arith.constant 0 : i32
    return %arg0, %c0_i32 : i32, i32
  }
  func.func @transform_2(%arg0: i32) -> (i32, i32) {
    %c0_i32 = arith.constant 0 : i32
    %c0_i32_0 = arith.constant 0 : i32
    return %arg0, %c0_i32 : i32, i32
  }
  func.func @transform_3(%arg0: i32) -> (i32, i32) {
    %c0_i32 = arith.constant 0 : i32
    %c0_i32_0 = arith.constant 0 : i32
    return %arg0, %c0_i32 : i32, i32
  }
  func.func @transform_4(%arg0: i32) -> (i32, i32) {
    %c0_i32 = arith.constant 0 : i32
    %c0_i32_0 = arith.constant 0 : i32
    return %arg0, %c0_i32 : i32, i32
  }
}

module attributes {stable_mosaic.version = 11 : i64} {
  func.func @_fused_mm_kernel(%arg0: i32, %arg1: i32, %arg2: i32, %arg3: memref<8x512xbf16, #tpu.memory_space<vmem>>, %arg4: memref<512x128xbf16, #tpu.memory_space<vmem>>, %arg5: memref<1x128xf32, #tpu.memory_space<vmem>>, %arg6: memref<8x128xf32, #tpu.memory_space<vmem>>, %arg7: memref<8x128xf32, #tpu.memory_space<vmem>>) attributes {dimension_semantics = [#tpu.dimension_semantics<parallel>, #tpu.dimension_semantics<parallel>, #tpu.dimension_semantics<arbitrary>], iteration_bounds = array<i64: 1, 1, 1>, scalar_prefetch = 0 : i64, scratch_operands = 1 : i64, tpu.core_type = #tpu.core_type<tc>, window_params = [{transform_indices = @transform_0, window_bounds = array<i64: 8, 512>}, {transform_indices = @transform_1, window_bounds = array<i64: 512, 128>}, {transform_indices = @transform_2, window_bounds = array<i64: 1, 128>}, {transform_indices = @transform_3, window_bounds = array<i64: 8, 128>}]} {
    %c0_i32 = arith.constant 0 : i32
    %0 = arith.cmpi eq, %arg2, %c0_i32 : i32
    %1 = arith.extui %0 : i1 to i32
    %c0_i32_0 = arith.constant 0 : i32
    %2 = arith.cmpi ne, %1, %c0_i32_0 : i32
    scf.if %2 {
      %cst_10 = arith.constant 0.000000e+00 : f32
      %12 = vector.broadcast %cst_10 : f32 to vector<8x128xf32>
      %c0_11 = arith.constant 0 : index
      %c0_12 = arith.constant 0 : index
      %13 = vector.load %arg7[%c0_11, %c0_12] : memref<8x128xf32, #tpu.memory_space<vmem>>, vector<8x128xf32>
      tpu.vector_store %arg7[%c0_11, %c0_12], %12 {strides = array<i32>} : memref<8x128xf32, #tpu.memory_space<vmem>>, vector<8x128xf32>,
    } else {
    }
    %c0 = arith.constant 0 : index
    %c0_1 = arith.constant 0 : index
    %3 = vector.load %arg3[%c0, %c0_1] : memref<8x512xbf16, #tpu.memory_space<vmem>>, vector<8x512xbf16>
    %c0_2 = arith.constant 0 : index
    %c0_3 = arith.constant 0 : index
    %4 = vector.load %arg7[%c0_2, %c0_3] : memref<8x128xf32, #tpu.memory_space<vmem>>, vector<8x128xf32>
    %c0_4 = arith.constant 0 : index
    %c0_5 = arith.constant 0 : index
    %5 = vector.load %arg4[%c0_4, %c0_5] : memref<512x128xbf16, #tpu.memory_space<vmem>>, vector<512x128xbf16>
    %cst = arith.constant dense<0.000000e+00> : vector<8x128xf32>
    %6 = tpu.matmul %3, %5, %cst {dimension_numbers = #tpu.dot_dimension_numbers<[1], [0], [0], [1], [0, 0, 1, 1], [], []>} : vector<8x512xbf16>, vector<512x128xbf16>, vector<8x128xf32> -> vector<8x128xf32>
    %7 = arith.addf %4, %6 : vector<8x128xf32>
    %c0_6 = arith.constant 0 : index
    %c0_7 = arith.constant 0 : index
    %8 = vector.load %arg7[%c0_6, %c0_7] : memref<8x128xf32, #tpu.memory_space<vmem>>, vector<8x128xf32>
    tpu.vector_store %arg7[%c0_6, %c0_7], %7 {strides = array<i32>} : memref<8x128xf32, #tpu.memory_space<vmem>>, vector<8x128xf32>,
    %c0_i32_8 = arith.constant 0 : i32
    %9 = arith.cmpi eq, %arg2, %c0_i32_8 : i32
    %10 = arith.extui %9 : i1 to i32
    %c0_i32_9 = arith.constant 0 : i32
    %11 = arith.cmpi ne, %10, %c0_i32_9 : i32
    scf.if %11 {
      %c0_10 = arith.constant 0 : index
      %c0_11 = arith.constant 0 : index
      %12 = vector.load %arg7[%c0_10, %c0_11] : memref<8x128xf32, #tpu.memory_space<vmem>>, vector<8x128xf32>
      %c0_12 = arith.constant 0 : index
      %c0_13 = arith.constant 0 : index
      %13 = vector.load %arg5[%c0_12, %c0_13] : memref<1x128xf32, #tpu.memory_space<vmem>>, vector<1x128xf32>
      %14 = vector.broadcast %13 : vector<1x128xf32> to vector<8x128xf32>
      %15 = arith.addf %12, %14 : vector<8x128xf32>
      %c0_14 = arith.constant 0 : index
      %c0_15 = arith.constant 0 : index
      %16 = vector.load %arg6[%c0_14, %c0_15] : memref<8x128xf32, #tpu.memory_space<vmem>>, vector<8x128xf32>
      tpu.vector_store %arg6[%c0_14, %c0_15], %15 {strides = array<i32>} : memref<8x128xf32, #tpu.memory_space<vmem>>, vector<8x128xf32>,
    } else {
    }
    return
  }
  func.func @transform_0(%arg0: i32, %arg1: i32, %arg2: i32) -> (i32, i32) {
    %c0_i32 = arith.constant 0 : i32
    return %arg0, %arg2 : i32, i32
  }
  func.func @transform_1(%arg0: i32, %arg1: i32, %arg2: i32) -> (i32, i32) {
    %c0_i32 = arith.constant 0 : i32
    return %arg2, %arg1 : i32, i32
  }
  func.func @transform_2(%arg0: i32, %arg1: i32, %arg2: i32) -> (i32, i32) {
    %c0_i32 = arith.constant 0 : i32
    %c0_i32_0 = arith.constant 0 : i32
    return %c0_i32, %arg1 : i32, i32
  }
  func.func @transform_3(%arg0: i32, %arg1: i32, %arg2: i32) -> (i32, i32) {
    %c0_i32 = arith.constant 0 : i32
    return %arg0, %arg1 : i32, i32
  }
}

</mosaic_0001>

<bundles_post_ra>
// kernel: value_encoder_forward.23
= control target key start
LH: loop header
LB: loop body
LE: loop exit
PB: predicated region body
PF: predicated region fallthrough
CT: control target
= control target key end

     0   :  { %s1677_s15 = smov 0   ;;  %s1679_s16 = smov 0   ;;  %s1923_s0 = inlined_call_operand.vmem [shape: bf16[512,256], index: 0, kind: input, shape index: {}]   ;;  %s1924_s1 = inlined_call_operand.vmem [shape: bf16[256,128], index: 1, kind: input, shape index: {}]   ;;  %s1925_s2 = inlined_call_operand.vmem [shape: f32[1,128], index: 2, kind: input, shape index: {}]   ;;  %s1926_s3 = inlined_call_operand.vmem [shape: f32[1,128], index: 3, kind: input, shape index: {}]   ;;  %s1927_s4 = inlined_call_operand.vmem [shape: bf16[512,128], index: 4, kind: output, shape index: {}]  }
   0x1   :  { %s1681_s17 = smov 0  }
   0x2 LB: > { %s33_s18 = sadd.s32 1, %s1646_s16  ;;  %p1242_p0 = scmp.ge.s32.totalorder %s1650_s17, 1  ;;  %s1650_s17 = sphi %s1681_s17, %s14_s17   ;;  %s1646_s16 = sphi %s1679_s16, %s1929_s16   ;;  %s1642_s15 = sphi %s1677_s15, %s1928_s15  }
   0x3   : > { %p35_p1 = scmp.ge.s32.totalorder %s33_s18, 2  ;;  %p224_p2 = scmp.lt.s32.totalorder %s1650_s17, 3 }
   0x5   : > { %s1931_s18 = smov (%p35_p1, %s33_s18), 0  ;;  %p225_p3 = pnand %p1242_p0, %p224_p2 }
   0x6   : > { %s1243_s5 = sshll.u32 (!%p225_p3), %s1642_s15, 5 }
   0x7   : > { %228 = sbr.rel (%p225_p3) target bundleno = 306 (0x132), region = 36  ;;  %p274_p4 = scmp.lt.s32.totalorder (!%p225_p3), %s1243_s5, 63 }
   0xc   : > { %v1482_v0 = vld [vmem:[%s1924_s1 + $0x38] sm:$0xff]  ;;  %v1481_v2 = vld [vmem:[%s1924_s1 + $0x30] sm:$0xff]  ;;  %v1480_v4 = vld [vmem:[%s1924_s1 + $0x28] sm:$0xff]  ;;  %s1933_s5 = smov (!%p274_p4, %s1243_s5), 63 }
   0xd   : > { %v1490_v1 = vld [vmem:[%s1924_s1 + $0x78] sm:$0xff]  ;;  %696 = vmatpush.bf16.msra.mxu0 %v1482_v0  ;;  %1586 = vmatpush.bf16.msra.mxu2 %v1482_v0  ;;  %v1489_v3 = vld [vmem:[%s1924_s1 + $0x70] sm:$0xff]  ;;  %v1488_v5 = vld [vmem:[%s1924_s1 + $0x68] sm:$0xff]  ;;  %s1442_s21 = sshll.u32 %s1933_s5, 3  ;;  %s1247_s12 = sshll.u32 %s1933_s5, 2 }
   0xe   : > { %785 = vmatpush.bf16.msra.mxu1 %v1490_v1  ;;  %1594 = vmatpush.bf16.msra.mxu3 %v1490_v1  ;;  %v1479_v6 = vld [vmem:[%s1924_s1 + $0x20] sm:$0xff]  ;;  %v1478_v8 = vld [vmem:[%s1924_s1 + $0x18] sm:$0xff]  ;;  %v1477_v10 = vld [vmem:[%s1924_s1 + $0x10] sm:$0xff]  ;;  %s1743_s26 = scalar_lea.vmem %s1923_s0, %s1442_s21  ;;  %s1836_s15 = scalar_lea.vmem %s1927_s4, %s1247_s12 }
   0xf   : > { %v1487_v7 = vld [vmem:[%s1924_s1 + $0x60] sm:$0xff]  ;;  %v1486_v9 = vld [vmem:[%s1924_s1 + $0x58] sm:$0xff]  ;;  %v1485_v11 = vld [vmem:[%s1924_s1 + $0x50] sm:$0xff] }
  0x10   : > { %v1476_v12 = vld [vmem:[%s1924_s1 + $0x8] sm:$0xff]  ;;  %v1475_v14 = vld [vmem:[%s1924_s1] sm:$0xff]  ;;  %v1258_v28 = vld [vmem:[%s1743_s26 + $0x10] sm:$0xf] }
  0x11   : > { %697 = vmatpush.bf16.msra.mxu0 %v1481_v2  ;;  %1587 = vmatpush.bf16.msra.mxu2 %v1481_v2  ;;  %v1484_v13 = vld [vmem:[%s1924_s1 + $0x48] sm:$0xff]  ;;  %v1483_v15 = vld [vmem:[%s1924_s1 + $0x40] sm:$0xff]  ;;  %v1446_v29 = vld [vmem:[%s1743_s26 + $0x14] sm:$0xf0] }
  0x12   : > { %786 = vmatpush.bf16.msra.mxu1 %v1489_v3  ;;  %1595 = vmatpush.bf16.msra.mxu3 %v1489_v3  ;;  %v1250_v16 = vld [vmem:[%s1743_s26] sm:$0xf]  ;;  %v1444_v17 = vld [vmem:[%s1743_s26 + $0x4] sm:$0xf0]  ;;  %v1443_v20 = vld [vmem:[%s1743_s26 + $0x4] sm:$0xf]  ;;  %v1259_v36 = vor.u32 %v1446_v29, %v1258_v28 }
  0x13   : > { %v1314_v18 = vld [vmem:[%s1743_s26 + $0x80] sm:$0xf]  ;;  %v1460_v19 = vld [vmem:[%s1743_s26 + $0x84] sm:$0xf0]  ;;  %v1252_v21 = vld [vmem:[%s1743_s26 + $0x8] sm:$0xf0]  ;;  %v1251_v24 = vor.u32 %v1444_v17, %v1250_v16 }
  0x14   : > { %v1459_v22 = vld [vmem:[%s1743_s26 + $0x84] sm:$0xf]  ;;  %v1316_v23 = vld [vmem:[%s1743_s26 + $0x88] sm:$0xf0]  ;;  %v1315_v25 = vor.u32 %v1460_v19, %v1314_v18  ;;  %v1255_v26 = vor.u32 %v1443_v20, %v1252_v21  ;;  %v1322_v30 = vld [vmem:[%s1743_s26 + $0x90] sm:$0xf] }
  0x15   : > { %698 = vmatpush.bf16.msra.mxu0 %v1480_v4  ;;  %1588 = vmatpush.bf16.msra.mxu2 %v1480_v4  ;;  %v1319_v27 = vor.u32 %v1459_v22, %v1316_v23  ;;  %v1462_v31 = vld [vmem:[%s1743_s26 + $0x94] sm:$0xf0]  ;;  %v1445_v32 = vld [vmem:[%s1743_s26 + $0x14] sm:$0xf]  ;;  %v1260_v33 = vld [vmem:[%s1743_s26 + $0x18] sm:$0xf0] }
  0x16   : > { %787 = vmatpush.bf16.msra.mxu1 %v1488_v5  ;;  %1596 = vmatpush.bf16.msra.mxu3 %v1488_v5  ;;  %v1461_v34 = vld [vmem:[%s1743_s26 + $0x94] sm:$0xf]  ;;  %v1324_v35 = vld [vmem:[%s1743_s26 + $0x98] sm:$0xf0]  ;;  %v1323_v37 = vor.u32 %v1462_v31, %v1322_v30  ;;  %v1263_v38 = vor.u32 %v1445_v32, %v1260_v33  ;;  %v1266_v40 = vld [vmem:[%s1743_s26 + $0x20] sm:$0xf] }
  0x17   : > { %v1327_v39 = vor.u32 %v1461_v34, %v1324_v35  ;;  %v1448_v41 = vld [vmem:[%s1743_s26 + $0x24] sm:$0xf0]  ;;  %v1330_v42 = vld [vmem:[%s1743_s26 + $0xa0] sm:$0xf]  ;;  %v1447_v44 = vld [vmem:[%s1743_s26 + $0x24] sm:$0xf] }
  0x18   : > { %v1464_v43 = vld [vmem:[%s1743_s26 + $0xa4] sm:$0xf0]  ;;  %v1268_v45 = vld [vmem:[%s1743_s26 + $0x28] sm:$0xf0]  ;;  %v1463_v46 = vld [vmem:[%s1743_s26 + $0xa4] sm:$0xf]  ;;  %v1267_v48 = vor.u32 %v1448_v41, %v1266_v40 }
  0x19   : > { %699 = vmatpush.bf16.msra.mxu0 %v1479_v6  ;;  %1589 = vmatpush.bf16.msra.mxu2 %v1479_v6  ;;  %v1332_v47 = vld [vmem:[%s1743_s26 + $0xa8] sm:$0xf0]  ;;  %v1331_v49 = vor.u32 %v1464_v43, %v1330_v42  ;;  %v1271_v50 = vor.u32 %v1447_v44, %v1268_v45  ;;  %v1274_v52 = vld [vmem:[%s1743_s26 + $0x30] sm:$0xf]  ;;  %v1450_v53 = vld [vmem:[%s1743_s26 + $0x34] sm:$0xf0] }
  0x1a   : > { %788 = vmatpush.bf16.msra.mxu1 %v1487_v7  ;;  %1597 = vmatpush.bf16.msra.mxu3 %v1487_v7  ;;  %v1335_v51 = vor.u32 %v1463_v46, %v1332_v47  ;;  %v1338_v54 = vld [vmem:[%s1743_s26 + $0xb0] sm:$0xf]  ;;  %v1466_v55 = vld [vmem:[%s1743_s26 + $0xb4] sm:$0xf0]  ;;  %v1449_v56 = vld [vmem:[%s1743_s26 + $0x34] sm:$0xf]  ;;  %v1275_v60 = vor.u32 %v1450_v53, %v1274_v52 }
  0x1b   : > { %v1276_v57 = vld [vmem:[%s1743_s26 + $0x38] sm:$0xf0]  ;;  %v1465_v58 = vld [vmem:[%s1743_s26 + $0xb4] sm:$0xf]  ;;  %v1339_v61 = vor.u32 %v1466_v55, %v1338_v54  ;;  %v1282_v0 = vld [vmem:[%s1743_s26 + $0x40] sm:$0xf] }
  0x1c   : > { %v1340_v59 = vld [vmem:[%s1743_s26 + $0xb8] sm:$0xf0]  ;;  %v1279_v62 = vor.u32 %v1449_v56, %v1276_v57  ;;  %v1452_v1 = vld [vmem:[%s1743_s26 + $0x44] sm:$0xf0]  ;;  %v1346_v2 = vld [vmem:[%s1743_s26 + $0xc0] sm:$0xf] }
  0x1d   : > { %700 = vmatpush.bf16.msra.mxu0 %v1478_v8  ;;  %1590 = vmatpush.bf16.msra.mxu2 %v1478_v8  ;;  %v1343_v63 = vor.u32 %v1465_v58, %v1340_v59  ;;  %v1468_v3 = vld [vmem:[%s1743_s26 + $0xc4] sm:$0xf0]  ;;  %v1451_v4 = vld [vmem:[%s1743_s26 + $0x44] sm:$0xf]  ;;  %v1284_v5 = vld [vmem:[%s1743_s26 + $0x48] sm:$0xf0]  ;;  %v1283_v8 = vor.u32 %v1452_v1, %v1282_v0 }
  0x1e   : > { %789 = vmatpush.bf16.msra.mxu1 %v1486_v9  ;;  %1598 = vmatpush.bf16.msra.mxu3 %v1486_v9  ;;  %v1467_v6 = vld [vmem:[%s1743_s26 + $0xc4] sm:$0xf]  ;;  %v1348_v7 = vld [vmem:[%s1743_s26 + $0xc8] sm:$0xf0]  ;;  %v1347_v9 = vor.u32 %v1468_v3, %v1346_v2  ;;  %v1453_v16 = vld [vmem:[%s1743_s26 + $0x54] sm:$0xf] }
  0x1f   : > { %v1292_v17 = vld [vmem:[%s1743_s26 + $0x58] sm:$0xf0]  ;;  %v1469_v18 = vld [vmem:[%s1743_s26 + $0xd4] sm:$0xf]  ;;  %v1455_v28 = vld [vmem:[%s1743_s26 + $0x64] sm:$0xf] }
  0x20   : > { %v1356_v19 = vld [vmem:[%s1743_s26 + $0xd8] sm:$0xf0]  ;;  %v1295_v22 = vor.u32 %v1453_v16, %v1292_v17  ;;  %v1300_v29 = vld [vmem:[%s1743_s26 + $0x68] sm:$0xf0]  ;;  %v1471_v30 = vld [vmem:[%s1743_s26 + $0xe4] sm:$0xf] }
  0x21   : > { %701 = vmatpush.bf16.msra.mxu0 %v1477_v10  ;;  %1591 = vmatpush.bf16.msra.mxu2 %v1477_v10  ;;  %v1287_v10 = vor.u32 %v1451_v4, %v1284_v5  ;;  %v1359_v23 = vor.u32 %v1469_v18, %v1356_v19  ;;  %v1364_v31 = vld [vmem:[%s1743_s26 + $0xe8] sm:$0xf0]  ;;  %v1303_v34 = vor.u32 %v1455_v28, %v1300_v29  ;;  %v1457_v40 = vld [vmem:[%s1743_s26 + $0x74] sm:$0xf]  ;;  %v1308_v41 = vld [vmem:[%s1743_s26 + $0x78] sm:$0xf0] }
  0x22   : > { %790 = vmatpush.bf16.msra.mxu1 %v1485_v11  ;;  %1599 = vmatpush.bf16.msra.mxu3 %v1485_v11  ;;  %v1351_v11 = vor.u32 %v1467_v6, %v1348_v7  ;;  %v1367_v35 = vor.u32 %v1471_v30, %v1364_v31  ;;  %v1473_v42 = vld [vmem:[%s1743_s26 + $0xf4] sm:$0xf]  ;;  %v1372_v43 = vld [vmem:[%s1743_s26 + $0xf8] sm:$0xf0]  ;;  %v1311_v46 = vor.u32 %v1457_v40, %v1308_v41  ;;  %v1827_v57 = vld [vmem:[%s1926_s3] ss:$0 sm:$0xff] }
  0x23   : > { %v1375_v47 = vor.u32 %v1473_v42, %v1372_v43 }
  0x25   : > { %702 = vmatpush.bf16.msra.mxu0 %v1476_v12  ;;  %1592 = vmatpush.bf16.msra.mxu2 %v1476_v12  ;;  %v1290_v12 = vld [vmem:[%s1743_s26 + $0x50] sm:$0xf] }
  0x26   : > { %791 = vmatpush.bf16.msra.mxu1 %v1484_v13  ;;  %1600 = vmatpush.bf16.msra.mxu3 %v1484_v13  ;;  %v1454_v13 = vld [vmem:[%s1743_s26 + $0x54] sm:$0xf0] }
  0x27   : > { %v1291_v20 = vor.u32 %v1454_v13, %v1290_v12 }
  0x29   : > { %703 = vmatpush.bf16.msra.mxu0 %v1475_v14  ;;  %1593 = vmatpush.bf16.msra.mxu2 %v1475_v14  ;;  %v1354_v14 = vld [vmem:[%s1743_s26 + $0xd0] sm:$0xf] }
  0x2a   : > { %792 = vmatpush.bf16.msra.mxu1 %v1483_v15  ;;  %1601 = vmatpush.bf16.msra.mxu3 %v1483_v15  ;;  %v1470_v15 = vld [vmem:[%s1743_s26 + $0xd4] sm:$0xf0] }
  0x2b   : > { %v1355_v21 = vor.u32 %v1470_v15, %v1354_v14 }
  0x2c   : > { %704 = vmatmul.bf16.vlgmr.msra.gmra.mxu0 %v1251_v24  ;;  %744 = vmatmul.bf16.vlgmr.msra.gmra.mxu2 %v1315_v25  ;;  %v1298_v24 = vld [vmem:[%s1743_s26 + $0x60] sm:$0xf]  ;;  %v1456_v25 = vld [vmem:[%s1743_s26 + $0x64] sm:$0xf0] }
  0x2d   : > { %793 = vmatmul.bf16.vlgmr.msra.gmra.mxu1 %v1255_v26  ;;  %833 = vmatmul.bf16.vlgmr.msra.gmra.mxu3 %v1319_v27  ;;  %v1362_v26 = vld [vmem:[%s1743_s26 + $0xe0] sm:$0xf]  ;;  %v1472_v27 = vld [vmem:[%s1743_s26 + $0xe4] sm:$0xf0]  ;;  %v1299_v32 = vor.u32 %v1456_v25, %v1298_v24 }
  0x2e   : > { %v1363_v33 = vor.u32 %v1472_v27, %v1362_v26 }
  0x3c   : > { %709 = vmatmul.bf16.gmra.mxu0 %v1259_v36  ;;  %749 = vmatmul.bf16.gmra.mxu2 %v1323_v37  ;;  %v1306_v36 = vld [vmem:[%s1743_s26 + $0x70] sm:$0xf]  ;;  %v1458_v37 = vld [vmem:[%s1743_s26 + $0x74] sm:$0xf0] }
  0x3d   : > { %798 = vmatmul.bf16.gmra.mxu1 %v1263_v38  ;;  %838 = vmatmul.bf16.gmra.mxu3 %v1327_v39  ;;  %v1370_v38 = vld [vmem:[%s1743_s26 + $0xf0] sm:$0xf]  ;;  %v1474_v39 = vld [vmem:[%s1743_s26 + $0xf4] sm:$0xf0]  ;;  %v1307_v44 = vor.u32 %v1458_v37, %v1306_v36 }
  0x3e   : > { %v1371_v45 = vor.u32 %v1474_v39, %v1370_v38 }
  0x4c   : > { %714 = vmatmul.bf16.gmra.mxu0 %v1267_v48  ;;  %754 = vmatmul.bf16.gmra.mxu2 %v1331_v49 }
  0x4d   : > { %803 = vmatmul.bf16.gmra.mxu1 %v1271_v50  ;;  %843 = vmatmul.bf16.gmra.mxu3 %v1335_v51  ;;  %v1821_v51 = vld [vmem:[%s1925_s2] ss:$0 sm:$0xff] }
  0x5c   : > { %719 = vmatmul.bf16.gmra.mxu0 %v1275_v60  ;;  %759 = vmatmul.bf16.gmra.mxu2 %v1339_v61 }
  0x5d   : > { %808 = vmatmul.bf16.gmra.mxu1 %v1279_v62  ;;  %848 = vmatmul.bf16.gmra.mxu3 %v1343_v63 }
  0x6c   : > { %724 = vmatmul.bf16.gmra.mxu0 %v1283_v8  ;;  %764 = vmatmul.bf16.gmra.mxu2 %v1347_v9 }
  0x6d   : > { %813 = vmatmul.bf16.gmra.mxu1 %v1287_v10  ;;  %853 = vmatmul.bf16.gmra.mxu3 %v1351_v11 }
  0x7c   : > { %729 = vmatmul.bf16.gmra.mxu0 %v1291_v20  ;;  %769 = vmatmul.bf16.gmra.mxu2 %v1355_v21 }
  0x7d   : > { %818 = vmatmul.bf16.gmra.mxu1 %v1295_v22  ;;  %858 = vmatmul.bf16.gmra.mxu3 %v1359_v23 }
  0x8c   : > { %734 = vmatmul.bf16.gmra.mxu0 %v1299_v32  ;;  %774 = vmatmul.bf16.gmra.mxu2 %v1363_v33 }
  0x8d   : > { %823 = vmatmul.bf16.gmra.mxu1 %v1303_v34  ;;  %863 = vmatmul.bf16.gmra.mxu3 %v1367_v35 }
  0x9c   : > { %739 = vmatmul.bf16.gmra.mxu0 %v1307_v44  ;;  %779 = vmatmul.bf16.gmra.mxu2 %v1371_v45 }
  0x9d   : > { %828 = vmatmul.bf16.gmra.mxu1 %v1311_v46  ;;  %868 = vmatmul.bf16.gmra.mxu3 %v1375_v47 }
  0xa9   : > { %v705_v48 = vpop.f32.mrf.mxu0 }
  0xaa   : > { %v794_v49 = vpop.f32.mrf.mxu1 }
  0xab   : > { %v795_v50 = vadd.f32 %v794_v49, %v705_v48 }
  0xad   : > { %v977_v56 = vmul.f32 %v1821_v51, %v795_v50 }
  0xaf   : > { %v745_v52 = vpop.f32.mrf.mxu2  ;;  %v1013_v61 = vadd.f32 %v1827_v57, %v977_v56 }
  0xb0   : > { %v834_v53 = vpop.f32.mrf.mxu3 }
  0xb1   : > { %v707_v54 = vpop.f32.mrf.mxu0  ;;  %v835_v59 = vadd.f32 %v834_v53, %v745_v52 }
  0xb2   : > { %v796_v55 = vpop.f32.mrf.mxu1 }
  0xb3   : > { %v797_v58 = vadd.f32 %v796_v55, %v707_v54  ;;  %v993_v1 = vmul.f32 %v1821_v51, %v835_v59 }
  0xb5   : > { %v978_v60 = vmul.f32 %v1821_v51, %v797_v58  ;;  %v1029_v7 = vadd.f32 %v1827_v57, %v993_v1 }
  0xb7   : > { %v1014_v62 = vadd.f32 %v1827_v57, %v978_v60  ;;  %v747_v63 = vpop.f32.mrf.mxu2 }
  0xb8   : > { %v836_v0 = vpop.f32.mrf.mxu3 }
  0xb9   : > { %v1494_v2 = vpack.c.bf16 %v1014_v62, %v1013_v61  ;;  %v837_v3 = vadd.f32 %v836_v0, %v747_v63  ;;  %v710_v4 = vpop.f32.mrf.mxu0 }
  0xba   : > { %v799_v5 = vpop.f32.mrf.mxu1 }
  0xbb   : > { %1495 = vst [vmem:[%s1836_s15] sm:$0xff] %v1494_v2   ;;  %v994_v6 = vmul.f32 %v1821_v51, %v837_v3  ;;  %v800_v10 = vadd.f32 %v799_v5, %v710_v4 }
  0xbd   : > { %v1030_v8 = vadd.f32 %v1827_v57, %v994_v6  ;;  %v979_v15 = vmul.f32 %v1821_v51, %v800_v10 }
  0xbf   : > { %v1534_v9 = vpack.c.bf16 %v1030_v8, %v1029_v7  ;;  %v750_v11 = vpop.f32.mrf.mxu2  ;;  %v1015_v19 = vadd.f32 %v1827_v57, %v979_v15 }
  0xc0   : > { %v839_v12 = vpop.f32.mrf.mxu3 }
  0xc1   : > { %1578 = vst [vmem:[%s1836_s15 + $0x40] sm:$0xff] %v1534_v9   ;;  %v712_v13 = vpop.f32.mrf.mxu0  ;;  %v840_v17 = vadd.f32 %v839_v12, %v750_v11 }
  0xc2   : > { %v801_v14 = vpop.f32.mrf.mxu1 }
  0xc3   : > { %v802_v16 = vadd.f32 %v801_v14, %v712_v13  ;;  %v995_v23 = vmul.f32 %v1821_v51, %v840_v17 }
  0xc5   : > { %v980_v18 = vmul.f32 %v1821_v51, %v802_v16  ;;  %v1031_v29 = vadd.f32 %v1827_v57, %v995_v23 }
  0xc7   : > { %v1016_v20 = vadd.f32 %v1827_v57, %v980_v18  ;;  %v752_v21 = vpop.f32.mrf.mxu2 }
  0xc8   : > { %v841_v22 = vpop.f32.mrf.mxu3 }
  0xc9   : > { %v1499_v24 = vpack.c.bf16 %v1016_v20, %v1015_v19  ;;  %v842_v25 = vadd.f32 %v841_v22, %v752_v21  ;;  %v715_v26 = vpop.f32.mrf.mxu0 }
  0xca   : > { %v804_v27 = vpop.f32.mrf.mxu1 }
  0xcb   : > { %1571 = vst [vmem:[%s1836_s15 + $0x8] sm:$0xff] %v1499_v24   ;;  %v996_v28 = vmul.f32 %v1821_v51, %v842_v25  ;;  %v805_v32 = vadd.f32 %v804_v27, %v715_v26 }
  0xcd   : > { %v1032_v30 = vadd.f32 %v1827_v57, %v996_v28  ;;  %v981_v37 = vmul.f32 %v1821_v51, %v805_v32 }
  0xcf   : > { %v1539_v31 = vpack.c.bf16 %v1032_v30, %v1031_v29  ;;  %v755_v33 = vpop.f32.mrf.mxu2  ;;  %v1017_v41 = vadd.f32 %v1827_v57, %v981_v37 }
  0xd0   : > { %v844_v34 = vpop.f32.mrf.mxu3 }
  0xd1   : > { %1579 = vst [vmem:[%s1836_s15 + $0x48] sm:$0xff] %v1539_v31   ;;  %v717_v35 = vpop.f32.mrf.mxu0  ;;  %v845_v39 = vadd.f32 %v844_v34, %v755_v33 }
  0xd2   : > { %v806_v36 = vpop.f32.mrf.mxu1 }
  0xd3   : > { %v807_v38 = vadd.f32 %v806_v36, %v717_v35  ;;  %v997_v45 = vmul.f32 %v1821_v51, %v845_v39 }
  0xd5   : > { %v982_v40 = vmul.f32 %v1821_v51, %v807_v38  ;;  %v1033_v52 = vadd.f32 %v1827_v57, %v997_v45 }
  0xd7   : > { %v1018_v42 = vadd.f32 %v1827_v57, %v982_v40  ;;  %v757_v43 = vpop.f32.mrf.mxu2 }
  0xd8   : > { %v846_v44 = vpop.f32.mrf.mxu3 }
  0xd9   : > { %v1504_v46 = vpack.c.bf16 %v1018_v42, %v1017_v41  ;;  %v847_v47 = vadd.f32 %v846_v44, %v757_v43  ;;  %v720_v48 = vpop.f32.mrf.mxu0 }
  0xda   : > { %v809_v49 = vpop.f32.mrf.mxu1 }
  0xdb   : > { %1572 = vst [vmem:[%s1836_s15 + $0x10] sm:$0xff] %v1504_v46   ;;  %v998_v50 = vmul.f32 %v1821_v51, %v847_v47  ;;  %v810_v55 = vadd.f32 %v809_v49, %v720_v48 }
  0xdd   : > { %v1034_v53 = vadd.f32 %v1827_v57, %v998_v50  ;;  %v983_v61 = vmul.f32 %v1821_v51, %v810_v55 }
  0xdf   : > { %v1544_v54 = vpack.c.bf16 %v1034_v53, %v1033_v52  ;;  %v760_v56 = vpop.f32.mrf.mxu2  ;;  %v1019_v1 = vadd.f32 %v1827_v57, %v983_v61 }
  0xe0   : > { %v849_v58 = vpop.f32.mrf.mxu3 }
  0xe1   : > { %1580 = vst [vmem:[%s1836_s15 + $0x50] sm:$0xff] %v1544_v54   ;;  %v722_v59 = vpop.f32.mrf.mxu0  ;;  %v850_v63 = vadd.f32 %v849_v58, %v760_v56 }
  0xe2   : > { %v811_v60 = vpop.f32.mrf.mxu1 }
  0xe3   : > { %v812_v62 = vadd.f32 %v811_v60, %v722_v59  ;;  %v999_v5 = vmul.f32 %v1821_v51, %v850_v63 }
  0xe5   : > { %v984_v0 = vmul.f32 %v1821_v51, %v812_v62  ;;  %v1035_v11 = vadd.f32 %v1827_v57, %v999_v5 }
  0xe7   : > { %v1020_v2 = vadd.f32 %v1827_v57, %v984_v0  ;;  %v762_v3 = vpop.f32.mrf.mxu2 }
  0xe8   : > { %v851_v4 = vpop.f32.mrf.mxu3 }
  0xe9   : > { %v1509_v6 = vpack.c.bf16 %v1020_v2, %v1019_v1  ;;  %v852_v7 = vadd.f32 %v851_v4, %v762_v3  ;;  %v725_v8 = vpop.f32.mrf.mxu0 }
  0xea   : > { %v814_v9 = vpop.f32.mrf.mxu1 }
  0xeb   : > { %1573 = vst [vmem:[%s1836_s15 + $0x18] sm:$0xff] %v1509_v6   ;;  %v1000_v10 = vmul.f32 %v1821_v51, %v852_v7  ;;  %v815_v14 = vadd.f32 %v814_v9, %v725_v8 }
  0xed   : > { %v1036_v12 = vadd.f32 %v1827_v57, %v1000_v10  ;;  %v985_v19 = vmul.f32 %v1821_v51, %v815_v14 }
  0xef   : > { %v1549_v13 = vpack.c.bf16 %v1036_v12, %v1035_v11  ;;  %v765_v15 = vpop.f32.mrf.mxu2  ;;  %v1021_v23 = vadd.f32 %v1827_v57, %v985_v19 }
  0xf0   : > { %v854_v16 = vpop.f32.mrf.mxu3 }
  0xf1   : > { %1581 = vst [vmem:[%s1836_s15 + $0x58] sm:$0xff] %v1549_v13   ;;  %v727_v17 = vpop.f32.mrf.mxu0  ;;  %v855_v21 = vadd.f32 %v854_v16, %v765_v15 }
  0xf2   : > { %v816_v18 = vpop.f32.mrf.mxu1 }
  0xf3   : > { %v817_v20 = vadd.f32 %v816_v18, %v727_v17  ;;  %v1001_v27 = vmul.f32 %v1821_v51, %v855_v21 }
  0xf5   : > { %v986_v22 = vmul.f32 %v1821_v51, %v817_v20  ;;  %v1037_v33 = vadd.f32 %v1827_v57, %v1001_v27 }
  0xf7   : > { %v1022_v24 = vadd.f32 %v1827_v57, %v986_v22  ;;  %v767_v25 = vpop.f32.mrf.mxu2 }
  0xf8   : > { %v856_v26 = vpop.f32.mrf.mxu3 }
  0xf9   : > { %v1514_v28 = vpack.c.bf16 %v1022_v24, %v1021_v23  ;;  %v857_v29 = vadd.f32 %v856_v26, %v767_v25  ;;  %v730_v30 = vpop.f32.mrf.mxu0 }
  0xfa   : > { %v819_v31 = vpop.f32.mrf.mxu1 }
  0xfb   : > { %1574 = vst [vmem:[%s1836_s15 + $0x20] sm:$0xff] %v1514_v28   ;;  %v1002_v32 = vmul.f32 %v1821_v51, %v857_v29  ;;  %v820_v36 = vadd.f32 %v819_v31, %v730_v30 }
  0xfd   : > { %v1038_v34 = vadd.f32 %v1827_v57, %v1002_v32  ;;  %v987_v41 = vmul.f32 %v1821_v51, %v820_v36 }
  0xff   : > { %v1554_v35 = vpack.c.bf16 %v1038_v34, %v1037_v33  ;;  %v770_v37 = vpop.f32.mrf.mxu2  ;;  %v1023_v45 = vadd.f32 %v1827_v57, %v987_v41 }
 0x100   : > { %v859_v38 = vpop.f32.mrf.mxu3 }
 0x101   : > { %1582 = vst [vmem:[%s1836_s15 + $0x60] sm:$0xff] %v1554_v35   ;;  %v732_v39 = vpop.f32.mrf.mxu0  ;;  %v860_v43 = vadd.f32 %v859_v38, %v770_v37 }
 0x102   : > { %v821_v40 = vpop.f32.mrf.mxu1 }
 0x103   : > { %v822_v42 = vadd.f32 %v821_v40, %v732_v39  ;;  %v1003_v49 = vmul.f32 %v1821_v51, %v860_v43 }
 0x105   : > { %v988_v44 = vmul.f32 %v1821_v51, %v822_v42  ;;  %v1039_v56 = vadd.f32 %v1827_v57, %v1003_v49 }
 0x107   : > { %v1024_v46 = vadd.f32 %v1827_v57, %v988_v44  ;;  %v772_v47 = vpop.f32.mrf.mxu2 }
 0x108   : > { %v861_v48 = vpop.f32.mrf.mxu3 }
 0x109   : > { %v1519_v50 = vpack.c.bf16 %v1024_v46, %v1023_v45  ;;  %v862_v52 = vadd.f32 %v861_v48, %v772_v47  ;;  %v735_v53 = vpop.f32.mrf.mxu0 }
 0x10a   : > { %v824_v54 = vpop.f32.mrf.mxu1 }
 0x10b   : > { %1575 = vst [vmem:[%s1836_s15 + $0x28] sm:$0xff] %v1519_v50   ;;  %v1004_v55 = vmul.f32 %v1821_v51, %v862_v52  ;;  %v825_v60 = vadd.f32 %v824_v54, %v735_v53 }
 0x10d   : > { %v1040_v58 = vadd.f32 %v1827_v57, %v1004_v55  ;;  %v989_v1 = vmul.f32 %v1821_v51, %v825_v60 }
 0x10f   : > { %v1559_v59 = vpack.c.bf16 %v1040_v58, %v1039_v56  ;;  %v775_v61 = vpop.f32.mrf.mxu2  ;;  %v1025_v5 = vadd.f32 %v1827_v57, %v989_v1 }
 0x110   : > { %v864_v62 = vpop.f32.mrf.mxu3 }
 0x111   : > { %1583 = vst [vmem:[%s1836_s15 + $0x68] sm:$0xff] %v1559_v59   ;;  %v737_v63 = vpop.f32.mrf.mxu0  ;;  %v865_v3 = vadd.f32 %v864_v62, %v775_v61 }
 0x112   : > { %v826_v0 = vpop.f32.mrf.mxu1 }
 0x113   : > { %v827_v2 = vadd.f32 %v826_v0, %v737_v63  ;;  %v1005_v9 = vmul.f32 %v1821_v51, %v865_v3 }
 0x115   : > { %v990_v4 = vmul.f32 %v1821_v51, %v827_v2  ;;  %v1041_v15 = vadd.f32 %v1827_v57, %v1005_v9 }
 0x117   : > { %v1026_v6 = vadd.f32 %v1827_v57, %v990_v4  ;;  %v777_v7 = vpop.f32.mrf.mxu2 }
 0x118   : > { %v866_v8 = vpop.f32.mrf.mxu3 }
 0x119   : > { %v1524_v10 = vpack.c.bf16 %v1026_v6, %v1025_v5  ;;  %v867_v11 = vadd.f32 %v866_v8, %v777_v7  ;;  %v740_v12 = vpop.f32.mrf.mxu0 }
 0x11a   : > { %v829_v13 = vpop.f32.mrf.mxu1 }
 0x11b   : > { %1576 = vst [vmem:[%s1836_s15 + $0x30] sm:$0xff] %v1524_v10   ;;  %v1006_v14 = vmul.f32 %v1821_v51, %v867_v11  ;;  %v830_v18 = vadd.f32 %v829_v13, %v740_v12 }
 0x11d   : > { %v1042_v16 = vadd.f32 %v1827_v57, %v1006_v14  ;;  %v991_v23 = vmul.f32 %v1821_v51, %v830_v18 }
 0x11f   : > { %v1564_v17 = vpack.c.bf16 %v1042_v16, %v1041_v15  ;;  %v780_v19 = vpop.f32.mrf.mxu2  ;;  %v1027_v27 = vadd.f32 %v1827_v57, %v991_v23 }
 0x120   : > { %v869_v20 = vpop.f32.mrf.mxu3 }
 0x121   : > { %1584 = vst [vmem:[%s1836_s15 + $0x70] sm:$0xff] %v1564_v17   ;;  %v742_v21 = vpop.f32.mrf.mxu0  ;;  %v870_v25 = vadd.f32 %v869_v20, %v780_v19 }
 0x122   : > { %v831_v22 = vpop.f32.mrf.mxu1 }
 0x123   : > { %v832_v24 = vadd.f32 %v831_v22, %v742_v21  ;;  %v1007_v31 = vmul.f32 %v1821_v51, %v870_v25 }
 0x125   : > { %v992_v26 = vmul.f32 %v1821_v51, %v832_v24  ;;  %v1043_v35 = vadd.f32 %v1827_v57, %v1007_v31 }
 0x127   : > { %v1028_v28 = vadd.f32 %v1827_v57, %v992_v26  ;;  %v782_v29 = vpop.f32.mrf.mxu2 }
 0x128   : > { %v871_v30 = vpop.f32.mrf.mxu3 }
 0x129   : > { %v1529_v32 = vpack.c.bf16 %v1028_v28, %v1027_v27  ;;  %v872_v33 = vadd.f32 %v871_v30, %v782_v29 }
 0x12b   : > { %1577 = vst [vmem:[%s1836_s15 + $0x38] sm:$0xff] %v1529_v32   ;;  %v1008_v34 = vmul.f32 %v1821_v51, %v872_v33 }
 0x12d   : > { %v1044_v36 = vadd.f32 %v1827_v57, %v1008_v34 }
 0x12f   : > { %v1569_v37 = vpack.c.bf16 %v1044_v36, %v1043_v35 }
 0x131   : > { %1585 = vst [vmem:[%s1836_s15 + $0x78] sm:$0xff] %v1569_v37  }
 0x132 PF: > { %s14_s17 = sadd.s32 1, %s1650_s17   ;;  %s1928_s15 = smov %s1646_s16 }
 0x133   : > { %p11_p5 = scmp.ge.s32.totalorder %s14_s17, 4   ;;  %s1929_s16 = smov %s1931_s18 }
 0x135   :  { %13 = sbr.rel (!%p11_p5) target bundleno = 2 (0x2), region = 83 }

// kernel: value_encoder_forward.24
= control target key start
LH: loop header
LB: loop body
LE: loop exit
PB: predicated region body
PF: predicated region fallthrough
CT: control target
= control target key end

     0   :  { %s1148_s15 = smov 0   ;;  %s1150_s16 = smov 0   ;;  %s1301_s0 = inlined_call_operand.vmem [shape: bf16[128,640], index: 0, kind: input, shape index: {}]   ;;  %s1302_s1 = inlined_call_operand.vmem [shape: bf16[640,128], index: 1, kind: input, shape index: {}]   ;;  %s1303_s2 = inlined_call_operand.vmem [shape: f32[1,128], index: 2, kind: input, shape index: {}]   ;;  %s1304_s3 = inlined_call_operand.vmem [shape: f32[1,128], index: 3, kind: input, shape index: {}]   ;;  %s1305_s4 = inlined_call_operand.vmem [shape: bf16[128,128], index: 4, kind: output, shape index: {}]  }
   0x1   :  { %s1152_s17 = smov 0   ;;  %s1154_s18 = smov 0  }
   0x2   :  { %s1156_s19 = smov 0  }
   0x3 LB: > { %s26_s20 = sadd.s32 1, %s1116_s18  ;;  %p49_p1 = scmp.ne.s32.totalorder %s1108_s16, %s1104_s15  ;;  %s1120_s19 = sphi %s1156_s19, %s14_s19   ;;  %s1116_s18 = sphi %s1154_s18, %s1309_s18   ;;  %s1112_s17 = sphi %s1152_s17, %s1308_s17   ;;  %s1108_s16 = sphi %s1150_s16, %s1307_s16   ;;  %s1104_s15 = sphi %s1148_s15, %s1306_s15  }
   0x4   : > { %p27_p0 = scmp.ge.s32.totalorder %s26_s20, 5  ;;  %p50_p2 = scmp.eq.s32.totalorder %s1120_s19, 0 }
   0x5   : > { %s42_s22 = sadd.s32 1, %s1108_s16  ;;  %p875_p5 = scmp.ge.s32.totalorder %s1120_s19, 5 }
   0x6   : > { %s1311_s20 = smov (%p27_p0, %s26_s20), 0  ;;  %p51_p3 = por %p50_p2, %p49_p1 }
   0x7   : > { %s38_s21 = ssub.s32 %s1116_s18, %s1311_s20  ;;  %195 = sbr.rel (%p875_p5) target bundleno = 32 (0x20), region = 24 }
   0x8   : > { %p40_p4 = scmp.eq.s32.totalorder %s38_s21, 0 }
   0xa   : > { %s1183_s23 = scalar_select %p40_p4, %s1108_s16, %s42_s22  }
   0xc   : > { %198 = sbr.rel (!%p51_p3) target bundleno = 32 (0x20), region = 28  ;;  %s200_s24 = sand.u32 (%p51_p3), 1, %s1108_s16  }
   0xd   : > { %s877_s25 = sshll.u32 (%p51_p3), %s1116_s18, 2  ;;  %s876_s26 = sshll.u32 (%p51_p3), %s200_s24, 6 }
   0xe   : > { %s1191_s29 = scalar_lea.vmem (%p51_p3), %s1301_s0, %s877_s25  ;;  %s202_s30 = scalar_lea.vmem (%p51_p3), [#allocation3], %s876_s26 }
   0xf   : > { %v224_v0 = vld [vmem:[%s1191_s29] sm:$0xf] (%p51_p3)  ;;  %v226_v1 = vld [vmem:[%s1191_s29 + $0x14] sm:$0xf] (%p51_p3)  ;;  %v228_v2 = vld [vmem:[%s1191_s29 + $0x28] sm:$0xf] (%p51_p3) }
  0x10   : > { %225 = vst [vmem:[%s202_s30] sm:$0xf] (%p51_p3), %v224_v0  ;;  %v230_v3 = vld [vmem:[%s1191_s29 + $0x3c] sm:$0xf] (%p51_p3)  ;;  %v232_v4 = vld [vmem:[%s1191_s29 + $0x50] sm:$0xf] (%p51_p3) }
  0x11   : > { %227 = vst [vmem:[%s202_s30 + $0x4] sm:$0xf] %v226_v1  ;;  %v234_v5 = vld [vmem:[%s1191_s29 + $0x64] sm:$0xf]  ;;  %v236_v6 = vld [vmem:[%s1191_s29 + $0x78] sm:$0xf] }
  0x12   : > { %229 = vst [vmem:[%s202_s30 + $0x8] sm:$0xf] %v228_v2  ;;  %v238_v7 = vld [vmem:[%s1191_s29 + $0x8c] sm:$0xf]  ;;  %v240_v8 = vld [vmem:[%s1191_s29 + $0xa0] sm:$0xf] }
  0x13   : > { %231 = vst [vmem:[%s202_s30 + $0xc] sm:$0xf] %v230_v3  ;;  %v242_v9 = vld [vmem:[%s1191_s29 + $0xb4] sm:$0xf]  ;;  %v244_v10 = vld [vmem:[%s1191_s29 + $0xc8] sm:$0xf] }
  0x14   : > { %233 = vst [vmem:[%s202_s30 + $0x10] sm:$0xf] %v232_v4  ;;  %v246_v11 = vld [vmem:[%s1191_s29 + $0xdc] sm:$0xf]  ;;  %v248_v12 = vld [vmem:[%s1191_s29 + $0xf0] sm:$0xf] }
  0x15   : > { %235 = vst [vmem:[%s202_s30 + $0x14] sm:$0xf] %v234_v5  ;;  %v250_v13 = vld [vmem:[%s1191_s29 + $0x104] sm:$0xf]  ;;  %v252_v14 = vld [vmem:[%s1191_s29 + $0x118] sm:$0xf] }
  0x16   : > { %237 = vst [vmem:[%s202_s30 + $0x18] sm:$0xf] %v236_v6  ;;  %v254_v15 = vld [vmem:[%s1191_s29 + $0x12c] sm:$0xf] }
  0x17   : > { %239 = vst [vmem:[%s202_s30 + $0x1c] sm:$0xf] %v238_v7 }
  0x18   : > { %241 = vst [vmem:[%s202_s30 + $0x20] sm:$0xf] %v240_v8 }
  0x19   : > { %243 = vst [vmem:[%s202_s30 + $0x24] sm:$0xf] %v242_v9 }
  0x1a   : > { %245 = vst [vmem:[%s202_s30 + $0x28] sm:$0xf] %v244_v10 }
  0x1b   : > { %247 = vst [vmem:[%s202_s30 + $0x2c] sm:$0xf] %v246_v11 }
  0x1c   : > { %249 = vst [vmem:[%s202_s30 + $0x30] sm:$0xf] %v248_v12 }
  0x1d   : > { %251 = vst [vmem:[%s202_s30 + $0x34] sm:$0xf] %v250_v13 }
  0x1e   : > { %253 = vst [vmem:[%s202_s30 + $0x38] sm:$0xf] %v252_v14 }
  0x1f   : > { %255 = vst [vmem:[%s202_s30 + $0x3c] sm:$0xf] %v254_v15 }
  0x20 PF: > { %p878_p6 = scmp.ge.s32.totalorder %s1120_s19, 1  ;;  %p322_p7 = scmp.lt.s32.totalorder %s1120_s19, 6 }
  0x22   : > { %p323_p8 = pnand %p878_p6, %p322_p7 }
  0x23   : > { %s329_s5 = sand.u32 (!%p323_p8), 1, %s1104_s15   ;;  %s880_s6 = sshll.u32 (!%p323_p8), %s1112_s17, 4 }
  0x24   : > { %326 = sbr.rel (%p323_p8) target bundleno = 277 (0x115), region = 73  ;;  %s879_s7 = sshll.u32 (!%p323_p8), %s329_s5, 6 }
  0x25   : > { %p373_p9 = scmp.lt.s32.totalorder (!%p323_p8), %s880_s6, 79  ;;  %s1218_s12 = scalar_lea.vmem (!%p323_p8), [#allocation3], %s879_s7 }
  0x26   : > { %p882_p10 = scmp.ne.s32.totalorder (!%p323_p8), %s1112_s17, 0 }
  0x29   : > { %s1313_s6 = smov (!%p373_p9, %s880_s6), 79  ;;  %399 = sbr.rel (%p882_p10) target bundleno = 63 (0x3f), region = 81 }
  0x2a   : > { %s881_s8 = sshll.u32 %s1313_s6, 2 }
  0x2b   : > { %s1216_s11 = scalar_lea.vmem %s1302_s1, %s881_s8 }
  0x2e   : > { %v1122_v16 = vmov 0.0  }
  0x2f   : > { %400 = vst [vmem:[#allocation2 + $0x30] sm:$0xff] %v1122_v16 }
  0x30   : > { %401 = vst [vmem:[#allocation2] sm:$0xff] %v1122_v16 }
  0x31   : > { %402 = vst [vmem:[#allocation2 + $0x58] sm:$0xff] %v1122_v16 }
  0x32   : > { %403 = vst [vmem:[#allocation2 + $0x18] sm:$0xff] %v1122_v16 }
  0x33   : > { %404 = vst [vmem:[#allocation2 + $0x50] sm:$0xff] %v1122_v16 }
  0x34   : > { %405 = vst [vmem:[#allocation2 + $0x68] sm:$0xff] %v1122_v16 }
  0x35   : > { %406 = vst [vmem:[#allocation2 + $0x8] sm:$0xff] %v1122_v16 }
  0x36   : > { %407 = vst [vmem:[#allocation2 + $0x48] sm:$0xff] %v1122_v16 }
  0x37   : > { %408 = vst [vmem:[#allocation2 + $0x40] sm:$0xff] %v1122_v16 }
  0x38   : > { %409 = vst [vmem:[#allocation2 + $0x20] sm:$0xff] %v1122_v16 }
  0x39   : > { %410 = vst [vmem:[#allocation2 + $0x10] sm:$0xff] %v1122_v16 }
  0x3a   : > { %411 = vst [vmem:[#allocation2 + $0x38] sm:$0xff] %v1122_v16 }
  0x3b   : > { %412 = vst [vmem:[#allocation2 + $0x60] sm:$0xff] %v1122_v16 }
  0x3c   : > { %413 = vst [vmem:[#allocation2 + $0x70] sm:$0xff] %v1122_v16 }
  0x3d   : > { %414 = vst [vmem:[#allocation2 + $0x78] sm:$0xff] %v1122_v16 }
  0x3e   : > { %415 = vst [vmem:[#allocation2 + $0x28] sm:$0xff] %v1122_v16 }
  0x3f PF: > { %v967_v17 = vld [vmem:[%s1216_s11 + $0x38] sm:$0xff]  ;;  %v966_v18 = vld [vmem:[%s1216_s11 + $0x30] sm:$0xff]  ;;  %v965_v19 = vld [vmem:[%s1216_s11 + $0x28] sm:$0xff]  ;;  %p947_p11 = scmp.ne.s32.totalorder %s1112_s17, 4 }
  0x40   : > { %560 = vmatpush.bf16.msra.mxu0 %v967_v17  ;;  %1015 = vmatpush.bf16.msra.mxu1 %v967_v17  ;;  %v964_v20 = vld [vmem:[%s1216_s11 + $0x20] sm:$0xff]  ;;  %v963_v21 = vld [vmem:[%s1216_s11 + $0x18] sm:$0xff]  ;;  %v962_v22 = vld [vmem:[%s1216_s11 + $0x10] sm:$0xff] }
  0x41   : > { %1016 = vmatpush.bf16.msra.mxu2 %v967_v17  ;;  %1017 = vmatpush.bf16.msra.mxu3 %v967_v17  ;;  %v961_v23 = vld [vmem:[%s1216_s11 + $0x8] sm:$0xff]  ;;  %v960_v24 = vld [vmem:[%s1216_s11] sm:$0xff]  ;;  %v954_v26 = vld [vmem:[%s1218_s12 + $0x10] sm:$0xff] }
  0x42   : > { %v952_v25 = vld [vmem:[%s1218_s12] sm:$0xff]  ;;  %v958_v28 = vld [vmem:[%s1218_s12 + $0x30] sm:$0xff]  ;;  %v953_v29 = vld [vmem:[%s1218_s12 + $0x8] sm:$0xff] }
  0x43   : > { %v956_v27 = vld [vmem:[%s1218_s12 + $0x20] sm:$0xff]  ;;  %v955_v30 = vld [vmem:[%s1218_s12 + $0x18] sm:$0xff]  ;;  %v957_v31 = vld [vmem:[%s1218_s12 + $0x28] sm:$0xff] }
  0x44   : > { %561 = vmatpush.bf16.msra.mxu0 %v966_v18  ;;  %1018 = vmatpush.bf16.msra.mxu1 %v966_v18  ;;  %v959_v32 = vld [vmem:[%s1218_s12 + $0x38] sm:$0xff]  ;;  %v432_v33 = vld [vmem:[#allocation2 + $0x30] sm:$0xff]  ;;  %v440_v39 = vld [vmem:[#allocation2 + $0x40] sm:$0xff] }
  0x45   : > { %1019 = vmatpush.bf16.msra.mxu2 %v966_v18  ;;  %1020 = vmatpush.bf16.msra.mxu3 %v966_v18  ;;  %v436_v34 = vld [vmem:[#allocation2 + $0x50] sm:$0xff]  ;;  %v444_v40 = vld [vmem:[#allocation2 + $0x60] sm:$0xff]  ;;  %v437_v42 = vld [vmem:[#allocation2 + $0x68] sm:$0xff] }
  0x46   : > { %v433_v41 = vld [vmem:[#allocation2] sm:$0xff]  ;;  %v445_v52 = vld [vmem:[#allocation2 + $0x70] sm:$0xff]  ;;  %v434_v53 = vld [vmem:[#allocation2 + $0x58] sm:$0xff] }
  0x47   : > { %v441_v51 = vld [vmem:[#allocation2 + $0x20] sm:$0xff]  ;;  %v438_v54 = vld [vmem:[#allocation2 + $0x8] sm:$0xff]  ;;  %v442_v63 = vld [vmem:[#allocation2 + $0x10] sm:$0xff] }
  0x48   : > { %562 = vmatpush.bf16.msra.mxu0 %v965_v19  ;;  %1021 = vmatpush.bf16.msra.mxu1 %v965_v19  ;;  %v446_v0 = vld [vmem:[#allocation2 + $0x78] sm:$0xff]  ;;  %v439_v2 = vld [vmem:[#allocation2 + $0x48] sm:$0xff] }
  0x49   : > { %1022 = vmatpush.bf16.msra.mxu2 %v965_v19  ;;  %1023 = vmatpush.bf16.msra.mxu3 %v965_v19  ;;  %v435_v1 = vld [vmem:[#allocation2 + $0x18] sm:$0xff]  ;;  %v447_v12 = vld [vmem:[#allocation2 + $0x28] sm:$0xff] }
  0x4a   : > { %v443_v11 = vld [vmem:[#allocation2 + $0x38] sm:$0xff] }
  0x4c   : > { %563 = vmatpush.bf16.msra.mxu0 %v964_v20  ;;  %1024 = vmatpush.bf16.msra.mxu1 %v964_v20 }
  0x4d   : > { %1025 = vmatpush.bf16.msra.mxu2 %v964_v20  ;;  %1026 = vmatpush.bf16.msra.mxu3 %v964_v20 }
  0x50   : > { %564 = vmatpush.bf16.msra.mxu0 %v963_v21  ;;  %1027 = vmatpush.bf16.msra.mxu1 %v963_v21 }
  0x51   : > { %1028 = vmatpush.bf16.msra.mxu2 %v963_v21  ;;  %1029 = vmatpush.bf16.msra.mxu3 %v963_v21 }
  0x54   : > { %565 = vmatpush.bf16.msra.mxu0 %v962_v22  ;;  %1030 = vmatpush.bf16.msra.mxu1 %v962_v22 }
  0x55   : > { %1031 = vmatpush.bf16.msra.mxu2 %v962_v22  ;;  %1032 = vmatpush.bf16.msra.mxu3 %v962_v22 }
  0x58   : > { %566 = vmatpush.bf16.msra.mxu0 %v961_v23  ;;  %1033 = vmatpush.bf16.msra.mxu1 %v961_v23 }
  0x59   : > { %1034 = vmatpush.bf16.msra.mxu2 %v961_v23  ;;  %1035 = vmatpush.bf16.msra.mxu3 %v961_v23 }
  0x5c   : > { %567 = vmatpush.bf16.msra.mxu0 %v960_v24  ;;  %1036 = vmatpush.bf16.msra.mxu1 %v960_v24 }
  0x5d   : > { %1037 = vmatpush.bf16.msra.mxu2 %v960_v24  ;;  %1038 = vmatpush.bf16.msra.mxu3 %v960_v24 }
  0x5f   : > { %568 = vmatmul.bf16.vlgmr.msra.gmra.mxu0 %v952_v25  ;;  %578 = vmatmul.bf16.vlgmr.msra.gmra.mxu1 %v954_v26 }
  0x60   : > { %588 = vmatmul.bf16.vlgmr.msra.gmra.mxu2 %v956_v27  ;;  %598 = vmatmul.bf16.vlgmr.msra.gmra.mxu3 %v958_v28 }
  0x6f   : > { %573 = vmatmul.bf16.gmra.mxu0 %v953_v29  ;;  %583 = vmatmul.bf16.gmra.mxu1 %v955_v30 }
  0x70   : > { %593 = vmatmul.bf16.gmra.mxu2 %v957_v31  ;;  %603 = vmatmul.bf16.gmra.mxu3 %v959_v32 }
  0xdc   : > { %v569_v35 = vpop.f32.mrf.mxu0  ;;  %v579_v36 = vpop.f32.mrf.mxu1 }
  0xdd   : > { %v609_v37 = vadd.f32 %v569_v35, %v432_v33  ;;  %v613_v38 = vadd.f32 %v579_v36, %v436_v34 }
  0xdf   : > { %625 = vst [vmem:[#allocation2 + $0x30] sm:$0xff] %v609_v37 }
  0xe0   : > { %629 = vst [vmem:[#allocation2 + $0x50] sm:$0xff] %v613_v38 }
  0xe3   : > { %v589_v43 = vpop.f32.mrf.mxu2  ;;  %v599_v44 = vpop.f32.mrf.mxu3 }
  0xe4   : > { %v617_v45 = vadd.f32 %v589_v43, %v440_v39  ;;  %v621_v46 = vadd.f32 %v599_v44, %v444_v40  ;;  %v571_v47 = vpop.f32.mrf.mxu0  ;;  %v581_v48 = vpop.f32.mrf.mxu1 }
  0xe5   : > { %v610_v49 = vadd.f32 %v571_v47, %v433_v41  ;;  %v614_v50 = vadd.f32 %v581_v48, %v437_v42 }
  0xe6   : > { %633 = vst [vmem:[#allocation2 + $0x40] sm:$0xff] %v617_v45 }
  0xe7   : > { %637 = vst [vmem:[#allocation2 + $0x60] sm:$0xff] %v621_v46 }
  0xe8   : > { %626 = vst [vmem:[#allocation2] sm:$0xff] %v610_v49 }
  0xe9   : > { %630 = vst [vmem:[#allocation2 + $0x68] sm:$0xff] %v614_v50 }
  0xeb   : > { %v591_v55 = vpop.f32.mrf.mxu2  ;;  %v601_v56 = vpop.f32.mrf.mxu3 }
  0xec   : > { %v618_v57 = vadd.f32 %v591_v55, %v441_v51  ;;  %v622_v58 = vadd.f32 %v601_v56, %v445_v52  ;;  %v574_v59 = vpop.f32.mrf.mxu0  ;;  %v584_v60 = vpop.f32.mrf.mxu1 }
  0xed   : > { %v611_v61 = vadd.f32 %v574_v59, %v434_v53  ;;  %v615_v62 = vadd.f32 %v584_v60, %v438_v54 }
  0xee   : > { %634 = vst [vmem:[#allocation2 + $0x20] sm:$0xff] %v618_v57 }
  0xef   : > { %638 = vst [vmem:[#allocation2 + $0x70] sm:$0xff] %v622_v58 }
  0xf0   : > { %627 = vst [vmem:[#allocation2 + $0x58] sm:$0xff] %v611_v61 }
  0xf1   : > { %631 = vst [vmem:[#allocation2 + $0x8] sm:$0xff] %v615_v62 }
  0xf3   : > { %v594_v3 = vpop.f32.mrf.mxu2  ;;  %v604_v4 = vpop.f32.mrf.mxu3 }
  0xf4   : > { %v619_v5 = vadd.f32 %v594_v3, %v442_v63  ;;  %v623_v6 = vadd.f32 %v604_v4, %v446_v0  ;;  %v576_v7 = vpop.f32.mrf.mxu0  ;;  %v586_v8 = vpop.f32.mrf.mxu1 }
  0xf5   : > { %v612_v9 = vadd.f32 %v576_v7, %v435_v1  ;;  %v616_v10 = vadd.f32 %v586_v8, %v439_v2 }
  0xf6   : > { %635 = vst [vmem:[#allocation2 + $0x10] sm:$0xff] %v619_v5 }
  0xf7   : > { %639 = vst [vmem:[#allocation2 + $0x78] sm:$0xff] %v623_v6 }
  0xf8   : > { %628 = vst [vmem:[#allocation2 + $0x18] sm:$0xff] %v612_v9 }
  0xf9   : > { %632 = vst [vmem:[#allocation2 + $0x48] sm:$0xff] %v616_v10 }
  0xfb   : > { %v596_v13 = vpop.f32.mrf.mxu2  ;;  %v606_v14 = vpop.f32.mrf.mxu3  ;;  %644 = sbr.rel (%p947_p11) target bundleno = 277 (0x115), region = 85 }
  0xfc   : > { %v620_v15 = vadd.f32 %v596_v13, %v443_v11  ;;  %v624_v16 = vadd.f32 %v606_v14, %v447_v12 }
  0xfe   : > { %636 = vst [vmem:[#allocation2 + $0x38] sm:$0xff] %v620_v15 }
  0xff   : > { %640 = vst [vmem:[#allocation2 + $0x28] sm:$0xff] %v624_v16 }
 0x100   : > { %v645_v17 = vld [vmem:[#allocation2 + $0x30] sm:$0xff]  ;;  %v646_v18 = vld [vmem:[#allocation2] sm:$0xff]  ;;  %v647_v21 = vld [vmem:[#allocation2 + $0x58] sm:$0xff] }
 0x101   : > { %v1080_v19 = vld [vmem:[%s1303_s2] ss:$0 sm:$0xff]  ;;  %v648_v22 = vld [vmem:[#allocation2 + $0x18] sm:$0xff]  ;;  %v649_v23 = vld [vmem:[#allocation2 + $0x50] sm:$0xff] }
 0x102   : > { %v1244_v20 = vld [vmem:[%s1304_s3] ss:$0 sm:$0xff]  ;;  %v665_v24 = vmul.f32 %v1080_v19, %v645_v17  ;;  %v666_v25 = vmul.f32 %v1080_v19, %v646_v18  ;;  %v667_v26 = vmul.f32 %v1080_v19, %v647_v21  ;;  %v668_v27 = vmul.f32 %v1080_v19, %v648_v22  ;;  %v650_v28 = vld [vmem:[#allocation2 + $0x68] sm:$0xff]  ;;  %v655_v49 = vld [vmem:[#allocation2 + $0x10] sm:$0xff] }
 0x103   : > { %v651_v29 = vld [vmem:[#allocation2 + $0x8] sm:$0xff]  ;;  %v669_v31 = vmul.f32 %v1080_v19, %v649_v23  ;;  %v670_v32 = vmul.f32 %v1080_v19, %v650_v28  ;;  %v653_v43 = vld [vmem:[#allocation2 + $0x40] sm:$0xff]  ;;  %v658_v56 = vld [vmem:[#allocation2 + $0x70] sm:$0xff]  ;;  %v675_v1 = vmul.f32 %v1080_v19, %v655_v49 }
 0x104   : > { %v652_v30 = vld [vmem:[#allocation2 + $0x48] sm:$0xff]  ;;  %v671_v33 = vmul.f32 %v1080_v19, %v651_v29  ;;  %v685_v35 = vadd.f32 %v1244_v20, %v665_v24  ;;  %v686_v36 = vadd.f32 %v1244_v20, %v666_v25  ;;  %v687_v37 = vadd.f32 %v1244_v20, %v667_v26  ;;  %v654_v44 = vld [vmem:[#allocation2 + $0x20] sm:$0xff]  ;;  %v659_v61 = vld [vmem:[#allocation2 + $0x78] sm:$0xff] }
 0x105   : > { %v672_v34 = vmul.f32 %v1080_v19, %v652_v30  ;;  %v688_v38 = vadd.f32 %v1244_v20, %v668_v27  ;;  %v689_v39 = vadd.f32 %v1244_v20, %v669_v31  ;;  %v690_v40 = vadd.f32 %v1244_v20, %v670_v32  ;;  %v656_v50 = vld [vmem:[#allocation2 + $0x38] sm:$0xff]  ;;  %v657_v55 = vld [vmem:[#allocation2 + $0x60] sm:$0xff] }
 0x106   : > { %v691_v41 = vadd.f32 %v1244_v20, %v671_v33  ;;  %v701_v45 = vmax.f32 %v685_v35, 0.0  ;;  %v702_v46 = vmax.f32 %v686_v36, 0.0  ;;  %v703_v47 = vmax.f32 %v687_v37, 0.0  ;;  %v660_v62 = vld [vmem:[#allocation2 + $0x28] sm:$0xff] }
 0x107   : > { %v692_v42 = vadd.f32 %v1244_v20, %v672_v34  ;;  %v704_v48 = vmax.f32 %v688_v38, 0.0  ;;  %v705_v51 = vmax.f32 %v689_v39, 0.0  ;;  %v706_v52 = vmax.f32 %v690_v40, 0.0 }
 0x108   : > { %v707_v53 = vmax.f32 %v691_v41, 0.0  ;;  %v971_v57 = vpack.c.bf16 %v702_v46, %v701_v45  ;;  %v673_v59 = vmul.f32 %v1080_v19, %v653_v43  ;;  %v674_v60 = vmul.f32 %v1080_v19, %v654_v44 }
 0x109   : > { %v708_v54 = vmax.f32 %v692_v42, 0.0  ;;  %v976_v58 = vpack.c.bf16 %v704_v48, %v703_v47  ;;  %v981_v63 = vpack.c.bf16 %v706_v52, %v705_v51  ;;  %v676_v2 = vmul.f32 %v1080_v19, %v656_v50 }
 0x10a   : > { %972 = vst [vmem:[%s1305_s4] sm:$0xff] %v971_v57   ;;  %v693_v3 = vadd.f32 %v1244_v20, %v673_v59  ;;  %v694_v4 = vadd.f32 %v1244_v20, %v674_v60  ;;  %v677_v5 = vmul.f32 %v1080_v19, %v657_v55  ;;  %v678_v6 = vmul.f32 %v1080_v19, %v658_v56 }
 0x10b   : > { %v986_v0 = vpack.c.bf16 %v708_v54, %v707_v53  ;;  %1008 = vst [vmem:[%s1305_s4 + $0x8] sm:$0xff] %v976_v58   ;;  %v695_v7 = vadd.f32 %v1244_v20, %v675_v1  ;;  %v696_v8 = vadd.f32 %v1244_v20, %v676_v2  ;;  %v679_v9 = vmul.f32 %v1080_v19, %v659_v61 }
 0x10c   : > { %v680_v10 = vmul.f32 %v1080_v19, %v660_v62  ;;  %1009 = vst [vmem:[%s1305_s4 + $0x10] sm:$0xff] %v981_v63   ;;  %v709_v11 = vmax.f32 %v693_v3, 0.0  ;;  %v710_v12 = vmax.f32 %v694_v4, 0.0  ;;  %v697_v13 = vadd.f32 %v1244_v20, %v677_v5 }
 0x10d   : > { %v698_v14 = vadd.f32 %v1244_v20, %v678_v6  ;;  %1010 = vst [vmem:[%s1305_s4 + $0x18] sm:$0xff] %v986_v0   ;;  %v711_v15 = vmax.f32 %v695_v7, 0.0  ;;  %v712_v16 = vmax.f32 %v696_v8, 0.0  ;;  %v699_v17 = vadd.f32 %v1244_v20, %v679_v9 }
 0x10e   : > { %v700_v18 = vadd.f32 %v1244_v20, %v680_v10  ;;  %v991_v19 = vpack.c.bf16 %v710_v12, %v709_v11  ;;  %v713_v21 = vmax.f32 %v697_v13, 0.0 }
 0x10f   : > { %v714_v22 = vmax.f32 %v698_v14, 0.0  ;;  %v996_v23 = vpack.c.bf16 %v712_v16, %v711_v15  ;;  %v715_v24 = vmax.f32 %v699_v17, 0.0 }
 0x110   : > { %v716_v25 = vmax.f32 %v700_v18, 0.0  ;;  %1011 = vst [vmem:[%s1305_s4 + $0x20] sm:$0xff] %v991_v19  }
 0x111   : > { %v1001_v26 = vpack.c.bf16 %v714_v22, %v713_v21  ;;  %1012 = vst [vmem:[%s1305_s4 + $0x28] sm:$0xff] %v996_v23  }
 0x112   : > { %v1006_v27 = vpack.c.bf16 %v716_v25, %v715_v24 }
 0x113   : > { %1013 = vst [vmem:[%s1305_s4 + $0x30] sm:$0xff] %v1001_v26  }
 0x114   : > { %1014 = vst [vmem:[%s1305_s4 + $0x38] sm:$0xff] %v1006_v27  }
 0x115 PF: > { %s14_s19 = sadd.s32 1, %s1120_s19   ;;  %s1306_s15 = smov %s1108_s16 }
 0x116   : > { %p11_p12 = scmp.ge.s32.totalorder %s14_s19, 7   ;;  %s1307_s16 = smov %s1183_s23 }
 0x117   : > { %s1308_s17 = smov %s1116_s18  ;;  %s1309_s18 = smov %s1311_s20 }
 0x118   :  { %13 = sbr.rel (!%p11_p12) target bundleno = 3 (0x3), region = 129 }

// kernel: value_encoder_forward.25
= control target key start
LH: loop header
LB: loop body
LE: loop exit
PB: predicated region body
PF: predicated region fallthrough
CT: control target
= control target key end

     0   :  { %s1319_s18 = smov 0   ;;  %s1321_s19 = smov 0   ;;  %s1514_s0 = inlined_call_operand.vmem [shape: bf16[128,640], index: 0, kind: input, shape index: {}]   ;;  %s1515_s1 = inlined_call_operand.vmem [shape: bf16[640,128], index: 1, kind: input, shape index: {}]   ;;  %s1516_s2 = inlined_call_operand.vmem [shape: f32[1,128], index: 2, kind: input, shape index: {}]   ;;  %s1517_s3 = inlined_call_operand.vmem [shape: f32[1,128], index: 3, kind: input, shape index: {}]   ;;  %s1518_s4 = inlined_call_operand.vmem [shape: bf16[128,128], index: 4, kind: input, shape index: {}]   ;;  %s1519_s5 = inlined_call_operand.vmem [shape: bf16[128,128], index: 5, kind: output, shape index: {}]  }
   0x1   :  { %s1323_s20 = smov 0   ;;  %s1325_s21 = smov 0  }
   0x2   :  { %s1327_s22 = smov 0  }
   0x3 LB: > { %s27_s23 = sadd.s32 1, %s1282_s21  ;;  %p50_p1 = scmp.ne.s32.totalorder %s1274_s19, %s1270_s18  ;;  %s1286_s22 = sphi %s1327_s22, %s15_s22   ;;  %s1282_s21 = sphi %s1325_s21, %s1523_s21   ;;  %s1278_s20 = sphi %s1323_s20, %s1522_s20   ;;  %s1274_s19 = sphi %s1321_s19, %s1521_s19   ;;  %s1270_s18 = sphi %s1319_s18, %s1520_s18  }
   0x4   : > { %p28_p0 = scmp.ge.s32.totalorder %s27_s23, 5  ;;  %p51_p2 = scmp.eq.s32.totalorder %s1286_s22, 0 }
   0x5   : > { %s43_s25 = sadd.s32 1, %s1274_s19  ;;  %p1002_p5 = scmp.ge.s32.totalorder %s1286_s22, 5 }
   0x6   : > { %s1525_s23 = smov (%p28_p0, %s27_s23), 0  ;;  %p52_p3 = por %p51_p2, %p50_p1 }
   0x7   : > { %s39_s24 = ssub.s32 %s1282_s21, %s1525_s23  ;;  %236 = sbr.rel (%p1002_p5) target bundleno = 32 (0x20), region = 28 }
   0x8   : > { %p41_p4 = scmp.eq.s32.totalorder %s39_s24, 0 }
   0xa   : > { %s1354_s26 = scalar_select %p41_p4, %s1274_s19, %s43_s25  }
   0xc   : > { %239 = sbr.rel (!%p52_p3) target bundleno = 32 (0x20), region = 32  ;;  %s241_s27 = sand.u32 (%p52_p3), 1, %s1274_s19  }
   0xd   : > { %s1004_s28 = sshll.u32 (%p52_p3), %s1282_s21, 2  ;;  %s1003_s29 = sshll.u32 (%p52_p3), %s241_s27, 6 }
   0xe   : > { %s1362_s7 = scalar_lea.vmem (%p52_p3), %s1514_s0, %s1004_s28  ;;  %s243_s8 = scalar_lea.vmem (%p52_p3), [#allocation3], %s1003_s29 }
   0xf   : > { %v265_v0 = vld [vmem:[%s1362_s7] sm:$0xf] (%p52_p3)  ;;  %v267_v1 = vld [vmem:[%s1362_s7 + $0x14] sm:$0xf] (%p52_p3)  ;;  %v269_v2 = vld [vmem:[%s1362_s7 + $0x28] sm:$0xf] (%p52_p3) }
  0x10   : > { %266 = vst [vmem:[%s243_s8] sm:$0xf] (%p52_p3), %v265_v0  ;;  %v271_v3 = vld [vmem:[%s1362_s7 + $0x3c] sm:$0xf] (%p52_p3)  ;;  %v273_v4 = vld [vmem:[%s1362_s7 + $0x50] sm:$0xf] (%p52_p3) }
  0x11   : > { %268 = vst [vmem:[%s243_s8 + $0x4] sm:$0xf] %v267_v1  ;;  %v275_v5 = vld [vmem:[%s1362_s7 + $0x64] sm:$0xf]  ;;  %v277_v6 = vld [vmem:[%s1362_s7 + $0x78] sm:$0xf] }
  0x12   : > { %270 = vst [vmem:[%s243_s8 + $0x8] sm:$0xf] %v269_v2  ;;  %v279_v7 = vld [vmem:[%s1362_s7 + $0x8c] sm:$0xf]  ;;  %v281_v8 = vld [vmem:[%s1362_s7 + $0xa0] sm:$0xf] }
  0x13   : > { %272 = vst [vmem:[%s243_s8 + $0xc] sm:$0xf] %v271_v3  ;;  %v283_v9 = vld [vmem:[%s1362_s7 + $0xb4] sm:$0xf]  ;;  %v285_v10 = vld [vmem:[%s1362_s7 + $0xc8] sm:$0xf] }
  0x14   : > { %274 = vst [vmem:[%s243_s8 + $0x10] sm:$0xf] %v273_v4  ;;  %v287_v11 = vld [vmem:[%s1362_s7 + $0xdc] sm:$0xf]  ;;  %v289_v12 = vld [vmem:[%s1362_s7 + $0xf0] sm:$0xf] }
  0x15   : > { %276 = vst [vmem:[%s243_s8 + $0x14] sm:$0xf] %v275_v5  ;;  %v291_v13 = vld [vmem:[%s1362_s7 + $0x104] sm:$0xf]  ;;  %v293_v14 = vld [vmem:[%s1362_s7 + $0x118] sm:$0xf] }
  0x16   : > { %278 = vst [vmem:[%s243_s8 + $0x18] sm:$0xf] %v277_v6  ;;  %v295_v15 = vld [vmem:[%s1362_s7 + $0x12c] sm:$0xf] }
  0x17   : > { %280 = vst [vmem:[%s243_s8 + $0x1c] sm:$0xf] %v279_v7 }
  0x18   : > { %282 = vst [vmem:[%s243_s8 + $0x20] sm:$0xf] %v281_v8 }
  0x19   : > { %284 = vst [vmem:[%s243_s8 + $0x24] sm:$0xf] %v283_v9 }
  0x1a   : > { %286 = vst [vmem:[%s243_s8 + $0x28] sm:$0xf] %v285_v10 }
  0x1b   : > { %288 = vst [vmem:[%s243_s8 + $0x2c] sm:$0xf] %v287_v11 }
  0x1c   : > { %290 = vst [vmem:[%s243_s8 + $0x30] sm:$0xf] %v289_v12 }
  0x1d   : > { %292 = vst [vmem:[%s243_s8 + $0x34] sm:$0xf] %v291_v13 }
  0x1e   : > { %294 = vst [vmem:[%s243_s8 + $0x38] sm:$0xf] %v293_v14 }
  0x1f   : > { %296 = vst [vmem:[%s243_s8 + $0x3c] sm:$0xf] %v295_v15 }
  0x20 PF: > { %p1005_p6 = scmp.ge.s32.totalorder %s1286_s22, 1  ;;  %p363_p7 = scmp.lt.s32.totalorder %s1286_s22, 6 }
  0x22   : > { %p364_p8 = pnand %p1005_p6, %p363_p7 }
  0x23   : > { %s370_s9 = sand.u32 (!%p364_p8), 1, %s1270_s18   ;;  %s1007_s10 = sshll.u32 (!%p364_p8), %s1278_s20, 4 }
  0x24   : > { %367 = sbr.rel (%p364_p8) target bundleno = 286 (0x11e), region = 77  ;;  %s1006_s11 = sshll.u32 (!%p364_p8), %s370_s9, 6 }
  0x25   : > { %p424_p9 = scmp.lt.s32.totalorder (!%p364_p8), %s1007_s10, 79  ;;  %s1389_s16 = scalar_lea.vmem (!%p364_p8), [#allocation3], %s1006_s11 }
  0x26   : > { %p1009_p10 = scmp.ne.s32.totalorder (!%p364_p8), %s1278_s20, 0 }
  0x29   : > { %s1527_s10 = smov (!%p424_p9, %s1007_s10), 79  ;;  %459 = sbr.rel (%p1009_p10) target bundleno = 63 (0x3f), region = 85 }
  0x2a   : > { %s1008_s12 = sshll.u32 %s1527_s10, 2 }
  0x2b   : > { %s1387_s15 = scalar_lea.vmem %s1515_s1, %s1008_s12 }
  0x2e   : > { %v1288_v16 = vmov 0.0  }
  0x2f   : > { %460 = vst [vmem:[#allocation2 + $0x30] sm:$0xff] %v1288_v16 }
  0x30   : > { %461 = vst [vmem:[#allocation2] sm:$0xff] %v1288_v16 }
  0x31   : > { %462 = vst [vmem:[#allocation2 + $0x58] sm:$0xff] %v1288_v16 }
  0x32   : > { %463 = vst [vmem:[#allocation2 + $0x18] sm:$0xff] %v1288_v16 }
  0x33   : > { %464 = vst [vmem:[#allocation2 + $0x50] sm:$0xff] %v1288_v16 }
  0x34   : > { %465 = vst [vmem:[#allocation2 + $0x68] sm:$0xff] %v1288_v16 }
  0x35   : > { %466 = vst [vmem:[#allocation2 + $0x8] sm:$0xff] %v1288_v16 }
  0x36   : > { %467 = vst [vmem:[#allocation2 + $0x48] sm:$0xff] %v1288_v16 }
  0x37   : > { %468 = vst [vmem:[#allocation2 + $0x40] sm:$0xff] %v1288_v16 }
  0x38   : > { %469 = vst [vmem:[#allocation2 + $0x20] sm:$0xff] %v1288_v16 }
  0x39   : > { %470 = vst [vmem:[#allocation2 + $0x10] sm:$0xff] %v1288_v16 }
  0x3a   : > { %471 = vst [vmem:[#allocation2 + $0x38] sm:$0xff] %v1288_v16 }
  0x3b   : > { %472 = vst [vmem:[#allocation2 + $0x60] sm:$0xff] %v1288_v16 }
  0x3c   : > { %473 = vst [vmem:[#allocation2 + $0x70] sm:$0xff] %v1288_v16 }
  0x3d   : > { %474 = vst [vmem:[#allocation2 + $0x78] sm:$0xff] %v1288_v16 }
  0x3e   : > { %475 = vst [vmem:[#allocation2 + $0x28] sm:$0xff] %v1288_v16 }
  0x3f PF: > { %v1094_v17 = vld [vmem:[%s1387_s15 + $0x38] sm:$0xff]  ;;  %v1093_v18 = vld [vmem:[%s1387_s15 + $0x30] sm:$0xff]  ;;  %v1092_v19 = vld [vmem:[%s1387_s15 + $0x28] sm:$0xff]  ;;  %p1074_p11 = scmp.ne.s32.totalorder %s1278_s20, 4 }
  0x40   : > { %620 = vmatpush.bf16.msra.mxu0 %v1094_v17  ;;  %1181 = vmatpush.bf16.msra.mxu1 %v1094_v17  ;;  %v1091_v20 = vld [vmem:[%s1387_s15 + $0x20] sm:$0xff]  ;;  %v1090_v21 = vld [vmem:[%s1387_s15 + $0x18] sm:$0xff]  ;;  %v1089_v22 = vld [vmem:[%s1387_s15 + $0x10] sm:$0xff] }
  0x41   : > { %1182 = vmatpush.bf16.msra.mxu2 %v1094_v17  ;;  %1183 = vmatpush.bf16.msra.mxu3 %v1094_v17  ;;  %v1088_v23 = vld [vmem:[%s1387_s15 + $0x8] sm:$0xff]  ;;  %v1087_v24 = vld [vmem:[%s1387_s15] sm:$0xff]  ;;  %v1081_v26 = vld [vmem:[%s1389_s16 + $0x10] sm:$0xff] }
  0x42   : > { %v1079_v25 = vld [vmem:[%s1389_s16] sm:$0xff]  ;;  %v1085_v28 = vld [vmem:[%s1389_s16 + $0x30] sm:$0xff]  ;;  %v1080_v29 = vld [vmem:[%s1389_s16 + $0x8] sm:$0xff] }
  0x43   : > { %v1083_v27 = vld [vmem:[%s1389_s16 + $0x20] sm:$0xff]  ;;  %v1082_v30 = vld [vmem:[%s1389_s16 + $0x18] sm:$0xff]  ;;  %v1084_v31 = vld [vmem:[%s1389_s16 + $0x28] sm:$0xff] }
  0x44   : > { %621 = vmatpush.bf16.msra.mxu0 %v1093_v18  ;;  %1184 = vmatpush.bf16.msra.mxu1 %v1093_v18  ;;  %v1086_v32 = vld [vmem:[%s1389_s16 + $0x38] sm:$0xff]  ;;  %v492_v33 = vld [vmem:[#allocation2 + $0x30] sm:$0xff]  ;;  %v500_v39 = vld [vmem:[#allocation2 + $0x40] sm:$0xff] }
  0x45   : > { %1185 = vmatpush.bf16.msra.mxu2 %v1093_v18  ;;  %1186 = vmatpush.bf16.msra.mxu3 %v1093_v18  ;;  %v496_v34 = vld [vmem:[#allocation2 + $0x50] sm:$0xff]  ;;  %v504_v40 = vld [vmem:[#allocation2 + $0x60] sm:$0xff]  ;;  %v497_v42 = vld [vmem:[#allocation2 + $0x68] sm:$0xff] }
  0x46   : > { %v493_v41 = vld [vmem:[#allocation2] sm:$0xff]  ;;  %v505_v52 = vld [vmem:[#allocation2 + $0x70] sm:$0xff]  ;;  %v494_v53 = vld [vmem:[#allocation2 + $0x58] sm:$0xff] }
  0x47   : > { %v501_v51 = vld [vmem:[#allocation2 + $0x20] sm:$0xff]  ;;  %v498_v54 = vld [vmem:[#allocation2 + $0x8] sm:$0xff]  ;;  %v502_v63 = vld [vmem:[#allocation2 + $0x10] sm:$0xff] }
  0x48   : > { %622 = vmatpush.bf16.msra.mxu0 %v1092_v19  ;;  %1187 = vmatpush.bf16.msra.mxu1 %v1092_v19  ;;  %v506_v0 = vld [vmem:[#allocation2 + $0x78] sm:$0xff]  ;;  %v499_v2 = vld [vmem:[#allocation2 + $0x48] sm:$0xff] }
  0x49   : > { %1188 = vmatpush.bf16.msra.mxu2 %v1092_v19  ;;  %1189 = vmatpush.bf16.msra.mxu3 %v1092_v19  ;;  %v495_v1 = vld [vmem:[#allocation2 + $0x18] sm:$0xff]  ;;  %v507_v12 = vld [vmem:[#allocation2 + $0x28] sm:$0xff] }
  0x4a   : > { %v503_v11 = vld [vmem:[#allocation2 + $0x38] sm:$0xff] }
  0x4c   : > { %623 = vmatpush.bf16.msra.mxu0 %v1091_v20  ;;  %1190 = vmatpush.bf16.msra.mxu1 %v1091_v20 }
  0x4d   : > { %1191 = vmatpush.bf16.msra.mxu2 %v1091_v20  ;;  %1192 = vmatpush.bf16.msra.mxu3 %v1091_v20 }
  0x50   : > { %624 = vmatpush.bf16.msra.mxu0 %v1090_v21  ;;  %1193 = vmatpush.bf16.msra.mxu1 %v1090_v21 }
  0x51   : > { %1194 = vmatpush.bf16.msra.mxu2 %v1090_v21  ;;  %1195 = vmatpush.bf16.msra.mxu3 %v1090_v21 }
  0x54   : > { %625 = vmatpush.bf16.msra.mxu0 %v1089_v22  ;;  %1196 = vmatpush.bf16.msra.mxu1 %v1089_v22 }
  0x55   : > { %1197 = vmatpush.bf16.msra.mxu2 %v1089_v22  ;;  %1198 = vmatpush.bf16.msra.mxu3 %v1089_v22 }
  0x58   : > { %626 = vmatpush.bf16.msra.mxu0 %v1088_v23  ;;  %1199 = vmatpush.bf16.msra.mxu1 %v1088_v23 }
  0x59   : > { %1200 = vmatpush.bf16.msra.mxu2 %v1088_v23  ;;  %1201 = vmatpush.bf16.msra.mxu3 %v1088_v23 }
  0x5c   : > { %627 = vmatpush.bf16.msra.mxu0 %v1087_v24  ;;  %1202 = vmatpush.bf16.msra.mxu1 %v1087_v24 }
  0x5d   : > { %1203 = vmatpush.bf16.msra.mxu2 %v1087_v24  ;;  %1204 = vmatpush.bf16.msra.mxu3 %v1087_v24 }
  0x5f   : > { %628 = vmatmul.bf16.vlgmr.msra.gmra.mxu0 %v1079_v25  ;;  %638 = vmatmul.bf16.vlgmr.msra.gmra.mxu1 %v1081_v26 }
  0x60   : > { %648 = vmatmul.bf16.vlgmr.msra.gmra.mxu2 %v1083_v27  ;;  %658 = vmatmul.bf16.vlgmr.msra.gmra.mxu3 %v1085_v28 }
  0x6f   : > { %633 = vmatmul.bf16.gmra.mxu0 %v1080_v29  ;;  %643 = vmatmul.bf16.gmra.mxu1 %v1082_v30 }
  0x70   : > { %653 = vmatmul.bf16.gmra.mxu2 %v1084_v31  ;;  %663 = vmatmul.bf16.gmra.mxu3 %v1086_v32 }
  0xdc   : > { %v629_v35 = vpop.f32.mrf.mxu0  ;;  %v639_v36 = vpop.f32.mrf.mxu1 }
  0xdd   : > { %v669_v37 = vadd.f32 %v629_v35, %v492_v33  ;;  %v673_v38 = vadd.f32 %v639_v36, %v496_v34 }
  0xdf   : > { %685 = vst [vmem:[#allocation2 + $0x30] sm:$0xff] %v669_v37 }
  0xe0   : > { %689 = vst [vmem:[#allocation2 + $0x50] sm:$0xff] %v673_v38 }
  0xe3   : > { %v649_v43 = vpop.f32.mrf.mxu2  ;;  %v659_v44 = vpop.f32.mrf.mxu3 }
  0xe4   : > { %v677_v45 = vadd.f32 %v649_v43, %v500_v39  ;;  %v681_v46 = vadd.f32 %v659_v44, %v504_v40  ;;  %v631_v47 = vpop.f32.mrf.mxu0  ;;  %v641_v48 = vpop.f32.mrf.mxu1 }
  0xe5   : > { %v670_v49 = vadd.f32 %v631_v47, %v493_v41  ;;  %v674_v50 = vadd.f32 %v641_v48, %v497_v42 }
  0xe6   : > { %693 = vst [vmem:[#allocation2 + $0x40] sm:$0xff] %v677_v45 }
  0xe7   : > { %697 = vst [vmem:[#allocation2 + $0x60] sm:$0xff] %v681_v46 }
  0xe8   : > { %686 = vst [vmem:[#allocation2] sm:$0xff] %v670_v49 }
  0xe9   : > { %690 = vst [vmem:[#allocation2 + $0x68] sm:$0xff] %v674_v50 }
  0xeb   : > { %v651_v55 = vpop.f32.mrf.mxu2  ;;  %v661_v56 = vpop.f32.mrf.mxu3 }
  0xec   : > { %v678_v57 = vadd.f32 %v651_v55, %v501_v51  ;;  %v682_v58 = vadd.f32 %v661_v56, %v505_v52  ;;  %v634_v59 = vpop.f32.mrf.mxu0  ;;  %v644_v60 = vpop.f32.mrf.mxu1 }
  0xed   : > { %v671_v61 = vadd.f32 %v634_v59, %v494_v53  ;;  %v675_v62 = vadd.f32 %v644_v60, %v498_v54 }
  0xee   : > { %694 = vst [vmem:[#allocation2 + $0x20] sm:$0xff] %v678_v57 }
  0xef   : > { %698 = vst [vmem:[#allocation2 + $0x70] sm:$0xff] %v682_v58 }
  0xf0   : > { %687 = vst [vmem:[#allocation2 + $0x58] sm:$0xff] %v671_v61 }
  0xf1   : > { %691 = vst [vmem:[#allocation2 + $0x8] sm:$0xff] %v675_v62 }
  0xf3   : > { %v654_v3 = vpop.f32.mrf.mxu2  ;;  %v664_v4 = vpop.f32.mrf.mxu3 }
  0xf4   : > { %v679_v5 = vadd.f32 %v654_v3, %v502_v63  ;;  %v683_v6 = vadd.f32 %v664_v4, %v506_v0  ;;  %v636_v7 = vpop.f32.mrf.mxu0  ;;  %v646_v8 = vpop.f32.mrf.mxu1 }
  0xf5   : > { %v672_v9 = vadd.f32 %v636_v7, %v495_v1  ;;  %v676_v10 = vadd.f32 %v646_v8, %v499_v2 }
  0xf6   : > { %695 = vst [vmem:[#allocation2 + $0x10] sm:$0xff] %v679_v5 }
  0xf7   : > { %699 = vst [vmem:[#allocation2 + $0x78] sm:$0xff] %v683_v6 }
  0xf8   : > { %688 = vst [vmem:[#allocation2 + $0x18] sm:$0xff] %v672_v9 }
  0xf9   : > { %692 = vst [vmem:[#allocation2 + $0x48] sm:$0xff] %v676_v10 }
  0xfb   : > { %v656_v13 = vpop.f32.mrf.mxu2  ;;  %v666_v14 = vpop.f32.mrf.mxu3  ;;  %704 = sbr.rel (%p1074_p11) target bundleno = 286 (0x11e), region = 89 }
  0xfc   : > { %v680_v15 = vadd.f32 %v656_v13, %v503_v11  ;;  %v684_v16 = vadd.f32 %v666_v14, %v507_v12 }
  0xfe   : > { %696 = vst [vmem:[#allocation2 + $0x38] sm:$0xff] %v680_v15 }
  0xff   : > { %700 = vst [vmem:[#allocation2 + $0x28] sm:$0xff] %v684_v16 }
 0x100   : > { %v705_v17 = vld [vmem:[#allocation2 + $0x30] sm:$0xff]  ;;  %v706_v18 = vld [vmem:[#allocation2] sm:$0xff]  ;;  %v707_v22 = vld [vmem:[#allocation2 + $0x58] sm:$0xff] }
 0x101   : > { %v1412_v19 = vld [vmem:[%s1516_s2] ss:$0 sm:$0xff]  ;;  %v708_v23 = vld [vmem:[#allocation2 + $0x18] sm:$0xff]  ;;  %v1167_v28 = vld [vmem:[%s1518_s4 + $0x8] sm:$0xff]  }
 0x102   : > { %v1417_v20 = vld [vmem:[%s1517_s3] ss:$0 sm:$0xff]  ;;  %v725_v24 = vmul.f32 %v1412_v19, %v705_v17  ;;  %v726_v25 = vmul.f32 %v1412_v19, %v706_v18  ;;  %v709_v29 = vld [vmem:[#allocation2 + $0x50] sm:$0xff]  ;;  %v710_v30 = vld [vmem:[#allocation2 + $0x68] sm:$0xff]  ;;  %v727_v31 = vmul.f32 %v1412_v19, %v707_v22  ;;  %v728_v32 = vmul.f32 %v1412_v19, %v708_v23 }
 0x103   : > { %v1096_v21 = vld [vmem:[%s1518_s4] sm:$0xff]   ;;  %v1101_v33 = vunpack.c.l.bf16 %v1167_v28  ;;  %v1102_v34 = vunpack.c.h.bf16 %v1167_v28  ;;  %v1168_v35 = vld [vmem:[%s1518_s4 + $0x10] sm:$0xff]   ;;  %v729_v38 = vmul.f32 %v1412_v19, %v709_v29  ;;  %v730_v39 = vmul.f32 %v1412_v19, %v710_v30  ;;  %v711_v40 = vld [vmem:[#allocation2 + $0x8] sm:$0xff] }
 0x104   : > { %v1097_v26 = vunpack.c.l.bf16 %v1096_v21  ;;  %v1098_v27 = vunpack.c.h.bf16 %v1096_v21  ;;  %v745_v36 = vadd.f32 %v1417_v20, %v725_v24  ;;  %v746_v37 = vadd.f32 %v1417_v20, %v726_v25  ;;  %v712_v41 = vld [vmem:[#allocation2 + $0x48] sm:$0xff]  ;;  %v1169_v54 = vld [vmem:[%s1518_s4 + $0x18] sm:$0xff]   ;;  %v713_v59 = vld [vmem:[#allocation2 + $0x40] sm:$0xff] }
 0x105   : > { %v747_v42 = vadd.f32 %v1417_v20, %v727_v31  ;;  %v748_v43 = vadd.f32 %v1417_v20, %v728_v32  ;;  %v1105_v44 = vunpack.c.l.bf16 %v1168_v35  ;;  %v1106_v45 = vunpack.c.h.bf16 %v1168_v35  ;;  %v714_v60 = vld [vmem:[#allocation2 + $0x20] sm:$0xff]  ;;  %v715_v6 = vld [vmem:[#allocation2 + $0x10] sm:$0xff]  ;;  %v716_v11 = vld [vmem:[#allocation2 + $0x38] sm:$0xff] }
 0x106   : > { %v793_v46 = vadd.f32 %v1097_v26, %v745_v36  ;;  %v794_v47 = vadd.f32 %v1098_v27, %v746_v37  ;;  %v749_v48 = vadd.f32 %v1417_v20, %v729_v38  ;;  %v750_v49 = vadd.f32 %v1417_v20, %v730_v39  ;;  %v1170_v1 = vld [vmem:[%s1518_s4 + $0x20] sm:$0xff]   ;;  %v1171_v12 = vld [vmem:[%s1518_s4 + $0x28] sm:$0xff]   ;;  %v718_v24 = vld [vmem:[#allocation2 + $0x70] sm:$0xff] }
 0x107   : > { %v795_v50 = vadd.f32 %v1101_v33, %v747_v42  ;;  %v796_v51 = vadd.f32 %v1102_v34, %v748_v43  ;;  %v731_v52 = vmul.f32 %v1412_v19, %v711_v40  ;;  %v732_v53 = vmul.f32 %v1412_v19, %v712_v41  ;;  %v717_v23 = vld [vmem:[#allocation2 + $0x60] sm:$0xff]  ;;  %v1172_v25 = vld [vmem:[%s1518_s4 + $0x30] sm:$0xff]   ;;  %v719_v38 = vld [vmem:[#allocation2 + $0x78] sm:$0xff] }
 0x108   : > { %v809_v55 = vmax.f32 %v793_v46, 0.0  ;;  %v810_v56 = vmax.f32 %v794_v47, 0.0  ;;  %v797_v57 = vadd.f32 %v1105_v44, %v749_v48  ;;  %v798_v58 = vadd.f32 %v1106_v45, %v750_v49  ;;  %v720_v39 = vld [vmem:[#allocation2 + $0x28] sm:$0xff]  ;;  %v1173_v44 = vld [vmem:[%s1518_s4 + $0x38] sm:$0xff]  }
 0x109   : > { %v811_v61 = vmax.f32 %v795_v50, 0.0  ;;  %v812_v62 = vmax.f32 %v796_v51, 0.0  ;;  %v751_v63 = vadd.f32 %v1417_v20, %v731_v52  ;;  %v752_v0 = vadd.f32 %v1417_v20, %v732_v53 }
 0x10a   : > { %v1130_v2 = vpack.c.bf16 %v810_v56, %v809_v55  ;;  %v813_v3 = vmax.f32 %v797_v57, 0.0  ;;  %v814_v4 = vmax.f32 %v798_v58, 0.0  ;;  %v1109_v5 = vunpack.c.l.bf16 %v1169_v54 }
 0x10b   : > { %v1135_v7 = vpack.c.bf16 %v812_v62, %v811_v61  ;;  %v1110_v8 = vunpack.c.h.bf16 %v1169_v54  ;;  %v733_v9 = vmul.f32 %v1412_v19, %v713_v59  ;;  %v734_v10 = vmul.f32 %v1412_v19, %v714_v60 }
 0x10c   : > { %1131 = vst [vmem:[%s1519_s5] sm:$0xff] %v1130_v2   ;;  %v1140_v13 = vpack.c.bf16 %v814_v4, %v813_v3  ;;  %v799_v14 = vadd.f32 %v1109_v5, %v751_v63  ;;  %v1113_v15 = vunpack.c.l.bf16 %v1170_v1  ;;  %v1114_v16 = vunpack.c.h.bf16 %v1170_v1 }
 0x10d   : > { %1174 = vst [vmem:[%s1519_s5 + $0x8] sm:$0xff] %v1135_v7   ;;  %v800_v17 = vadd.f32 %v1110_v8, %v752_v0  ;;  %v753_v18 = vadd.f32 %v1417_v20, %v733_v9  ;;  %v754_v21 = vadd.f32 %v1417_v20, %v734_v10  ;;  %v735_v22 = vmul.f32 %v1412_v19, %v715_v6 }
 0x10e   : > { %1175 = vst [vmem:[%s1519_s5 + $0x10] sm:$0xff] %v1140_v13   ;;  %v815_v26 = vmax.f32 %v799_v14, 0.0  ;;  %v736_v27 = vmul.f32 %v1412_v19, %v716_v11  ;;  %v1117_v28 = vunpack.c.l.bf16 %v1171_v12  ;;  %v1118_v29 = vunpack.c.h.bf16 %v1171_v12 }
 0x10f   : > { %v816_v30 = vmax.f32 %v800_v17, 0.0  ;;  %v801_v31 = vadd.f32 %v1113_v15, %v753_v18  ;;  %v802_v32 = vadd.f32 %v1114_v16, %v754_v21  ;;  %v755_v33 = vadd.f32 %v1417_v20, %v735_v22 }
 0x110   : > { %v756_v34 = vadd.f32 %v1417_v20, %v736_v27  ;;  %v737_v35 = vmul.f32 %v1412_v19, %v717_v23  ;;  %v738_v36 = vmul.f32 %v1412_v19, %v718_v24  ;;  %v1121_v37 = vunpack.c.l.bf16 %v1172_v25 }
 0x111   : > { %v1145_v40 = vpack.c.bf16 %v816_v30, %v815_v26  ;;  %v817_v41 = vmax.f32 %v801_v31, 0.0  ;;  %v818_v42 = vmax.f32 %v802_v32, 0.0  ;;  %v803_v43 = vadd.f32 %v1117_v28, %v755_v33 }
 0x112   : > { %v804_v45 = vadd.f32 %v1118_v29, %v756_v34  ;;  %v757_v46 = vadd.f32 %v1417_v20, %v737_v35  ;;  %v758_v47 = vadd.f32 %v1417_v20, %v738_v36  ;;  %v1122_v48 = vunpack.c.h.bf16 %v1172_v25 }
 0x113   : > { %1176 = vst [vmem:[%s1519_s5 + $0x18] sm:$0xff] %v1145_v40   ;;  %v1150_v49 = vpack.c.bf16 %v818_v42, %v817_v41  ;;  %v819_v50 = vmax.f32 %v803_v43, 0.0  ;;  %v739_v51 = vmul.f32 %v1412_v19, %v719_v38  ;;  %v740_v52 = vmul.f32 %v1412_v19, %v720_v39 }
 0x114   : > { %v820_v53 = vmax.f32 %v804_v45, 0.0  ;;  %v805_v54 = vadd.f32 %v1121_v37, %v757_v46  ;;  %v806_v55 = vadd.f32 %v1122_v48, %v758_v47  ;;  %v1125_v56 = vunpack.c.l.bf16 %v1173_v44 }
 0x115   : > { %1177 = vst [vmem:[%s1519_s5 + $0x20] sm:$0xff] %v1150_v49   ;;  %v759_v57 = vadd.f32 %v1417_v20, %v739_v51  ;;  %v760_v58 = vadd.f32 %v1417_v20, %v740_v52  ;;  %v1126_v59 = vunpack.c.h.bf16 %v1173_v44 }
 0x116   : > { %v1155_v60 = vpack.c.bf16 %v820_v53, %v819_v50  ;;  %v821_v61 = vmax.f32 %v805_v54, 0.0  ;;  %v822_v62 = vmax.f32 %v806_v55, 0.0 }
 0x117   : > { %v807_v63 = vadd.f32 %v1125_v56, %v759_v57  ;;  %v808_v0 = vadd.f32 %v1126_v59, %v760_v58 }
 0x118   : > { %1178 = vst [vmem:[%s1519_s5 + $0x28] sm:$0xff] %v1155_v60   ;;  %v1160_v19 = vpack.c.bf16 %v822_v62, %v821_v61 }
 0x119   : > { %v823_v1 = vmax.f32 %v807_v63, 0.0  ;;  %v824_v2 = vmax.f32 %v808_v0, 0.0 }
 0x11a   : > { %1179 = vst [vmem:[%s1519_s5 + $0x30] sm:$0xff] %v1160_v19  }
 0x11b   : > { %v1165_v3 = vpack.c.bf16 %v824_v2, %v823_v1 }
 0x11d   : > { %1180 = vst [vmem:[%s1519_s5 + $0x38] sm:$0xff] %v1165_v3  }
 0x11e PF: > { %s15_s22 = sadd.s32 1, %s1286_s22   ;;  %s1520_s18 = smov %s1274_s19 }
 0x11f   : > { %p12_p12 = scmp.ge.s32.totalorder %s15_s22, 7   ;;  %s1521_s19 = smov %s1354_s26 }
 0x120   : > { %s1522_s20 = smov %s1282_s21  ;;  %s1523_s21 = smov %s1525_s23 }
 0x121   :  { %14 = sbr.rel (!%p12_p12) target bundleno = 3 (0x3), region = 136 }

// kernel: value_encoder_forward.28
= control target key start
LH: loop header
LB: loop body
LE: loop exit
PB: predicated region body
PF: predicated region fallthrough
CT: control target
= control target key end

     0   :  { %s820_s15 = smov 0   ;;  %s822_s16 = smov 0   ;;  %s916_s0 = inlined_call_operand.vmem [shape: bf16[32,640], index: 0, kind: input, shape index: {}]   ;;  %s917_s1 = inlined_call_operand.vmem [shape: bf16[640,128], index: 1, kind: input, shape index: {}]   ;;  %s918_s2 = inlined_call_operand.vmem [shape: f32[1,128], index: 2, kind: input, shape index: {}]   ;;  %s919_s3 = inlined_call_operand.vmem [shape: f32[1,128], index: 3, kind: input, shape index: {}]   ;;  %s920_s4 = inlined_call_operand.vmem [shape: bf16[32,128], index: 4, kind: output, shape index: {}]  }
   0x1   :  { %s824_s17 = smov 0   ;;  %s826_s18 = smov 0  }
   0x2   :  { %s828_s19 = smov 0  }
   0x3 LB: > { %s26_s20 = sadd.s32 1, %s788_s18  ;;  %p49_p1 = scmp.ne.s32.totalorder %s780_s16, %s776_s15  ;;  %s792_s19 = sphi %s828_s19, %s14_s19   ;;  %s788_s18 = sphi %s826_s18, %s924_s18   ;;  %s784_s17 = sphi %s824_s17, %s923_s17   ;;  %s780_s16 = sphi %s822_s16, %s922_s16   ;;  %s776_s15 = sphi %s820_s15, %s921_s15  }
   0x4   : > { %p27_p0 = scmp.ge.s32.totalorder %s26_s20, 5  ;;  %p50_p2 = scmp.eq.s32.totalorder %s792_s19, 0 }
   0x5   : > { %s42_s22 = sadd.s32 1, %s780_s16  ;;  %p629_p5 = scmp.ge.s32.totalorder %s792_s19, 5 }
   0x6   : > { %s926_s20 = smov (%p27_p0, %s26_s20), 0  ;;  %p51_p3 = por %p50_p2, %p49_p1 }
   0x7   : > { %s38_s21 = ssub.s32 %s788_s18, %s926_s20  ;;  %195 = sbr.rel (%p629_p5) target bundleno = 20 (0x14), region = 24 }
   0x8   : > { %p40_p4 = scmp.eq.s32.totalorder %s38_s21, 0 }
   0xa   : > { %s855_s23 = scalar_select %p40_p4, %s780_s16, %s42_s22  }
   0xc   : > { %198 = sbr.rel (!%p51_p3) target bundleno = 20 (0x14), region = 28  ;;  %s200_s24 = sand.u32 (%p51_p3), 1, %s780_s16  }
   0xd   : > { %s631_s25 = sshll.u32 (%p51_p3), %s788_s18, 2  ;;  %s630_s26 = sshll.u32 (%p51_p3), %s200_s24, 4 }
   0xe   : > { %s207_s29 = scalar_lea.vmem (%p51_p3), %s916_s0, %s631_s25  ;;  %s202_s30 = scalar_lea.vmem (%p51_p3), [#allocation3], %s630_s26 }
   0xf   : > { %v224_v0 = vld [vmem:[%s207_s29] sm:$0xf] (%p51_p3)  ;;  %v226_v1 = vld [vmem:[%s207_s29 + $0x14] sm:$0xf] (%p51_p3)  ;;  %v228_v2 = vld [vmem:[%s207_s29 + $0x28] sm:$0xf] (%p51_p3) }
  0x10   : > { %225 = vst [vmem:[%s202_s30] sm:$0xf] (%p51_p3), %v224_v0  ;;  %v230_v3 = vld [vmem:[%s207_s29 + $0x3c] sm:$0xf] (%p51_p3) }
  0x11   : > { %227 = vst [vmem:[%s202_s30 + $0x4] sm:$0xf] %v226_v1 }
  0x12   : > { %229 = vst [vmem:[%s202_s30 + $0x8] sm:$0xf] %v228_v2 }
  0x13   : > { %231 = vst [vmem:[%s202_s30 + $0xc] sm:$0xf] %v230_v3 }
  0x14 PF: > { %p632_p6 = scmp.ge.s32.totalorder %s792_s19, 1  ;;  %p274_p7 = scmp.lt.s32.totalorder %s792_s19, 6 }
  0x16   : > { %p275_p8 = pnand %p632_p6, %p274_p7 }
  0x17   : > { %s281_s5 = sand.u32 (!%p275_p8), 1, %s776_s15   ;;  %s634_s6 = sshll.u32 (!%p275_p8), %s784_s17, 4 }
  0x18   : > { %278 = sbr.rel (%p275_p8) target bundleno = 225 (0xe1), region = 73  ;;  %s867_s7 = sshll.u32 (!%p275_p8), %s281_s5, 4 }
  0x19   : > { %p325_p9 = scmp.lt.s32.totalorder (!%p275_p8), %s634_s6, 79  ;;  %s283_s12 = scalar_lea.vmem (!%p275_p8), [#allocation3], %s867_s7 }
  0x1a   : > { %p636_p10 = scmp.ne.s32.totalorder (!%p275_p8), %s784_s17, 0 }
  0x1d   : > { %s928_s6 = smov (!%p325_p9, %s634_s6), 79  ;;  %351 = sbr.rel (%p636_p10) target bundleno = 39 (0x27), region = 81 }
  0x1e   : > { %s635_s8 = sshll.u32 %s928_s6, 2 }
  0x1f   : > { %s872_s11 = scalar_lea.vmem %s917_s1, %s635_s8 }
  0x22   : > { %v794_v4 = vmov 0.0  }
  0x23   : > { %352 = vst [vmem:[#allocation2 + $0x10] sm:$0xff] %v794_v4 }
  0x24   : > { %353 = vst [vmem:[#allocation2] sm:$0xff] %v794_v4 }
  0x25   : > { %354 = vst [vmem:[#allocation2 + $0x18] sm:$0xff] %v794_v4 }
  0x26   : > { %355 = vst [vmem:[#allocation2 + $0x8] sm:$0xff] %v794_v4 }
  0x27 PF: > { %v691_v5 = vld [vmem:[%s872_s11 + $0x38] sm:$0xff]  ;;  %v690_v6 = vld [vmem:[%s872_s11 + $0x30] sm:$0xff]  ;;  %v689_v7 = vld [vmem:[%s872_s11 + $0x28] sm:$0xff]  ;;  %p677_p11 = scmp.ne.s32.totalorder %s784_s17, 4 }
  0x28   : > { %440 = vmatpush.bf16.msra.mxu0 %v691_v5  ;;  %703 = vmatpush.bf16.msra.mxu1 %v691_v5  ;;  %v688_v8 = vld [vmem:[%s872_s11 + $0x20] sm:$0xff]  ;;  %v687_v9 = vld [vmem:[%s872_s11 + $0x18] sm:$0xff]  ;;  %v686_v10 = vld [vmem:[%s872_s11 + $0x10] sm:$0xff] }
  0x29   : > { %v685_v11 = vld [vmem:[%s872_s11 + $0x8] sm:$0xff]  ;;  %v684_v12 = vld [vmem:[%s872_s11] sm:$0xff] }
  0x2a   : > { %v682_v13 = vld [vmem:[%s283_s12] sm:$0xff]  ;;  %v683_v14 = vld [vmem:[%s283_s12 + $0x8] sm:$0xff] }
  0x2b   : > { %v360_v15 = vld [vmem:[#allocation2 + $0x10] sm:$0xff]  ;;  %v361_v21 = vld [vmem:[#allocation2] sm:$0xff] }
  0x2c   : > { %441 = vmatpush.bf16.msra.mxu0 %v690_v6  ;;  %704 = vmatpush.bf16.msra.mxu1 %v690_v6  ;;  %v362_v16 = vld [vmem:[#allocation2 + $0x18] sm:$0xff] }
  0x2d   : > { %v363_v22 = vld [vmem:[#allocation2 + $0x8] sm:$0xff] }
  0x30   : > { %442 = vmatpush.bf16.msra.mxu0 %v689_v7  ;;  %705 = vmatpush.bf16.msra.mxu1 %v689_v7 }
  0x34   : > { %443 = vmatpush.bf16.msra.mxu0 %v688_v8  ;;  %706 = vmatpush.bf16.msra.mxu1 %v688_v8 }
  0x38   : > { %444 = vmatpush.bf16.msra.mxu0 %v687_v9  ;;  %707 = vmatpush.bf16.msra.mxu1 %v687_v9 }
  0x3c   : > { %445 = vmatpush.bf16.msra.mxu0 %v686_v10  ;;  %708 = vmatpush.bf16.msra.mxu1 %v686_v10 }
  0x40   : > { %446 = vmatpush.bf16.msra.mxu0 %v685_v11  ;;  %709 = vmatpush.bf16.msra.mxu1 %v685_v11 }
  0x44   : > { %447 = vmatpush.bf16.msra.mxu0 %v684_v12  ;;  %710 = vmatpush.bf16.msra.mxu1 %v684_v12 }
  0x47   : > { %448 = vmatmul.bf16.vlgmr.msra.gmra.mxu0 %v682_v13  ;;  %453 = vmatmul.bf16.vlgmr.msra.gmra.mxu1 %v683_v14 }
  0xc4   : > { %v449_v17 = vpop.f32.mrf.mxu0  ;;  %v454_v18 = vpop.f32.mrf.mxu1 }
  0xc5   : > { %v459_v19 = vadd.f32 %v449_v17, %v360_v15  ;;  %v461_v20 = vadd.f32 %v454_v18, %v362_v16 }
  0xc7   : > { %463 = vst [vmem:[#allocation2 + $0x10] sm:$0xff] %v459_v19 }
  0xc8   : > { %465 = vst [vmem:[#allocation2 + $0x18] sm:$0xff] %v461_v20 }
  0xcc   : > { %v451_v23 = vpop.f32.mrf.mxu0  ;;  %v456_v24 = vpop.f32.mrf.mxu1  ;;  %470 = sbr.rel (%p677_p11) target bundleno = 225 (0xe1), region = 85 }
  0xcd   : > { %v460_v25 = vadd.f32 %v451_v23, %v361_v21  ;;  %v462_v26 = vadd.f32 %v456_v24, %v363_v22 }
  0xcf   : > { %464 = vst [vmem:[#allocation2] sm:$0xff] %v460_v25 }
  0xd0   : > { %466 = vst [vmem:[#allocation2 + $0x8] sm:$0xff] %v462_v26 }
  0xd1   : > { %v471_v27 = vld [vmem:[#allocation2 + $0x10] sm:$0xff]  ;;  %v752_v29 = vld [vmem:[%s918_s2] ss:$0 sm:$0xff]  ;;  %v473_v31 = vld [vmem:[#allocation2 + $0x18] sm:$0xff] }
  0xd2   : > { %v753_v30 = vld [vmem:[%s919_s3] ss:$0 sm:$0xff]  ;;  %v479_v33 = vmul.f32 %v752_v29, %v471_v27  ;;  %v481_v35 = vmul.f32 %v752_v29, %v473_v31 }
  0xd4   : > { %v487_v37 = vadd.f32 %v753_v30, %v479_v33  ;;  %v489_v39 = vadd.f32 %v753_v30, %v481_v35 }
  0xd6   : > { %v472_v28 = vld [vmem:[#allocation2] sm:$0xff]  ;;  %v491_v41 = vmax.f32 %v487_v37, 0.0  ;;  %v493_v43 = vmax.f32 %v489_v39, 0.0 }
  0xd7   : > { %v474_v32 = vld [vmem:[#allocation2 + $0x8] sm:$0xff]  ;;  %v480_v34 = vmul.f32 %v752_v29, %v472_v28 }
  0xd8   : > { %v482_v36 = vmul.f32 %v752_v29, %v474_v32 }
  0xd9   : > { %v488_v38 = vadd.f32 %v753_v30, %v480_v34 }
  0xda   : > { %v490_v40 = vadd.f32 %v753_v30, %v482_v36 }
  0xdb   : > { %v492_v42 = vmax.f32 %v488_v38, 0.0 }
  0xdc   : > { %v494_v44 = vmax.f32 %v490_v40, 0.0 }
  0xdd   : > { %v695_v45 = vpack.c.bf16 %v492_v42, %v491_v41 }
  0xde   : > { %v700_v46 = vpack.c.bf16 %v494_v44, %v493_v43 }
  0xdf   : > { %696 = vst [vmem:[%s920_s4] sm:$0xff] %v695_v45  }
  0xe0   : > { %702 = vst [vmem:[%s920_s4 + $0x8] sm:$0xff] %v700_v46  }
  0xe1 PF: > { %s14_s19 = sadd.s32 1, %s792_s19   ;;  %s921_s15 = smov %s780_s16 }
  0xe2   : > { %p11_p12 = scmp.ge.s32.totalorder %s14_s19, 7   ;;  %s922_s16 = smov %s855_s23 }
  0xe3   : > { %s923_s17 = smov %s788_s18  ;;  %s924_s18 = smov %s926_s20 }
  0xe4   :  { %13 = sbr.rel (!%p11_p12) target bundleno = 3 (0x3), region = 129 }

// kernel: value_encoder_forward.29
= control target key start
LH: loop header
LB: loop body
LE: loop exit
PB: predicated region body
PF: predicated region fallthrough
CT: control target
= control target key end

     0   :  { %s309_s1 = inlined_call_operand.vmem [shape: bf16[128,128], index: 1, kind: input, shape index: {}]   ;;  %s310_s2 = inlined_call_operand.vmem [shape: f32[1,128], index: 2, kind: input, shape index: {}]   ;;  %s311_s3 = inlined_call_operand.vmem [shape: f32[1,128], index: 3, kind: input, shape index: {}]   ;;  %s312_s0 = inlined_call_operand.vmem [shape: bf16[32,128], index: 0, kind: input, shape index: {}]   ;;  %s313_s4 = inlined_call_operand.vmem [shape: bf16[32,128], index: 4, kind: output, shape index: {}]  }
   0x1   :  { %v220_v0 = vld [vmem:[%s309_s1 + $0x38] sm:$0xff]  ;;  %v219_v1 = vld [vmem:[%s309_s1 + $0x30] sm:$0xff]  ;;  %v218_v2 = vld [vmem:[%s309_s1 + $0x28] sm:$0xff] }
   0x2   :  { %109 = vmatpush.bf16.msra.mxu0 %v220_v0  ;;  %232 = vmatpush.bf16.msra.mxu1 %v220_v0  ;;  %v217_v3 = vld [vmem:[%s309_s1 + $0x20] sm:$0xff]  ;;  %v216_v4 = vld [vmem:[%s309_s1 + $0x18] sm:$0xff]  ;;  %v215_v5 = vld [vmem:[%s309_s1 + $0x10] sm:$0xff] }
   0x3   :  { %v214_v6 = vld [vmem:[%s309_s1 + $0x8] sm:$0xff]  ;;  %v213_v7 = vld [vmem:[%s309_s1] sm:$0xff] }
   0x4   :  { %v211_v8 = vld [vmem:[%s312_s0] sm:$0xff]  ;;  %v212_v9 = vld [vmem:[%s312_s0 + $0x8] sm:$0xff] }
   0x5   :  { %v240_v12 = vld [vmem:[%s310_s2] ss:$0 sm:$0xff] }
   0x6   :  { %110 = vmatpush.bf16.msra.mxu0 %v219_v1  ;;  %233 = vmatpush.bf16.msra.mxu1 %v219_v1  ;;  %v241_v14 = vld [vmem:[%s311_s3] ss:$0 sm:$0xff] }
   0xa   :  { %111 = vmatpush.bf16.msra.mxu0 %v218_v2  ;;  %234 = vmatpush.bf16.msra.mxu1 %v218_v2 }
   0xe   :  { %112 = vmatpush.bf16.msra.mxu0 %v217_v3  ;;  %235 = vmatpush.bf16.msra.mxu1 %v217_v3 }
  0x12   :  { %113 = vmatpush.bf16.msra.mxu0 %v216_v4  ;;  %236 = vmatpush.bf16.msra.mxu1 %v216_v4 }
  0x16   :  { %114 = vmatpush.bf16.msra.mxu0 %v215_v5  ;;  %237 = vmatpush.bf16.msra.mxu1 %v215_v5 }
  0x1a   :  { %115 = vmatpush.bf16.msra.mxu0 %v214_v6  ;;  %238 = vmatpush.bf16.msra.mxu1 %v214_v6 }
  0x1e   :  { %116 = vmatpush.bf16.msra.mxu0 %v213_v7  ;;  %239 = vmatpush.bf16.msra.mxu1 %v213_v7 }
  0x21   :  { %117 = vmatmul.bf16.vlgmr.msra.gmra.mxu0 %v211_v8  ;;  %122 = vmatmul.bf16.vlgmr.msra.gmra.mxu1 %v212_v9 }
  0x9e   :  { %v118_v10 = vpop.f32.mrf.mxu0  ;;  %v123_v11 = vpop.f32.mrf.mxu1 }
  0x9f   :  { %v147_v13 = vmul.f32 %v240_v12, %v118_v10  ;;  %v149_v15 = vmul.f32 %v240_v12, %v123_v11 }
  0xa1   :  { %v155_v20 = vadd.f32 %v241_v14, %v147_v13  ;;  %v157_v21 = vadd.f32 %v241_v14, %v149_v15 }
  0xa6   :  { %v120_v16 = vpop.f32.mrf.mxu0  ;;  %v125_v17 = vpop.f32.mrf.mxu1 }
  0xa7   :  { %v148_v18 = vmul.f32 %v240_v12, %v120_v16  ;;  %v150_v19 = vmul.f32 %v240_v12, %v125_v17 }
  0xa9   :  { %v156_v22 = vadd.f32 %v241_v14, %v148_v18  ;;  %v158_v23 = vadd.f32 %v241_v14, %v150_v19 }
  0xab   :  { %v224_v24 = vpack.c.bf16 %v156_v22, %v155_v20  ;;  %v229_v25 = vpack.c.bf16 %v158_v23, %v157_v21 }
  0xad   :  { %225 = vst [vmem:[%s313_s4] sm:$0xff] %v224_v24  }
  0xae   :  { %231 = vst [vmem:[%s313_s4 + $0x8] sm:$0xff] %v229_v25  }

// kernel: value_encoder_forward.30
= control target key start
LH: loop header
LB: loop body
LE: loop exit
PB: predicated region body
PF: predicated region fallthrough
CT: control target
= control target key end

     0   :  { %s1218_s18 = smov 0   ;;  %s1220_s19 = smov 0   ;;  %s1343_s0 = inlined_call_operand.vmem [shape: bf16[32,1152], index: 0, kind: input, shape index: {}]   ;;  %s1344_s1 = inlined_call_operand.vmem [shape: bf16[1152,128], index: 1, kind: input, shape index: {}]   ;;  %s1345_s2 = inlined_call_operand.vmem [shape: f32[1,128], index: 2, kind: input, shape index: {}]   ;;  %s1346_s3 = inlined_call_operand.vmem [shape: f32[1,128], index: 3, kind: input, shape index: {}]   ;;  %s1347_s4 = inlined_call_operand.vmem [shape: bf16[32,128], index: 4, kind: input, shape index: {}]   ;;  %s1348_s5 = inlined_call_operand.vmem [shape: bf16[32,128], index: 5, kind: output, shape index: {}]  }
   0x1   :  { %s1222_s20 = smov 0   ;;  %s1224_s21 = smov 0  }
   0x2   :  { %s1226_s22 = smov 0  }
   0x3 LB: > { %s27_s23 = sadd.s32 1, %s1181_s21  ;;  %p50_p1 = scmp.ne.s32.totalorder %s1173_s19, %s1169_s18  ;;  %s1185_s22 = sphi %s1226_s22, %s15_s22   ;;  %s1181_s21 = sphi %s1224_s21, %s1352_s21   ;;  %s1177_s20 = sphi %s1222_s20, %s1351_s20   ;;  %s1173_s19 = sphi %s1220_s19, %s1350_s19   ;;  %s1169_s18 = sphi %s1218_s18, %s1349_s18  }
   0x4   : > { %p28_p0 = scmp.ge.s32.totalorder %s27_s23, 3  ;;  %p51_p2 = scmp.eq.s32.totalorder %s1185_s22, 0 }
   0x5   : > { %s43_s25 = sadd.s32 1, %s1173_s19  ;;  %p905_p5 = scmp.ge.s32.totalorder %s1185_s22, 3 }
   0x6   : > { %s1354_s23 = smov (%p28_p0, %s27_s23), 0  ;;  %p52_p3 = por %p51_p2, %p50_p1 }
   0x7   : > { %s39_s24 = ssub.s32 %s1181_s21, %s1354_s23  ;;  %236 = sbr.rel (%p905_p5) target bundleno = 25 (0x19), region = 28 }
   0x8   : > { %p41_p4 = scmp.eq.s32.totalorder %s39_s24, 0 }
   0xa   : > { %s1253_s26 = scalar_select %p41_p4, %s1173_s19, %s43_s25  }
   0xc   : > { %239 = sbr.rel (!%p52_p3) target bundleno = 25 (0x19), region = 32  ;;  %s241_s27 = sand.u32 (%p52_p3), 1, %s1173_s19  }
   0xd   : > { %s1043_s28 = smul.u32 (%p52_p3), 12, %s1181_s21 }
   0xe   : > { %s1102_s29 = smul.u32 (%p52_p3), 48, %s241_s27 }
   0xf   : > { %s249_s7 = scalar_lea.vmem (%p52_p3), %s1343_s0, %s1043_s28 }
  0x10   : > { %v264_v0 = vld [vmem:[%s249_s7] sm:$0xff] (%p52_p3)  ;;  %v268_v2 = vld [vmem:[%s249_s7 + $0x48] sm:$0xff] (%p52_p3)  ;;  %s243_s8 = scalar_lea.vmem (%p52_p3), [#allocation3], %s1102_s29  ;;  %v911_v6 = vld [vmem:[%s249_s7 + $0x50] sm:$0xf] (%p52_p3) }
  0x11   : > { %v266_v1 = vld [vmem:[%s249_s7 + $0x24] sm:$0xff]  ;;  %265 = vst [vmem:[%s243_s8] sm:$0xff] %v264_v0  ;;  %v270_v3 = vld [vmem:[%s249_s7 + $0x6c] sm:$0xff]  ;;  %v913_v7 = vld [vmem:[%s249_s7 + $0x74] sm:$0xf] }
  0x12   : > { %267 = vst [vmem:[%s243_s8 + $0xc] sm:$0xff] %v266_v1  ;;  %v907_v4 = vld [vmem:[%s249_s7 + $0x8] sm:$0xf]  ;;  %v909_v5 = vld [vmem:[%s249_s7 + $0x2c] sm:$0xf] }
  0x13   : > { %269 = vst [vmem:[%s243_s8 + $0x18] sm:$0xff] %v268_v2 }
  0x14   : > { %271 = vst [vmem:[%s243_s8 + $0x24] sm:$0xff] %v270_v3 }
  0x15   : > { %908 = vst [vmem:[%s243_s8 + $0x8] sm:$0xf] %v907_v4 }
  0x16   : > { %910 = vst [vmem:[%s243_s8 + $0x14] sm:$0xf] %v909_v5 }
  0x17   : > { %912 = vst [vmem:[%s243_s8 + $0x20] sm:$0xf] %v911_v6 }
  0x18   : > { %914 = vst [vmem:[%s243_s8 + $0x2c] sm:$0xf] %v913_v7 }
  0x19 PF: > { %p915_p6 = scmp.ge.s32.totalorder %s1185_s22, 1  ;;  %p304_p7 = scmp.lt.s32.totalorder %s1185_s22, 4 }
  0x1b   : > { %p305_p8 = pnand %p915_p6, %p304_p7 }
  0x1c   : > { %s311_s9 = sand.u32 (!%p305_p8), 1, %s1169_s18   ;;  %s365_s10 = smul.u32 (!%p305_p8), 48, %s1177_s20 }
  0x1d   : > { %308 = sbr.rel (%p305_p8) target bundleno = 257 (0x101), region = 62  ;;  %p917_p10 = scmp.ne.s32.totalorder (!%p305_p8), %s1177_s20, 0 }
  0x1e   : > { %s1103_s11 = smul.u32 (!%p305_p8), 48, %s311_s9  ;;  %p366_p9 = scmp.lt.s32.totalorder (!%p305_p8), %s365_s10, 143 }
  0x20   : > { %s1270_s16 = scalar_lea.vmem (!%p305_p8), [#allocation3], %s1103_s11 }
  0x22   : > { %s1356_s10 = smov (!%p366_p9, %s365_s10), 143  ;;  %401 = sbr.rel (%p917_p10) target bundleno = 44 (0x2c), region = 70 }
  0x23   : > { %s916_s12 = sshll.u32 %s1356_s10, 2 }
  0x24   : > { %s1268_s15 = scalar_lea.vmem %s1344_s1, %s916_s12 }
  0x27   : > { %v1187_v8 = vmov 0.0  }
  0x28   : > { %402 = vst [vmem:[#allocation2 + $0x10] sm:$0xff] %v1187_v8 }
  0x29   : > { %403 = vst [vmem:[#allocation2] sm:$0xff] %v1187_v8 }
  0x2a   : > { %404 = vst [vmem:[#allocation2 + $0x18] sm:$0xff] %v1187_v8 }
  0x2b   : > { %405 = vst [vmem:[#allocation2 + $0x8] sm:$0xff] %v1187_v8 }
  0x2c PF: > { %v1057_v9 = vld [vmem:[%s1268_s15 + $0x38] sm:$0xff]  ;;  %v1056_v12 = vld [vmem:[%s1268_s15 + $0x30] sm:$0xff]  ;;  %v1055_v15 = vld [vmem:[%s1268_s15 + $0x28] sm:$0xff]  ;;  %p1038_p11 = scmp.ne.s32.totalorder %s1177_s20, 2 }
  0x2d   : > { %v1065_v10 = vld [vmem:[%s1268_s15 + $0x78] sm:$0xff]  ;;  %642 = vmatpush.bf16.msra.mxu0 %v1057_v9  ;;  %v1064_v13 = vld [vmem:[%s1268_s15 + $0x70] sm:$0xff]  ;;  %1094 = vmatpush.bf16.msra.mxu3 %v1057_v9  ;;  %v1063_v16 = vld [vmem:[%s1268_s15 + $0x68] sm:$0xff] }
  0x2e   : > { %v1073_v11 = vld [vmem:[%s1268_s15 + $0xb8] sm:$0xff]  ;;  %661 = vmatpush.bf16.msra.mxu1 %v1065_v10  ;;  %v1072_v14 = vld [vmem:[%s1268_s15 + $0xb0] sm:$0xff]  ;;  %v1071_v17 = vld [vmem:[%s1268_s15 + $0xa8] sm:$0xff] }
  0x2f   : > { %680 = vmatpush.bf16.msra.mxu2 %v1073_v11  ;;  %v1054_v18 = vld [vmem:[%s1268_s15 + $0x20] sm:$0xff]  ;;  %v1053_v21 = vld [vmem:[%s1268_s15 + $0x18] sm:$0xff]  ;;  %v1052_v24 = vld [vmem:[%s1268_s15 + $0x10] sm:$0xff] }
  0x30   : > { %v1062_v19 = vld [vmem:[%s1268_s15 + $0x60] sm:$0xff]  ;;  %v1061_v22 = vld [vmem:[%s1268_s15 + $0x58] sm:$0xff]  ;;  %v1060_v25 = vld [vmem:[%s1268_s15 + $0x50] sm:$0xff] }
  0x31   : > { %643 = vmatpush.bf16.msra.mxu0 %v1056_v12  ;;  %1095 = vmatpush.bf16.msra.mxu3 %v1056_v12  ;;  %v1070_v20 = vld [vmem:[%s1268_s15 + $0xa0] sm:$0xff]  ;;  %v1069_v23 = vld [vmem:[%s1268_s15 + $0x98] sm:$0xff]  ;;  %v1068_v26 = vld [vmem:[%s1268_s15 + $0x90] sm:$0xff] }
  0x32   : > { %662 = vmatpush.bf16.msra.mxu1 %v1064_v13  ;;  %v1051_v27 = vld [vmem:[%s1268_s15 + $0x8] sm:$0xff]  ;;  %v1050_v30 = vld [vmem:[%s1268_s15] sm:$0xff]  ;;  %v414_v54 = vld [vmem:[#allocation2 + $0x10] sm:$0xff] }
  0x33   : > { %681 = vmatpush.bf16.msra.mxu2 %v1072_v14  ;;  %v1059_v28 = vld [vmem:[%s1268_s15 + $0x48] sm:$0xff]  ;;  %v1058_v31 = vld [vmem:[%s1268_s15 + $0x40] sm:$0xff]  ;;  %v416_v4 = vld [vmem:[#allocation2 + $0x18] sm:$0xff] }
  0x34   : > { %v1067_v29 = vld [vmem:[%s1268_s15 + $0x88] sm:$0xff]  ;;  %v1066_v32 = vld [vmem:[%s1268_s15 + $0x80] sm:$0xff] }
  0x35   : > { %644 = vmatpush.bf16.msra.mxu0 %v1055_v15  ;;  %1096 = vmatpush.bf16.msra.mxu3 %v1055_v15  ;;  %v920_v33 = vld [vmem:[%s1270_s16] sm:$0xf]  ;;  %v1045_v34 = vld [vmem:[%s1270_s16 + $0x8] sm:$0xf0]  ;;  %v1044_v35 = vld [vmem:[%s1270_s16 + $0x4] sm:$0xf] }
  0x36   : > { %663 = vmatpush.bf16.msra.mxu1 %v1063_v16  ;;  %v922_v36 = vld [vmem:[%s1270_s16 + $0xc] sm:$0xf0]  ;;  %v928_v37 = vld [vmem:[%s1270_s16 + $0x8] sm:$0xf]  ;;  %v1046_v38 = vld [vmem:[%s1270_s16 + $0x10] sm:$0xf0]  ;;  %v921_v41 = vor.u32 %v1045_v34, %v920_v33 }
  0x37   : > { %682 = vmatpush.bf16.msra.mxu2 %v1071_v17  ;;  %v932_v39 = vld [vmem:[%s1270_s16 + $0x18] sm:$0xf]  ;;  %v1048_v40 = vld [vmem:[%s1270_s16 + $0x20] sm:$0xf0]  ;;  %v925_v42 = vor.u32 %v1044_v35, %v922_v36  ;;  %v929_v43 = vor.u32 %v1046_v38, %v928_v37  ;;  %v1047_v45 = vld [vmem:[%s1270_s16 + $0x1c] sm:$0xf] }
  0x38   : > { %v933_v44 = vor.u32 %v1048_v40, %v932_v39  ;;  %v934_v46 = vld [vmem:[%s1270_s16 + $0x24] sm:$0xf0]  ;;  %v940_v47 = vld [vmem:[%s1270_s16 + $0x20] sm:$0xf]  ;;  %v1049_v48 = vld [vmem:[%s1270_s16 + $0x28] sm:$0xf0] }
  0x39   : > { %645 = vmatpush.bf16.msra.mxu0 %v1054_v18  ;;  %1097 = vmatpush.bf16.msra.mxu3 %v1054_v18  ;;  %v937_v49 = vor.u32 %v1047_v45, %v934_v46  ;;  %v941_v50 = vor.u32 %v1049_v48, %v940_v47  ;;  %v415_v61 = vld [vmem:[#allocation2] sm:$0xff]  ;;  %v417_v11 = vld [vmem:[#allocation2 + $0x8] sm:$0xff] }
  0x3a   : > { %664 = vmatpush.bf16.msra.mxu1 %v1062_v19 }
  0x3b   : > { %683 = vmatpush.bf16.msra.mxu2 %v1070_v20 }
  0x3d   : > { %646 = vmatpush.bf16.msra.mxu0 %v1053_v21  ;;  %1098 = vmatpush.bf16.msra.mxu3 %v1053_v21 }
  0x3e   : > { %665 = vmatpush.bf16.msra.mxu1 %v1061_v22 }
  0x3f   : > { %684 = vmatpush.bf16.msra.mxu2 %v1069_v23 }
  0x41   : > { %647 = vmatpush.bf16.msra.mxu0 %v1052_v24  ;;  %1099 = vmatpush.bf16.msra.mxu3 %v1052_v24 }
  0x42   : > { %666 = vmatpush.bf16.msra.mxu1 %v1060_v25 }
  0x43   : > { %685 = vmatpush.bf16.msra.mxu2 %v1068_v26 }
  0x45   : > { %648 = vmatpush.bf16.msra.mxu0 %v1051_v27  ;;  %1100 = vmatpush.bf16.msra.mxu3 %v1051_v27 }
  0x46   : > { %667 = vmatpush.bf16.msra.mxu1 %v1059_v28 }
  0x47   : > { %686 = vmatpush.bf16.msra.mxu2 %v1067_v29 }
  0x49   : > { %649 = vmatpush.bf16.msra.mxu0 %v1050_v30  ;;  %1101 = vmatpush.bf16.msra.mxu3 %v1050_v30 }
  0x4a   : > { %668 = vmatpush.bf16.msra.mxu1 %v1058_v31 }
  0x4b   : > { %687 = vmatpush.bf16.msra.mxu2 %v1066_v32 }
  0x4c   : > { %650 = vmatmul.bf16.vlgmr.msra.gmra.mxu0 %v921_v41  ;;  %655 = vmatmul.bf16.vlgmr.msra.gmra.mxu3 %v933_v44 }
  0x4d   : > { %669 = vmatmul.bf16.vlgmr.msra.gmra.mxu1 %v925_v42 }
  0x4e   : > { %688 = vmatmul.bf16.vlgmr.msra.gmra.mxu2 %v929_v43 }
  0x5d   : > { %674 = vmatmul.bf16.gmra.mxu1 %v937_v49 }
  0x5e   : > { %693 = vmatmul.bf16.gmra.mxu2 %v941_v50 }
  0xc9   : > { %v651_v52 = vpop.f32.mrf.mxu0 }
  0xca   : > { %v670_v51 = vpop.f32.mrf.mxu1 }
  0xcb   : > { %v671_v53 = vadd.f32 %v670_v51, %v651_v52 }
  0xcf   : > { %v656_v2 = vpop.f32.mrf.mxu3 }
  0xd1   : > { %v689_v55 = vpop.f32.mrf.mxu2  ;;  %v653_v59 = vpop.f32.mrf.mxu0 }
  0xd2   : > { %v690_v56 = vadd.f32 %v689_v55, %v671_v53  ;;  %v672_v57 = vpop.f32.mrf.mxu1 }
  0xd3   : > { %v673_v60 = vadd.f32 %v672_v57, %v653_v59 }
  0xd4   : > { %v699_v58 = vadd.f32 %v690_v56, %v414_v54 }
  0xd6   : > { %703 = vst [vmem:[#allocation2 + $0x10] sm:$0xff] %v699_v58 }
  0xd7   : > { %v658_v9 = vpop.f32.mrf.mxu3 }
  0xd9   : > { %v691_v62 = vpop.f32.mrf.mxu2 }
  0xda   : > { %v692_v63 = vadd.f32 %v691_v62, %v673_v60  ;;  %v675_v0 = vpop.f32.mrf.mxu1 }
  0xdb   : > { %v676_v3 = vadd.f32 %v675_v0, %v656_v2 }
  0xdc   : > { %v700_v1 = vadd.f32 %v692_v63, %v415_v61 }
  0xde   : > { %704 = vst [vmem:[#allocation2] sm:$0xff] %v700_v1 }
  0xe1   : > { %v694_v5 = vpop.f32.mrf.mxu2 }
  0xe2   : > { %v695_v6 = vadd.f32 %v694_v5, %v676_v3  ;;  %v677_v8 = vpop.f32.mrf.mxu1 }
  0xe3   : > { %v678_v10 = vadd.f32 %v677_v8, %v658_v9 }
  0xe4   : > { %v701_v7 = vadd.f32 %v695_v6, %v416_v4 }
  0xe6   : > { %705 = vst [vmem:[#allocation2 + $0x18] sm:$0xff] %v701_v7 }
  0xe9   : > { %v696_v12 = vpop.f32.mrf.mxu2 }
  0xea   : > { %v697_v13 = vadd.f32 %v696_v12, %v678_v10  ;;  %710 = sbr.rel (%p1038_p11) target bundleno = 257 (0x101), region = 74 }
  0xec   : > { %v702_v14 = vadd.f32 %v697_v13, %v417_v11 }
  0xee   : > { %706 = vst [vmem:[#allocation2 + $0x8] sm:$0xff] %v702_v14 }
  0xef   : > { %v711_v15 = vld [vmem:[#allocation2 + $0x10] sm:$0xff]  ;;  %v712_v16 = vld [vmem:[#allocation2] sm:$0xff]  ;;  %v713_v20 = vld [vmem:[#allocation2 + $0x18] sm:$0xff] }
  0xf0   : > { %v1145_v17 = vld [vmem:[%s1345_s2] ss:$0 sm:$0xff]  ;;  %v1092_v26 = vld [vmem:[%s1347_s4 + $0x8] sm:$0xff]  }
  0xf1   : > { %v1146_v18 = vld [vmem:[%s1346_s3] ss:$0 sm:$0xff]  ;;  %v719_v22 = vmul.f32 %v1145_v17, %v711_v15  ;;  %v720_v23 = vmul.f32 %v1145_v17, %v712_v16  ;;  %v721_v27 = vmul.f32 %v1145_v17, %v713_v20  ;;  %v1080_v29 = vunpack.c.l.bf16 %v1092_v26 }
  0xf2   : > { %v1075_v19 = vld [vmem:[%s1347_s4] sm:$0xff]   ;;  %v1081_v30 = vunpack.c.h.bf16 %v1092_v26 }
  0xf3   : > { %v1076_v24 = vunpack.c.l.bf16 %v1075_v19  ;;  %v1077_v25 = vunpack.c.h.bf16 %v1075_v19  ;;  %v727_v31 = vadd.f32 %v1146_v18, %v719_v22  ;;  %v728_v32 = vadd.f32 %v1146_v18, %v720_v23 }
  0xf4   : > { %v729_v33 = vadd.f32 %v1146_v18, %v721_v27 }
  0xf5   : > { %v714_v21 = vld [vmem:[#allocation2 + $0x8] sm:$0xff]  ;;  %v739_v35 = vadd.f32 %v1076_v24, %v727_v31  ;;  %v740_v36 = vadd.f32 %v1077_v25, %v728_v32 }
  0xf6   : > { %v722_v28 = vmul.f32 %v1145_v17, %v714_v21  ;;  %v741_v37 = vadd.f32 %v1080_v29, %v729_v33 }
  0xf7   : > { %v743_v39 = vmax.f32 %v739_v35, 0.0  ;;  %v744_v40 = vmax.f32 %v740_v36, 0.0 }
  0xf8   : > { %v730_v34 = vadd.f32 %v1146_v18, %v722_v28  ;;  %v745_v41 = vmax.f32 %v741_v37, 0.0 }
  0xf9   : > { %v1085_v43 = vpack.c.bf16 %v744_v40, %v743_v39 }
  0xfa   : > { %v742_v38 = vadd.f32 %v1081_v30, %v730_v34 }
  0xfb   : > { %1086 = vst [vmem:[%s1348_s5] sm:$0xff] %v1085_v43  }
  0xfc   : > { %v746_v42 = vmax.f32 %v742_v38, 0.0 }
  0xfe   : > { %v1090_v44 = vpack.c.bf16 %v746_v42, %v745_v41 }
 0x100   : > { %1093 = vst [vmem:[%s1348_s5 + $0x8] sm:$0xff] %v1090_v44  }
 0x101 PF: > { %s15_s22 = sadd.s32 1, %s1185_s22   ;;  %s1349_s18 = smov %s1173_s19 }
 0x102   : > { %p12_p12 = scmp.ge.s32.totalorder %s15_s22, 5   ;;  %s1350_s19 = smov %s1253_s26 }
 0x103   : > { %s1351_s20 = smov %s1181_s21  ;;  %s1352_s21 = smov %s1354_s23 }
 0x104   :  { %14 = sbr.rel (!%p12_p12) target bundleno = 3 (0x3), region = 127 }

// kernel: value_encoder_forward.31
= control target key start
LH: loop header
LB: loop body
LE: loop exit
PB: predicated region body
PF: predicated region fallthrough
CT: control target
= control target key end

     0   :  { %s1113_s15 = smov 0   ;;  %s1115_s16 = smov 0   ;;  %s1232_s0 = inlined_call_operand.vmem [shape: bf16[32,1152], index: 0, kind: input, shape index: {}]   ;;  %s1233_s1 = inlined_call_operand.vmem [shape: bf16[1152,128], index: 1, kind: input, shape index: {}]   ;;  %s1234_s2 = inlined_call_operand.vmem [shape: f32[1,128], index: 2, kind: input, shape index: {}]   ;;  %s1235_s3 = inlined_call_operand.vmem [shape: f32[1,128], index: 3, kind: input, shape index: {}]   ;;  %s1236_s4 = inlined_call_operand.vmem [shape: bf16[32,128], index: 4, kind: output, shape index: {}]  }
   0x1   :  { %s1117_s17 = smov 0   ;;  %s1119_s18 = smov 0  }
   0x2   :  { %s1121_s19 = smov 0  }
   0x3 LB: > { %s26_s20 = sadd.s32 1, %s1081_s18  ;;  %p49_p1 = scmp.ne.s32.totalorder %s1073_s16, %s1069_s15  ;;  %s1085_s19 = sphi %s1121_s19, %s14_s19   ;;  %s1081_s18 = sphi %s1119_s18, %s1240_s18   ;;  %s1077_s17 = sphi %s1117_s17, %s1239_s17   ;;  %s1073_s16 = sphi %s1115_s16, %s1238_s16   ;;  %s1069_s15 = sphi %s1113_s15, %s1237_s15  }
   0x4   : > { %p27_p0 = scmp.ge.s32.totalorder %s26_s20, 3  ;;  %p50_p2 = scmp.eq.s32.totalorder %s1085_s19, 0 }
   0x5   : > { %s42_s22 = sadd.s32 1, %s1073_s16  ;;  %p814_p5 = scmp.ge.s32.totalorder %s1085_s19, 3 }
   0x6   : > { %s1242_s20 = smov (%p27_p0, %s26_s20), 0  ;;  %p51_p3 = por %p50_p2, %p49_p1 }
   0x7   : > { %s38_s21 = ssub.s32 %s1081_s18, %s1242_s20  ;;  %195 = sbr.rel (%p814_p5) target bundleno = 25 (0x19), region = 24 }
   0x8   : > { %p40_p4 = scmp.eq.s32.totalorder %s38_s21, 0 }
   0xa   : > { %s1148_s23 = scalar_select %p40_p4, %s1073_s16, %s42_s22  }
   0xc   : > { %198 = sbr.rel (!%p51_p3) target bundleno = 25 (0x19), region = 28  ;;  %s200_s24 = sand.u32 (%p51_p3), 1, %s1073_s16  }
   0xd   : > { %s952_s25 = smul.u32 (%p51_p3), 12, %s1081_s18 }
   0xe   : > { %s1002_s26 = smul.u32 (%p51_p3), 48, %s200_s24 }
   0xf   : > { %s208_s29 = scalar_lea.vmem (%p51_p3), %s1232_s0, %s952_s25 }
  0x10   : > { %v223_v0 = vld [vmem:[%s208_s29] sm:$0xff] (%p51_p3)  ;;  %v227_v2 = vld [vmem:[%s208_s29 + $0x48] sm:$0xff] (%p51_p3)  ;;  %s202_s30 = scalar_lea.vmem (%p51_p3), [#allocation3], %s1002_s26  ;;  %v820_v6 = vld [vmem:[%s208_s29 + $0x50] sm:$0xf] (%p51_p3) }
  0x11   : > { %v225_v1 = vld [vmem:[%s208_s29 + $0x24] sm:$0xff]  ;;  %224 = vst [vmem:[%s202_s30] sm:$0xff] %v223_v0  ;;  %v229_v3 = vld [vmem:[%s208_s29 + $0x6c] sm:$0xff]  ;;  %v822_v7 = vld [vmem:[%s208_s29 + $0x74] sm:$0xf] }
  0x12   : > { %226 = vst [vmem:[%s202_s30 + $0xc] sm:$0xff] %v225_v1  ;;  %v816_v4 = vld [vmem:[%s208_s29 + $0x8] sm:$0xf]  ;;  %v818_v5 = vld [vmem:[%s208_s29 + $0x2c] sm:$0xf] }
  0x13   : > { %228 = vst [vmem:[%s202_s30 + $0x18] sm:$0xff] %v227_v2 }
  0x14   : > { %230 = vst [vmem:[%s202_s30 + $0x24] sm:$0xff] %v229_v3 }
  0x15   : > { %817 = vst [vmem:[%s202_s30 + $0x8] sm:$0xf] %v816_v4 }
  0x16   : > { %819 = vst [vmem:[%s202_s30 + $0x14] sm:$0xf] %v818_v5 }
  0x17   : > { %821 = vst [vmem:[%s202_s30 + $0x20] sm:$0xf] %v820_v6 }
  0x18   : > { %823 = vst [vmem:[%s202_s30 + $0x2c] sm:$0xf] %v822_v7 }
  0x19 PF: > { %p824_p6 = scmp.ge.s32.totalorder %s1085_s19, 1  ;;  %p263_p7 = scmp.lt.s32.totalorder %s1085_s19, 4 }
  0x1b   : > { %p264_p8 = pnand %p824_p6, %p263_p7 }
  0x1c   : > { %s270_s5 = sand.u32 (!%p264_p8), 1, %s1069_s15   ;;  %s314_s6 = smul.u32 (!%p264_p8), 48, %s1077_s17 }
  0x1d   : > { %267 = sbr.rel (%p264_p8) target bundleno = 255 (0xff), region = 58  ;;  %p826_p10 = scmp.ne.s32.totalorder (!%p264_p8), %s1077_s17, 0 }
  0x1e   : > { %s1003_s7 = smul.u32 (!%p264_p8), 48, %s270_s5  ;;  %p315_p9 = scmp.lt.s32.totalorder (!%p264_p8), %s314_s6, 143 }
  0x20   : > { %s1165_s12 = scalar_lea.vmem (!%p264_p8), [#allocation3], %s1003_s7 }
  0x22   : > { %s1244_s6 = smov (!%p315_p9, %s314_s6), 143  ;;  %341 = sbr.rel (%p826_p10) target bundleno = 44 (0x2c), region = 66 }
  0x23   : > { %s825_s8 = sshll.u32 %s1244_s6, 2 }
  0x24   : > { %s1163_s11 = scalar_lea.vmem %s1233_s1, %s825_s8 }
  0x27   : > { %v1087_v8 = vmov 0.0  }
  0x28   : > { %342 = vst [vmem:[#allocation2 + $0x10] sm:$0xff] %v1087_v8 }
  0x29   : > { %343 = vst [vmem:[#allocation2] sm:$0xff] %v1087_v8 }
  0x2a   : > { %344 = vst [vmem:[#allocation2 + $0x18] sm:$0xff] %v1087_v8 }
  0x2b   : > { %345 = vst [vmem:[#allocation2 + $0x8] sm:$0xff] %v1087_v8 }
  0x2c PF: > { %v966_v9 = vld [vmem:[%s1163_s11 + $0x38] sm:$0xff]  ;;  %v965_v12 = vld [vmem:[%s1163_s11 + $0x30] sm:$0xff]  ;;  %v964_v15 = vld [vmem:[%s1163_s11 + $0x28] sm:$0xff]  ;;  %p947_p11 = scmp.ne.s32.totalorder %s1077_s17, 2 }
  0x2d   : > { %v974_v10 = vld [vmem:[%s1163_s11 + $0x78] sm:$0xff]  ;;  %582 = vmatpush.bf16.msra.mxu0 %v966_v9  ;;  %v973_v13 = vld [vmem:[%s1163_s11 + $0x70] sm:$0xff]  ;;  %994 = vmatpush.bf16.msra.mxu3 %v966_v9  ;;  %v972_v16 = vld [vmem:[%s1163_s11 + $0x68] sm:$0xff] }
  0x2e   : > { %v982_v11 = vld [vmem:[%s1163_s11 + $0xb8] sm:$0xff]  ;;  %601 = vmatpush.bf16.msra.mxu1 %v974_v10  ;;  %v981_v14 = vld [vmem:[%s1163_s11 + $0xb0] sm:$0xff]  ;;  %v980_v17 = vld [vmem:[%s1163_s11 + $0xa8] sm:$0xff] }
  0x2f   : > { %620 = vmatpush.bf16.msra.mxu2 %v982_v11  ;;  %v963_v18 = vld [vmem:[%s1163_s11 + $0x20] sm:$0xff]  ;;  %v962_v21 = vld [vmem:[%s1163_s11 + $0x18] sm:$0xff]  ;;  %v961_v24 = vld [vmem:[%s1163_s11 + $0x10] sm:$0xff] }
  0x30   : > { %v971_v19 = vld [vmem:[%s1163_s11 + $0x60] sm:$0xff]  ;;  %v970_v22 = vld [vmem:[%s1163_s11 + $0x58] sm:$0xff]  ;;  %v969_v25 = vld [vmem:[%s1163_s11 + $0x50] sm:$0xff] }
  0x31   : > { %583 = vmatpush.bf16.msra.mxu0 %v965_v12  ;;  %995 = vmatpush.bf16.msra.mxu3 %v965_v12  ;;  %v979_v20 = vld [vmem:[%s1163_s11 + $0xa0] sm:$0xff]  ;;  %v978_v23 = vld [vmem:[%s1163_s11 + $0x98] sm:$0xff]  ;;  %v977_v26 = vld [vmem:[%s1163_s11 + $0x90] sm:$0xff] }
  0x32   : > { %602 = vmatpush.bf16.msra.mxu1 %v973_v13  ;;  %v960_v27 = vld [vmem:[%s1163_s11 + $0x8] sm:$0xff]  ;;  %v959_v30 = vld [vmem:[%s1163_s11] sm:$0xff]  ;;  %v354_v54 = vld [vmem:[#allocation2 + $0x10] sm:$0xff] }
  0x33   : > { %621 = vmatpush.bf16.msra.mxu2 %v981_v14  ;;  %v968_v28 = vld [vmem:[%s1163_s11 + $0x48] sm:$0xff]  ;;  %v967_v31 = vld [vmem:[%s1163_s11 + $0x40] sm:$0xff]  ;;  %v356_v4 = vld [vmem:[#allocation2 + $0x18] sm:$0xff] }
  0x34   : > { %v976_v29 = vld [vmem:[%s1163_s11 + $0x88] sm:$0xff]  ;;  %v975_v32 = vld [vmem:[%s1163_s11 + $0x80] sm:$0xff] }
  0x35   : > { %584 = vmatpush.bf16.msra.mxu0 %v964_v15  ;;  %996 = vmatpush.bf16.msra.mxu3 %v964_v15  ;;  %v829_v33 = vld [vmem:[%s1165_s12] sm:$0xf]  ;;  %v954_v34 = vld [vmem:[%s1165_s12 + $0x8] sm:$0xf0]  ;;  %v953_v35 = vld [vmem:[%s1165_s12 + $0x4] sm:$0xf] }
  0x36   : > { %603 = vmatpush.bf16.msra.mxu1 %v972_v16  ;;  %v831_v36 = vld [vmem:[%s1165_s12 + $0xc] sm:$0xf0]  ;;  %v837_v37 = vld [vmem:[%s1165_s12 + $0x8] sm:$0xf]  ;;  %v955_v38 = vld [vmem:[%s1165_s12 + $0x10] sm:$0xf0]  ;;  %v830_v41 = vor.u32 %v954_v34, %v829_v33 }
  0x37   : > { %622 = vmatpush.bf16.msra.mxu2 %v980_v17  ;;  %v841_v39 = vld [vmem:[%s1165_s12 + $0x18] sm:$0xf]  ;;  %v957_v40 = vld [vmem:[%s1165_s12 + $0x20] sm:$0xf0]  ;;  %v834_v42 = vor.u32 %v953_v35, %v831_v36  ;;  %v838_v43 = vor.u32 %v955_v38, %v837_v37  ;;  %v956_v45 = vld [vmem:[%s1165_s12 + $0x1c] sm:$0xf] }
  0x38   : > { %v842_v44 = vor.u32 %v957_v40, %v841_v39  ;;  %v843_v46 = vld [vmem:[%s1165_s12 + $0x24] sm:$0xf0]  ;;  %v849_v47 = vld [vmem:[%s1165_s12 + $0x20] sm:$0xf]  ;;  %v958_v48 = vld [vmem:[%s1165_s12 + $0x28] sm:$0xf0] }
  0x39   : > { %585 = vmatpush.bf16.msra.mxu0 %v963_v18  ;;  %997 = vmatpush.bf16.msra.mxu3 %v963_v18  ;;  %v846_v49 = vor.u32 %v956_v45, %v843_v46  ;;  %v850_v50 = vor.u32 %v958_v48, %v849_v47  ;;  %v355_v61 = vld [vmem:[#allocation2] sm:$0xff]  ;;  %v357_v11 = vld [vmem:[#allocation2 + $0x8] sm:$0xff] }
  0x3a   : > { %604 = vmatpush.bf16.msra.mxu1 %v971_v19 }
  0x3b   : > { %623 = vmatpush.bf16.msra.mxu2 %v979_v20 }
  0x3d   : > { %586 = vmatpush.bf16.msra.mxu0 %v962_v21  ;;  %998 = vmatpush.bf16.msra.mxu3 %v962_v21 }
  0x3e   : > { %605 = vmatpush.bf16.msra.mxu1 %v970_v22 }
  0x3f   : > { %624 = vmatpush.bf16.msra.mxu2 %v978_v23 }
  0x41   : > { %587 = vmatpush.bf16.msra.mxu0 %v961_v24  ;;  %999 = vmatpush.bf16.msra.mxu3 %v961_v24 }
  0x42   : > { %606 = vmatpush.bf16.msra.mxu1 %v969_v25 }
  0x43   : > { %625 = vmatpush.bf16.msra.mxu2 %v977_v26 }
  0x45   : > { %588 = vmatpush.bf16.msra.mxu0 %v960_v27  ;;  %1000 = vmatpush.bf16.msra.mxu3 %v960_v27 }
  0x46   : > { %607 = vmatpush.bf16.msra.mxu1 %v968_v28 }
  0x47   : > { %626 = vmatpush.bf16.msra.mxu2 %v976_v29 }
  0x49   : > { %589 = vmatpush.bf16.msra.mxu0 %v959_v30  ;;  %1001 = vmatpush.bf16.msra.mxu3 %v959_v30 }
  0x4a   : > { %608 = vmatpush.bf16.msra.mxu1 %v967_v31 }
  0x4b   : > { %627 = vmatpush.bf16.msra.mxu2 %v975_v32 }
  0x4c   : > { %590 = vmatmul.bf16.vlgmr.msra.gmra.mxu0 %v830_v41  ;;  %595 = vmatmul.bf16.vlgmr.msra.gmra.mxu3 %v842_v44 }
  0x4d   : > { %609 = vmatmul.bf16.vlgmr.msra.gmra.mxu1 %v834_v42 }
  0x4e   : > { %628 = vmatmul.bf16.vlgmr.msra.gmra.mxu2 %v838_v43 }
  0x5d   : > { %614 = vmatmul.bf16.gmra.mxu1 %v846_v49 }
  0x5e   : > { %633 = vmatmul.bf16.gmra.mxu2 %v850_v50 }
  0xc9   : > { %v591_v52 = vpop.f32.mrf.mxu0 }
  0xca   : > { %v610_v51 = vpop.f32.mrf.mxu1 }
  0xcb   : > { %v611_v53 = vadd.f32 %v610_v51, %v591_v52 }
  0xcf   : > { %v596_v2 = vpop.f32.mrf.mxu3 }
  0xd1   : > { %v629_v55 = vpop.f32.mrf.mxu2  ;;  %v593_v59 = vpop.f32.mrf.mxu0 }
  0xd2   : > { %v630_v56 = vadd.f32 %v629_v55, %v611_v53  ;;  %v612_v57 = vpop.f32.mrf.mxu1 }
  0xd3   : > { %v613_v60 = vadd.f32 %v612_v57, %v593_v59 }
  0xd4   : > { %v639_v58 = vadd.f32 %v630_v56, %v354_v54 }
  0xd6   : > { %643 = vst [vmem:[#allocation2 + $0x10] sm:$0xff] %v639_v58 }
  0xd7   : > { %v598_v9 = vpop.f32.mrf.mxu3 }
  0xd9   : > { %v631_v62 = vpop.f32.mrf.mxu2 }
  0xda   : > { %v632_v63 = vadd.f32 %v631_v62, %v613_v60  ;;  %v615_v0 = vpop.f32.mrf.mxu1 }
  0xdb   : > { %v616_v3 = vadd.f32 %v615_v0, %v596_v2 }
  0xdc   : > { %v640_v1 = vadd.f32 %v632_v63, %v355_v61 }
  0xde   : > { %644 = vst [vmem:[#allocation2] sm:$0xff] %v640_v1 }
  0xe1   : > { %v634_v5 = vpop.f32.mrf.mxu2 }
  0xe2   : > { %v635_v6 = vadd.f32 %v634_v5, %v616_v3  ;;  %v617_v8 = vpop.f32.mrf.mxu1 }
  0xe3   : > { %v618_v10 = vadd.f32 %v617_v8, %v598_v9 }
  0xe4   : > { %v641_v7 = vadd.f32 %v635_v6, %v356_v4 }
  0xe6   : > { %645 = vst [vmem:[#allocation2 + $0x18] sm:$0xff] %v641_v7 }
  0xe9   : > { %v636_v12 = vpop.f32.mrf.mxu2 }
  0xea   : > { %v637_v13 = vadd.f32 %v636_v12, %v618_v10  ;;  %650 = sbr.rel (%p947_p11) target bundleno = 255 (0xff), region = 70 }
  0xec   : > { %v642_v14 = vadd.f32 %v637_v13, %v357_v11 }
  0xee   : > { %646 = vst [vmem:[#allocation2 + $0x8] sm:$0xff] %v642_v14 }
  0xef   : > { %v651_v15 = vld [vmem:[#allocation2 + $0x10] sm:$0xff]  ;;  %v652_v16 = vld [vmem:[#allocation2] sm:$0xff]  ;;  %v653_v19 = vld [vmem:[#allocation2 + $0x18] sm:$0xff] }
  0xf0   : > { %v1045_v17 = vld [vmem:[%s1234_s2] ss:$0 sm:$0xff] }
  0xf1   : > { %v1046_v18 = vld [vmem:[%s1235_s3] ss:$0 sm:$0xff]  ;;  %v659_v21 = vmul.f32 %v1045_v17, %v651_v15  ;;  %v660_v22 = vmul.f32 %v1045_v17, %v652_v16  ;;  %v661_v23 = vmul.f32 %v1045_v17, %v653_v19 }
  0xf3   : > { %v667_v25 = vadd.f32 %v1046_v18, %v659_v21  ;;  %v668_v26 = vadd.f32 %v1046_v18, %v660_v22  ;;  %v669_v27 = vadd.f32 %v1046_v18, %v661_v23 }
  0xf5   : > { %v654_v20 = vld [vmem:[#allocation2 + $0x8] sm:$0xff]  ;;  %v671_v29 = vmax.f32 %v667_v25, 0.0  ;;  %v672_v30 = vmax.f32 %v668_v26, 0.0  ;;  %v673_v31 = vmax.f32 %v669_v27, 0.0 }
  0xf6   : > { %v662_v24 = vmul.f32 %v1045_v17, %v654_v20 }
  0xf7   : > { %v986_v33 = vpack.c.bf16 %v672_v30, %v671_v29 }
  0xf8   : > { %v670_v28 = vadd.f32 %v1046_v18, %v662_v24 }
  0xf9   : > { %987 = vst [vmem:[%s1236_s4] sm:$0xff] %v986_v33  }
  0xfa   : > { %v674_v32 = vmax.f32 %v670_v28, 0.0 }
  0xfc   : > { %v991_v34 = vpack.c.bf16 %v674_v32, %v673_v31 }
  0xfe   : > { %993 = vst [vmem:[%s1236_s4 + $0x8] sm:$0xff] %v991_v34  }
  0xff PF: > { %s14_s19 = sadd.s32 1, %s1085_s19   ;;  %s1237_s15 = smov %s1073_s16 }
 0x100   : > { %p11_p12 = scmp.ge.s32.totalorder %s14_s19, 5   ;;  %s1238_s16 = smov %s1148_s23 }
 0x101   : > { %s1239_s17 = smov %s1081_s18  ;;  %s1240_s18 = smov %s1242_s20 }
 0x102   :  { %13 = sbr.rel (!%p11_p12) target bundleno = 3 (0x3), region = 120 }

// kernel: value_encoder_forward.33
= control target key start
LH: loop header
LB: loop body
LE: loop exit
PB: predicated region body
PF: predicated region fallthrough
CT: control target
= control target key end

     0   :  { %s1200_s15 = smov 0   ;;  %s1202_s16 = smov 0   ;;  %s1449_s0 = inlined_call_operand.vmem [shape: bf16[8,1152], index: 0, kind: input, shape index: {}]   ;;  %s1450_s1 = inlined_call_operand.vmem [shape: bf16[1152,256], index: 1, kind: input, shape index: {}]   ;;  %s1451_s2 = inlined_call_operand.vmem [shape: f32[1,256], index: 2, kind: input, shape index: {}]   ;;  %s1452_s3 = inlined_call_operand.vmem [shape: f32[1,256], index: 3, kind: input, shape index: {}]   ;;  %s1453_s4 = inlined_call_operand.vmem [shape: bf16[8,256], index: 4, kind: output, shape index: {}]  }
   0x1   :  { %s1204_s17 = smov 0   ;;  %s1206_s18 = smov 0  }
   0x2   :  { %s1208_s19 = smov 0   ;;  %s1210_s20 = smov 0  }
   0x3   :  { %s1212_s21 = smov 0  }
   0x4 LB: > { %s26_s22 = sadd.s32 1, %s1164_s19  ;;  %s29_s23 = sadd.s32 1, %s1168_s20  ;;  %s1172_s21 = sphi %s1212_s21, %s14_s21   ;;  %s1168_s20 = sphi %s1210_s20, %s1459_s20   ;;  %s1164_s19 = sphi %s1208_s19, %s1458_s19   ;;  %s1160_s18 = sphi %s1206_s18, %s1457_s18   ;;  %s1156_s17 = sphi %s1204_s17, %s1456_s17   ;;  %s1152_s16 = sphi %s1202_s16, %s1455_s16   ;;  %s1148_s15 = sphi %s1200_s15, %s1454_s15  }
   0x5   : > { %p27_p0 = scmp.ge.s32.totalorder %s26_s22, 3  ;;  %p77_p1 = scmp.ne.s32.totalorder %s1152_s16, %s1148_s15 }
   0x6   : > { %p78_p2 = scmp.eq.s32.totalorder %s1172_s21, 0  ;;  %s70_s27 = sadd.s32 1, %s1152_s16 }
   0x7   : > { %s1461_s22 = smov (%p27_p0, %s26_s22), 0  ;;  %s1463_s23 = smov (!%p27_p0, %s29_s23), %s1168_s20 }
   0x8   : > { %p79_p3 = por %p78_p2, %p77_p1  ;;  %p31_p4 = scmp.ge.s32.totalorder %s1463_s23, 2 }
   0x9   : > { %s65_s24 = ssub.s32 %s1164_s19, %s1461_s22  ;;  %p926_p6 = scmp.ge.s32.totalorder %s1172_s21, 6 }
   0xa   : > { %s1465_s23 = smov (%p31_p4, %s1463_s23), 0 }
   0xb   : > { %s66_s25 = ssub.s32 %s1168_s20, %s1465_s23  ;;  %183 = sbr.rel (%p926_p6) target bundleno = 71 (0x47), region = 16 }
   0xc   : > { %s67_s26 = sor.u32 %s66_s25, %s65_s24 }
   0xd   : > { %p68_p5 = scmp.eq.s32.totalorder %s67_s26, 0 }
   0xf   : > { %s1251_s28 = scalar_select %p68_p5, %s1152_s16, %s70_s27  }
  0x10   : > { %199 = sbr.rel (!%p79_p3) target bundleno = 71 (0x47), region = 24  ;;  %s201_s29 = sand.u32 (%p79_p3), 1, %s1152_s16  }
  0x11   : > { %s1032_s30 = smul.u32 (%p79_p3), 96, %s1164_s19 }
  0x12   : > { %s1057_s5 = smul.u32 (%p79_p3), 192, %s201_s29 }
  0x13   : > { %s206_s6 = sadd.s32 (%p79_p3), %s1168_s20, %s1032_s30 }
  0x14   : > { %s928_s7 = sshll.u32 (%p79_p3), %s206_s6, 2  ;;  %s1265_s11 = scalar_lea.vmem (%p79_p3), [#allocation3], %s1057_s5 }
  0x15   : > { %s1260_s10 = scalar_lea.vmem %s1450_s1, %s928_s7 }
  0x16   : > { %v225_v0 = vld [vmem:[%s1260_s10] sm:$0xf]  ;;  %v227_v1 = vld [vmem:[%s1260_s10 + $0x8] sm:$0xf]  ;;  %v229_v2 = vld [vmem:[%s1260_s10 + $0x10] sm:$0xf] }
  0x17   : > { %226 = vst [vmem:[%s1265_s11] sm:$0xf] %v225_v0  ;;  %v231_v3 = vld [vmem:[%s1260_s10 + $0x18] sm:$0xf]  ;;  %v233_v4 = vld [vmem:[%s1260_s10 + $0x20] sm:$0xf] }
  0x18   : > { %228 = vst [vmem:[%s1265_s11 + $0x4] sm:$0xf] %v227_v1  ;;  %v235_v5 = vld [vmem:[%s1260_s10 + $0x28] sm:$0xf]  ;;  %v237_v6 = vld [vmem:[%s1260_s10 + $0x30] sm:$0xf] }
  0x19   : > { %230 = vst [vmem:[%s1265_s11 + $0x8] sm:$0xf] %v229_v2  ;;  %v239_v7 = vld [vmem:[%s1260_s10 + $0x38] sm:$0xf]  ;;  %v241_v8 = vld [vmem:[%s1260_s10 + $0x40] sm:$0xf] }
  0x1a   : > { %232 = vst [vmem:[%s1265_s11 + $0xc] sm:$0xf] %v231_v3  ;;  %v243_v9 = vld [vmem:[%s1260_s10 + $0x48] sm:$0xf]  ;;  %v245_v10 = vld [vmem:[%s1260_s10 + $0x50] sm:$0xf] }
  0x1b   : > { %234 = vst [vmem:[%s1265_s11 + $0x10] sm:$0xf] %v233_v4  ;;  %v247_v11 = vld [vmem:[%s1260_s10 + $0x58] sm:$0xf]  ;;  %v249_v12 = vld [vmem:[%s1260_s10 + $0x60] sm:$0xf] }
  0x1c   : > { %236 = vst [vmem:[%s1265_s11 + $0x14] sm:$0xf] %v235_v5  ;;  %v251_v13 = vld [vmem:[%s1260_s10 + $0x68] sm:$0xf]  ;;  %v253_v14 = vld [vmem:[%s1260_s10 + $0x70] sm:$0xf] }
  0x1d   : > { %238 = vst [vmem:[%s1265_s11 + $0x18] sm:$0xf] %v237_v6  ;;  %v255_v15 = vld [vmem:[%s1260_s10 + $0x78] sm:$0xf]  ;;  %v257_v16 = vld [vmem:[%s1260_s10 + $0x80] sm:$0xf] }
  0x1e   : > { %240 = vst [vmem:[%s1265_s11 + $0x1c] sm:$0xf] %v239_v7  ;;  %v259_v17 = vld [vmem:[%s1260_s10 + $0x88] sm:$0xf]  ;;  %v261_v18 = vld [vmem:[%s1260_s10 + $0x90] sm:$0xf] }
  0x1f   : > { %242 = vst [vmem:[%s1265_s11 + $0x20] sm:$0xf] %v241_v8  ;;  %v263_v19 = vld [vmem:[%s1260_s10 + $0x98] sm:$0xf]  ;;  %v265_v20 = vld [vmem:[%s1260_s10 + $0xa0] sm:$0xf] }
  0x20   : > { %244 = vst [vmem:[%s1265_s11 + $0x24] sm:$0xf] %v243_v9  ;;  %v267_v21 = vld [vmem:[%s1260_s10 + $0xa8] sm:$0xf]  ;;  %v269_v22 = vld [vmem:[%s1260_s10 + $0xb0] sm:$0xf] }
  0x21   : > { %246 = vst [vmem:[%s1265_s11 + $0x28] sm:$0xf] %v245_v10  ;;  %v271_v23 = vld [vmem:[%s1260_s10 + $0xb8] sm:$0xf]  ;;  %v273_v24 = vld [vmem:[%s1260_s10 + $0xc0] sm:$0xf] }
  0x22   : > { %248 = vst [vmem:[%s1265_s11 + $0x2c] sm:$0xf] %v247_v11  ;;  %v275_v25 = vld [vmem:[%s1260_s10 + $0xc8] sm:$0xf]  ;;  %v277_v26 = vld [vmem:[%s1260_s10 + $0xd0] sm:$0xf] }
  0x23   : > { %250 = vst [vmem:[%s1265_s11 + $0x30] sm:$0xf] %v249_v12  ;;  %v279_v27 = vld [vmem:[%s1260_s10 + $0xd8] sm:$0xf]  ;;  %v281_v28 = vld [vmem:[%s1260_s10 + $0xe0] sm:$0xf] }
  0x24   : > { %252 = vst [vmem:[%s1265_s11 + $0x34] sm:$0xf] %v251_v13  ;;  %v283_v29 = vld [vmem:[%s1260_s10 + $0xe8] sm:$0xf]  ;;  %v285_v30 = vld [vmem:[%s1260_s10 + $0xf0] sm:$0xf] }
  0x25   : > { %254 = vst [vmem:[%s1265_s11 + $0x38] sm:$0xf] %v253_v14  ;;  %v287_v31 = vld [vmem:[%s1260_s10 + $0xf8] sm:$0xf]  ;;  %v289_v32 = vld [vmem:[%s1260_s10 + $0x100] sm:$0xf] }
  0x26   : > { %256 = vst [vmem:[%s1265_s11 + $0x3c] sm:$0xf] %v255_v15  ;;  %v291_v33 = vld [vmem:[%s1260_s10 + $0x108] sm:$0xf]  ;;  %v293_v34 = vld [vmem:[%s1260_s10 + $0x110] sm:$0xf] }
  0x27   : > { %258 = vst [vmem:[%s1265_s11 + $0x40] sm:$0xf] %v257_v16  ;;  %v295_v35 = vld [vmem:[%s1260_s10 + $0x118] sm:$0xf]  ;;  %v297_v36 = vld [vmem:[%s1260_s10 + $0x120] sm:$0xf] }
  0x28   : > { %260 = vst [vmem:[%s1265_s11 + $0x44] sm:$0xf] %v259_v17  ;;  %v299_v37 = vld [vmem:[%s1260_s10 + $0x128] sm:$0xf]  ;;  %v301_v38 = vld [vmem:[%s1260_s10 + $0x130] sm:$0xf] }
  0x29   : > { %262 = vst [vmem:[%s1265_s11 + $0x48] sm:$0xf] %v261_v18  ;;  %v303_v39 = vld [vmem:[%s1260_s10 + $0x138] sm:$0xf]  ;;  %v305_v40 = vld [vmem:[%s1260_s10 + $0x140] sm:$0xf] }
  0x2a   : > { %264 = vst [vmem:[%s1265_s11 + $0x4c] sm:$0xf] %v263_v19  ;;  %v307_v41 = vld [vmem:[%s1260_s10 + $0x148] sm:$0xf]  ;;  %v309_v42 = vld [vmem:[%s1260_s10 + $0x150] sm:$0xf] }
  0x2b   : > { %266 = vst [vmem:[%s1265_s11 + $0x50] sm:$0xf] %v265_v20  ;;  %v311_v43 = vld [vmem:[%s1260_s10 + $0x158] sm:$0xf]  ;;  %v313_v44 = vld [vmem:[%s1260_s10 + $0x160] sm:$0xf] }
  0x2c   : > { %268 = vst [vmem:[%s1265_s11 + $0x54] sm:$0xf] %v267_v21  ;;  %v315_v45 = vld [vmem:[%s1260_s10 + $0x168] sm:$0xf]  ;;  %v317_v46 = vld [vmem:[%s1260_s10 + $0x170] sm:$0xf] }
  0x2d   : > { %270 = vst [vmem:[%s1265_s11 + $0x58] sm:$0xf] %v269_v22  ;;  %v319_v47 = vld [vmem:[%s1260_s10 + $0x178] sm:$0xf] }
  0x2e   : > { %272 = vst [vmem:[%s1265_s11 + $0x5c] sm:$0xf] %v271_v23 }
  0x2f   : > { %274 = vst [vmem:[%s1265_s11 + $0x60] sm:$0xf] %v273_v24 }
  0x30   : > { %276 = vst [vmem:[%s1265_s11 + $0x64] sm:$0xf] %v275_v25 }
  0x31   : > { %278 = vst [vmem:[%s1265_s11 + $0x68] sm:$0xf] %v277_v26 }
  0x32   : > { %280 = vst [vmem:[%s1265_s11 + $0x6c] sm:$0xf] %v279_v27 }
  0x33   : > { %282 = vst [vmem:[%s1265_s11 + $0x70] sm:$0xf] %v281_v28 }
  0x34   : > { %284 = vst [vmem:[%s1265_s11 + $0x74] sm:$0xf] %v283_v29 }
  0x35   : > { %286 = vst [vmem:[%s1265_s11 + $0x78] sm:$0xf] %v285_v30 }
  0x36   : > { %288 = vst [vmem:[%s1265_s11 + $0x7c] sm:$0xf] %v287_v31 }
  0x37   : > { %290 = vst [vmem:[%s1265_s11 + $0x80] sm:$0xf] %v289_v32 }
  0x38   : > { %292 = vst [vmem:[%s1265_s11 + $0x84] sm:$0xf] %v291_v33 }
  0x39   : > { %294 = vst [vmem:[%s1265_s11 + $0x88] sm:$0xf] %v293_v34 }
  0x3a   : > { %296 = vst [vmem:[%s1265_s11 + $0x8c] sm:$0xf] %v295_v35 }
  0x3b   : > { %298 = vst [vmem:[%s1265_s11 + $0x90] sm:$0xf] %v297_v36 }
  0x3c   : > { %300 = vst [vmem:[%s1265_s11 + $0x94] sm:$0xf] %v299_v37 }
  0x3d   : > { %302 = vst [vmem:[%s1265_s11 + $0x98] sm:$0xf] %v301_v38 }
  0x3e   : > { %304 = vst [vmem:[%s1265_s11 + $0x9c] sm:$0xf] %v303_v39 }
  0x3f   : > { %306 = vst [vmem:[%s1265_s11 + $0xa0] sm:$0xf] %v305_v40 }
  0x40   : > { %308 = vst [vmem:[%s1265_s11 + $0xa4] sm:$0xf] %v307_v41 }
  0x41   : > { %310 = vst [vmem:[%s1265_s11 + $0xa8] sm:$0xf] %v309_v42 }
  0x42   : > { %312 = vst [vmem:[%s1265_s11 + $0xac] sm:$0xf] %v311_v43 }
  0x43   : > { %314 = vst [vmem:[%s1265_s11 + $0xb0] sm:$0xf] %v313_v44 }
  0x44   : > { %316 = vst [vmem:[%s1265_s11 + $0xb4] sm:$0xf] %v315_v45 }
  0x45   : > { %318 = vst [vmem:[%s1265_s11 + $0xb8] sm:$0xf] %v317_v46 }
  0x46   : > { %320 = vst [vmem:[%s1265_s11 + $0xbc] sm:$0xf] %v319_v47 }
  0x47 PF: > { %p929_p7 = scmp.ge.s32.totalorder %s1172_s21, 1  ;;  %p451_p8 = scmp.lt.s32.totalorder %s1172_s21, 7 }
  0x49   : > { %p452_p9 = pnand %p929_p7, %p451_p8 }
  0x4a   : > { %s458_s12 = sand.u32 (!%p452_p9), 1, %s1148_s15   ;;  %s501_s13 = smul.u32 (!%p452_p9), 3, %s1156_s17 }
  0x4b   : > { %455 = sbr.rel (%p452_p9) target bundleno = 277 (0x115), region = 73  ;;  %p512_p10 = scmp.lt.s32.totalorder (!%p452_p9), %s1160_s18, 1 }
  0x4c   : > { %s1058_s14 = smul.u32 (!%p452_p9), 192, %s458_s12  ;;  %p504_p11 = scmp.lt.s32.totalorder (!%p452_p9), %s501_s13, 8 }
  0x4d   : > { %p932_p12 = scmp.ne.s32.totalorder (!%p452_p9), %s1156_s17, 0 }
  0x4e   : > { %s1387_s12 = scalar_lea.vmem (!%p452_p9), [#allocation3], %s1058_s14 }
  0x50   : > { %s1467_s13 = smov (!%p504_p11, %s501_s13), 8  ;;  %s1469_s18 = smov (!%p512_p10, %s1160_s18), 1 }
  0x51   : > { %s930_s24 = sshll.u32 %s1467_s13, 2  ;;  %s514_s15 = scalar_lea.vmem %s1451_s2, %s1469_s18 }
  0x52   : > { %s1371_s27 = scalar_lea.vmem %s1449_s0, %s930_s24  ;;  %s517_s7 = scalar_lea.vmem %s1452_s3, %s1469_s18 }
  0x53   : > { %s931_s8 = sshll.u32 %s1469_s18, 2  ;;  %529 = sbr.rel (%p932_p12) target bundleno = 90 (0x5a), region = 81 }
  0x54   : > { %s1385_s11 = scalar_lea.vmem %s1453_s4, %s931_s8 }
  0x58   : > { %v1174_v48 = vmov 0.0  }
  0x59   : > { %530 = vst [vmem:[#allocation2] sm:$0xff] %v1174_v48 }
  0x5a PF: > { %v1040_v49 = vld [vmem:[%s1387_s12 + $0x38] sm:$0xff]  ;;  %v1039_v52 = vld [vmem:[%s1387_s12 + $0x30] sm:$0xff]  ;;  %v1038_v55 = vld [vmem:[%s1387_s12 + $0x28] sm:$0xff]  ;;  %p1029_p13 = scmp.ne.s32.totalorder %s1156_s17, 2 }
  0x5b   : > { %v1048_v50 = vld [vmem:[%s1387_s12 + $0x78] sm:$0xff]  ;;  %737 = vmatpush.bf16.msra.mxu0 %v1040_v49  ;;  %v1047_v53 = vld [vmem:[%s1387_s12 + $0x70] sm:$0xff]  ;;  %v1046_v56 = vld [vmem:[%s1387_s12 + $0x68] sm:$0xff] }
  0x5c   : > { %v1056_v51 = vld [vmem:[%s1387_s12 + $0xb8] sm:$0xff]  ;;  %750 = vmatpush.bf16.msra.mxu1 %v1048_v50  ;;  %v1055_v54 = vld [vmem:[%s1387_s12 + $0xb0] sm:$0xff]  ;;  %v1054_v57 = vld [vmem:[%s1387_s12 + $0xa8] sm:$0xff] }
  0x5d   : > { %763 = vmatpush.bf16.msra.mxu2 %v1056_v51  ;;  %v1037_v58 = vld [vmem:[%s1387_s12 + $0x20] sm:$0xff]  ;;  %v1036_v61 = vld [vmem:[%s1387_s12 + $0x18] sm:$0xff]  ;;  %v1035_v0 = vld [vmem:[%s1387_s12 + $0x10] sm:$0xff] }
  0x5e   : > { %v1045_v59 = vld [vmem:[%s1387_s12 + $0x60] sm:$0xff]  ;;  %v1044_v62 = vld [vmem:[%s1387_s12 + $0x58] sm:$0xff]  ;;  %v1043_v1 = vld [vmem:[%s1387_s12 + $0x50] sm:$0xff] }
  0x5f   : > { %738 = vmatpush.bf16.msra.mxu0 %v1039_v52  ;;  %v1053_v60 = vld [vmem:[%s1387_s12 + $0xa0] sm:$0xff]  ;;  %v1052_v63 = vld [vmem:[%s1387_s12 + $0x98] sm:$0xff]  ;;  %v1051_v2 = vld [vmem:[%s1387_s12 + $0x90] sm:$0xff] }
  0x60   : > { %751 = vmatpush.bf16.msra.mxu1 %v1047_v53  ;;  %v1034_v3 = vld [vmem:[%s1387_s12 + $0x8] sm:$0xff]  ;;  %v531_v5 = vld [vmem:[%s1371_s27] sm:$0xff]  ;;  %v532_v7 = vld [vmem:[%s1371_s27 + $0x8] sm:$0xf] }
  0x61   : > { %764 = vmatpush.bf16.msra.mxu2 %v1055_v54  ;;  %v1042_v4 = vld [vmem:[%s1387_s12 + $0x48] sm:$0xff]  ;;  %v584_v8 = vunpack.c.l.b16 %v531_v5  ;;  %v585_v9 = vunpack.c.h.b16 %v531_v5  ;;  %v1033_v10 = vld [vmem:[%s1387_s12] sm:$0xff]  ;;  %v586_v12 = vunpack.c.l.b16 %v532_v7  ;;  %v533_v20 = vld [vmem:[#allocation2] sm:$0xff] }
  0x62   : > { %v1050_v6 = vld [vmem:[%s1387_s12 + $0x88] sm:$0xff]  ;;  %v1041_v11 = vld [vmem:[%s1387_s12 + $0x40] sm:$0xff] }
  0x63   : > { %739 = vmatpush.bf16.msra.mxu0 %v1038_v55  ;;  %v1049_v13 = vld [vmem:[%s1387_s12 + $0x80] sm:$0xff]  ;;  %v587_v14 = vpack.c.b16 %v584_v8, %v584_v8  ;;  %v588_v15 = vpack.c.b16 %v585_v9, %v585_v9  ;;  %v589_v16 = vpack.c.b16 %v586_v12, %v586_v12 }
  0x64   : > { %752 = vmatpush.bf16.msra.mxu1 %v1046_v56 }
  0x65   : > { %765 = vmatpush.bf16.msra.mxu2 %v1054_v57 }
  0x67   : > { %740 = vmatpush.bf16.msra.mxu0 %v1037_v58 }
  0x68   : > { %753 = vmatpush.bf16.msra.mxu1 %v1045_v59 }
  0x69   : > { %766 = vmatpush.bf16.msra.mxu2 %v1053_v60 }
  0x6b   : > { %741 = vmatpush.bf16.msra.mxu0 %v1036_v61 }
  0x6c   : > { %754 = vmatpush.bf16.msra.mxu1 %v1044_v62 }
  0x6d   : > { %767 = vmatpush.bf16.msra.mxu2 %v1052_v63 }
  0x6f   : > { %742 = vmatpush.bf16.msra.mxu0 %v1035_v0 }
  0x70   : > { %755 = vmatpush.bf16.msra.mxu1 %v1043_v1 }
  0x71   : > { %768 = vmatpush.bf16.msra.mxu2 %v1051_v2 }
  0x73   : > { %743 = vmatpush.bf16.msra.mxu0 %v1034_v3 }
  0x74   : > { %756 = vmatpush.bf16.msra.mxu1 %v1042_v4 }
  0x75   : > { %769 = vmatpush.bf16.msra.mxu2 %v1050_v6 }
  0x77   : > { %744 = vmatpush.bf16.msra.mxu0 %v1033_v10 }
  0x78   : > { %757 = vmatpush.bf16.msra.mxu1 %v1041_v11 }
  0x79   : > { %770 = vmatpush.bf16.msra.mxu2 %v1049_v13 }
  0x7a   : > { %745 = vmatmul.bf16.vlgmr.msra.gmra.mxu0 %v587_v14 }
  0x7b   : > { %758 = vmatmul.bf16.vlgmr.msra.gmra.mxu1 %v588_v15 }
  0x7c   : > { %771 = vmatmul.bf16.vlgmr.msra.gmra.mxu2 %v589_v16 }
  0xf7   : > { %v746_v17 = vpop.f32.mrf.mxu0 }
  0xf8   : > { %v759_v18 = vpop.f32.mrf.mxu1 }
  0xf9   : > { %v760_v19 = vadd.f32 %v759_v18, %v746_v17 }
  0xff   : > { %v772_v21 = vpop.f32.mrf.mxu2  ;;  %v748_v23 = vpop.f32.mrf.mxu0 }
 0x100   : > { %v773_v22 = vadd.f32 %v772_v21, %v760_v19  ;;  %v761_v24 = vpop.f32.mrf.mxu1 }
 0x102   : > { %v776_v25 = vadd.f32 %v773_v22, %v533_v20 }
 0x103   : > { %781 = sbr.rel (%p1029_p13) target bundleno = 277 (0x115), region = 85 }
 0x104   : > { %777 = vst [vmem:[#allocation2] sm:$0xff] %v776_v25 }
 0x107   : > { %v774_v26 = vpop.f32.mrf.mxu2 }
 0x108   : > { %v1116_v28 = vld [vmem:[%s514_s15] ss:$0 sm:$0xff] }
 0x109   : > { %v1117_v29 = vld [vmem:[%s517_s7] ss:$0 sm:$0xff] }
 0x10b   : > { %v782_v27 = vld [vmem:[#allocation2] sm:$0xff] }
 0x10c   : > { %v787_v30 = vmul.f32 %v1116_v28, %v782_v27 }
 0x10e   : > { %v792_v31 = vadd.f32 %v1117_v29, %v787_v30 }
 0x110   : > { %v793_v32 = vmax.f32 %v792_v31, 0.0 }
 0x112   : > { %v794_v33 = vpack.c.bf16 %v793_v32, %v793_v32 }
 0x114   : > { %795 = vst [vmem:[%s1385_s11] sm:$0xf] %v794_v33 }
 0x115 PF: > { %s14_s21 = sadd.s32 1, %s1172_s21   ;;  %s1454_s15 = smov %s1152_s16 }
 0x116   : > { %p11_p0 = scmp.ge.s32.totalorder %s14_s21, 8   ;;  %s1455_s16 = smov %s1251_s28 }
 0x117   : > { %s1456_s17 = smov %s1164_s19  ;;  %s1457_s18 = smov %s1168_s20 }
 0x118   : > { %s1458_s19 = smov %s1461_s22  ;;  %s1459_s20 = smov %s1465_s23 }
 0x119   :  { %13 = sbr.rel (!%p11_p0) target bundleno = 4 (0x4), region = 129 }

// kernel: value_encoder_forward.34
= control target key start
LH: loop header
LB: loop body
LE: loop exit
PB: predicated region body
PF: predicated region fallthrough
CT: control target
= control target key end

     0   :  { %s776_s15 = smov 0   ;;  %s778_s16 = smov 0   ;;  %s869_s0 = inlined_call_operand.vmem [shape: bf16[8,128], index: 0, kind: input, shape index: {}]   ;;  %s870_s1 = inlined_call_operand.vmem [shape: bf16[128,256], index: 1, kind: input, shape index: {}]   ;;  %s871_s2 = inlined_call_operand.vmem [shape: f32[1,256], index: 2, kind: input, shape index: {}]   ;;  %s872_s3 = inlined_call_operand.vmem [shape: f32[1,256], index: 3, kind: input, shape index: {}]   ;;  %s873_s4 = inlined_call_operand.vmem [shape: bf16[8,256], index: 4, kind: output, shape index: {}]  }
   0x1   :  { %s780_s17 = smov 0   ;;  %s782_s18 = smov 0  }
   0x2   :  { %s784_s19 = smov 0  }
   0x3 LB: > { %s29_s20 = sadd.s32 1, %s745_s18  ;;  %p77_p1 = scmp.ne.s32.totalorder %s737_s16, %s733_s15  ;;  %s749_s19 = sphi %s784_s19, %s14_s19   ;;  %s745_s18 = sphi %s782_s18, %s877_s18   ;;  %s741_s17 = sphi %s780_s17, %s876_s17   ;;  %s737_s16 = sphi %s778_s16, %s875_s16   ;;  %s733_s15 = sphi %s776_s15, %s874_s15  }
   0x4   : > { %p31_p0 = scmp.ge.s32.totalorder %s29_s20, 2  ;;  %p78_p2 = scmp.eq.s32.totalorder %s749_s19, 0 }
   0x5   : > { %s70_s22 = sadd.s32 1, %s737_s16  ;;  %p621_p5 = scmp.ge.s32.totalorder %s749_s19, 2 }
   0x6   : > { %s879_s20 = smov (%p31_p0, %s29_s20), 0  ;;  %p79_p3 = por %p78_p2, %p77_p1 }
   0x7   : > { %s66_s21 = ssub.s32 %s745_s18, %s879_s20  ;;  %193 = sbr.rel (%p621_p5) target bundleno = 32 (0x20), region = 20 }
   0x8   : > { %p68_p4 = scmp.eq.s32.totalorder %s66_s21, 0 }
   0xa   : > { %s811_s23 = scalar_select %p68_p4, %s737_s16, %s70_s22  }
   0xc   : > { %196 = sbr.rel (!%p79_p3) target bundleno = 32 (0x20), region = 24  ;;  %s198_s24 = sand.u32 (%p79_p3), 1, %s737_s16  }
   0xd   : > { %s623_s25 = sshll.u32 (%p79_p3), %s745_s18, 2  ;;  %s622_s26 = sshll.u32 (%p79_p3), %s198_s24, 6 }
   0xe   : > { %s819_s29 = scalar_lea.vmem (%p79_p3), %s870_s1, %s623_s25  ;;  %s200_s30 = scalar_lea.vmem (%p79_p3), [#allocation3], %s622_s26 }
   0xf   : > { %v222_v0 = vld [vmem:[%s819_s29] sm:$0xf] (%p79_p3)  ;;  %v224_v1 = vld [vmem:[%s819_s29 + $0x8] sm:$0xf] (%p79_p3)  ;;  %v226_v2 = vld [vmem:[%s819_s29 + $0x10] sm:$0xf] (%p79_p3) }
  0x10   : > { %223 = vst [vmem:[%s200_s30] sm:$0xf] (%p79_p3), %v222_v0  ;;  %v228_v3 = vld [vmem:[%s819_s29 + $0x18] sm:$0xf] (%p79_p3)  ;;  %v230_v4 = vld [vmem:[%s819_s29 + $0x20] sm:$0xf] (%p79_p3) }
  0x11   : > { %225 = vst [vmem:[%s200_s30 + $0x4] sm:$0xf] %v224_v1  ;;  %v232_v5 = vld [vmem:[%s819_s29 + $0x28] sm:$0xf]  ;;  %v234_v6 = vld [vmem:[%s819_s29 + $0x30] sm:$0xf] }
  0x12   : > { %227 = vst [vmem:[%s200_s30 + $0x8] sm:$0xf] %v226_v2  ;;  %v236_v7 = vld [vmem:[%s819_s29 + $0x38] sm:$0xf]  ;;  %v238_v8 = vld [vmem:[%s819_s29 + $0x40] sm:$0xf] }
  0x13   : > { %229 = vst [vmem:[%s200_s30 + $0xc] sm:$0xf] %v228_v3  ;;  %v240_v9 = vld [vmem:[%s819_s29 + $0x48] sm:$0xf]  ;;  %v242_v10 = vld [vmem:[%s819_s29 + $0x50] sm:$0xf] }
  0x14   : > { %231 = vst [vmem:[%s200_s30 + $0x10] sm:$0xf] %v230_v4  ;;  %v244_v11 = vld [vmem:[%s819_s29 + $0x58] sm:$0xf]  ;;  %v246_v12 = vld [vmem:[%s819_s29 + $0x60] sm:$0xf] }
  0x15   : > { %233 = vst [vmem:[%s200_s30 + $0x14] sm:$0xf] %v232_v5  ;;  %v248_v13 = vld [vmem:[%s819_s29 + $0x68] sm:$0xf]  ;;  %v250_v14 = vld [vmem:[%s819_s29 + $0x70] sm:$0xf] }
  0x16   : > { %235 = vst [vmem:[%s200_s30 + $0x18] sm:$0xf] %v234_v6  ;;  %v252_v15 = vld [vmem:[%s819_s29 + $0x78] sm:$0xf] }
  0x17   : > { %237 = vst [vmem:[%s200_s30 + $0x1c] sm:$0xf] %v236_v7 }
  0x18   : > { %239 = vst [vmem:[%s200_s30 + $0x20] sm:$0xf] %v238_v8 }
  0x19   : > { %241 = vst [vmem:[%s200_s30 + $0x24] sm:$0xf] %v240_v9 }
  0x1a   : > { %243 = vst [vmem:[%s200_s30 + $0x28] sm:$0xf] %v242_v10 }
  0x1b   : > { %245 = vst [vmem:[%s200_s30 + $0x2c] sm:$0xf] %v244_v11 }
  0x1c   : > { %247 = vst [vmem:[%s200_s30 + $0x30] sm:$0xf] %v246_v12 }
  0x1d   : > { %249 = vst [vmem:[%s200_s30 + $0x34] sm:$0xf] %v248_v13 }
  0x1e   : > { %251 = vst [vmem:[%s200_s30 + $0x38] sm:$0xf] %v250_v14 }
  0x1f   : > { %253 = vst [vmem:[%s200_s30 + $0x3c] sm:$0xf] %v252_v15 }
  0x20 PF: > { %p624_p6 = scmp.ge.s32.totalorder %s749_s19, 1  ;;  %p320_p7 = scmp.lt.s32.totalorder %s749_s19, 3 }
  0x22   : > { %p321_p8 = pnand %p624_p6, %p320_p7 }
  0x23   : > { %s327_s5 = sand.u32 (!%p321_p8), 1, %s733_s15   ;;  %p376_p9 = scmp.lt.s32.totalorder (!%p321_p8), %s741_s17, 1 }
  0x24   : > { %324 = sbr.rel (%p321_p8) target bundleno = 207 (0xcf), region = 73  ;;  %s625_s6 = sshll.u32 (!%p321_p8), %s327_s5, 6 }
  0x25   : > { %s329_s7 = scalar_lea.vmem (!%p321_p8), [#allocation3], %s625_s6 }
  0x29   : > { %v668_v16 = vld [vmem:[%s329_s7 + $0x38] sm:$0xff]  ;;  %s881_s17 = smov (!%p376_p9, %s741_s17), 1  ;;  %v667_v17 = vld [vmem:[%s329_s7 + $0x30] sm:$0xff]  ;;  %v666_v18 = vld [vmem:[%s329_s7 + $0x28] sm:$0xff] }
  0x2a   : > { %461 = vmatpush.bf16.msra.mxu0 %v668_v16  ;;  %s378_s10 = scalar_lea.vmem %s871_s2, %s881_s17  ;;  %s381_s13 = scalar_lea.vmem %s872_s3, %s881_s17  ;;  %v665_v19 = vld [vmem:[%s329_s7 + $0x20] sm:$0xff]  ;;  %v664_v20 = vld [vmem:[%s329_s7 + $0x18] sm:$0xff]  ;;  %v663_v21 = vld [vmem:[%s329_s7 + $0x10] sm:$0xff] }
  0x2b   : > { %v662_v22 = vld [vmem:[%s329_s7 + $0x8] sm:$0xff]  ;;  %v661_v23 = vld [vmem:[%s329_s7] sm:$0xff]  ;;  %s626_s21 = sshll.u32 %s881_s17, 2 }
  0x2c   : > { %v395_v24 = vld [vmem:[%s869_s0] sm:$0xf]  ;;  %s389_s25 = scalar_lea.vmem %s873_s4, %s626_s21 }
  0x2d   : > { %v709_v25 = vld [vmem:[%s378_s10] ss:$0 sm:$0xff] }
  0x2e   : > { %462 = vmatpush.bf16.msra.mxu0 %v667_v17  ;;  %v710_v26 = vld [vmem:[%s381_s13] ss:$0 sm:$0xff] }
  0x32   : > { %463 = vmatpush.bf16.msra.mxu0 %v666_v18 }
  0x36   : > { %464 = vmatpush.bf16.msra.mxu0 %v665_v19 }
  0x3a   : > { %465 = vmatpush.bf16.msra.mxu0 %v664_v20 }
  0x3e   : > { %466 = vmatpush.bf16.msra.mxu0 %v663_v21 }
  0x42   : > { %467 = vmatpush.bf16.msra.mxu0 %v662_v22 }
  0x46   : > { %468 = vmatpush.bf16.msra.mxu0 %v661_v23 }
  0x49   : > { %469 = vmatmul.bf16.vlgmr.msra.gmra.mxu0 %v395_v24 }
  0xc6   : > { %v470_v27 = vpop.f32.mrf.mxu0 }
  0xc7   : > { %v484_v28 = vmul.f32 %v709_v25, %v470_v27 }
  0xc9   : > { %v489_v29 = vadd.f32 %v710_v26, %v484_v28 }
  0xcb   : > { %v490_v30 = vpack.c.bf16 %v489_v29, %v489_v29 }
  0xcd   : > { %491 = vst [vmem:[%s389_s25] sm:$0xf] %v490_v30 }
  0xce   : > { %v472_v31 = vpop.f32.mrf.mxu0 }
  0xcf PF: > { %s14_s19 = sadd.s32 1, %s749_s19   ;;  %s874_s15 = smov %s737_s16 }
  0xd0   : > { %p11_p10 = scmp.ge.s32.totalorder %s14_s19, 4   ;;  %s875_s16 = smov %s811_s23 }
  0xd1   : > { %s876_s17 = smov %s745_s18  ;;  %s877_s18 = smov %s879_s20 }
  0xd2   :  { %13 = sbr.rel (!%p11_p10) target bundleno = 3 (0x3), region = 129 }

// kernel: value_encoder_forward.35
= control target key start
LH: loop header
LB: loop body
LE: loop exit
PB: predicated region body
PF: predicated region fallthrough
CT: control target
= control target key end

     0   :  { %s1540_s0 = inlined_call_operand.vmem [shape: bf16[8,2304], index: 0, kind: input, shape index: {}]   ;;  %s1541_s1 = inlined_call_operand.vmem [shape: bf16[2304,256], index: 1, kind: input, shape index: {}]   ;;  %s1542_s2 = inlined_call_operand.vmem [shape: f32[1,256], index: 2, kind: input, shape index: {}]   ;;  %s1543_s3 = inlined_call_operand.vmem [shape: f32[1,256], index: 3, kind: input, shape index: {}]   ;;  %s1544_s4 = inlined_call_operand.vmem [shape: bf16[8,256], index: 4, kind: input, shape index: {}]   ;;  %s1545_s5 = inlined_call_operand.vmem [shape: bf16[8,256], index: 5, kind: output, shape index: {}]  }
   0x1   :  { %1546 = sst [smem:[#allocation4_spill]] %s1541_s1 }
   0x2   :  { %s1285_s18 = smov 0   ;;  %s1287_s19 = smov 0  }
   0x3   :  { %s1289_s20 = smov 0   ;;  %s1291_s21 = smov 0  }
   0x4   :  { %s1293_s22 = smov 0   ;;  %s1295_s23 = smov 0  }
   0x5   :  { %s1297_s24 = smov 0  }
   0x6 LB: > { %s27_s25 = sadd.s32 1, %s1244_s22  ;;  %s30_s26 = sadd.s32 1, %s1248_s23  ;;  %s1252_s24 = sphi %s1297_s24, %s15_s24   ;;  %s1248_s23 = sphi %s1295_s23, %s1553_s23   ;;  %s1244_s22 = sphi %s1293_s22, %s1552_s22   ;;  %s1240_s21 = sphi %s1291_s21, %s1551_s21   ;;  %s1236_s20 = sphi %s1289_s20, %s1550_s20   ;;  %s1232_s19 = sphi %s1287_s19, %s1549_s19   ;;  %s1228_s18 = sphi %s1285_s18, %s1548_s18  }
   0x7   : > { %p28_p0 = scmp.ge.s32.totalorder %s27_s25, 6  ;;  %p78_p1 = scmp.ne.s32.totalorder %s1232_s19, %s1228_s18 }
   0x8   : > { %p79_p2 = scmp.eq.s32.totalorder %s1252_s24, 0  ;;  %s71_s30 = sadd.s32 1, %s1232_s19 }
   0x9   : > { %s1555_s25 = smov (%p28_p0, %s27_s25), 0  ;;  %s1557_s26 = smov (!%p28_p0, %s30_s26), %s1248_s23 }
   0xa   : > { %p80_p3 = por %p79_p2, %p78_p1  ;;  %p32_p4 = scmp.ge.s32.totalorder %s1557_s26, 2 }
   0xb   : > { %s66_s27 = ssub.s32 %s1244_s22, %s1555_s25  ;;  %p1005_p6 = scmp.ge.s32.totalorder %s1252_s24, 12 }
   0xc   : > { %s1559_s26 = smov (%p32_p4, %s1557_s26), 0 }
   0xd   : > { %s67_s28 = ssub.s32 %s1248_s23, %s1559_s26  ;;  %212 = sbr.rel (%p1005_p6) target bundleno = 75 (0x4b), region = 16 }
   0xe   : > { %s68_s29 = sor.u32 %s67_s28, %s66_s27 }
   0xf   : > { %p69_p5 = scmp.eq.s32.totalorder %s68_s29, 0 }
  0x11   : > { %s1336_s6 = scalar_select %p69_p5, %s1232_s19, %s71_s30  }
  0x12   : > { %228 = sbr.rel (!%p80_p3) target bundleno = 75 (0x4b), region = 24  ;;  %s230_s7 = sand.u32 (%p80_p3), 1, %s1232_s19  }
  0x13   : > { %s1112_s8 = smul.u32 (%p80_p3), 96, %s1244_s22  ;;  %s1547_s1 = sld [smem:[#allocation4_spill]] (%p80_p3) }
  0x14   : > { %s1137_s9 = smul.u32 (%p80_p3), 192, %s230_s7 }
  0x15   : > { %s235_s10 = sadd.s32 (%p80_p3), %s1248_s23, %s1112_s8 }
  0x16   : > { %s1007_s11 = sshll.u32 (%p80_p3), %s235_s10, 2  ;;  %s1350_s15 = scalar_lea.vmem (%p80_p3), [#allocation3], %s1137_s9 }
  0x19   : > { %s1345_s14 = scalar_lea.vmem %s1547_s1, %s1007_s11 }
  0x1a   : > { %v254_v0 = vld [vmem:[%s1345_s14] sm:$0xf]  ;;  %v256_v1 = vld [vmem:[%s1345_s14 + $0x8] sm:$0xf]  ;;  %v258_v2 = vld [vmem:[%s1345_s14 + $0x10] sm:$0xf] }
  0x1b   : > { %255 = vst [vmem:[%s1350_s15] sm:$0xf] %v254_v0  ;;  %v260_v3 = vld [vmem:[%s1345_s14 + $0x18] sm:$0xf]  ;;  %v262_v4 = vld [vmem:[%s1345_s14 + $0x20] sm:$0xf] }
  0x1c   : > { %257 = vst [vmem:[%s1350_s15 + $0x4] sm:$0xf] %v256_v1  ;;  %v264_v5 = vld [vmem:[%s1345_s14 + $0x28] sm:$0xf]  ;;  %v266_v6 = vld [vmem:[%s1345_s14 + $0x30] sm:$0xf] }
  0x1d   : > { %259 = vst [vmem:[%s1350_s15 + $0x8] sm:$0xf] %v258_v2  ;;  %v268_v7 = vld [vmem:[%s1345_s14 + $0x38] sm:$0xf]  ;;  %v270_v8 = vld [vmem:[%s1345_s14 + $0x40] sm:$0xf] }
  0x1e   : > { %261 = vst [vmem:[%s1350_s15 + $0xc] sm:$0xf] %v260_v3  ;;  %v272_v9 = vld [vmem:[%s1345_s14 + $0x48] sm:$0xf]  ;;  %v274_v10 = vld [vmem:[%s1345_s14 + $0x50] sm:$0xf] }
  0x1f   : > { %263 = vst [vmem:[%s1350_s15 + $0x10] sm:$0xf] %v262_v4  ;;  %v276_v11 = vld [vmem:[%s1345_s14 + $0x58] sm:$0xf]  ;;  %v278_v12 = vld [vmem:[%s1345_s14 + $0x60] sm:$0xf] }
  0x20   : > { %265 = vst [vmem:[%s1350_s15 + $0x14] sm:$0xf] %v264_v5  ;;  %v280_v13 = vld [vmem:[%s1345_s14 + $0x68] sm:$0xf]  ;;  %v282_v14 = vld [vmem:[%s1345_s14 + $0x70] sm:$0xf] }
  0x21   : > { %267 = vst [vmem:[%s1350_s15 + $0x18] sm:$0xf] %v266_v6  ;;  %v284_v15 = vld [vmem:[%s1345_s14 + $0x78] sm:$0xf]  ;;  %v286_v16 = vld [vmem:[%s1345_s14 + $0x80] sm:$0xf] }
  0x22   : > { %269 = vst [vmem:[%s1350_s15 + $0x1c] sm:$0xf] %v268_v7  ;;  %v288_v17 = vld [vmem:[%s1345_s14 + $0x88] sm:$0xf]  ;;  %v290_v18 = vld [vmem:[%s1345_s14 + $0x90] sm:$0xf] }
  0x23   : > { %271 = vst [vmem:[%s1350_s15 + $0x20] sm:$0xf] %v270_v8  ;;  %v292_v19 = vld [vmem:[%s1345_s14 + $0x98] sm:$0xf]  ;;  %v294_v20 = vld [vmem:[%s1345_s14 + $0xa0] sm:$0xf] }
  0x24   : > { %273 = vst [vmem:[%s1350_s15 + $0x24] sm:$0xf] %v272_v9  ;;  %v296_v21 = vld [vmem:[%s1345_s14 + $0xa8] sm:$0xf]  ;;  %v298_v22 = vld [vmem:[%s1345_s14 + $0xb0] sm:$0xf] }
  0x25   : > { %275 = vst [vmem:[%s1350_s15 + $0x28] sm:$0xf] %v274_v10  ;;  %v300_v23 = vld [vmem:[%s1345_s14 + $0xb8] sm:$0xf]  ;;  %v302_v24 = vld [vmem:[%s1345_s14 + $0xc0] sm:$0xf] }
  0x26   : > { %277 = vst [vmem:[%s1350_s15 + $0x2c] sm:$0xf] %v276_v11  ;;  %v304_v25 = vld [vmem:[%s1345_s14 + $0xc8] sm:$0xf]  ;;  %v306_v26 = vld [vmem:[%s1345_s14 + $0xd0] sm:$0xf] }
  0x27   : > { %279 = vst [vmem:[%s1350_s15 + $0x30] sm:$0xf] %v278_v12  ;;  %v308_v27 = vld [vmem:[%s1345_s14 + $0xd8] sm:$0xf]  ;;  %v310_v28 = vld [vmem:[%s1345_s14 + $0xe0] sm:$0xf] }
  0x28   : > { %281 = vst [vmem:[%s1350_s15 + $0x34] sm:$0xf] %v280_v13  ;;  %v312_v29 = vld [vmem:[%s1345_s14 + $0xe8] sm:$0xf]  ;;  %v314_v30 = vld [vmem:[%s1345_s14 + $0xf0] sm:$0xf] }
  0x29   : > { %283 = vst [vmem:[%s1350_s15 + $0x38] sm:$0xf] %v282_v14  ;;  %v316_v31 = vld [vmem:[%s1345_s14 + $0xf8] sm:$0xf]  ;;  %v318_v32 = vld [vmem:[%s1345_s14 + $0x100] sm:$0xf] }
  0x2a   : > { %285 = vst [vmem:[%s1350_s15 + $0x3c] sm:$0xf] %v284_v15  ;;  %v320_v33 = vld [vmem:[%s1345_s14 + $0x108] sm:$0xf]  ;;  %v322_v34 = vld [vmem:[%s1345_s14 + $0x110] sm:$0xf] }
  0x2b   : > { %287 = vst [vmem:[%s1350_s15 + $0x40] sm:$0xf] %v286_v16  ;;  %v324_v35 = vld [vmem:[%s1345_s14 + $0x118] sm:$0xf]  ;;  %v326_v36 = vld [vmem:[%s1345_s14 + $0x120] sm:$0xf] }
  0x2c   : > { %289 = vst [vmem:[%s1350_s15 + $0x44] sm:$0xf] %v288_v17  ;;  %v328_v37 = vld [vmem:[%s1345_s14 + $0x128] sm:$0xf]  ;;  %v330_v38 = vld [vmem:[%s1345_s14 + $0x130] sm:$0xf] }
  0x2d   : > { %291 = vst [vmem:[%s1350_s15 + $0x48] sm:$0xf] %v290_v18  ;;  %v332_v39 = vld [vmem:[%s1345_s14 + $0x138] sm:$0xf]  ;;  %v334_v40 = vld [vmem:[%s1345_s14 + $0x140] sm:$0xf] }
  0x2e   : > { %293 = vst [vmem:[%s1350_s15 + $0x4c] sm:$0xf] %v292_v19  ;;  %v336_v41 = vld [vmem:[%s1345_s14 + $0x148] sm:$0xf]  ;;  %v338_v42 = vld [vmem:[%s1345_s14 + $0x150] sm:$0xf] }
  0x2f   : > { %295 = vst [vmem:[%s1350_s15 + $0x50] sm:$0xf] %v294_v20  ;;  %v340_v43 = vld [vmem:[%s1345_s14 + $0x158] sm:$0xf]  ;;  %v342_v44 = vld [vmem:[%s1345_s14 + $0x160] sm:$0xf] }
  0x30   : > { %297 = vst [vmem:[%s1350_s15 + $0x54] sm:$0xf] %v296_v21  ;;  %v344_v45 = vld [vmem:[%s1345_s14 + $0x168] sm:$0xf]  ;;  %v346_v46 = vld [vmem:[%s1345_s14 + $0x170] sm:$0xf] }
  0x31   : > { %299 = vst [vmem:[%s1350_s15 + $0x58] sm:$0xf] %v298_v22  ;;  %v348_v47 = vld [vmem:[%s1345_s14 + $0x178] sm:$0xf] }
  0x32   : > { %301 = vst [vmem:[%s1350_s15 + $0x5c] sm:$0xf] %v300_v23 }
  0x33   : > { %303 = vst [vmem:[%s1350_s15 + $0x60] sm:$0xf] %v302_v24 }
  0x34   : > { %305 = vst [vmem:[%s1350_s15 + $0x64] sm:$0xf] %v304_v25 }
  0x35   : > { %307 = vst [vmem:[%s1350_s15 + $0x68] sm:$0xf] %v306_v26 }
  0x36   : > { %309 = vst [vmem:[%s1350_s15 + $0x6c] sm:$0xf] %v308_v27 }
  0x37   : > { %311 = vst [vmem:[%s1350_s15 + $0x70] sm:$0xf] %v310_v28 }
  0x38   : > { %313 = vst [vmem:[%s1350_s15 + $0x74] sm:$0xf] %v312_v29 }
  0x39   : > { %315 = vst [vmem:[%s1350_s15 + $0x78] sm:$0xf] %v314_v30 }
  0x3a   : > { %317 = vst [vmem:[%s1350_s15 + $0x7c] sm:$0xf] %v316_v31 }
  0x3b   : > { %319 = vst [vmem:[%s1350_s15 + $0x80] sm:$0xf] %v318_v32 }
  0x3c   : > { %321 = vst [vmem:[%s1350_s15 + $0x84] sm:$0xf] %v320_v33 }
  0x3d   : > { %323 = vst [vmem:[%s1350_s15 + $0x88] sm:$0xf] %v322_v34 }
  0x3e   : > { %325 = vst [vmem:[%s1350_s15 + $0x8c] sm:$0xf] %v324_v35 }
  0x3f   : > { %327 = vst [vmem:[%s1350_s15 + $0x90] sm:$0xf] %v326_v36 }
  0x40   : > { %329 = vst [vmem:[%s1350_s15 + $0x94] sm:$0xf] %v328_v37 }
  0x41   : > { %331 = vst [vmem:[%s1350_s15 + $0x98] sm:$0xf] %v330_v38 }
  0x42   : > { %333 = vst [vmem:[%s1350_s15 + $0x9c] sm:$0xf] %v332_v39 }
  0x43   : > { %335 = vst [vmem:[%s1350_s15 + $0xa0] sm:$0xf] %v334_v40 }
  0x44   : > { %337 = vst [vmem:[%s1350_s15 + $0xa4] sm:$0xf] %v336_v41 }
  0x45   : > { %339 = vst [vmem:[%s1350_s15 + $0xa8] sm:$0xf] %v338_v42 }
  0x46   : > { %341 = vst [vmem:[%s1350_s15 + $0xac] sm:$0xf] %v340_v43 }
  0x47   : > { %343 = vst [vmem:[%s1350_s15 + $0xb0] sm:$0xf] %v342_v44 }
  0x48   : > { %345 = vst [vmem:[%s1350_s15 + $0xb4] sm:$0xf] %v344_v45 }
  0x49   : > { %347 = vst [vmem:[%s1350_s15 + $0xb8] sm:$0xf] %v346_v46 }
  0x4a   : > { %349 = vst [vmem:[%s1350_s15 + $0xbc] sm:$0xf] %v348_v47 }
  0x4b PF: > { %p1008_p7 = scmp.ge.s32.totalorder %s1252_s24, 1  ;;  %p491_p8 = scmp.lt.s32.totalorder %s1252_s24, 13 }
  0x4d   : > { %p492_p9 = pnand %p1008_p7, %p491_p8 }
  0x4e   : > { %s498_s16 = sand.u32 (!%p492_p9), 1, %s1228_s18   ;;  %s551_s17 = smul.u32 (!%p492_p9), 3, %s1236_s20 }
  0x4f   : > { %495 = sbr.rel (%p492_p9) target bundleno = 285 (0x11d), region = 77  ;;  %p562_p10 = scmp.lt.s32.totalorder (!%p492_p9), %s1240_s21, 1 }
  0x50   : > { %s1138_s27 = smul.u32 (!%p492_p9), 192, %s498_s16  ;;  %p554_p11 = scmp.lt.s32.totalorder (!%p492_p9), %s551_s17, 17 }
  0x51   : > { %p1012_p12 = scmp.ne.s32.totalorder (!%p492_p9), %s1236_s20, 0 }
  0x54   : > { %s1561_s17 = smov (!%p554_p11, %s551_s17), 17  ;;  %s1563_s21 = smov (!%p562_p10, %s1240_s21), 1 }
  0x55   : > { %s1009_s28 = sshll.u32 %s1561_s17, 2  ;;  %s564_s18 = scalar_lea.vmem %s1542_s2, %s1563_s21 }
  0x56   : > { %s1456_s7 = scalar_lea.vmem %s1540_s0, %s1009_s28  ;;  %s567_s12 = scalar_lea.vmem %s1543_s3, %s1563_s21 }
  0x57   : > { %s1010_s13 = sshll.u32 %s1563_s21, 2  ;;  %s1477_s28 = scalar_lea.vmem [#allocation3], %s1138_s27 }
  0x58   : > { %s1470_s16 = scalar_lea.vmem %s1544_s4, %s1010_s13  ;;  %s1475_s29 = scalar_lea.vmem %s1545_s5, %s1010_s13 }
  0x59   : > { %587 = sbr.rel (%p1012_p12) target bundleno = 96 (0x60), region = 85 }
  0x5e   : > { %v1254_v48 = vmov 0.0  }
  0x5f   : > { %588 = vst [vmem:[#allocation2] sm:$0xff] %v1254_v48 }
  0x60 PF: > { %v1120_v49 = vld [vmem:[%s1477_s28 + $0x38] sm:$0xff]  ;;  %v1119_v52 = vld [vmem:[%s1477_s28 + $0x30] sm:$0xff]  ;;  %v1118_v55 = vld [vmem:[%s1477_s28 + $0x28] sm:$0xff]  ;;  %p1109_p13 = scmp.ne.s32.totalorder %s1236_s20, 5 }
  0x61   : > { %v1128_v50 = vld [vmem:[%s1477_s28 + $0x78] sm:$0xff]  ;;  %795 = vmatpush.bf16.msra.mxu0 %v1120_v49  ;;  %v1127_v53 = vld [vmem:[%s1477_s28 + $0x70] sm:$0xff]  ;;  %v1126_v56 = vld [vmem:[%s1477_s28 + $0x68] sm:$0xff] }
  0x62   : > { %v1136_v51 = vld [vmem:[%s1477_s28 + $0xb8] sm:$0xff]  ;;  %808 = vmatpush.bf16.msra.mxu1 %v1128_v50  ;;  %v1135_v54 = vld [vmem:[%s1477_s28 + $0xb0] sm:$0xff]  ;;  %v1134_v57 = vld [vmem:[%s1477_s28 + $0xa8] sm:$0xff] }
  0x63   : > { %821 = vmatpush.bf16.msra.mxu2 %v1136_v51  ;;  %v1117_v58 = vld [vmem:[%s1477_s28 + $0x20] sm:$0xff]  ;;  %v1116_v61 = vld [vmem:[%s1477_s28 + $0x18] sm:$0xff]  ;;  %v1115_v0 = vld [vmem:[%s1477_s28 + $0x10] sm:$0xff] }
  0x64   : > { %v1125_v59 = vld [vmem:[%s1477_s28 + $0x60] sm:$0xff]  ;;  %v1124_v62 = vld [vmem:[%s1477_s28 + $0x58] sm:$0xff]  ;;  %v1123_v1 = vld [vmem:[%s1477_s28 + $0x50] sm:$0xff] }
  0x65   : > { %796 = vmatpush.bf16.msra.mxu0 %v1119_v52  ;;  %v1133_v60 = vld [vmem:[%s1477_s28 + $0xa0] sm:$0xff]  ;;  %v1132_v63 = vld [vmem:[%s1477_s28 + $0x98] sm:$0xff]  ;;  %v1131_v2 = vld [vmem:[%s1477_s28 + $0x90] sm:$0xff] }
  0x66   : > { %809 = vmatpush.bf16.msra.mxu1 %v1127_v53  ;;  %v1114_v3 = vld [vmem:[%s1477_s28 + $0x8] sm:$0xff]  ;;  %v589_v5 = vld [vmem:[%s1456_s7] sm:$0xff]  ;;  %v590_v7 = vld [vmem:[%s1456_s7 + $0x8] sm:$0xf] }
  0x67   : > { %822 = vmatpush.bf16.msra.mxu2 %v1135_v54  ;;  %v1122_v4 = vld [vmem:[%s1477_s28 + $0x48] sm:$0xff]  ;;  %v642_v8 = vunpack.c.l.b16 %v589_v5  ;;  %v643_v9 = vunpack.c.h.b16 %v589_v5  ;;  %v1113_v10 = vld [vmem:[%s1477_s28] sm:$0xff]  ;;  %v644_v12 = vunpack.c.l.b16 %v590_v7  ;;  %v591_v20 = vld [vmem:[#allocation2] sm:$0xff] }
  0x68   : > { %v1130_v6 = vld [vmem:[%s1477_s28 + $0x88] sm:$0xff]  ;;  %v1121_v11 = vld [vmem:[%s1477_s28 + $0x40] sm:$0xff] }
  0x69   : > { %797 = vmatpush.bf16.msra.mxu0 %v1118_v55  ;;  %v1129_v13 = vld [vmem:[%s1477_s28 + $0x80] sm:$0xff]  ;;  %v645_v14 = vpack.c.b16 %v642_v8, %v642_v8  ;;  %v646_v15 = vpack.c.b16 %v643_v9, %v643_v9  ;;  %v647_v16 = vpack.c.b16 %v644_v12, %v644_v12 }
  0x6a   : > { %810 = vmatpush.bf16.msra.mxu1 %v1126_v56 }
  0x6b   : > { %823 = vmatpush.bf16.msra.mxu2 %v1134_v57 }
  0x6d   : > { %798 = vmatpush.bf16.msra.mxu0 %v1117_v58 }
  0x6e   : > { %811 = vmatpush.bf16.msra.mxu1 %v1125_v59 }
  0x6f   : > { %824 = vmatpush.bf16.msra.mxu2 %v1133_v60 }
  0x71   : > { %799 = vmatpush.bf16.msra.mxu0 %v1116_v61 }
  0x72   : > { %812 = vmatpush.bf16.msra.mxu1 %v1124_v62 }
  0x73   : > { %825 = vmatpush.bf16.msra.mxu2 %v1132_v63 }
  0x75   : > { %800 = vmatpush.bf16.msra.mxu0 %v1115_v0 }
  0x76   : > { %813 = vmatpush.bf16.msra.mxu1 %v1123_v1 }
  0x77   : > { %826 = vmatpush.bf16.msra.mxu2 %v1131_v2 }
  0x79   : > { %801 = vmatpush.bf16.msra.mxu0 %v1114_v3 }
  0x7a   : > { %814 = vmatpush.bf16.msra.mxu1 %v1122_v4 }
  0x7b   : > { %827 = vmatpush.bf16.msra.mxu2 %v1130_v6 }
  0x7d   : > { %802 = vmatpush.bf16.msra.mxu0 %v1113_v10 }
  0x7e   : > { %815 = vmatpush.bf16.msra.mxu1 %v1121_v11 }
  0x7f   : > { %828 = vmatpush.bf16.msra.mxu2 %v1129_v13 }
  0x80   : > { %803 = vmatmul.bf16.vlgmr.msra.gmra.mxu0 %v645_v14 }
  0x81   : > { %816 = vmatmul.bf16.vlgmr.msra.gmra.mxu1 %v646_v15 }
  0x82   : > { %829 = vmatmul.bf16.vlgmr.msra.gmra.mxu2 %v647_v16 }
  0xfd   : > { %v804_v17 = vpop.f32.mrf.mxu0 }
  0xfe   : > { %v817_v18 = vpop.f32.mrf.mxu1 }
  0xff   : > { %v818_v19 = vadd.f32 %v817_v18, %v804_v17 }
 0x105   : > { %v830_v21 = vpop.f32.mrf.mxu2  ;;  %v806_v23 = vpop.f32.mrf.mxu0 }
 0x106   : > { %v831_v22 = vadd.f32 %v830_v21, %v818_v19  ;;  %v819_v24 = vpop.f32.mrf.mxu1 }
 0x108   : > { %v834_v25 = vadd.f32 %v831_v22, %v591_v20 }
 0x109   : > { %839 = sbr.rel (%p1109_p13) target bundleno = 285 (0x11d), region = 89 }
 0x10a   : > { %835 = vst [vmem:[#allocation2] sm:$0xff] %v834_v25 }
 0x10d   : > { %v832_v26 = vpop.f32.mrf.mxu2 }
 0x10e   : > { %v1196_v28 = vld [vmem:[%s564_s18] ss:$0 sm:$0xff] }
 0x10f   : > { %v1197_v29 = vld [vmem:[%s567_s12] ss:$0 sm:$0xff] }
 0x110   : > { %v851_v30 = vld [vmem:[%s1470_s16] sm:$0xf] }
 0x111   : > { %v840_v27 = vld [vmem:[#allocation2] sm:$0xff]  ;;  %v852_v32 = vunpack.c.l.bf16 %v851_v30 }
 0x112   : > { %v845_v31 = vmul.f32 %v1196_v28, %v840_v27 }
 0x114   : > { %v850_v33 = vadd.f32 %v1197_v29, %v845_v31 }
 0x116   : > { %v853_v34 = vadd.f32 %v852_v32, %v850_v33 }
 0x118   : > { %v854_v35 = vmax.f32 %v853_v34, 0.0 }
 0x11a   : > { %v855_v36 = vpack.c.bf16 %v854_v35, %v854_v35 }
 0x11c   : > { %856 = vst [vmem:[%s1475_s29] sm:$0xf] %v855_v36 }
 0x11d PF: > { %s15_s24 = sadd.s32 1, %s1252_s24   ;;  %s1548_s18 = smov %s1232_s19 }
 0x11e   : > { %p12_p0 = scmp.ge.s32.totalorder %s15_s24, 14   ;;  %s1549_s19 = smov %s1336_s6 }
 0x11f   : > { %s1550_s20 = smov %s1244_s22  ;;  %s1551_s21 = smov %s1248_s23 }
 0x120   : > { %s1552_s22 = smov %s1555_s25  ;;  %s1553_s23 = smov %s1559_s26 }
 0x121   :  { %14 = sbr.rel (!%p12_p0) target bundleno = 6 (0x6), region = 136 }

// kernel: value_encoder_forward.36
= control target key start
LH: loop header
LB: loop body
LE: loop exit
PB: predicated region body
PF: predicated region fallthrough
CT: control target
= control target key end

     0   :  { %s1200_s15 = smov 0   ;;  %s1202_s16 = smov 0   ;;  %s1449_s0 = inlined_call_operand.vmem [shape: bf16[8,2304], index: 0, kind: input, shape index: {}]   ;;  %s1450_s1 = inlined_call_operand.vmem [shape: bf16[2304,256], index: 1, kind: input, shape index: {}]   ;;  %s1451_s2 = inlined_call_operand.vmem [shape: f32[1,256], index: 2, kind: input, shape index: {}]   ;;  %s1452_s3 = inlined_call_operand.vmem [shape: f32[1,256], index: 3, kind: input, shape index: {}]   ;;  %s1453_s4 = inlined_call_operand.vmem [shape: bf16[8,256], index: 4, kind: output, shape index: {}]  }
   0x1   :  { %s1204_s17 = smov 0   ;;  %s1206_s18 = smov 0  }
   0x2   :  { %s1208_s19 = smov 0   ;;  %s1210_s20 = smov 0  }
   0x3   :  { %s1212_s21 = smov 0  }
   0x4 LB: > { %s26_s22 = sadd.s32 1, %s1164_s19  ;;  %s29_s23 = sadd.s32 1, %s1168_s20  ;;  %s1172_s21 = sphi %s1212_s21, %s14_s21   ;;  %s1168_s20 = sphi %s1210_s20, %s1459_s20   ;;  %s1164_s19 = sphi %s1208_s19, %s1458_s19   ;;  %s1160_s18 = sphi %s1206_s18, %s1457_s18   ;;  %s1156_s17 = sphi %s1204_s17, %s1456_s17   ;;  %s1152_s16 = sphi %s1202_s16, %s1455_s16   ;;  %s1148_s15 = sphi %s1200_s15, %s1454_s15  }
   0x5   : > { %p27_p0 = scmp.ge.s32.totalorder %s26_s22, 6  ;;  %p77_p1 = scmp.ne.s32.totalorder %s1152_s16, %s1148_s15 }
   0x6   : > { %p78_p2 = scmp.eq.s32.totalorder %s1172_s21, 0  ;;  %s70_s27 = sadd.s32 1, %s1152_s16 }
   0x7   : > { %s1461_s22 = smov (%p27_p0, %s26_s22), 0  ;;  %s1463_s23 = smov (!%p27_p0, %s29_s23), %s1168_s20 }
   0x8   : > { %p79_p3 = por %p78_p2, %p77_p1  ;;  %p31_p4 = scmp.ge.s32.totalorder %s1463_s23, 2 }
   0x9   : > { %s65_s24 = ssub.s32 %s1164_s19, %s1461_s22  ;;  %p926_p6 = scmp.ge.s32.totalorder %s1172_s21, 12 }
   0xa   : > { %s1465_s23 = smov (%p31_p4, %s1463_s23), 0 }
   0xb   : > { %s66_s25 = ssub.s32 %s1168_s20, %s1465_s23  ;;  %183 = sbr.rel (%p926_p6) target bundleno = 71 (0x47), region = 16 }
   0xc   : > { %s67_s26 = sor.u32 %s66_s25, %s65_s24 }
   0xd   : > { %p68_p5 = scmp.eq.s32.totalorder %s67_s26, 0 }
   0xf   : > { %s1251_s28 = scalar_select %p68_p5, %s1152_s16, %s70_s27  }
  0x10   : > { %199 = sbr.rel (!%p79_p3) target bundleno = 71 (0x47), region = 24  ;;  %s201_s29 = sand.u32 (%p79_p3), 1, %s1152_s16  }
  0x11   : > { %s1032_s30 = smul.u32 (%p79_p3), 96, %s1164_s19 }
  0x12   : > { %s1057_s5 = smul.u32 (%p79_p3), 192, %s201_s29 }
  0x13   : > { %s206_s6 = sadd.s32 (%p79_p3), %s1168_s20, %s1032_s30 }
  0x14   : > { %s928_s7 = sshll.u32 (%p79_p3), %s206_s6, 2  ;;  %s1265_s11 = scalar_lea.vmem (%p79_p3), [#allocation3], %s1057_s5 }
  0x15   : > { %s1260_s10 = scalar_lea.vmem %s1450_s1, %s928_s7 }
  0x16   : > { %v225_v0 = vld [vmem:[%s1260_s10] sm:$0xf]  ;;  %v227_v1 = vld [vmem:[%s1260_s10 + $0x8] sm:$0xf]  ;;  %v229_v2 = vld [vmem:[%s1260_s10 + $0x10] sm:$0xf] }
  0x17   : > { %226 = vst [vmem:[%s1265_s11] sm:$0xf] %v225_v0  ;;  %v231_v3 = vld [vmem:[%s1260_s10 + $0x18] sm:$0xf]  ;;  %v233_v4 = vld [vmem:[%s1260_s10 + $0x20] sm:$0xf] }
  0x18   : > { %228 = vst [vmem:[%s1265_s11 + $0x4] sm:$0xf] %v227_v1  ;;  %v235_v5 = vld [vmem:[%s1260_s10 + $0x28] sm:$0xf]  ;;  %v237_v6 = vld [vmem:[%s1260_s10 + $0x30] sm:$0xf] }
  0x19   : > { %230 = vst [vmem:[%s1265_s11 + $0x8] sm:$0xf] %v229_v2  ;;  %v239_v7 = vld [vmem:[%s1260_s10 + $0x38] sm:$0xf]  ;;  %v241_v8 = vld [vmem:[%s1260_s10 + $0x40] sm:$0xf] }
  0x1a   : > { %232 = vst [vmem:[%s1265_s11 + $0xc] sm:$0xf] %v231_v3  ;;  %v243_v9 = vld [vmem:[%s1260_s10 + $0x48] sm:$0xf]  ;;  %v245_v10 = vld [vmem:[%s1260_s10 + $0x50] sm:$0xf] }
  0x1b   : > { %234 = vst [vmem:[%s1265_s11 + $0x10] sm:$0xf] %v233_v4  ;;  %v247_v11 = vld [vmem:[%s1260_s10 + $0x58] sm:$0xf]  ;;  %v249_v12 = vld [vmem:[%s1260_s10 + $0x60] sm:$0xf] }
  0x1c   : > { %236 = vst [vmem:[%s1265_s11 + $0x14] sm:$0xf] %v235_v5  ;;  %v251_v13 = vld [vmem:[%s1260_s10 + $0x68] sm:$0xf]  ;;  %v253_v14 = vld [vmem:[%s1260_s10 + $0x70] sm:$0xf] }
  0x1d   : > { %238 = vst [vmem:[%s1265_s11 + $0x18] sm:$0xf] %v237_v6  ;;  %v255_v15 = vld [vmem:[%s1260_s10 + $0x78] sm:$0xf]  ;;  %v257_v16 = vld [vmem:[%s1260_s10 + $0x80] sm:$0xf] }
  0x1e   : > { %240 = vst [vmem:[%s1265_s11 + $0x1c] sm:$0xf] %v239_v7  ;;  %v259_v17 = vld [vmem:[%s1260_s10 + $0x88] sm:$0xf]  ;;  %v261_v18 = vld [vmem:[%s1260_s10 + $0x90] sm:$0xf] }
  0x1f   : > { %242 = vst [vmem:[%s1265_s11 + $0x20] sm:$0xf] %v241_v8  ;;  %v263_v19 = vld [vmem:[%s1260_s10 + $0x98] sm:$0xf]  ;;  %v265_v20 = vld [vmem:[%s1260_s10 + $0xa0] sm:$0xf] }
  0x20   : > { %244 = vst [vmem:[%s1265_s11 + $0x24] sm:$0xf] %v243_v9  ;;  %v267_v21 = vld [vmem:[%s1260_s10 + $0xa8] sm:$0xf]  ;;  %v269_v22 = vld [vmem:[%s1260_s10 + $0xb0] sm:$0xf] }
  0x21   : > { %246 = vst [vmem:[%s1265_s11 + $0x28] sm:$0xf] %v245_v10  ;;  %v271_v23 = vld [vmem:[%s1260_s10 + $0xb8] sm:$0xf]  ;;  %v273_v24 = vld [vmem:[%s1260_s10 + $0xc0] sm:$0xf] }
  0x22   : > { %248 = vst [vmem:[%s1265_s11 + $0x2c] sm:$0xf] %v247_v11  ;;  %v275_v25 = vld [vmem:[%s1260_s10 + $0xc8] sm:$0xf]  ;;  %v277_v26 = vld [vmem:[%s1260_s10 + $0xd0] sm:$0xf] }
  0x23   : > { %250 = vst [vmem:[%s1265_s11 + $0x30] sm:$0xf] %v249_v12  ;;  %v279_v27 = vld [vmem:[%s1260_s10 + $0xd8] sm:$0xf]  ;;  %v281_v28 = vld [vmem:[%s1260_s10 + $0xe0] sm:$0xf] }
  0x24   : > { %252 = vst [vmem:[%s1265_s11 + $0x34] sm:$0xf] %v251_v13  ;;  %v283_v29 = vld [vmem:[%s1260_s10 + $0xe8] sm:$0xf]  ;;  %v285_v30 = vld [vmem:[%s1260_s10 + $0xf0] sm:$0xf] }
  0x25   : > { %254 = vst [vmem:[%s1265_s11 + $0x38] sm:$0xf] %v253_v14  ;;  %v287_v31 = vld [vmem:[%s1260_s10 + $0xf8] sm:$0xf]  ;;  %v289_v32 = vld [vmem:[%s1260_s10 + $0x100] sm:$0xf] }
  0x26   : > { %256 = vst [vmem:[%s1265_s11 + $0x3c] sm:$0xf] %v255_v15  ;;  %v291_v33 = vld [vmem:[%s1260_s10 + $0x108] sm:$0xf]  ;;  %v293_v34 = vld [vmem:[%s1260_s10 + $0x110] sm:$0xf] }
  0x27   : > { %258 = vst [vmem:[%s1265_s11 + $0x40] sm:$0xf] %v257_v16  ;;  %v295_v35 = vld [vmem:[%s1260_s10 + $0x118] sm:$0xf]  ;;  %v297_v36 = vld [vmem:[%s1260_s10 + $0x120] sm:$0xf] }
  0x28   : > { %260 = vst [vmem:[%s1265_s11 + $0x44] sm:$0xf] %v259_v17  ;;  %v299_v37 = vld [vmem:[%s1260_s10 + $0x128] sm:$0xf]  ;;  %v301_v38 = vld [vmem:[%s1260_s10 + $0x130] sm:$0xf] }
  0x29   : > { %262 = vst [vmem:[%s1265_s11 + $0x48] sm:$0xf] %v261_v18  ;;  %v303_v39 = vld [vmem:[%s1260_s10 + $0x138] sm:$0xf]  ;;  %v305_v40 = vld [vmem:[%s1260_s10 + $0x140] sm:$0xf] }
  0x2a   : > { %264 = vst [vmem:[%s1265_s11 + $0x4c] sm:$0xf] %v263_v19  ;;  %v307_v41 = vld [vmem:[%s1260_s10 + $0x148] sm:$0xf]  ;;  %v309_v42 = vld [vmem:[%s1260_s10 + $0x150] sm:$0xf] }
  0x2b   : > { %266 = vst [vmem:[%s1265_s11 + $0x50] sm:$0xf] %v265_v20  ;;  %v311_v43 = vld [vmem:[%s1260_s10 + $0x158] sm:$0xf]  ;;  %v313_v44 = vld [vmem:[%s1260_s10 + $0x160] sm:$0xf] }
  0x2c   : > { %268 = vst [vmem:[%s1265_s11 + $0x54] sm:$0xf] %v267_v21  ;;  %v315_v45 = vld [vmem:[%s1260_s10 + $0x168] sm:$0xf]  ;;  %v317_v46 = vld [vmem:[%s1260_s10 + $0x170] sm:$0xf] }
  0x2d   : > { %270 = vst [vmem:[%s1265_s11 + $0x58] sm:$0xf] %v269_v22  ;;  %v319_v47 = vld [vmem:[%s1260_s10 + $0x178] sm:$0xf] }
  0x2e   : > { %272 = vst [vmem:[%s1265_s11 + $0x5c] sm:$0xf] %v271_v23 }
  0x2f   : > { %274 = vst [vmem:[%s1265_s11 + $0x60] sm:$0xf] %v273_v24 }
  0x30   : > { %276 = vst [vmem:[%s1265_s11 + $0x64] sm:$0xf] %v275_v25 }
  0x31   : > { %278 = vst [vmem:[%s1265_s11 + $0x68] sm:$0xf] %v277_v26 }
  0x32   : > { %280 = vst [vmem:[%s1265_s11 + $0x6c] sm:$0xf] %v279_v27 }
  0x33   : > { %282 = vst [vmem:[%s1265_s11 + $0x70] sm:$0xf] %v281_v28 }
  0x34   : > { %284 = vst [vmem:[%s1265_s11 + $0x74] sm:$0xf] %v283_v29 }
  0x35   : > { %286 = vst [vmem:[%s1265_s11 + $0x78] sm:$0xf] %v285_v30 }
  0x36   : > { %288 = vst [vmem:[%s1265_s11 + $0x7c] sm:$0xf] %v287_v31 }
  0x37   : > { %290 = vst [vmem:[%s1265_s11 + $0x80] sm:$0xf] %v289_v32 }
  0x38   : > { %292 = vst [vmem:[%s1265_s11 + $0x84] sm:$0xf] %v291_v33 }
  0x39   : > { %294 = vst [vmem:[%s1265_s11 + $0x88] sm:$0xf] %v293_v34 }
  0x3a   : > { %296 = vst [vmem:[%s1265_s11 + $0x8c] sm:$0xf] %v295_v35 }
  0x3b   : > { %298 = vst [vmem:[%s1265_s11 + $0x90] sm:$0xf] %v297_v36 }
  0x3c   : > { %300 = vst [vmem:[%s1265_s11 + $0x94] sm:$0xf] %v299_v37 }
  0x3d   : > { %302 = vst [vmem:[%s1265_s11 + $0x98] sm:$0xf] %v301_v38 }
  0x3e   : > { %304 = vst [vmem:[%s1265_s11 + $0x9c] sm:$0xf] %v303_v39 }
  0x3f   : > { %306 = vst [vmem:[%s1265_s11 + $0xa0] sm:$0xf] %v305_v40 }
  0x40   : > { %308 = vst [vmem:[%s1265_s11 + $0xa4] sm:$0xf] %v307_v41 }
  0x41   : > { %310 = vst [vmem:[%s1265_s11 + $0xa8] sm:$0xf] %v309_v42 }
  0x42   : > { %312 = vst [vmem:[%s1265_s11 + $0xac] sm:$0xf] %v311_v43 }
  0x43   : > { %314 = vst [vmem:[%s1265_s11 + $0xb0] sm:$0xf] %v313_v44 }
  0x44   : > { %316 = vst [vmem:[%s1265_s11 + $0xb4] sm:$0xf] %v315_v45 }
  0x45   : > { %318 = vst [vmem:[%s1265_s11 + $0xb8] sm:$0xf] %v317_v46 }
  0x46   : > { %320 = vst [vmem:[%s1265_s11 + $0xbc] sm:$0xf] %v319_v47 }
  0x47 PF: > { %p929_p7 = scmp.ge.s32.totalorder %s1172_s21, 1  ;;  %p451_p8 = scmp.lt.s32.totalorder %s1172_s21, 13 }
  0x49   : > { %p452_p9 = pnand %p929_p7, %p451_p8 }
  0x4a   : > { %s458_s12 = sand.u32 (!%p452_p9), 1, %s1148_s15   ;;  %s501_s13 = smul.u32 (!%p452_p9), 3, %s1156_s17 }
  0x4b   : > { %455 = sbr.rel (%p452_p9) target bundleno = 277 (0x115), region = 73  ;;  %p512_p10 = scmp.lt.s32.totalorder (!%p452_p9), %s1160_s18, 1 }
  0x4c   : > { %s1058_s14 = smul.u32 (!%p452_p9), 192, %s458_s12  ;;  %p504_p11 = scmp.lt.s32.totalorder (!%p452_p9), %s501_s13, 17 }
  0x4d   : > { %p932_p12 = scmp.ne.s32.totalorder (!%p452_p9), %s1156_s17, 0 }
  0x4e   : > { %s1387_s12 = scalar_lea.vmem (!%p452_p9), [#allocation3], %s1058_s14 }
  0x50   : > { %s1467_s13 = smov (!%p504_p11, %s501_s13), 17  ;;  %s1469_s18 = smov (!%p512_p10, %s1160_s18), 1 }
  0x51   : > { %s930_s24 = sshll.u32 %s1467_s13, 2  ;;  %s514_s15 = scalar_lea.vmem %s1451_s2, %s1469_s18 }
  0x52   : > { %s1371_s27 = scalar_lea.vmem %s1449_s0, %s930_s24  ;;  %s517_s7 = scalar_lea.vmem %s1452_s3, %s1469_s18 }
  0x53   : > { %s931_s8 = sshll.u32 %s1469_s18, 2  ;;  %529 = sbr.rel (%p932_p12) target bundleno = 90 (0x5a), region = 81 }
  0x54   : > { %s1385_s11 = scalar_lea.vmem %s1453_s4, %s931_s8 }
  0x58   : > { %v1174_v48 = vmov 0.0  }
  0x59   : > { %530 = vst [vmem:[#allocation2] sm:$0xff] %v1174_v48 }
  0x5a PF: > { %v1040_v49 = vld [vmem:[%s1387_s12 + $0x38] sm:$0xff]  ;;  %v1039_v52 = vld [vmem:[%s1387_s12 + $0x30] sm:$0xff]  ;;  %v1038_v55 = vld [vmem:[%s1387_s12 + $0x28] sm:$0xff]  ;;  %p1029_p13 = scmp.ne.s32.totalorder %s1156_s17, 5 }
  0x5b   : > { %v1048_v50 = vld [vmem:[%s1387_s12 + $0x78] sm:$0xff]  ;;  %737 = vmatpush.bf16.msra.mxu0 %v1040_v49  ;;  %v1047_v53 = vld [vmem:[%s1387_s12 + $0x70] sm:$0xff]  ;;  %v1046_v56 = vld [vmem:[%s1387_s12 + $0x68] sm:$0xff] }
  0x5c   : > { %v1056_v51 = vld [vmem:[%s1387_s12 + $0xb8] sm:$0xff]  ;;  %750 = vmatpush.bf16.msra.mxu1 %v1048_v50  ;;  %v1055_v54 = vld [vmem:[%s1387_s12 + $0xb0] sm:$0xff]  ;;  %v1054_v57 = vld [vmem:[%s1387_s12 + $0xa8] sm:$0xff] }
  0x5d   : > { %763 = vmatpush.bf16.msra.mxu2 %v1056_v51  ;;  %v1037_v58 = vld [vmem:[%s1387_s12 + $0x20] sm:$0xff]  ;;  %v1036_v61 = vld [vmem:[%s1387_s12 + $0x18] sm:$0xff]  ;;  %v1035_v0 = vld [vmem:[%s1387_s12 + $0x10] sm:$0xff] }
  0x5e   : > { %v1045_v59 = vld [vmem:[%s1387_s12 + $0x60] sm:$0xff]  ;;  %v1044_v62 = vld [vmem:[%s1387_s12 + $0x58] sm:$0xff]  ;;  %v1043_v1 = vld [vmem:[%s1387_s12 + $0x50] sm:$0xff] }
  0x5f   : > { %738 = vmatpush.bf16.msra.mxu0 %v1039_v52  ;;  %v1053_v60 = vld [vmem:[%s1387_s12 + $0xa0] sm:$0xff]  ;;  %v1052_v63 = vld [vmem:[%s1387_s12 + $0x98] sm:$0xff]  ;;  %v1051_v2 = vld [vmem:[%s1387_s12 + $0x90] sm:$0xff] }
  0x60   : > { %751 = vmatpush.bf16.msra.mxu1 %v1047_v53  ;;  %v1034_v3 = vld [vmem:[%s1387_s12 + $0x8] sm:$0xff]  ;;  %v531_v5 = vld [vmem:[%s1371_s27] sm:$0xff]  ;;  %v532_v7 = vld [vmem:[%s1371_s27 + $0x8] sm:$0xf] }
  0x61   : > { %764 = vmatpush.bf16.msra.mxu2 %v1055_v54  ;;  %v1042_v4 = vld [vmem:[%s1387_s12 + $0x48] sm:$0xff]  ;;  %v584_v8 = vunpack.c.l.b16 %v531_v5  ;;  %v585_v9 = vunpack.c.h.b16 %v531_v5  ;;  %v1033_v10 = vld [vmem:[%s1387_s12] sm:$0xff]  ;;  %v586_v12 = vunpack.c.l.b16 %v532_v7  ;;  %v533_v20 = vld [vmem:[#allocation2] sm:$0xff] }
  0x62   : > { %v1050_v6 = vld [vmem:[%s1387_s12 + $0x88] sm:$0xff]  ;;  %v1041_v11 = vld [vmem:[%s1387_s12 + $0x40] sm:$0xff] }
  0x63   : > { %739 = vmatpush.bf16.msra.mxu0 %v1038_v55  ;;  %v1049_v13 = vld [vmem:[%s1387_s12 + $0x80] sm:$0xff]  ;;  %v587_v14 = vpack.c.b16 %v584_v8, %v584_v8  ;;  %v588_v15 = vpack.c.b16 %v585_v9, %v585_v9  ;;  %v589_v16 = vpack.c.b16 %v586_v12, %v586_v12 }
  0x64   : > { %752 = vmatpush.bf16.msra.mxu1 %v1046_v56 }
  0x65   : > { %765 = vmatpush.bf16.msra.mxu2 %v1054_v57 }
  0x67   : > { %740 = vmatpush.bf16.msra.mxu0 %v1037_v58 }
  0x68   : > { %753 = vmatpush.bf16.msra.mxu1 %v1045_v59 }
  0x69   : > { %766 = vmatpush.bf16.msra.mxu2 %v1053_v60 }
  0x6b   : > { %741 = vmatpush.bf16.msra.mxu0 %v1036_v61 }
  0x6c   : > { %754 = vmatpush.bf16.msra.mxu1 %v1044_v62 }
  0x6d   : > { %767 = vmatpush.bf16.msra.mxu2 %v1052_v63 }
  0x6f   : > { %742 = vmatpush.bf16.msra.mxu0 %v1035_v0 }
  0x70   : > { %755 = vmatpush.bf16.msra.mxu1 %v1043_v1 }
  0x71   : > { %768 = vmatpush.bf16.msra.mxu2 %v1051_v2 }
  0x73   : > { %743 = vmatpush.bf16.msra.mxu0 %v1034_v3 }
  0x74   : > { %756 = vmatpush.bf16.msra.mxu1 %v1042_v4 }
  0x75   : > { %769 = vmatpush.bf16.msra.mxu2 %v1050_v6 }
  0x77   : > { %744 = vmatpush.bf16.msra.mxu0 %v1033_v10 }
  0x78   : > { %757 = vmatpush.bf16.msra.mxu1 %v1041_v11 }
  0x79   : > { %770 = vmatpush.bf16.msra.mxu2 %v1049_v13 }
  0x7a   : > { %745 = vmatmul.bf16.vlgmr.msra.gmra.mxu0 %v587_v14 }
  0x7b   : > { %758 = vmatmul.bf16.vlgmr.msra.gmra.mxu1 %v588_v15 }
  0x7c   : > { %771 = vmatmul.bf16.vlgmr.msra.gmra.mxu2 %v589_v16 }
  0xf7   : > { %v746_v17 = vpop.f32.mrf.mxu0 }
  0xf8   : > { %v759_v18 = vpop.f32.mrf.mxu1 }
  0xf9   : > { %v760_v19 = vadd.f32 %v759_v18, %v746_v17 }
  0xff   : > { %v772_v21 = vpop.f32.mrf.mxu2  ;;  %v748_v23 = vpop.f32.mrf.mxu0 }
 0x100   : > { %v773_v22 = vadd.f32 %v772_v21, %v760_v19  ;;  %v761_v24 = vpop.f32.mrf.mxu1 }
 0x102   : > { %v776_v25 = vadd.f32 %v773_v22, %v533_v20 }
 0x103   : > { %781 = sbr.rel (%p1029_p13) target bundleno = 277 (0x115), region = 85 }
 0x104   : > { %777 = vst [vmem:[#allocation2] sm:$0xff] %v776_v25 }
 0x107   : > { %v774_v26 = vpop.f32.mrf.mxu2 }
 0x108   : > { %v1116_v28 = vld [vmem:[%s514_s15] ss:$0 sm:$0xff] }
 0x109   : > { %v1117_v29 = vld [vmem:[%s517_s7] ss:$0 sm:$0xff] }
 0x10b   : > { %v782_v27 = vld [vmem:[#allocation2] sm:$0xff] }
 0x10c   : > { %v787_v30 = vmul.f32 %v1116_v28, %v782_v27 }
 0x10e   : > { %v792_v31 = vadd.f32 %v1117_v29, %v787_v30 }
 0x110   : > { %v793_v32 = vmax.f32 %v792_v31, 0.0 }
 0x112   : > { %v794_v33 = vpack.c.bf16 %v793_v32, %v793_v32 }
 0x114   : > { %795 = vst [vmem:[%s1385_s11] sm:$0xf] %v794_v33 }
 0x115 PF: > { %s14_s21 = sadd.s32 1, %s1172_s21   ;;  %s1454_s15 = smov %s1152_s16 }
 0x116   : > { %p11_p0 = scmp.ge.s32.totalorder %s14_s21, 14   ;;  %s1455_s16 = smov %s1251_s28 }
 0x117   : > { %s1456_s17 = smov %s1164_s19  ;;  %s1457_s18 = smov %s1168_s20 }
 0x118   : > { %s1458_s19 = smov %s1461_s22  ;;  %s1459_s20 = smov %s1465_s23 }
 0x119   :  { %13 = sbr.rel (!%p11_p0) target bundleno = 4 (0x4), region = 129 }

// kernel: value_encoder_forward.38
= control target key start
LH: loop header
LB: loop body
LE: loop exit
PB: predicated region body
PF: predicated region fallthrough
CT: control target
= control target key end

     0   :  { %s829_s12 = smov 0   ;;  %s831_s13 = smov 0   ;;  %s904_s0 = inlined_call_operand.vmem [shape: bf16[8,11520], index: 0, kind: input, shape index: {}]   ;;  %s905_s1 = inlined_call_operand.vmem [shape: bf16[11520,128], index: 1, kind: input, shape index: {}]   ;;  %s906_s2 = inlined_call_operand.vmem [shape: f32[1,128], index: 2, kind: input, shape index: {}]   ;;  %s907_s3 = inlined_call_operand.vmem [shape: bf16[8,128], index: 3, kind: output, shape index: {}]  }
   0x1   :  { %s833_s14 = smov 0  }
   0x2 LB: > { %s25_s15 = sadd.s32 1, %s802_s13  ;;  %p630_p0 = scmp.ge.s32.totalorder %s806_s14, 1  ;;  %s806_s14 = sphi %s833_s14, %s13_s14   ;;  %s802_s13 = sphi %s831_s13, %s909_s13   ;;  %s798_s12 = sphi %s829_s12, %s908_s12  }
   0x3   : > { %p26_p1 = scmp.ge.s32.totalorder %s25_s15, 30  ;;  %p189_p2 = scmp.lt.s32.totalorder %s806_s14, 31 }
   0x5   : > { %s911_s15 = smov (%p26_p1, %s25_s15), 0  ;;  %p190_p3 = pnand %p630_p0, %p189_p2 }
   0x6   : > { %s230_s16 = smul.u32 (!%p190_p3), 3, %s798_s12  ;;  %p633_p6 = scmp.ne.s32.totalorder (!%p190_p3), %s798_s12, 0 }
   0x7   : > { %193 = sbr.rel (%p190_p3) target bundleno = 205 (0xcd), region = 32 }
   0x8   : > { %s240_s17 = smul.u32 (!%p190_p3), 48, %s798_s12  ;;  %p233_p4 = scmp.lt.s32.totalorder (!%p190_p3), %s230_s16, 89 }
   0xa   : > { %p241_p5 = scmp.lt.s32.totalorder (!%p190_p3), %s240_s17, 1439 }
   0xc   : > { %s913_s16 = smov (!%p233_p4, %s230_s16), 89  ;;  %s915_s17 = smov (!%p241_p5, %s240_s17), 1439 }
   0xd   : > { %s631_s18 = sshll.u32 %s913_s16, 2  ;;  %s632_s22 = sshll.u32 %s915_s17, 2 }
   0xe   : > { %s854_s21 = scalar_lea.vmem %s904_s0, %s631_s18  ;;  %s859_s25 = scalar_lea.vmem %s905_s1, %s632_s22 }
   0xf   : > { %262 = sbr.rel (%p633_p6) target bundleno = 22 (0x16), region = 36 }
  0x14   : > { %v808_v0 = vmov 0.0  }
  0x15   : > { %263 = vst [vmem:[#allocation2] sm:$0xff] %v808_v0 }
  0x16 PF: > { %v741_v1 = vld [vmem:[%s859_s25 + $0x38] sm:$0xff]  ;;  %v740_v4 = vld [vmem:[%s859_s25 + $0x30] sm:$0xff]  ;;  %v739_v7 = vld [vmem:[%s859_s25 + $0x28] sm:$0xff]  ;;  %p730_p7 = scmp.ne.s32.totalorder %s798_s12, 29 }
  0x17   : > { %v749_v2 = vld [vmem:[%s859_s25 + $0x78] sm:$0xff]  ;;  %468 = vmatpush.bf16.msra.mxu0 %v741_v1  ;;  %v748_v5 = vld [vmem:[%s859_s25 + $0x70] sm:$0xff]  ;;  %v747_v8 = vld [vmem:[%s859_s25 + $0x68] sm:$0xff] }
  0x18   : > { %v757_v3 = vld [vmem:[%s859_s25 + $0xb8] sm:$0xff]  ;;  %481 = vmatpush.bf16.msra.mxu1 %v749_v2  ;;  %v756_v6 = vld [vmem:[%s859_s25 + $0xb0] sm:$0xff]  ;;  %v755_v9 = vld [vmem:[%s859_s25 + $0xa8] sm:$0xff] }
  0x19   : > { %494 = vmatpush.bf16.msra.mxu2 %v757_v3  ;;  %v738_v10 = vld [vmem:[%s859_s25 + $0x20] sm:$0xff]  ;;  %v737_v13 = vld [vmem:[%s859_s25 + $0x18] sm:$0xff]  ;;  %v736_v16 = vld [vmem:[%s859_s25 + $0x10] sm:$0xff] }
  0x1a   : > { %v746_v11 = vld [vmem:[%s859_s25 + $0x60] sm:$0xff]  ;;  %v745_v14 = vld [vmem:[%s859_s25 + $0x58] sm:$0xff]  ;;  %v744_v17 = vld [vmem:[%s859_s25 + $0x50] sm:$0xff] }
  0x1b   : > { %469 = vmatpush.bf16.msra.mxu0 %v740_v4  ;;  %v754_v12 = vld [vmem:[%s859_s25 + $0xa0] sm:$0xff]  ;;  %v753_v15 = vld [vmem:[%s859_s25 + $0x98] sm:$0xff]  ;;  %v752_v19 = vld [vmem:[%s859_s25 + $0x90] sm:$0xff] }
  0x1c   : > { %482 = vmatpush.bf16.msra.mxu1 %v748_v5  ;;  %v264_v18 = vld [vmem:[%s854_s21] sm:$0xff]  ;;  %v265_v20 = vld [vmem:[%s854_s21 + $0x8] sm:$0xf] }
  0x1d   : > { %495 = vmatpush.bf16.msra.mxu2 %v756_v6  ;;  %v266_v21 = vunpack.c.l.bf16 %v264_v18  ;;  %v267_v22 = vunpack.c.h.bf16 %v264_v18  ;;  %v735_v23 = vld [vmem:[%s859_s25 + $0x8] sm:$0xff]  ;;  %v268_v25 = vunpack.c.l.bf16 %v265_v20  ;;  %v734_v29 = vld [vmem:[%s859_s25] sm:$0xff] }
  0x1e   : > { %v743_v24 = vld [vmem:[%s859_s25 + $0x48] sm:$0xff]  ;;  %v742_v30 = vld [vmem:[%s859_s25 + $0x40] sm:$0xff] }
  0x1f   : > { %470 = vmatpush.bf16.msra.mxu0 %v739_v7  ;;  %v751_v26 = vld [vmem:[%s859_s25 + $0x88] sm:$0xff]  ;;  %v269_v27 = vmax.f32 %v266_v21, 0.0  ;;  %v270_v28 = vmax.f32 %v267_v22, 0.0  ;;  %v271_v31 = vmax.f32 %v268_v25, 0.0  ;;  %v750_v32 = vld [vmem:[%s859_s25 + $0x80] sm:$0xff] }
  0x20   : > { %483 = vmatpush.bf16.msra.mxu1 %v747_v8  ;;  %v275_v39 = vld [vmem:[#allocation2] sm:$0xff] }
  0x21   : > { %496 = vmatpush.bf16.msra.mxu2 %v755_v9  ;;  %v272_v33 = vpack.c.bf16 %v269_v27, %v269_v27  ;;  %v273_v34 = vpack.c.bf16 %v270_v28, %v270_v28  ;;  %v274_v35 = vpack.c.bf16 %v271_v31, %v271_v31 }
  0x23   : > { %471 = vmatpush.bf16.msra.mxu0 %v738_v10 }
  0x24   : > { %484 = vmatpush.bf16.msra.mxu1 %v746_v11 }
  0x25   : > { %497 = vmatpush.bf16.msra.mxu2 %v754_v12 }
  0x27   : > { %472 = vmatpush.bf16.msra.mxu0 %v737_v13 }
  0x28   : > { %485 = vmatpush.bf16.msra.mxu1 %v745_v14 }
  0x29   : > { %498 = vmatpush.bf16.msra.mxu2 %v753_v15 }
  0x2b   : > { %473 = vmatpush.bf16.msra.mxu0 %v736_v16 }
  0x2c   : > { %486 = vmatpush.bf16.msra.mxu1 %v744_v17 }
  0x2d   : > { %499 = vmatpush.bf16.msra.mxu2 %v752_v19 }
  0x2f   : > { %474 = vmatpush.bf16.msra.mxu0 %v735_v23 }
  0x30   : > { %487 = vmatpush.bf16.msra.mxu1 %v743_v24 }
  0x31   : > { %500 = vmatpush.bf16.msra.mxu2 %v751_v26 }
  0x33   : > { %475 = vmatpush.bf16.msra.mxu0 %v734_v29 }
  0x34   : > { %488 = vmatpush.bf16.msra.mxu1 %v742_v30 }
  0x35   : > { %501 = vmatpush.bf16.msra.mxu2 %v750_v32 }
  0x36   : > { %476 = vmatmul.bf16.vlgmr.msra.gmra.mxu0 %v272_v33 }
  0x37   : > { %489 = vmatmul.bf16.vlgmr.msra.gmra.mxu1 %v273_v34 }
  0x38   : > { %502 = vmatmul.bf16.vlgmr.msra.gmra.mxu2 %v274_v35 }
  0xb3   : > { %v477_v36 = vpop.f32.mrf.mxu0 }
  0xb4   : > { %v490_v37 = vpop.f32.mrf.mxu1 }
  0xb5   : > { %v491_v38 = vadd.f32 %v490_v37, %v477_v36 }
  0xbb   : > { %v503_v40 = vpop.f32.mrf.mxu2  ;;  %v479_v42 = vpop.f32.mrf.mxu0 }
  0xbc   : > { %v504_v41 = vadd.f32 %v503_v40, %v491_v38  ;;  %v492_v43 = vpop.f32.mrf.mxu1 }
  0xbe   : > { %v507_v44 = vadd.f32 %v504_v41, %v275_v39 }
  0xbf   : > { %512 = sbr.rel (%p730_p7) target bundleno = 205 (0xcd), region = 40 }
  0xc0   : > { %508 = vst [vmem:[#allocation2] sm:$0xff] %v507_v44 }
  0xc3   : > { %v505_v45 = vpop.f32.mrf.mxu2 }
  0xc4   : > { %v783_v47 = vld [vmem:[%s906_s2] ss:$0 sm:$0xff] }
  0xc7   : > { %v513_v46 = vld [vmem:[#allocation2] sm:$0xff] }
  0xc8   : > { %v518_v48 = vadd.f32 %v783_v47, %v513_v46 }
  0xca   : > { %v519_v49 = vpack.c.bf16 %v518_v48, %v518_v48 }
  0xcc   : > { %520 = vst [vmem:[%s907_s3] sm:$0xf] %v519_v49 }
  0xcd PF: > { %s13_s14 = sadd.s32 1, %s806_s14   ;;  %s908_s12 = smov %s802_s13 }
  0xce   : > { %p10_p8 = scmp.ge.s32.totalorder %s13_s14, 32   ;;  %s909_s13 = smov %s911_s15 }
  0xd0   :  { %12 = sbr.rel (!%p10_p8) target bundleno = 2 (0x2), region = 76 }

// kernel: value_encoder_forward.39
= control target key start
LH: loop header
LB: loop body
LE: loop exit
PB: predicated region body
PF: predicated region fallthrough
CT: control target
= control target key end

     0   :  { %s831_s12 = smov 0   ;;  %s833_s13 = smov 0   ;;  %s906_s0 = inlined_call_operand.vmem [shape: bf16[8,11520], index: 0, kind: input, shape index: {}]   ;;  %s907_s1 = inlined_call_operand.vmem [shape: bf16[11520,128], index: 1, kind: input, shape index: {}]   ;;  %s908_s2 = inlined_call_operand.vmem [shape: f32[1,128], index: 2, kind: input, shape index: {}]   ;;  %s909_s3 = inlined_call_operand.vmem [shape: bf16[8,128], index: 3, kind: output, shape index: {}]  }
   0x1   :  { %s835_s14 = smov 0  }
   0x2 LB: > { %s25_s15 = sadd.s32 1, %s804_s13  ;;  %p632_p0 = scmp.ge.s32.totalorder %s808_s14, 1  ;;  %s808_s14 = sphi %s835_s14, %s13_s14   ;;  %s804_s13 = sphi %s833_s13, %s911_s13   ;;  %s800_s12 = sphi %s831_s12, %s910_s12  }
   0x3   : > { %p26_p1 = scmp.ge.s32.totalorder %s25_s15, 30  ;;  %p189_p2 = scmp.lt.s32.totalorder %s808_s14, 31 }
   0x5   : > { %s913_s15 = smov (%p26_p1, %s25_s15), 0  ;;  %p190_p3 = pnand %p632_p0, %p189_p2 }
   0x6   : > { %s230_s16 = smul.u32 (!%p190_p3), 3, %s800_s12  ;;  %p635_p6 = scmp.ne.s32.totalorder (!%p190_p3), %s800_s12, 0 }
   0x7   : > { %193 = sbr.rel (%p190_p3) target bundleno = 205 (0xcd), region = 32 }
   0x8   : > { %s240_s17 = smul.u32 (!%p190_p3), 48, %s800_s12  ;;  %p233_p4 = scmp.lt.s32.totalorder (!%p190_p3), %s230_s16, 89 }
   0xa   : > { %p241_p5 = scmp.lt.s32.totalorder (!%p190_p3), %s240_s17, 1439 }
   0xc   : > { %s915_s16 = smov (!%p233_p4, %s230_s16), 89  ;;  %s917_s17 = smov (!%p241_p5, %s240_s17), 1439 }
   0xd   : > { %s633_s18 = sshll.u32 %s915_s16, 2  ;;  %s634_s22 = sshll.u32 %s917_s17, 2 }
   0xe   : > { %s856_s21 = scalar_lea.vmem %s906_s0, %s633_s18  ;;  %s861_s25 = scalar_lea.vmem %s907_s1, %s634_s22 }
   0xf   : > { %262 = sbr.rel (%p635_p6) target bundleno = 22 (0x16), region = 36 }
  0x14   : > { %v810_v0 = vmov 0.0  }
  0x15   : > { %263 = vst [vmem:[#allocation2] sm:$0xff] %v810_v0 }
  0x16 PF: > { %v743_v1 = vld [vmem:[%s861_s25 + $0x38] sm:$0xff]  ;;  %v742_v4 = vld [vmem:[%s861_s25 + $0x30] sm:$0xff]  ;;  %v741_v7 = vld [vmem:[%s861_s25 + $0x28] sm:$0xff]  ;;  %p732_p7 = scmp.ne.s32.totalorder %s800_s12, 29 }
  0x17   : > { %v751_v2 = vld [vmem:[%s861_s25 + $0x78] sm:$0xff]  ;;  %470 = vmatpush.bf16.msra.mxu0 %v743_v1  ;;  %v750_v5 = vld [vmem:[%s861_s25 + $0x70] sm:$0xff]  ;;  %v749_v8 = vld [vmem:[%s861_s25 + $0x68] sm:$0xff] }
  0x18   : > { %v759_v3 = vld [vmem:[%s861_s25 + $0xb8] sm:$0xff]  ;;  %483 = vmatpush.bf16.msra.mxu1 %v751_v2  ;;  %v758_v6 = vld [vmem:[%s861_s25 + $0xb0] sm:$0xff]  ;;  %v757_v9 = vld [vmem:[%s861_s25 + $0xa8] sm:$0xff] }
  0x19   : > { %496 = vmatpush.bf16.msra.mxu2 %v759_v3  ;;  %v740_v10 = vld [vmem:[%s861_s25 + $0x20] sm:$0xff]  ;;  %v739_v13 = vld [vmem:[%s861_s25 + $0x18] sm:$0xff]  ;;  %v738_v16 = vld [vmem:[%s861_s25 + $0x10] sm:$0xff] }
  0x1a   : > { %v748_v11 = vld [vmem:[%s861_s25 + $0x60] sm:$0xff]  ;;  %v747_v14 = vld [vmem:[%s861_s25 + $0x58] sm:$0xff]  ;;  %v746_v17 = vld [vmem:[%s861_s25 + $0x50] sm:$0xff] }
  0x1b   : > { %471 = vmatpush.bf16.msra.mxu0 %v742_v4  ;;  %v756_v12 = vld [vmem:[%s861_s25 + $0xa0] sm:$0xff]  ;;  %v755_v15 = vld [vmem:[%s861_s25 + $0x98] sm:$0xff]  ;;  %v754_v18 = vld [vmem:[%s861_s25 + $0x90] sm:$0xff] }
  0x1c   : > { %484 = vmatpush.bf16.msra.mxu1 %v750_v5  ;;  %v737_v19 = vld [vmem:[%s861_s25 + $0x8] sm:$0xff]  ;;  %v264_v21 = vld [vmem:[%s856_s21] sm:$0xff] }
  0x1d   : > { %497 = vmatpush.bf16.msra.mxu2 %v758_v6  ;;  %v745_v20 = vld [vmem:[%s861_s25 + $0x48] sm:$0xff]  ;;  %v317_v24 = vunpack.c.l.b16 %v264_v21  ;;  %v318_v25 = vunpack.c.h.b16 %v264_v21  ;;  %v736_v26 = vld [vmem:[%s861_s25] sm:$0xff] }
  0x1e   : > { %v753_v22 = vld [vmem:[%s861_s25 + $0x88] sm:$0xff]  ;;  %v744_v27 = vld [vmem:[%s861_s25 + $0x40] sm:$0xff] }
  0x1f   : > { %472 = vmatpush.bf16.msra.mxu0 %v741_v7  ;;  %v265_v23 = vld [vmem:[%s856_s21 + $0x8] sm:$0xf]  ;;  %v752_v29 = vld [vmem:[%s861_s25 + $0x80] sm:$0xff]  ;;  %v320_v30 = vpack.c.b16 %v317_v24, %v317_v24  ;;  %v321_v31 = vpack.c.b16 %v318_v25, %v318_v25 }
  0x20   : > { %485 = vmatpush.bf16.msra.mxu1 %v749_v8  ;;  %v319_v28 = vunpack.c.l.b16 %v265_v23  ;;  %v266_v36 = vld [vmem:[#allocation2] sm:$0xff] }
  0x21   : > { %498 = vmatpush.bf16.msra.mxu2 %v757_v9 }
  0x22   : > { %v322_v32 = vpack.c.b16 %v319_v28, %v319_v28 }
  0x23   : > { %473 = vmatpush.bf16.msra.mxu0 %v740_v10 }
  0x24   : > { %486 = vmatpush.bf16.msra.mxu1 %v748_v11 }
  0x25   : > { %499 = vmatpush.bf16.msra.mxu2 %v756_v12 }
  0x27   : > { %474 = vmatpush.bf16.msra.mxu0 %v739_v13 }
  0x28   : > { %487 = vmatpush.bf16.msra.mxu1 %v747_v14 }
  0x29   : > { %500 = vmatpush.bf16.msra.mxu2 %v755_v15 }
  0x2b   : > { %475 = vmatpush.bf16.msra.mxu0 %v738_v16 }
  0x2c   : > { %488 = vmatpush.bf16.msra.mxu1 %v746_v17 }
  0x2d   : > { %501 = vmatpush.bf16.msra.mxu2 %v754_v18 }
  0x2f   : > { %476 = vmatpush.bf16.msra.mxu0 %v737_v19 }
  0x30   : > { %489 = vmatpush.bf16.msra.mxu1 %v745_v20 }
  0x31   : > { %502 = vmatpush.bf16.msra.mxu2 %v753_v22 }
  0x33   : > { %477 = vmatpush.bf16.msra.mxu0 %v736_v26 }
  0x34   : > { %490 = vmatpush.bf16.msra.mxu1 %v744_v27 }
  0x35   : > { %503 = vmatpush.bf16.msra.mxu2 %v752_v29 }
  0x36   : > { %478 = vmatmul.bf16.vlgmr.msra.gmra.mxu0 %v320_v30 }
  0x37   : > { %491 = vmatmul.bf16.vlgmr.msra.gmra.mxu1 %v321_v31 }
  0x38   : > { %504 = vmatmul.bf16.vlgmr.msra.gmra.mxu2 %v322_v32 }
  0xb3   : > { %v479_v33 = vpop.f32.mrf.mxu0 }
  0xb4   : > { %v492_v34 = vpop.f32.mrf.mxu1 }
  0xb5   : > { %v493_v35 = vadd.f32 %v492_v34, %v479_v33 }
  0xbb   : > { %v505_v37 = vpop.f32.mrf.mxu2  ;;  %v481_v39 = vpop.f32.mrf.mxu0 }
  0xbc   : > { %v506_v38 = vadd.f32 %v505_v37, %v493_v35  ;;  %v494_v40 = vpop.f32.mrf.mxu1 }
  0xbe   : > { %v509_v41 = vadd.f32 %v506_v38, %v266_v36 }
  0xbf   : > { %514 = sbr.rel (%p732_p7) target bundleno = 205 (0xcd), region = 40 }
  0xc0   : > { %510 = vst [vmem:[#allocation2] sm:$0xff] %v509_v41 }
  0xc3   : > { %v507_v42 = vpop.f32.mrf.mxu2 }
  0xc4   : > { %v785_v44 = vld [vmem:[%s908_s2] ss:$0 sm:$0xff] }
  0xc7   : > { %v515_v43 = vld [vmem:[#allocation2] sm:$0xff] }
  0xc8   : > { %v520_v45 = vadd.f32 %v785_v44, %v515_v43 }
  0xca   : > { %v521_v46 = vpack.c.bf16 %v520_v45, %v520_v45 }
  0xcc   : > { %522 = vst [vmem:[%s909_s3] sm:$0xf] %v521_v46 }
  0xcd PF: > { %s13_s14 = sadd.s32 1, %s808_s14   ;;  %s910_s12 = smov %s804_s13 }
  0xce   : > { %p10_p8 = scmp.ge.s32.totalorder %s13_s14, 32   ;;  %s911_s13 = smov %s913_s15 }
  0xd0   :  { %12 = sbr.rel (!%p10_p8) target bundleno = 2 (0x2), region = 76 }

// kernel: value_encoder_forward.40
= control target key start
LH: loop header
LB: loop body
LE: loop exit
PB: predicated region body
PF: predicated region fallthrough
CT: control target
= control target key end

     0   :  { %s518_s1 = inlined_call_operand.vmem [shape: bf16[384,128], index: 1, kind: input, shape index: {}]   ;;  %s519_s0 = inlined_call_operand.vmem [shape: bf16[8,384], index: 0, kind: input, shape index: {}]   ;;  %s520_s2 = inlined_call_operand.vmem [shape: f32[1,128], index: 2, kind: input, shape index: {}]   ;;  %s521_s3 = inlined_call_operand.vmem [shape: bf16[8,128], index: 3, kind: input, shape index: {}]   ;;  %s522_s4 = inlined_call_operand.vmem [shape: bf16[8,128], index: 4, kind: output, shape index: {}]  }
   0x1   :  { %v388_v0 = vld [vmem:[%s518_s1 + $0x38] sm:$0xff]  ;;  %v387_v3 = vld [vmem:[%s518_s1 + $0x30] sm:$0xff]  ;;  %v386_v6 = vld [vmem:[%s518_s1 + $0x28] sm:$0xff] }
   0x2   :  { %v396_v1 = vld [vmem:[%s518_s1 + $0x78] sm:$0xff]  ;;  %226 = vmatpush.bf16.msra.mxu0 %v388_v0  ;;  %v395_v4 = vld [vmem:[%s518_s1 + $0x70] sm:$0xff]  ;;  %v394_v7 = vld [vmem:[%s518_s1 + $0x68] sm:$0xff] }
   0x3   :  { %v404_v2 = vld [vmem:[%s518_s1 + $0xb8] sm:$0xff]  ;;  %239 = vmatpush.bf16.msra.mxu1 %v396_v1  ;;  %v403_v5 = vld [vmem:[%s518_s1 + $0xb0] sm:$0xff]  ;;  %v402_v8 = vld [vmem:[%s518_s1 + $0xa8] sm:$0xff] }
   0x4   :  { %252 = vmatpush.bf16.msra.mxu2 %v404_v2  ;;  %v385_v9 = vld [vmem:[%s518_s1 + $0x20] sm:$0xff]  ;;  %v384_v12 = vld [vmem:[%s518_s1 + $0x18] sm:$0xff]  ;;  %v383_v15 = vld [vmem:[%s518_s1 + $0x10] sm:$0xff] }
   0x5   :  { %v393_v10 = vld [vmem:[%s518_s1 + $0x60] sm:$0xff]  ;;  %v392_v13 = vld [vmem:[%s518_s1 + $0x58] sm:$0xff]  ;;  %v391_v16 = vld [vmem:[%s518_s1 + $0x50] sm:$0xff] }
   0x6   :  { %227 = vmatpush.bf16.msra.mxu0 %v387_v3  ;;  %v401_v11 = vld [vmem:[%s518_s1 + $0xa0] sm:$0xff]  ;;  %v400_v14 = vld [vmem:[%s518_s1 + $0x98] sm:$0xff]  ;;  %v399_v18 = vld [vmem:[%s518_s1 + $0x90] sm:$0xff] }
   0x7   :  { %240 = vmatpush.bf16.msra.mxu1 %v395_v4  ;;  %v22_v17 = vld [vmem:[%s519_s0] sm:$0xff]  ;;  %v23_v19 = vld [vmem:[%s519_s0 + $0x8] sm:$0xf] }
   0x8   :  { %253 = vmatpush.bf16.msra.mxu2 %v403_v5  ;;  %v24_v20 = vunpack.c.l.bf16 %v22_v17  ;;  %v25_v21 = vunpack.c.h.bf16 %v22_v17  ;;  %v382_v22 = vld [vmem:[%s518_s1 + $0x8] sm:$0xff]  ;;  %v26_v24 = vunpack.c.l.bf16 %v23_v19  ;;  %v381_v28 = vld [vmem:[%s518_s1] sm:$0xff] }
   0x9   :  { %v390_v23 = vld [vmem:[%s518_s1 + $0x48] sm:$0xff]  ;;  %v389_v29 = vld [vmem:[%s518_s1 + $0x40] sm:$0xff] }
   0xa   :  { %228 = vmatpush.bf16.msra.mxu0 %v386_v6  ;;  %v398_v25 = vld [vmem:[%s518_s1 + $0x88] sm:$0xff]  ;;  %v27_v26 = vmax.f32 %v24_v20, 0.0  ;;  %v28_v27 = vmax.f32 %v25_v21, 0.0  ;;  %v29_v30 = vmax.f32 %v26_v24, 0.0  ;;  %v397_v31 = vld [vmem:[%s518_s1 + $0x80] sm:$0xff] }
   0xb   :  { %241 = vmatpush.bf16.msra.mxu1 %v394_v7  ;;  %v276_v38 = vld [vmem:[%s521_s3] sm:$0xf] }
   0xc   :  { %254 = vmatpush.bf16.msra.mxu2 %v402_v8  ;;  %v30_v32 = vpack.c.bf16 %v27_v26, %v27_v26  ;;  %v31_v33 = vpack.c.bf16 %v28_v27, %v28_v27  ;;  %v32_v34 = vpack.c.bf16 %v29_v30, %v29_v30  ;;  %v405_v39 = vld [vmem:[%s520_s2] ss:$0 sm:$0xff]  ;;  %v277_v42 = vunpack.c.l.bf16 %v276_v38 }
   0xe   :  { %229 = vmatpush.bf16.msra.mxu0 %v385_v9 }
   0xf   :  { %242 = vmatpush.bf16.msra.mxu1 %v393_v10 }
  0x10   :  { %255 = vmatpush.bf16.msra.mxu2 %v401_v11 }
  0x12   :  { %230 = vmatpush.bf16.msra.mxu0 %v384_v12 }
  0x13   :  { %243 = vmatpush.bf16.msra.mxu1 %v392_v13 }
  0x14   :  { %256 = vmatpush.bf16.msra.mxu2 %v400_v14 }
  0x16   :  { %231 = vmatpush.bf16.msra.mxu0 %v383_v15 }
  0x17   :  { %244 = vmatpush.bf16.msra.mxu1 %v391_v16 }
  0x18   :  { %257 = vmatpush.bf16.msra.mxu2 %v399_v18 }
  0x1a   :  { %232 = vmatpush.bf16.msra.mxu0 %v382_v22 }
  0x1b   :  { %245 = vmatpush.bf16.msra.mxu1 %v390_v23 }
  0x1c   :  { %258 = vmatpush.bf16.msra.mxu2 %v398_v25 }
  0x1e   :  { %233 = vmatpush.bf16.msra.mxu0 %v381_v28 }
  0x1f   :  { %246 = vmatpush.bf16.msra.mxu1 %v389_v29 }
  0x20   :  { %259 = vmatpush.bf16.msra.mxu2 %v397_v31 }
  0x21   :  { %234 = vmatmul.bf16.vlgmr.msra.gmra.mxu0 %v30_v32 }
  0x22   :  { %247 = vmatmul.bf16.vlgmr.msra.gmra.mxu1 %v31_v33 }
  0x23   :  { %260 = vmatmul.bf16.vlgmr.msra.gmra.mxu2 %v32_v34 }
  0x9e   :  { %v235_v35 = vpop.f32.mrf.mxu0 }
  0x9f   :  { %v248_v36 = vpop.f32.mrf.mxu1 }
  0xa0   :  { %v249_v37 = vadd.f32 %v248_v36, %v235_v35 }
  0xa6   :  { %v261_v40 = vpop.f32.mrf.mxu2  ;;  %v237_v43 = vpop.f32.mrf.mxu0 }
  0xa7   :  { %v262_v41 = vadd.f32 %v261_v40, %v249_v37  ;;  %v250_v44 = vpop.f32.mrf.mxu1 }
  0xa9   :  { %v275_v45 = vadd.f32 %v405_v39, %v262_v41 }
  0xab   :  { %v278_v46 = vadd.f32 %v277_v42, %v275_v45 }
  0xad   :  { %v279_v47 = vpack.c.bf16 %v278_v46, %v278_v46 }
  0xae   :  { %v263_v48 = vpop.f32.mrf.mxu2 }
  0xaf   :  { %280 = vst [vmem:[%s522_s4] sm:$0xf] %v279_v47 }

// kernel: value_encoder_forward.41
= control target key start
LH: loop header
LB: loop body
LE: loop exit
PB: predicated region body
PF: predicated region fallthrough
CT: control target
= control target key end

     0   :  { %s225_s1 = inlined_call_operand.vmem [shape: bf16[128,128], index: 1, kind: input, shape index: {}]   ;;  %s226_s2 = inlined_call_operand.vmem [shape: f32[1,128], index: 2, kind: input, shape index: {}]   ;;  %s227_s3 = inlined_call_operand.vmem [shape: f32[1,128], index: 3, kind: input, shape index: {}]   ;;  %s228_s0 = inlined_call_operand.vmem [shape: bf16[8,128], index: 0, kind: input, shape index: {}]   ;;  %s229_s4 = inlined_call_operand.vmem [shape: f32[8,128], index: 4, kind: output, shape index: {}]  }
   0x1   :  { %v161_v0 = vld [vmem:[%s225_s1 + $0x38] sm:$0xff]  ;;  %v160_v1 = vld [vmem:[%s225_s1 + $0x30] sm:$0xff]  ;;  %v159_v2 = vld [vmem:[%s225_s1 + $0x28] sm:$0xff] }
   0x2   :  { %88 = vmatpush.bf16.msra.mxu0 %v161_v0  ;;  %v158_v3 = vld [vmem:[%s225_s1 + $0x20] sm:$0xff]  ;;  %v157_v4 = vld [vmem:[%s225_s1 + $0x18] sm:$0xff]  ;;  %v156_v5 = vld [vmem:[%s225_s1 + $0x10] sm:$0xff] }
   0x3   :  { %v155_v6 = vld [vmem:[%s225_s1 + $0x8] sm:$0xff]  ;;  %v154_v7 = vld [vmem:[%s225_s1] sm:$0xff] }
   0x4   :  { %v22_v8 = vld [vmem:[%s228_s0] sm:$0xf] }
   0x5   :  { %v162_v9 = vld [vmem:[%s226_s2] ss:$0 sm:$0xff] }
   0x6   :  { %89 = vmatpush.bf16.msra.mxu0 %v160_v1  ;;  %v163_v10 = vld [vmem:[%s227_s3] ss:$0 sm:$0xff] }
   0xa   :  { %90 = vmatpush.bf16.msra.mxu0 %v159_v2 }
   0xe   :  { %91 = vmatpush.bf16.msra.mxu0 %v158_v3 }
  0x12   :  { %92 = vmatpush.bf16.msra.mxu0 %v157_v4 }
  0x16   :  { %93 = vmatpush.bf16.msra.mxu0 %v156_v5 }
  0x1a   :  { %94 = vmatpush.bf16.msra.mxu0 %v155_v6 }
  0x1e   :  { %95 = vmatpush.bf16.msra.mxu0 %v154_v7 }
  0x21   :  { %96 = vmatmul.bf16.vlgmr.msra.gmra.mxu0 %v22_v8 }
  0x9e   :  { %v97_v11 = vpop.f32.mrf.mxu0 }
  0x9f   :  { %v111_v12 = vmul.f32 %v162_v9, %v97_v11 }
  0xa1   :  { %v116_v13 = vadd.f32 %v163_v10, %v111_v12 }
  0xa3   :  { %117 = vst [vmem:[%s229_s4] sm:$0xff] %v116_v13 }
  0xa6   :  { %v99_v14 = vpop.f32.mrf.mxu0 }

// kernel: value_encoder_forward.43
= control target key start
LH: loop header
LB: loop body
LE: loop exit
PB: predicated region body
PF: predicated region fallthrough
CT: control target
= control target key end

     0   :  { %s517_s1 = inlined_call_operand.vmem [shape: bf16[384,128], index: 1, kind: input, shape index: {}]   ;;  %s518_s0 = inlined_call_operand.vmem [shape: bf16[8,384], index: 0, kind: input, shape index: {}]   ;;  %s519_s2 = inlined_call_operand.vmem [shape: f32[1,128], index: 2, kind: input, shape index: {}]   ;;  %s520_s3 = inlined_call_operand.vmem [shape: bf16[8,128], index: 3, kind: input, shape index: {}]   ;;  %s521_s4 = inlined_call_operand.vmem [shape: f32[8,128], index: 4, kind: output, shape index: {}]  }
   0x1   :  { %v387_v0 = vld [vmem:[%s517_s1 + $0x38] sm:$0xff]  ;;  %v386_v3 = vld [vmem:[%s517_s1 + $0x30] sm:$0xff]  ;;  %v385_v6 = vld [vmem:[%s517_s1 + $0x28] sm:$0xff] }
   0x2   :  { %v395_v1 = vld [vmem:[%s517_s1 + $0x78] sm:$0xff]  ;;  %226 = vmatpush.bf16.msra.mxu0 %v387_v0  ;;  %v394_v4 = vld [vmem:[%s517_s1 + $0x70] sm:$0xff]  ;;  %v393_v7 = vld [vmem:[%s517_s1 + $0x68] sm:$0xff] }
   0x3   :  { %v403_v2 = vld [vmem:[%s517_s1 + $0xb8] sm:$0xff]  ;;  %239 = vmatpush.bf16.msra.mxu1 %v395_v1  ;;  %v402_v5 = vld [vmem:[%s517_s1 + $0xb0] sm:$0xff]  ;;  %v401_v8 = vld [vmem:[%s517_s1 + $0xa8] sm:$0xff] }
   0x4   :  { %252 = vmatpush.bf16.msra.mxu2 %v403_v2  ;;  %v384_v9 = vld [vmem:[%s517_s1 + $0x20] sm:$0xff]  ;;  %v383_v12 = vld [vmem:[%s517_s1 + $0x18] sm:$0xff]  ;;  %v382_v15 = vld [vmem:[%s517_s1 + $0x10] sm:$0xff] }
   0x5   :  { %v392_v10 = vld [vmem:[%s517_s1 + $0x60] sm:$0xff]  ;;  %v391_v13 = vld [vmem:[%s517_s1 + $0x58] sm:$0xff]  ;;  %v390_v16 = vld [vmem:[%s517_s1 + $0x50] sm:$0xff] }
   0x6   :  { %227 = vmatpush.bf16.msra.mxu0 %v386_v3  ;;  %v400_v11 = vld [vmem:[%s517_s1 + $0xa0] sm:$0xff]  ;;  %v399_v14 = vld [vmem:[%s517_s1 + $0x98] sm:$0xff]  ;;  %v398_v18 = vld [vmem:[%s517_s1 + $0x90] sm:$0xff] }
   0x7   :  { %240 = vmatpush.bf16.msra.mxu1 %v394_v4  ;;  %v22_v17 = vld [vmem:[%s518_s0] sm:$0xff]  ;;  %v23_v19 = vld [vmem:[%s518_s0 + $0x8] sm:$0xf] }
   0x8   :  { %253 = vmatpush.bf16.msra.mxu2 %v402_v5  ;;  %v24_v20 = vunpack.c.l.bf16 %v22_v17  ;;  %v25_v21 = vunpack.c.h.bf16 %v22_v17  ;;  %v381_v22 = vld [vmem:[%s517_s1 + $0x8] sm:$0xff]  ;;  %v26_v24 = vunpack.c.l.bf16 %v23_v19  ;;  %v380_v28 = vld [vmem:[%s517_s1] sm:$0xff] }
   0x9   :  { %v389_v23 = vld [vmem:[%s517_s1 + $0x48] sm:$0xff]  ;;  %v388_v29 = vld [vmem:[%s517_s1 + $0x40] sm:$0xff] }
   0xa   :  { %228 = vmatpush.bf16.msra.mxu0 %v385_v6  ;;  %v397_v25 = vld [vmem:[%s517_s1 + $0x88] sm:$0xff]  ;;  %v27_v26 = vmax.f32 %v24_v20, 0.0  ;;  %v28_v27 = vmax.f32 %v25_v21, 0.0  ;;  %v29_v30 = vmax.f32 %v26_v24, 0.0  ;;  %v396_v31 = vld [vmem:[%s517_s1 + $0x80] sm:$0xff] }
   0xb   :  { %241 = vmatpush.bf16.msra.mxu1 %v393_v7  ;;  %v276_v38 = vld [vmem:[%s520_s3] sm:$0xf] }
   0xc   :  { %254 = vmatpush.bf16.msra.mxu2 %v401_v8  ;;  %v30_v32 = vpack.c.bf16 %v27_v26, %v27_v26  ;;  %v31_v33 = vpack.c.bf16 %v28_v27, %v28_v27  ;;  %v32_v34 = vpack.c.bf16 %v29_v30, %v29_v30  ;;  %v404_v39 = vld [vmem:[%s519_s2] ss:$0 sm:$0xff]  ;;  %v277_v42 = vunpack.c.l.bf16 %v276_v38 }
   0xe   :  { %229 = vmatpush.bf16.msra.mxu0 %v384_v9 }
   0xf   :  { %242 = vmatpush.bf16.msra.mxu1 %v392_v10 }
  0x10   :  { %255 = vmatpush.bf16.msra.mxu2 %v400_v11 }
  0x12   :  { %230 = vmatpush.bf16.msra.mxu0 %v383_v12 }
  0x13   :  { %243 = vmatpush.bf16.msra.mxu1 %v391_v13 }
  0x14   :  { %256 = vmatpush.bf16.msra.mxu2 %v399_v14 }
  0x16   :  { %231 = vmatpush.bf16.msra.mxu0 %v382_v15 }
  0x17   :  { %244 = vmatpush.bf16.msra.mxu1 %v390_v16 }
  0x18   :  { %257 = vmatpush.bf16.msra.mxu2 %v398_v18 }
  0x1a   :  { %232 = vmatpush.bf16.msra.mxu0 %v381_v22 }
  0x1b   :  { %245 = vmatpush.bf16.msra.mxu1 %v389_v23 }
  0x1c   :  { %258 = vmatpush.bf16.msra.mxu2 %v397_v25 }
  0x1e   :  { %233 = vmatpush.bf16.msra.mxu0 %v380_v28 }
  0x1f   :  { %246 = vmatpush.bf16.msra.mxu1 %v388_v29 }
  0x20   :  { %259 = vmatpush.bf16.msra.mxu2 %v396_v31 }
  0x21   :  { %234 = vmatmul.bf16.vlgmr.msra.gmra.mxu0 %v30_v32 }
  0x22   :  { %247 = vmatmul.bf16.vlgmr.msra.gmra.mxu1 %v31_v33 }
  0x23   :  { %260 = vmatmul.bf16.vlgmr.msra.gmra.mxu2 %v32_v34 }
  0x9e   :  { %v235_v35 = vpop.f32.mrf.mxu0 }
  0x9f   :  { %v248_v36 = vpop.f32.mrf.mxu1 }
  0xa0   :  { %v249_v37 = vadd.f32 %v248_v36, %v235_v35 }
  0xa6   :  { %v261_v40 = vpop.f32.mrf.mxu2  ;;  %v237_v43 = vpop.f32.mrf.mxu0 }
  0xa7   :  { %v262_v41 = vadd.f32 %v261_v40, %v249_v37  ;;  %v250_v44 = vpop.f32.mrf.mxu1 }
  0xa9   :  { %v275_v45 = vadd.f32 %v404_v39, %v262_v41 }
  0xab   :  { %v278_v46 = vadd.f32 %v277_v42, %v275_v45 }
  0xad   :  { %279 = vst [vmem:[%s521_s4] sm:$0xff] %v278_v46 }
  0xae   :  { %v263_v47 = vpop.f32.mrf.mxu2 }

// kernel: value_encoder_forward.42
= control target key start
LH: loop header
LB: loop body
LE: loop exit
PB: predicated region body
PF: predicated region fallthrough
CT: control target
= control target key end

     0   :  { %s504_s1 = inlined_call_operand.vmem [shape: bf16[384,128], index: 1, kind: input, shape index: {}]   ;;  %s505_s0 = inlined_call_operand.vmem [shape: bf16[8,384], index: 0, kind: input, shape index: {}]   ;;  %s506_s2 = inlined_call_operand.vmem [shape: f32[1,128], index: 2, kind: input, shape index: {}]   ;;  %s507_s3 = inlined_call_operand.vmem [shape: bf16[8,128], index: 3, kind: output, shape index: {}]  }
   0x1   :  { %v382_v0 = vld [vmem:[%s504_s1 + $0x38] sm:$0xff]  ;;  %v381_v3 = vld [vmem:[%s504_s1 + $0x30] sm:$0xff]  ;;  %v380_v6 = vld [vmem:[%s504_s1 + $0x28] sm:$0xff] }
   0x2   :  { %v390_v1 = vld [vmem:[%s504_s1 + $0x78] sm:$0xff]  ;;  %223 = vmatpush.bf16.msra.mxu0 %v382_v0  ;;  %v389_v4 = vld [vmem:[%s504_s1 + $0x70] sm:$0xff]  ;;  %v388_v7 = vld [vmem:[%s504_s1 + $0x68] sm:$0xff] }
   0x3   :  { %v398_v2 = vld [vmem:[%s504_s1 + $0xb8] sm:$0xff]  ;;  %236 = vmatpush.bf16.msra.mxu1 %v390_v1  ;;  %v397_v5 = vld [vmem:[%s504_s1 + $0xb0] sm:$0xff]  ;;  %v396_v8 = vld [vmem:[%s504_s1 + $0xa8] sm:$0xff] }
   0x4   :  { %249 = vmatpush.bf16.msra.mxu2 %v398_v2  ;;  %v379_v9 = vld [vmem:[%s504_s1 + $0x20] sm:$0xff]  ;;  %v378_v12 = vld [vmem:[%s504_s1 + $0x18] sm:$0xff]  ;;  %v377_v15 = vld [vmem:[%s504_s1 + $0x10] sm:$0xff] }
   0x5   :  { %v387_v10 = vld [vmem:[%s504_s1 + $0x60] sm:$0xff]  ;;  %v386_v13 = vld [vmem:[%s504_s1 + $0x58] sm:$0xff]  ;;  %v385_v16 = vld [vmem:[%s504_s1 + $0x50] sm:$0xff] }
   0x6   :  { %224 = vmatpush.bf16.msra.mxu0 %v381_v3  ;;  %v395_v11 = vld [vmem:[%s504_s1 + $0xa0] sm:$0xff]  ;;  %v394_v14 = vld [vmem:[%s504_s1 + $0x98] sm:$0xff]  ;;  %v393_v18 = vld [vmem:[%s504_s1 + $0x90] sm:$0xff] }
   0x7   :  { %237 = vmatpush.bf16.msra.mxu1 %v389_v4  ;;  %v19_v17 = vld [vmem:[%s505_s0] sm:$0xff]  ;;  %v20_v19 = vld [vmem:[%s505_s0 + $0x8] sm:$0xf] }
   0x8   :  { %250 = vmatpush.bf16.msra.mxu2 %v397_v5  ;;  %v21_v20 = vunpack.c.l.bf16 %v19_v17  ;;  %v22_v21 = vunpack.c.h.bf16 %v19_v17  ;;  %v376_v22 = vld [vmem:[%s504_s1 + $0x8] sm:$0xff]  ;;  %v23_v24 = vunpack.c.l.bf16 %v20_v19  ;;  %v375_v28 = vld [vmem:[%s504_s1] sm:$0xff] }
   0x9   :  { %v384_v23 = vld [vmem:[%s504_s1 + $0x48] sm:$0xff]  ;;  %v383_v29 = vld [vmem:[%s504_s1 + $0x40] sm:$0xff] }
   0xa   :  { %225 = vmatpush.bf16.msra.mxu0 %v380_v6  ;;  %v392_v25 = vld [vmem:[%s504_s1 + $0x88] sm:$0xff]  ;;  %v24_v26 = vmax.f32 %v21_v20, 0.0  ;;  %v25_v27 = vmax.f32 %v22_v21, 0.0  ;;  %v26_v30 = vmax.f32 %v23_v24, 0.0  ;;  %v391_v31 = vld [vmem:[%s504_s1 + $0x80] sm:$0xff] }
   0xb   :  { %238 = vmatpush.bf16.msra.mxu1 %v388_v7  ;;  %v399_v38 = vld [vmem:[%s506_s2] ss:$0 sm:$0xff] }
   0xc   :  { %251 = vmatpush.bf16.msra.mxu2 %v396_v8  ;;  %v27_v32 = vpack.c.bf16 %v24_v26, %v24_v26  ;;  %v28_v33 = vpack.c.bf16 %v25_v27, %v25_v27  ;;  %v29_v34 = vpack.c.bf16 %v26_v30, %v26_v30 }
   0xe   :  { %226 = vmatpush.bf16.msra.mxu0 %v379_v9 }
   0xf   :  { %239 = vmatpush.bf16.msra.mxu1 %v387_v10 }
  0x10   :  { %252 = vmatpush.bf16.msra.mxu2 %v395_v11 }
  0x12   :  { %227 = vmatpush.bf16.msra.mxu0 %v378_v12 }
  0x13   :  { %240 = vmatpush.bf16.msra.mxu1 %v386_v13 }
  0x14   :  { %253 = vmatpush.bf16.msra.mxu2 %v394_v14 }
  0x16   :  { %228 = vmatpush.bf16.msra.mxu0 %v377_v15 }
  0x17   :  { %241 = vmatpush.bf16.msra.mxu1 %v385_v16 }
  0x18   :  { %254 = vmatpush.bf16.msra.mxu2 %v393_v18 }
  0x1a   :  { %229 = vmatpush.bf16.msra.mxu0 %v376_v22 }
  0x1b   :  { %242 = vmatpush.bf16.msra.mxu1 %v384_v23 }
  0x1c   :  { %255 = vmatpush.bf16.msra.mxu2 %v392_v25 }
  0x1e   :  { %230 = vmatpush.bf16.msra.mxu0 %v375_v28 }
  0x1f   :  { %243 = vmatpush.bf16.msra.mxu1 %v383_v29 }
  0x20   :  { %256 = vmatpush.bf16.msra.mxu2 %v391_v31 }
  0x21   :  { %231 = vmatmul.bf16.vlgmr.msra.gmra.mxu0 %v27_v32 }
  0x22   :  { %244 = vmatmul.bf16.vlgmr.msra.gmra.mxu1 %v28_v33 }
  0x23   :  { %257 = vmatmul.bf16.vlgmr.msra.gmra.mxu2 %v29_v34 }
  0x9e   :  { %v232_v35 = vpop.f32.mrf.mxu0 }
  0x9f   :  { %v245_v36 = vpop.f32.mrf.mxu1 }
  0xa0   :  { %v246_v37 = vadd.f32 %v245_v36, %v232_v35 }
  0xa6   :  { %v258_v39 = vpop.f32.mrf.mxu2  ;;  %v234_v41 = vpop.f32.mrf.mxu0 }
  0xa7   :  { %v259_v40 = vadd.f32 %v258_v39, %v246_v37  ;;  %v247_v42 = vpop.f32.mrf.mxu1 }
  0xa9   :  { %v272_v43 = vadd.f32 %v399_v38, %v259_v40 }
  0xab   :  { %v273_v44 = vpack.c.bf16 %v272_v43, %v272_v43 }
  0xad   :  { %274 = vst [vmem:[%s507_s3] sm:$0xf] %v273_v44 }
  0xae   :  { %v260_v45 = vpop.f32.mrf.mxu2 }

// kernel: value_encoder_forward.45
= control target key start
LH: loop header
LB: loop body
LE: loop exit
PB: predicated region body
PF: predicated region fallthrough
CT: control target
= control target key end

     0   :  { %s164_s0 = inlined_call_operand.vmem [shape: f32[8,16], index: 0, kind: input, shape index: {}]   ;;  %s165_s1 = inlined_call_operand.vmem [shape: f32[8,16], index: 1, kind: input, shape index: {}]   ;;  %s166_s2 = inlined_call_operand.vmem [shape: f32[8,16], index: 2, kind: input, shape index: {}]   ;;  %s167_s3 = inlined_call_operand.vmem [shape: f32[8,16], index: 3, kind: input, shape index: {}]   ;;  %s168_s4 = inlined_call_operand.hbm [shape: f32[8,16], index: 4, kind: output, shape index: {}]  }
   0x1   :  { %v18_v0 = vld [vmem:[%s164_s0] sm:$0xff] }
   0x2   :  { %v38_v1 = vld [vmem:[%s165_s1] sm:$0xff]  ;;  %v84_v2 = vmul.f32 -1.442695, %v18_v0 }
   0x3   :  { %v85_v3 = vmul.f32 -1.442695, %v38_v1 }
   0x4   :  { %9 = vsyncpa [#allocation3], 0  ;;  %87 = vpow2.f32 %v84_v2  ;;  %v58_v8 = vld [vmem:[%s166_s2] sm:$0xff]  ;;  %s123_s2 = smov [#allocation2]   ;;  %s75_s24 = sshll.u32 %s168_s4, 4  ;;  %vm66_vm8 = vcmask 130048   ;;  %s76_s24 = int_to_ptr.hbm [resolvable:$true] %s75_s24 }
   0x5   :  { %89 = vpow2.f32 %v85_v3  ;;  %v60_v26 = vld [vmem:[%s167_s3] sm:$0xff]  ;;  %s73_s21 = sshll.u32 %s123_s2, 4  ;;  %s74_s21 = int_to_ptr.vmem [resolvable:$true] %s73_s21 }
   0xa   :  { %v88_v4 = vpop.eup %87 }
   0xb   :  { %v90_v5 = vpop.eup %89  ;;  %v22_v6 = vadd.f32 1.0, %v88_v4 }
   0xc   :  { %v42_v7 = vadd.f32 1.0, %v90_v5 }
   0xd   :  { %91 = vrcp.f32 %v22_v6  ;;  %vm28_vm0 = vweird.f32 %v22_v6  ;;  %v34_v12 = vand.u32 2147483648, %v22_v6  ;;  %v32_v15 = vand.u32 2147483647, %v22_v6 }
   0xe   :  { %93 = vrcp.f32 %v42_v7  ;;  %v54_v16 = vand.u32 2147483648, %v42_v7  ;;  %vm48_vm2 = vweird.f32 %v42_v7  ;;  %v52_v18 = vand.u32 2147483647, %v42_v7 }
   0xf   :  { %95 = vtanh.f32 %v58_v8  ;;  %v35_v20 = vor.u32 1.1754944e-38, %v34_v12  ;;  %vm33_vm5 = vcmp.eq.f32.partialorder %v32_v15, 8.507059e+37 }
  0x10   :  { %v55_v23 = vor.u32 1.1754944e-38, %v54_v16  ;;  %vm53_vm7 = vcmp.eq.f32.partialorder %v52_v18, 8.507059e+37 }
  0x13   :  { %v92_v9 = vpop.eup %91 }
  0x14   :  { %v94_v10 = vpop.eup %93  ;;  %v24_v11 = vmul.f32 %v92_v9, %v22_v6  ;;  %vm29_vm1 = vweird.f32 %v92_v9 }
  0x15   :  { %v44_v13 = vmul.f32 %v94_v10, %v42_v7  ;;  %vm49_vm3 = vweird.f32 %v94_v10  ;;  %vm30_vm4 = vmor %vm28_vm0, %vm29_vm1  ;;  %v96_v24 = vpop.eup %95 }
  0x16   :  { %v25_v14 = vsub.f32 1.0, %v24_v11  ;;  %vm50_vm6 = vmor %vm48_vm2, %vm49_vm3 }
  0x17   :  { %v45_v17 = vsub.f32 1.0, %v44_v13 }
  0x18   :  { %v26_v19 = vmul.f32 %v92_v9, %v25_v14 }
  0x19   :  { %v46_v21 = vmul.f32 %v94_v10, %v45_v17 }
  0x1a   :  { %v27_v22 = vadd.f32 %v92_v9, %v26_v19 }
  0x1b   :  { %v47_v25 = vadd.f32 %v94_v10, %v46_v21 }
  0x1c   :  { %v31_v27 = vsel %vm30_vm4, %v92_v9, %v27_v22 }
  0x1d   :  { %v36_v28 = vsel %vm33_vm5, %v35_v20, %v31_v27  ;;  %v51_v29 = vsel %vm50_vm6, %v94_v10, %v47_v25 }
  0x1e   :  { %v56_v30 = vsel %vm53_vm7, %v55_v23, %v51_v29  ;;  %v61_v31 = vmul.f32 %v60_v26, %v36_v28 }
  0x1f   :  { %v62_v32 = vsub.f32 1.0, %v56_v30  ;;  %v64_v33 = vmul.f32 %v96_v24, %v56_v30 }
  0x21   :  { %v63_v34 = vmul.f32 %v62_v32, %v61_v31 }
  0x23   :  { %v65_v35 = vadd.f32 %v64_v33, %v63_v34 }
  0x25   :  { %67 = vst.msk [vmem:[#allocation2] sm:$0xff] %vm66_vm8, %v65_v35 }
  0x26   :  { %78 = dma.vmem_to_hbm [thread:$0]  %s74_s21, 128, %s76_s24, [#allocation3]  }
  0x27   :  { %121 = dma.done.wait [#allocation3], 128  }
  0x28   :  { %122 = vsyncadd [#allocation3], 4294967168 }
  0x29   :  { %83 = vsyncpa [#allocation3], 1 }

// kernel: value_encoder_forward.44
= control target key start
LH: loop header
LB: loop body
LE: loop exit
PB: predicated region body
PF: predicated region fallthrough
CT: control target
= control target key end

     0   :  { %s649_s1 = inlined_call_operand.vmem [shape: bf16[512,128], index: 1, kind: input, shape index: {}]   ;;  %s650_s0 = inlined_call_operand.vmem [shape: bf16[8,512], index: 0, kind: input, shape index: {}]   ;;  %s651_s2 = inlined_call_operand.vmem [shape: f32[1,128], index: 2, kind: input, shape index: {}]   ;;  %s652_s3 = inlined_call_operand.vmem [shape: f32[8,128], index: 3, kind: output, shape index: {}]  }
   0x1   :  { %v495_v0 = vld [vmem:[%s649_s1 + $0x38] sm:$0xff]  ;;  %v494_v4 = vld [vmem:[%s649_s1 + $0x30] sm:$0xff]  ;;  %v493_v8 = vld [vmem:[%s649_s1 + $0x28] sm:$0xff] }
   0x2   :  { %v503_v1 = vld [vmem:[%s649_s1 + $0x78] sm:$0xff]  ;;  %292 = vmatpush.bf16.msra.mxu0 %v495_v0  ;;  %v502_v5 = vld [vmem:[%s649_s1 + $0x70] sm:$0xff]  ;;  %v501_v9 = vld [vmem:[%s649_s1 + $0x68] sm:$0xff] }
   0x3   :  { %v511_v2 = vld [vmem:[%s649_s1 + $0xb8] sm:$0xff]  ;;  %305 = vmatpush.bf16.msra.mxu1 %v503_v1  ;;  %v510_v6 = vld [vmem:[%s649_s1 + $0xb0] sm:$0xff]  ;;  %v509_v10 = vld [vmem:[%s649_s1 + $0xa8] sm:$0xff] }
   0x4   :  { %v519_v3 = vld [vmem:[%s649_s1 + $0xf8] sm:$0xff]  ;;  %318 = vmatpush.bf16.msra.mxu2 %v511_v2  ;;  %v518_v7 = vld [vmem:[%s649_s1 + $0xf0] sm:$0xff]  ;;  %v517_v11 = vld [vmem:[%s649_s1 + $0xe8] sm:$0xff] }
   0x5   :  { %331 = vmatpush.bf16.msra.mxu3 %v519_v3  ;;  %v492_v12 = vld [vmem:[%s649_s1 + $0x20] sm:$0xff]  ;;  %v491_v16 = vld [vmem:[%s649_s1 + $0x18] sm:$0xff]  ;;  %v490_v20 = vld [vmem:[%s649_s1 + $0x10] sm:$0xff] }
   0x6   :  { %293 = vmatpush.bf16.msra.mxu0 %v494_v4  ;;  %v500_v13 = vld [vmem:[%s649_s1 + $0x60] sm:$0xff]  ;;  %v499_v17 = vld [vmem:[%s649_s1 + $0x58] sm:$0xff]  ;;  %v498_v21 = vld [vmem:[%s649_s1 + $0x50] sm:$0xff] }
   0x7   :  { %306 = vmatpush.bf16.msra.mxu1 %v502_v5  ;;  %v508_v14 = vld [vmem:[%s649_s1 + $0xa0] sm:$0xff]  ;;  %v507_v18 = vld [vmem:[%s649_s1 + $0x98] sm:$0xff]  ;;  %v506_v22 = vld [vmem:[%s649_s1 + $0x90] sm:$0xff] }
   0x8   :  { %319 = vmatpush.bf16.msra.mxu2 %v510_v6  ;;  %v516_v15 = vld [vmem:[%s649_s1 + $0xe0] sm:$0xff]  ;;  %v515_v19 = vld [vmem:[%s649_s1 + $0xd8] sm:$0xff]  ;;  %v514_v23 = vld [vmem:[%s649_s1 + $0xd0] sm:$0xff] }
   0x9   :  { %332 = vmatpush.bf16.msra.mxu3 %v518_v7  ;;  %v489_v24 = vld [vmem:[%s649_s1 + $0x8] sm:$0xff]  ;;  %v19_v26 = vld [vmem:[%s650_s0] sm:$0xff] }
   0xa   :  { %294 = vmatpush.bf16.msra.mxu0 %v493_v8  ;;  %v497_v25 = vld [vmem:[%s649_s1 + $0x48] sm:$0xff]  ;;  %v88_v30 = vunpack.c.l.b16 %v19_v26  ;;  %v89_v31 = vunpack.c.h.b16 %v19_v26  ;;  %v488_v32 = vld [vmem:[%s649_s1] sm:$0xff] }
   0xb   :  { %307 = vmatpush.bf16.msra.mxu1 %v501_v9  ;;  %v505_v27 = vld [vmem:[%s649_s1 + $0x88] sm:$0xff]  ;;  %v496_v33 = vld [vmem:[%s649_s1 + $0x40] sm:$0xff] }
   0xc   :  { %320 = vmatpush.bf16.msra.mxu2 %v509_v10  ;;  %v513_v28 = vld [vmem:[%s649_s1 + $0xc8] sm:$0xff]  ;;  %v504_v36 = vld [vmem:[%s649_s1 + $0x80] sm:$0xff]  ;;  %v92_v38 = vpack.c.b16 %v88_v30, %v88_v30  ;;  %v93_v39 = vpack.c.b16 %v89_v31, %v89_v31 }
   0xd   :  { %333 = vmatpush.bf16.msra.mxu3 %v517_v11  ;;  %v20_v29 = vld [vmem:[%s650_s0 + $0x8] sm:$0xff]  ;;  %v512_v37 = vld [vmem:[%s649_s1 + $0xc0] sm:$0xff] }
   0xe   :  { %295 = vmatpush.bf16.msra.mxu0 %v492_v12  ;;  %v90_v34 = vunpack.c.l.b16 %v20_v29  ;;  %v91_v35 = vunpack.c.h.b16 %v20_v29  ;;  %v520_v48 = vld [vmem:[%s651_s2] ss:$0 sm:$0xff] }
   0xf   :  { %308 = vmatpush.bf16.msra.mxu1 %v500_v13 }
  0x10   :  { %321 = vmatpush.bf16.msra.mxu2 %v508_v14  ;;  %v94_v40 = vpack.c.b16 %v90_v34, %v90_v34  ;;  %v95_v41 = vpack.c.b16 %v91_v35, %v91_v35 }
  0x11   :  { %334 = vmatpush.bf16.msra.mxu3 %v516_v15 }
  0x12   :  { %296 = vmatpush.bf16.msra.mxu0 %v491_v16 }
  0x13   :  { %309 = vmatpush.bf16.msra.mxu1 %v499_v17 }
  0x14   :  { %322 = vmatpush.bf16.msra.mxu2 %v507_v18 }
  0x15   :  { %335 = vmatpush.bf16.msra.mxu3 %v515_v19 }
  0x16   :  { %297 = vmatpush.bf16.msra.mxu0 %v490_v20 }
  0x17   :  { %310 = vmatpush.bf16.msra.mxu1 %v498_v21 }
  0x18   :  { %323 = vmatpush.bf16.msra.mxu2 %v506_v22 }
  0x19   :  { %336 = vmatpush.bf16.msra.mxu3 %v514_v23 }
  0x1a   :  { %298 = vmatpush.bf16.msra.mxu0 %v489_v24 }
  0x1b   :  { %311 = vmatpush.bf16.msra.mxu1 %v497_v25 }
  0x1c   :  { %324 = vmatpush.bf16.msra.mxu2 %v505_v27 }
  0x1d   :  { %337 = vmatpush.bf16.msra.mxu3 %v513_v28 }
  0x1e   :  { %299 = vmatpush.bf16.msra.mxu0 %v488_v32 }
  0x1f   :  { %312 = vmatpush.bf16.msra.mxu1 %v496_v33 }
  0x20   :  { %325 = vmatpush.bf16.msra.mxu2 %v504_v36 }
  0x21   :  { %338 = vmatpush.bf16.msra.mxu3 %v512_v37  ;;  %300 = vmatmul.bf16.vlgmr.msra.gmra.mxu0 %v92_v38 }
  0x22   :  { %313 = vmatmul.bf16.vlgmr.msra.gmra.mxu1 %v93_v39 }
  0x23   :  { %326 = vmatmul.bf16.vlgmr.msra.gmra.mxu2 %v94_v40 }
  0x24   :  { %339 = vmatmul.bf16.vlgmr.msra.gmra.mxu3 %v95_v41 }
  0x9e   :  { %v301_v42 = vpop.f32.mrf.mxu0 }
  0x9f   :  { %v314_v43 = vpop.f32.mrf.mxu1 }
  0xa0   :  { %v315_v44 = vadd.f32 %v314_v43, %v301_v42 }
  0xa6   :  { %v327_v45 = vpop.f32.mrf.mxu2  ;;  %v303_v49 = vpop.f32.mrf.mxu0 }
  0xa7   :  { %v340_v46 = vpop.f32.mrf.mxu3  ;;  %v328_v47 = vadd.f32 %v327_v45, %v315_v44  ;;  %v316_v50 = vpop.f32.mrf.mxu1 }
  0xa9   :  { %v341_v51 = vadd.f32 %v340_v46, %v328_v47 }
  0xab   :  { %v354_v52 = vadd.f32 %v520_v48, %v341_v51 }
  0xad   :  { %355 = vst [vmem:[%s652_s3] sm:$0xff] %v354_v52 }
  0xae   :  { %v329_v53 = vpop.f32.mrf.mxu2 }
  0xaf   :  { %v342_v54 = vpop.f32.mrf.mxu3 }

</bundles_post_ra>
